<compile_context>
chip_gen: v7x
topology: tpu7x:2x2x1
jax: 0.10.0
libtpu: 0.0.40
codegen_flags: <defaults>
</compile_context>

<pallas_src>
import functools

import jax
import jax.numpy as jnp
import numpy as np
from jax import lax
from jax.experimental import pallas as pl
from jax.experimental.pallas import tpu as pltpu

EPS = 1e-5  # PyTorch BatchNorm2d default


def _bn_affine(z2d, gamma, beta, inv_n):
    """Training-mode BatchNorm2d folded into one per-channel affine.

    One pass over z for the statistics (sum and sum-of-squares), then the
    normalization is applied as z * scale + shift.
    """
    s1 = jnp.sum(z2d, axis=0, keepdims=True)            # (1, C)
    s2 = jnp.sum(z2d * z2d, axis=0, keepdims=True)      # (1, C)
    mu = s1 * inv_n
    var = s2 * inv_n - mu * mu                          # biased variance
    scale = gamma * lax.rsqrt(var + EPS)                # (1, C)
    shift = beta - mu * scale                           # (1, C)
    return z2d * scale + shift


def _inverted_residual_kernel(
    x_ref, w1_ref, g1_ref, b1_ref, dw_ref, g2_ref, b2_ref,
    w3_ref, g3_ref, b3_ref, o_ref, pad_ref,
    *, stride, use_residual, dims):
    N, H, W, Cin, Ce, Cout, Ho, Wo = dims

    # ---- 1x1 expansion conv (MXU matmul over channels) + folded BN + ReLU6 ----
    x = x_ref[...]                                            # (N, H, W, Cin)
    h2d = jnp.dot(x.reshape(N * H * W, Cin), w1_ref[...],
                  preferred_element_type=jnp.float32)         # (N*H*W, Ce)
    h2d = jnp.clip(
        _bn_affine(h2d, g1_ref[...], b1_ref[...], 1.0 / (N * H * W)), 0.0, 6.0)
    h = h2d.reshape(N, H, W, Ce)

    # ---- 3x3 depthwise conv, padding=1, stride ----
    # Padded staging buffer in VMEM scratch. Scratch is uninitialized, so the
    # 1-element halo is zeroed explicitly; NO full-buffer zero fill.
    pad_ref[:, 0:1, :, :] = jnp.zeros((N, 1, W + 2, Ce), jnp.float32)
    pad_ref[:, H + 1:H + 2, :, :] = jnp.zeros((N, 1, W + 2, Ce), jnp.float32)
    pad_ref[:, :, 0:1, :] = jnp.zeros((N, H + 2, 1, Ce), jnp.float32)
    pad_ref[:, :, W + 1:W + 2, :] = jnp.zeros((N, H + 2, 1, Ce), jnp.float32)
    pad_ref[:, 1:H + 1, 1:W + 1, :] = h

    acc = jnp.zeros((N, Ho, Wo, Ce), jnp.float32)
    if stride == 1:
        # Load the padded tensor once; the 9 shifted windows are value slices,
        # avoiding 9 separate reloads of the scratch from VMEM.
        hp = pad_ref[...]
        for ki in range(3):
            for kj in range(3):
                k = ki * 3 + kj
                wk = dw_ref[k:k + 1, :].reshape(1, 1, 1, Ce)
                acc = acc + hp[:, ki:ki + Ho, kj:kj + Wo, :] * wk
    else:
        # General strided path (not exercised by the small test below).
        for ki in range(3):
            for kj in range(3):
                k = ki * 3 + kj
                wk = dw_ref[k:k + 1, :].reshape(1, 1, 1, Ce)
                win = pad_ref[:, pl.ds(ki, Ho, stride), pl.ds(kj, Wo, stride), :]
                acc = acc + win * wk

    acc2d = acc.reshape(N * Ho * Wo, Ce)
    acc2d = jnp.clip(
        _bn_affine(acc2d, g2_ref[...], b2_ref[...], 1.0 / (N * Ho * Wo)),
        0.0, 6.0)

    # ---- 1x1 projection conv (MXU) + folded BN (no activation) ----
    y2d = jnp.dot(acc2d, w3_ref[...], preferred_element_type=jnp.float32)
    y2d = _bn_affine(y2d, g3_ref[...], b3_ref[...], 1.0 / (N * Ho * Wo))
    y = y2d.reshape(N, Ho, Wo, Cout)

    if use_residual:
        y = y + x
    o_ref[...] = y


def inverted_residual_block(x_nchw, params, *, stride):
    """Wrapper: PyTorch-shaped params & NCHW input -> NCHW output."""
    N, Cin, H, W = x_nchw.shape
    w1_t = params["conv1_w"]        # (Ce, Cin, 1, 1)
    wd_t = params["dw_w"]           # (Ce, 1, 3, 3)
    wp_t = params["proj_w"]         # (Cout, Ce, 1, 1)
    Ce = w1_t.shape[0]
    Cout = wp_t.shape[0]
    Ho = (H + 2 - 3) // stride + 1
    Wo = (W + 2 - 3) // stride + 1
    use_residual = (stride == 1 and Cin == Cout)

    # NCHW -> NHWC and reshape weights for the kernel.
    x = jnp.transpose(x_nchw, (0, 2, 3, 1)).astype(jnp.float32)        # (N,H,W,Cin)
    w1 = jnp.transpose(w1_t[:, :, 0, 0], (1, 0))                        # (Cin, Ce)
    dw = jnp.transpose(wd_t[:, 0, :, :], (1, 2, 0)).reshape(9, Ce)      # (9, Ce)
    w3 = jnp.transpose(wp_t[:, :, 0, 0], (1, 0))                        # (Ce, Cout)
    g1 = params["bn1_g"].reshape(1, Ce)
    b1 = params["bn1_b"].reshape(1, Ce)
    g2 = params["bn2_g"].reshape(1, Ce)
    b2 = params["bn2_b"].reshape(1, Ce)
    g3 = params["bn3_g"].reshape(1, Cout)
    b3 = params["bn3_b"].reshape(1, Cout)

    dims = (N, H, W, Cin, Ce, Cout, Ho, Wo)
    kernel = functools.partial(
        _inverted_residual_kernel,
        stride=stride, use_residual=use_residual, dims=dims)

    vmem = pl.BlockSpec(memory_space=pltpu.MemorySpace.VMEM)
    out_nhwc = pl.pallas_call(
        kernel,
        out_shape=jax.ShapeDtypeStruct((N, Ho, Wo, Cout), jnp.float32),
        in_specs=[vmem] * 10,
        out_specs=vmem,
        scratch_shapes=[pltpu.VMEM((N, H + 2, W + 2, Ce), jnp.float32)],
        compiler_params=pltpu.CompilerParams(
            vmem_limit_bytes=64 * 1024 * 1024),
    )(x, w1, g1, b1, dw, g2, b2, w3, g3, b3)

    return jnp.transpose(out_nhwc, (0, 3, 1, 2))   # back to NCHW


def reference_forward(x, p, *, stride):
    """Pure-JAX reference using lax conv + explicit training-mode BN (NCHW)."""
    def bn(z, g, b):
        mu = jnp.mean(z, axis=(0, 2, 3), keepdims=True)
        var = jnp.mean((z - mu) ** 2, axis=(0, 2, 3), keepdims=True)
        return ((z - mu) / jnp.sqrt(var + EPS)
                * g.reshape(1, -1, 1, 1) + b.reshape(1, -1, 1, 1))

    dn = ("NCHW", "OIHW", "NCHW")
    Ce = p["conv1_w"].shape[0]
    Cout = p["proj_w"].shape[0]
    z = lax.conv_general_dilated(x, p["conv1_w"], (1, 1), "VALID",
                                 dimension_numbers=dn)
    z = jnp.clip(bn(z, p["bn1_g"], p["bn1_b"]), 0.0, 6.0)
    z = lax.conv_general_dilated(z, p["dw_w"], (stride, stride),
                                 ((1, 1), (1, 1)), dimension_numbers=dn,
                                 feature_group_count=Ce)
    z = jnp.clip(bn(z, p["bn2_g"], p["bn2_b"]), 0.0, 6.0)
    z = lax.conv_general_dilated(z, p["proj_w"], (1, 1), "VALID",
                                 dimension_numbers=dn)
    z = bn(z, p["bn3_g"], p["bn3_b"])
    if stride == 1 and x.shape[1] == Cout:
        z = x + z
    return z


if __name__ == "__main__":
    # Small shapes consistent with the module: in=out=4, expansion=4, stride=1
    N, Cin, H, W = 2, 4, 16, 16
    expansion, stride = 4, 1
    Cout = 4
    Ce = Cin * expansion

    key = jax.random.PRNGKey(0)
    ks = jax.random.split(key, 10)
    params = {
        "conv1_w": 0.2 * jax.random.normal(ks[0], (Ce, Cin, 1, 1), jnp.float32),
        "dw_w":    0.2 * jax.random.normal(ks[1], (Ce, 1, 3, 3), jnp.float32),
        "proj_w":  0.2 * jax.random.normal(ks[2], (Cout, Ce, 1, 1), jnp.float32),
        "bn1_g": 1.0 + 0.1 * jax.random.normal(ks[3], (Ce,), jnp.float32),
        "bn1_b": 0.1 * jax.random.normal(ks[4], (Ce,), jnp.float32),
        "bn2_g": 1.0 + 0.1 * jax.random.normal(ks[5], (Ce,), jnp.float32),
        "bn2_b": 0.1 * jax.random.normal(ks[6], (Ce,), jnp.float32),
        "bn3_g": 1.0 + 0.1 * jax.random.normal(ks[7], (Cout,), jnp.float32),
        "bn3_b": 0.1 * jax.random.normal(ks[8], (Cout,), jnp.float32),
    }
    x = jax.random.normal(ks[9], (N, Cin, H, W), jnp.float32)

    out = inverted_residual_block(x, params, stride=stride)
    out = jax.block_until_ready(out)

    ref = jax.block_until_ready(reference_forward(x, params, stride=stride))
    np.testing.assert_allclose(np.asarray(out), np.asarray(ref),
                               rtol=2e-4, atol=2e-4)
    print("KERNEL_OK")
</pallas_src>

<mosaic_0001>
module attributes {stable_mosaic.version = 11 : i64} {
  func.func @_inverted_residual_kernel(%arg0: memref<2x16x16x4xf32, #tpu.memory_space<vmem>>, %arg1: memref<4x16xf32, #tpu.memory_space<vmem>>, %arg2: memref<1x16xf32, #tpu.memory_space<vmem>>, %arg3: memref<1x16xf32, #tpu.memory_space<vmem>>, %arg4: memref<9x16xf32, #tpu.memory_space<vmem>>, %arg5: memref<1x16xf32, #tpu.memory_space<vmem>>, %arg6: memref<1x16xf32, #tpu.memory_space<vmem>>, %arg7: memref<16x4xf32, #tpu.memory_space<vmem>>, %arg8: memref<1x4xf32, #tpu.memory_space<vmem>>, %arg9: memref<1x4xf32, #tpu.memory_space<vmem>>, %arg10: memref<2x16x16x4xf32, #tpu.memory_space<vmem>>, %arg11: memref<2x18x18x16xf32, #tpu.memory_space<vmem>>) attributes {dimension_semantics = [], scalar_prefetch = 0 : i64, scratch_operands = 1 : i64, tpu.core_type = #tpu.core_type<tc>} {
    %c0 = arith.constant 0 : index
    %c0_0 = arith.constant 0 : index
    %c0_1 = arith.constant 0 : index
    %c0_2 = arith.constant 0 : index
    %0 = vector.load %arg0[%c0, %c0_0, %c0_1, %c0_2] : memref<2x16x16x4xf32, #tpu.memory_space<vmem>>, vector<2x16x16x4xf32>
    %1 = vector.shape_cast %0 : vector<2x16x16x4xf32> to vector<512x4xf32>
    %c0_3 = arith.constant 0 : index
    %c0_4 = arith.constant 0 : index
    %2 = vector.load %arg1[%c0_3, %c0_4] : memref<4x16xf32, #tpu.memory_space<vmem>>, vector<4x16xf32>
    %cst = arith.constant dense<0.000000e+00> : vector<512x16xf32>
    %3 = tpu.matmul %1, %2, %cst {dimension_numbers = #tpu.dot_dimension_numbers<[1], [0], [0], [1], [0, 0, 1, 1], [], []>} : vector<512x4xf32>, vector<4x16xf32>, vector<512x16xf32> -> vector<512x16xf32>
    %c0_5 = arith.constant 0 : index
    %c0_6 = arith.constant 0 : index
    %4 = vector.load %arg2[%c0_5, %c0_6] : memref<1x16xf32, #tpu.memory_space<vmem>>, vector<1x16xf32>
    %c0_7 = arith.constant 0 : index
    %c0_8 = arith.constant 0 : index
    %5 = vector.load %arg3[%c0_7, %c0_8] : memref<1x16xf32, #tpu.memory_space<vmem>>, vector<1x16xf32>
    %cst_9 = arith.constant dense<0.000000e+00> : vector<16xf32>
    %6 = vector.multi_reduction <add>, %3, %cst_9 [0] : vector<512x16xf32> to vector<16xf32>
    %7 = vector.shape_cast %6 : vector<16xf32> to vector<1x16xf32>
    %8 = arith.mulf %3, %3 : vector<512x16xf32>
    %cst_10 = arith.constant dense<0.000000e+00> : vector<16xf32>
    %9 = vector.multi_reduction <add>, %8, %cst_10 [0] : vector<512x16xf32> to vector<16xf32>
    %10 = vector.shape_cast %9 : vector<16xf32> to vector<1x16xf32>
    %cst_11 = arith.constant 0.001953125 : f32
    %11 = vector.broadcast %cst_11 : f32 to vector<1x16xf32>
    %12 = arith.mulf %7, %11 : vector<1x16xf32>
    %cst_12 = arith.constant 0.001953125 : f32
    %13 = vector.broadcast %cst_12 : f32 to vector<1x16xf32>
    %14 = arith.mulf %10, %13 : vector<1x16xf32>
    %15 = arith.mulf %12, %12 : vector<1x16xf32>
    %16 = arith.subf %14, %15 : vector<1x16xf32>
    %cst_13 = arith.constant 9.99999974E-6 : f32
    %17 = vector.broadcast %cst_13 : f32 to vector<1x16xf32>
    %18 = arith.addf %16, %17 : vector<1x16xf32>
    %19 = math.rsqrt %18 : vector<1x16xf32>
    %20 = arith.mulf %4, %19 : vector<1x16xf32>
    %21 = arith.mulf %12, %20 : vector<1x16xf32>
    %22 = arith.subf %5, %21 : vector<1x16xf32>
    %23 = vector.broadcast %20 : vector<1x16xf32> to vector<512x16xf32>
    %24 = arith.mulf %3, %23 : vector<512x16xf32>
    %25 = vector.broadcast %22 : vector<1x16xf32> to vector<512x16xf32>
    %26 = arith.addf %24, %25 : vector<512x16xf32>
    %cst_14 = arith.constant 0.000000e+00 : f32
    %cst_15 = arith.constant 6.000000e+00 : f32
    %27 = vector.broadcast %cst_14 : f32 to vector<512x16xf32>
    %28 = arith.maximumf %27, %26 : vector<512x16xf32>
    %29 = vector.broadcast %cst_15 : f32 to vector<512x16xf32>
    %30 = arith.minimumf %29, %28 : vector<512x16xf32>
    %31 = vector.shape_cast %30 : vector<512x16xf32> to vector<2x16x16x16xf32>
    %cst_16 = arith.constant 0.000000e+00 : f32
    %32 = vector.broadcast %cst_16 : f32 to vector<2x1x18x16xf32>
    %c0_17 = arith.constant 0 : index
    %c0_18 = arith.constant 0 : index
    %c0_19 = arith.constant 0 : index
    %c0_20 = arith.constant 0 : index
    %33 = vector.load %arg11[%c0_17, %c0_18, %c0_19, %c0_20] : memref<2x18x18x16xf32, #tpu.memory_space<vmem>>, vector<2x1x18x16xf32>
    tpu.vector_store %arg11[%c0_17, %c0_18, %c0_19, %c0_20], %32 {strides = array<i32>} : memref<2x18x18x16xf32, #tpu.memory_space<vmem>>, vector<2x1x18x16xf32>,
    %cst_21 = arith.constant 0.000000e+00 : f32
    %34 = vector.broadcast %cst_21 : f32 to vector<2x1x18x16xf32>
    %c0_22 = arith.constant 0 : index
    %c17 = arith.constant 17 : index
    %c0_23 = arith.constant 0 : index
    %c0_24 = arith.constant 0 : index
    %35 = vector.load %arg11[%c0_22, %c17, %c0_23, %c0_24] : memref<2x18x18x16xf32, #tpu.memory_space<vmem>>, vector<2x1x18x16xf32>
    tpu.vector_store %arg11[%c0_22, %c17, %c0_23, %c0_24], %34 {strides = array<i32>} : memref<2x18x18x16xf32, #tpu.memory_space<vmem>>, vector<2x1x18x16xf32>,
    %cst_25 = arith.constant 0.000000e+00 : f32
    %36 = vector.broadcast %cst_25 : f32 to vector<2x18x1x16xf32>
    %c0_26 = arith.constant 0 : index
    %c0_27 = arith.constant 0 : index
    %c0_28 = arith.constant 0 : index
    %c0_29 = arith.constant 0 : index
    %37 = vector.load %arg11[%c0_26, %c0_27, %c0_28, %c0_29] : memref<2x18x18x16xf32, #tpu.memory_space<vmem>>, vector<2x18x1x16xf32>
    tpu.vector_store %arg11[%c0_26, %c0_27, %c0_28, %c0_29], %36 {strides = array<i32>} : memref<2x18x18x16xf32, #tpu.memory_space<vmem>>, vector<2x18x1x16xf32>,
    %cst_30 = arith.constant 0.000000e+00 : f32
    %38 = vector.broadcast %cst_30 : f32 to vector<2x18x1x16xf32>
    %c0_31 = arith.constant 0 : index
    %c0_32 = arith.constant 0 : index
    %c17_33 = arith.constant 17 : index
    %c0_34 = arith.constant 0 : index
    %39 = vector.load %arg11[%c0_31, %c0_32, %c17_33, %c0_34] : memref<2x18x18x16xf32, #tpu.memory_space<vmem>>, vector<2x18x1x16xf32>
    tpu.vector_store %arg11[%c0_31, %c0_32, %c17_33, %c0_34], %38 {strides = array<i32>} : memref<2x18x18x16xf32, #tpu.memory_space<vmem>>, vector<2x18x1x16xf32>,
    %c0_35 = arith.constant 0 : index
    %c1 = arith.constant 1 : index
    %c1_36 = arith.constant 1 : index
    %c0_37 = arith.constant 0 : index
    %40 = vector.load %arg11[%c0_35, %c1, %c1_36, %c0_37] : memref<2x18x18x16xf32, #tpu.memory_space<vmem>>, vector<2x16x16x16xf32>
    tpu.vector_store %arg11[%c0_35, %c1, %c1_36, %c0_37], %31 {strides = array<i32>} : memref<2x18x18x16xf32, #tpu.memory_space<vmem>>, vector<2x16x16x16xf32>,
    %cst_38 = arith.constant 0.000000e+00 : f32
    %41 = vector.broadcast %cst_38 : f32 to vector<2x16x16x16xf32>
    %c0_39 = arith.constant 0 : index
    %c0_40 = arith.constant 0 : index
    %c0_41 = arith.constant 0 : index
    %c0_42 = arith.constant 0 : index
    %42 = vector.load %arg11[%c0_39, %c0_40, %c0_41, %c0_42] : memref<2x18x18x16xf32, #tpu.memory_space<vmem>>, vector<2x18x18x16xf32>
    %c0_43 = arith.constant 0 : index
    %c0_44 = arith.constant 0 : index
    %43 = vector.load %arg4[%c0_43, %c0_44] : memref<9x16xf32, #tpu.memory_space<vmem>>, vector<1x16xf32>
    %44 = vector.shape_cast %43 : vector<1x16xf32> to vector<1x1x1x16xf32>
    %45 = vector.extract_strided_slice %42 {offsets = [0, 0, 0, 0], sizes = [2, 16, 16, 16], strides = [1, 1, 1, 1]} : vector<2x18x18x16xf32> to vector<2x16x16x16xf32>
    %46 = vector.broadcast %44 : vector<1x1x1x16xf32> to vector<2x16x16x16xf32>
    %47 = arith.mulf %45, %46 : vector<2x16x16x16xf32>
    %48 = arith.addf %41, %47 : vector<2x16x16x16xf32>
    %c1_45 = arith.constant 1 : index
    %c0_46 = arith.constant 0 : index
    %49 = vector.load %arg4[%c1_45, %c0_46] : memref<9x16xf32, #tpu.memory_space<vmem>>, vector<1x16xf32>
    %50 = vector.shape_cast %49 : vector<1x16xf32> to vector<1x1x1x16xf32>
    %51 = vector.extract_strided_slice %42 {offsets = [0, 0, 1, 0], sizes = [2, 16, 16, 16], strides = [1, 1, 1, 1]} : vector<2x18x18x16xf32> to vector<2x16x16x16xf32>
    %52 = vector.broadcast %50 : vector<1x1x1x16xf32> to vector<2x16x16x16xf32>
    %53 = arith.mulf %51, %52 : vector<2x16x16x16xf32>
    %54 = arith.addf %48, %53 : vector<2x16x16x16xf32>
    %c2 = arith.constant 2 : index
    %c0_47 = arith.constant 0 : index
    %55 = vector.load %arg4[%c2, %c0_47] : memref<9x16xf32, #tpu.memory_space<vmem>>, vector<1x16xf32>
    %56 = vector.shape_cast %55 : vector<1x16xf32> to vector<1x1x1x16xf32>
    %57 = vector.extract_strided_slice %42 {offsets = [0, 0, 2, 0], sizes = [2, 16, 16, 16], strides = [1, 1, 1, 1]} : vector<2x18x18x16xf32> to vector<2x16x16x16xf32>
    %58 = vector.broadcast %56 : vector<1x1x1x16xf32> to vector<2x16x16x16xf32>
    %59 = arith.mulf %57, %58 : vector<2x16x16x16xf32>
    %60 = arith.addf %54, %59 : vector<2x16x16x16xf32>
    %c3 = arith.constant 3 : index
    %c0_48 = arith.constant 0 : index
    %61 = vector.load %arg4[%c3, %c0_48] : memref<9x16xf32, #tpu.memory_space<vmem>>, vector<1x16xf32>
    %62 = vector.shape_cast %61 : vector<1x16xf32> to vector<1x1x1x16xf32>
    %63 = vector.extract_strided_slice %42 {offsets = [0, 1, 0, 0], sizes = [2, 16, 16, 16], strides = [1, 1, 1, 1]} : vector<2x18x18x16xf32> to vector<2x16x16x16xf32>
    %64 = vector.broadcast %62 : vector<1x1x1x16xf32> to vector<2x16x16x16xf32>
    %65 = arith.mulf %63, %64 : vector<2x16x16x16xf32>
    %66 = arith.addf %60, %65 : vector<2x16x16x16xf32>
    %c4 = arith.constant 4 : index
    %c0_49 = arith.constant 0 : index
    %67 = vector.load %arg4[%c4, %c0_49] : memref<9x16xf32, #tpu.memory_space<vmem>>, vector<1x16xf32>
    %68 = vector.shape_cast %67 : vector<1x16xf32> to vector<1x1x1x16xf32>
    %69 = vector.extract_strided_slice %42 {offsets = [0, 1, 1, 0], sizes = [2, 16, 16, 16], strides = [1, 1, 1, 1]} : vector<2x18x18x16xf32> to vector<2x16x16x16xf32>
    %70 = vector.broadcast %68 : vector<1x1x1x16xf32> to vector<2x16x16x16xf32>
    %71 = arith.mulf %69, %70 : vector<2x16x16x16xf32>
    %72 = arith.addf %66, %71 : vector<2x16x16x16xf32>
    %c5 = arith.constant 5 : index
    %c0_50 = arith.constant 0 : index
    %73 = vector.load %arg4[%c5, %c0_50] : memref<9x16xf32, #tpu.memory_space<vmem>>, vector<1x16xf32>
    %74 = vector.shape_cast %73 : vector<1x16xf32> to vector<1x1x1x16xf32>
    %75 = vector.extract_strided_slice %42 {offsets = [0, 1, 2, 0], sizes = [2, 16, 16, 16], strides = [1, 1, 1, 1]} : vector<2x18x18x16xf32> to vector<2x16x16x16xf32>
    %76 = vector.broadcast %74 : vector<1x1x1x16xf32> to vector<2x16x16x16xf32>
    %77 = arith.mulf %75, %76 : vector<2x16x16x16xf32>
    %78 = arith.addf %72, %77 : vector<2x16x16x16xf32>
    %c6 = arith.constant 6 : index
    %c0_51 = arith.constant 0 : index
    %79 = vector.load %arg4[%c6, %c0_51] : memref<9x16xf32, #tpu.memory_space<vmem>>, vector<1x16xf32>
    %80 = vector.shape_cast %79 : vector<1x16xf32> to vector<1x1x1x16xf32>
    %81 = vector.extract_strided_slice %42 {offsets = [0, 2, 0, 0], sizes = [2, 16, 16, 16], strides = [1, 1, 1, 1]} : vector<2x18x18x16xf32> to vector<2x16x16x16xf32>
    %82 = vector.broadcast %80 : vector<1x1x1x16xf32> to vector<2x16x16x16xf32>
    %83 = arith.mulf %81, %82 : vector<2x16x16x16xf32>
    %84 = arith.addf %78, %83 : vector<2x16x16x16xf32>
    %c7 = arith.constant 7 : index
    %c0_52 = arith.constant 0 : index
    %85 = vector.load %arg4[%c7, %c0_52] : memref<9x16xf32, #tpu.memory_space<vmem>>, vector<1x16xf32>
    %86 = vector.shape_cast %85 : vector<1x16xf32> to vector<1x1x1x16xf32>
    %87 = vector.extract_strided_slice %42 {offsets = [0, 2, 1, 0], sizes = [2, 16, 16, 16], strides = [1, 1, 1, 1]} : vector<2x18x18x16xf32> to vector<2x16x16x16xf32>
    %88 = vector.broadcast %86 : vector<1x1x1x16xf32> to vector<2x16x16x16xf32>
    %89 = arith.mulf %87, %88 : vector<2x16x16x16xf32>
    %90 = arith.addf %84, %89 : vector<2x16x16x16xf32>
    %c8 = arith.constant 8 : index
    %c0_53 = arith.constant 0 : index
    %91 = vector.load %arg4[%c8, %c0_53] : memref<9x16xf32, #tpu.memory_space<vmem>>, vector<1x16xf32>
    %92 = vector.shape_cast %91 : vector<1x16xf32> to vector<1x1x1x16xf32>
    %93 = vector.extract_strided_slice %42 {offsets = [0, 2, 2, 0], sizes = [2, 16, 16, 16], strides = [1, 1, 1, 1]} : vector<2x18x18x16xf32> to vector<2x16x16x16xf32>
    %94 = vector.broadcast %92 : vector<1x1x1x16xf32> to vector<2x16x16x16xf32>
    %95 = arith.mulf %93, %94 : vector<2x16x16x16xf32>
    %96 = arith.addf %90, %95 : vector<2x16x16x16xf32>
    %97 = vector.shape_cast %96 : vector<2x16x16x16xf32> to vector<512x16xf32>
    %c0_54 = arith.constant 0 : index
    %c0_55 = arith.constant 0 : index
    %98 = vector.load %arg5[%c0_54, %c0_55] : memref<1x16xf32, #tpu.memory_space<vmem>>, vector<1x16xf32>
    %c0_56 = arith.constant 0 : index
    %c0_57 = arith.constant 0 : index
    %99 = vector.load %arg6[%c0_56, %c0_57] : memref<1x16xf32, #tpu.memory_space<vmem>>, vector<1x16xf32>
    %cst_58 = arith.constant dense<0.000000e+00> : vector<16xf32>
    %100 = vector.multi_reduction <add>, %97, %cst_58 [0] : vector<512x16xf32> to vector<16xf32>
    %101 = vector.shape_cast %100 : vector<16xf32> to vector<1x16xf32>
    %102 = arith.mulf %97, %97 : vector<512x16xf32>
    %cst_59 = arith.constant dense<0.000000e+00> : vector<16xf32>
    %103 = vector.multi_reduction <add>, %102, %cst_59 [0] : vector<512x16xf32> to vector<16xf32>
    %104 = vector.shape_cast %103 : vector<16xf32> to vector<1x16xf32>
    %cst_60 = arith.constant 0.001953125 : f32
    %105 = vector.broadcast %cst_60 : f32 to vector<1x16xf32>
    %106 = arith.mulf %101, %105 : vector<1x16xf32>
    %cst_61 = arith.constant 0.001953125 : f32
    %107 = vector.broadcast %cst_61 : f32 to vector<1x16xf32>
    %108 = arith.mulf %104, %107 : vector<1x16xf32>
    %109 = arith.mulf %106, %106 : vector<1x16xf32>
    %110 = arith.subf %108, %109 : vector<1x16xf32>
    %cst_62 = arith.constant 9.99999974E-6 : f32
    %111 = vector.broadcast %cst_62 : f32 to vector<1x16xf32>
    %112 = arith.addf %110, %111 : vector<1x16xf32>
    %113 = math.rsqrt %112 : vector<1x16xf32>
    %114 = arith.mulf %98, %113 : vector<1x16xf32>
    %115 = arith.mulf %106, %114 : vector<1x16xf32>
    %116 = arith.subf %99, %115 : vector<1x16xf32>
    %117 = vector.broadcast %114 : vector<1x16xf32> to vector<512x16xf32>
    %118 = arith.mulf %97, %117 : vector<512x16xf32>
    %119 = vector.broadcast %116 : vector<1x16xf32> to vector<512x16xf32>
    %120 = arith.addf %118, %119 : vector<512x16xf32>
    %cst_63 = arith.constant 0.000000e+00 : f32
    %cst_64 = arith.constant 6.000000e+00 : f32
    %121 = vector.broadcast %cst_63 : f32 to vector<512x16xf32>
    %122 = arith.maximumf %121, %120 : vector<512x16xf32>
    %123 = vector.broadcast %cst_64 : f32 to vector<512x16xf32>
    %124 = arith.minimumf %123, %122 : vector<512x16xf32>
    %c0_65 = arith.constant 0 : index
    %c0_66 = arith.constant 0 : index
    %125 = vector.load %arg7[%c0_65, %c0_66] : memref<16x4xf32, #tpu.memory_space<vmem>>, vector<16x4xf32>
    %cst_67 = arith.constant dense<0.000000e+00> : vector<512x4xf32>
    %126 = tpu.matmul %124, %125, %cst_67 {dimension_numbers = #tpu.dot_dimension_numbers<[1], [0], [0], [1], [0, 0, 1, 1], [], []>} : vector<512x16xf32>, vector<16x4xf32>, vector<512x4xf32> -> vector<512x4xf32>
    %c0_68 = arith.constant 0 : index
    %c0_69 = arith.constant 0 : index
    %127 = vector.load %arg8[%c0_68, %c0_69] : memref<1x4xf32, #tpu.memory_space<vmem>>, vector<1x4xf32>
    %c0_70 = arith.constant 0 : index
    %c0_71 = arith.constant 0 : index
    %128 = vector.load %arg9[%c0_70, %c0_71] : memref<1x4xf32, #tpu.memory_space<vmem>>, vector<1x4xf32>
    %cst_72 = arith.constant dense<0.000000e+00> : vector<4xf32>
    %129 = vector.multi_reduction <add>, %126, %cst_72 [0] : vector<512x4xf32> to vector<4xf32>
    %130 = vector.shape_cast %129 : vector<4xf32> to vector<1x4xf32>
    %131 = arith.mulf %126, %126 : vector<512x4xf32>
    %cst_73 = arith.constant dense<0.000000e+00> : vector<4xf32>
    %132 = vector.multi_reduction <add>, %131, %cst_73 [0] : vector<512x4xf32> to vector<4xf32>
    %133 = vector.shape_cast %132 : vector<4xf32> to vector<1x4xf32>
    %cst_74 = arith.constant 0.001953125 : f32
    %134 = vector.broadcast %cst_74 : f32 to vector<1x4xf32>
    %135 = arith.mulf %130, %134 : vector<1x4xf32>
    %cst_75 = arith.constant 0.001953125 : f32
    %136 = vector.broadcast %cst_75 : f32 to vector<1x4xf32>
    %137 = arith.mulf %133, %136 : vector<1x4xf32>
    %138 = arith.mulf %135, %135 : vector<1x4xf32>
    %139 = arith.subf %137, %138 : vector<1x4xf32>
    %cst_76 = arith.constant 9.99999974E-6 : f32
    %140 = vector.broadcast %cst_76 : f32 to vector<1x4xf32>
    %141 = arith.addf %139, %140 : vector<1x4xf32>
    %142 = math.rsqrt %141 : vector<1x4xf32>
    %143 = arith.mulf %127, %142 : vector<1x4xf32>
    %144 = arith.mulf %135, %143 : vector<1x4xf32>
    %145 = arith.subf %128, %144 : vector<1x4xf32>
    %146 = vector.broadcast %143 : vector<1x4xf32> to vector<512x4xf32>
    %147 = arith.mulf %126, %146 : vector<512x4xf32>
    %148 = vector.broadcast %145 : vector<1x4xf32> to vector<512x4xf32>
    %149 = arith.addf %147, %148 : vector<512x4xf32>
    %150 = vector.shape_cast %149 : vector<512x4xf32> to vector<2x16x16x4xf32>
    %151 = arith.addf %150, %0 : vector<2x16x16x4xf32>
    %c0_77 = arith.constant 0 : index
    %c0_78 = arith.constant 0 : index
    %c0_79 = arith.constant 0 : index
    %c0_80 = arith.constant 0 : index
    %152 = vector.load %arg10[%c0_77, %c0_78, %c0_79, %c0_80] : memref<2x16x16x4xf32, #tpu.memory_space<vmem>>, vector<2x16x16x4xf32>
    tpu.vector_store %arg10[%c0_77, %c0_78, %c0_79, %c0_80], %151 {strides = array<i32>} : memref<2x16x16x4xf32, #tpu.memory_space<vmem>>, vector<2x16x16x4xf32>,
    return
  }
}

</mosaic_0001>

<bundles_post_ra>
// kernel: tpu_custom_call.1
= control target key start
LH: loop header
LB: loop body
LE: loop exit
PB: predicated region body
PF: predicated region fallthrough
CT: control target
= control target key end

     0   :  { %15 = vsyncpa [#allocation4], 0  ;;  %s16030_s0 = inlined_call_operand.hbm [shape: f32[2,16,16,4], index: 0, kind: input, shape index: {}]   ;;  %s16031_s1 = inlined_call_operand.hbm [shape: f32[4,16], index: 1, kind: input, shape index: {}]   ;;  %s16032_s2 = inlined_call_operand.hbm [shape: f32[1,16], index: 2, kind: input, shape index: {}]   ;;  %s16033_s3 = inlined_call_operand.hbm [shape: f32[1,16], index: 3, kind: input, shape index: {}]   ;;  %s16034_s4 = inlined_call_operand.hbm [shape: f32[9,16], index: 4, kind: input, shape index: {}]   ;;  %s16035_s5 = inlined_call_operand.hbm [shape: f32[1,16], index: 5, kind: input, shape index: {}]   ;;  %s16036_s6 = inlined_call_operand.hbm [shape: f32[1,16], index: 6, kind: input, shape index: {}]   ;;  %s16037_s7 = inlined_call_operand.hbm [shape: f32[16,4], index: 7, kind: input, shape index: {}]   ;;  %s16038_s8 = inlined_call_operand.hbm [shape: f32[1,4], index: 8, kind: input, shape index: {}]   ;;  %s16039_s9 = inlined_call_operand.hbm [shape: f32[1,4], index: 9, kind: input, shape index: {}]   ;;  %s16040_s10 = inlined_call_operand.hbm [shape: f32[2,16,16,4], index: 10, kind: output, shape index: {}]  }
   0x1   :  { %16 = vsyncpa [#allocation7], 0 }
   0x2   :  { %17 = vsyncpa [#allocation10], 0 }
   0x3   :  { %18 = vsyncpa [#allocation13], 0 }
   0x4   :  { %19 = vsyncpa [#allocation16], 0 }
   0x5   :  { %20 = vsyncpa [#allocation19], 0 }
   0x6   :  { %21 = vsyncpa [#allocation5], 0  ;;  %s7773_s13 = smov [#allocation6]   ;;  %s7774_s15 = smov [#allocation9]  }
   0x7   :  { %s40_s14 = sshll.u32 %s7773_s13, 4  ;;  %s60_s16 = sshll.u32 %s7774_s15, 4  ;;  %s41_s14 = int_to_ptr.vmem [resolvable:$true] %s40_s14  ;;  %s61_s16 = int_to_ptr.vmem [resolvable:$true] %s60_s16 }
   0x8   :  { %s7517_s19 = scalar_lea.hbm %s16031_s1, 64 }
   0x9   :  { %p7518_p0 = scmp.ne.s32.totalorder %s16031_s1, %s7517_s19  ;;  %p7521_p1 = scmp.lt.u32.totalorder %s7517_s19, %s16031_s1 }
   0xb   :  { %p7523_p2 = pnand %p7521_p1, %p7518_p0 }
   0xd   :  { %7526 = shalt.err (!%p7523_p2)
}
   0xe   :  { %s7527_s24 = scalar_lea.vmem %s41_s14, 64  ;;  %p7532_p4 = scmp.lt.s32.totalorder %s41_s14, %s41_s14 }
   0xf   :  { %p7528_p3 = scmp.ne.s32.totalorder %s41_s14, %s7527_s24  ;;  %p7533_p5 = scmp.lt.s32.totalorder %s7527_s24, %s7527_s24 }
  0x11   :  { %p7534_p6 = por %p7533_p5, %p7532_p4 }
  0x13   :  { %p7535_p7 = pnand %p7534_p6, %p7528_p3 }
  0x15   :  { %7538 = shalt.err (!%p7535_p7)
}
  0x16   :  { %43 = dma.hbm_to_vmem [thread:$0]  %s16031_s1, 64, %s41_s14, [#allocation7]  }
  0x17   :  { %s7539_s29 = scalar_lea.hbm %s16033_s3, 16 }
  0x18   :  { %p7540_p8 = scmp.ne.s32.totalorder %s16033_s3, %s7539_s29  ;;  %p7543_p9 = scmp.lt.u32.totalorder %s7539_s29, %s16033_s3 }
  0x1a   :  { %p7545_p10 = pnand %p7543_p9, %p7540_p8 }
  0x1c   :  { %7548 = shalt.err (!%p7545_p10)
}
  0x1d   :  { %s7549_s15 = scalar_lea.vmem %s61_s16, 16  ;;  %s7553_s17 = scalar_lea.vmem %s61_s16, 32 }
  0x1e   :  { %p7550_p11 = scmp.ne.s32.totalorder %s61_s16, %s7549_s15  ;;  %p7554_p12 = scmp.lt.s32.totalorder %s61_s16, %s61_s16 }
  0x1f   :  { %p7555_p13 = scmp.lt.s32.totalorder %s7553_s17, %s7549_s15 }
  0x21   :  { %p7556_p0 = por %p7555_p13, %p7554_p12 }
  0x23   :  { %p7557_p1 = pnand %p7556_p0, %p7550_p11 }
  0x25   :  { %7560 = shalt.err (!%p7557_p1)
}
  0x26   :  { %63 = dma.hbm_to_vmem [thread:$0]  %s16033_s3, 16, %s61_s16, [#allocation10]  }
  0x27   :  { %s7775_s18 = smov [#allocation12]   ;;  %s7561_s22 = scalar_lea.hbm %s16035_s5, 16 }
  0x28   :  { %s82_s19 = sshll.u32 %s7775_s18, 4  ;;  %p7562_p2 = scmp.ne.s32.totalorder %s16035_s5, %s7561_s22  ;;  %s83_s19 = int_to_ptr.vmem [resolvable:$true] %s82_s19 }
  0x29   :  { %p7565_p3 = scmp.lt.u32.totalorder %s7561_s22, %s16035_s5 }
  0x2b   :  { %p7567_p4 = pnand %p7565_p3, %p7562_p2 }
  0x2d   :  { %7570 = shalt.err (!%p7567_p4)
}
  0x2e   :  { %s7571_s27 = scalar_lea.vmem %s83_s19, 16  ;;  %s7575_s3 = scalar_lea.vmem %s83_s19, 32 }
  0x2f   :  { %p7572_p5 = scmp.ne.s32.totalorder %s83_s19, %s7571_s27  ;;  %p7576_p6 = scmp.lt.s32.totalorder %s83_s19, %s83_s19 }
  0x30   :  { %p7577_p7 = scmp.lt.s32.totalorder %s7575_s3, %s7571_s27 }
  0x32   :  { %p7578_p8 = por %p7577_p7, %p7576_p6 }
  0x34   :  { %p7579_p9 = pnand %p7578_p8, %p7572_p5 }
  0x36   :  { %7582 = shalt.err (!%p7579_p9)
}
  0x37   :  { %85 = dma.hbm_to_vmem [thread:$0]  %s16035_s5, 16, %s83_s19, [#allocation13]  }
  0x38   :  { %s7776_s29 = smov [#allocation15]   ;;  %s7777_s11 = smov [#allocation3]  }
  0x39   :  { %s101_s30 = sshll.u32 %s7776_s29, 4  ;;  %s27_s12 = sshll.u32 %s7777_s11, 4  ;;  %s102_s30 = int_to_ptr.vmem [resolvable:$true] %s101_s30  ;;  %s28_s12 = int_to_ptr.vmem [resolvable:$true] %s27_s12 }
  0x3a   :  { %s7583_s17 = scalar_lea.hbm %s16037_s7, 256 }
  0x3b   :  { %p7584_p10 = scmp.ne.s32.totalorder %s16037_s7, %s7583_s17  ;;  %p7587_p11 = scmp.lt.u32.totalorder %s7583_s17, %s16037_s7 }
  0x3d   :  { %p7589_p12 = pnand %p7587_p11, %p7584_p10 }
  0x3f   :  { %7592 = shalt.err (!%p7589_p12)
}
  0x40   :  { %s7593_s5 = scalar_lea.vmem %s102_s30, 256  ;;  %p7598_p0 = scmp.lt.s32.totalorder %s102_s30, %s102_s30 }
  0x41   :  { %p7594_p13 = scmp.ne.s32.totalorder %s102_s30, %s7593_s5  ;;  %p7599_p1 = scmp.lt.s32.totalorder %s7593_s5, %s7593_s5 }
  0x43   :  { %p7600_p2 = por %p7599_p1, %p7598_p0 }
  0x45   :  { %p7601_p3 = pnand %p7600_p2, %p7594_p13 }
  0x47   :  { %7604 = shalt.err (!%p7601_p3)
}
  0x48   :  { %s7778_s19 = smov 128   ;;  %s7779_s21 = smov 8  }
  0x49   :  { %107 = dma.hbm_to_vmem [thread:$0]  %s16037_s7, 256, %s102_s30, [#allocation16], %s7778_s19, %s7778_s19, %s7779_s21  }
  0x4a   :  { %s7605_s26 = scalar_lea.hbm %s16030_s0, 8192 }
  0x4b   :  { %p7606_p4 = scmp.ne.s32.totalorder %s16030_s0, %s7605_s26  ;;  %p7609_p5 = scmp.lt.u32.totalorder %s7605_s26, %s16030_s0 }
  0x4d   :  { %p7611_p6 = pnand %p7609_p5, %p7606_p4 }
  0x4f   :  { %7614 = shalt.err (!%p7611_p6)
}
  0x50   :  { %s7615_s29 = scalar_lea.vmem %s28_s12, 8192  ;;  %p7620_p8 = scmp.lt.s32.totalorder %s28_s12, %s28_s12 }
  0x51   :  { %p7616_p7 = scmp.ne.s32.totalorder %s28_s12, %s7615_s29  ;;  %p7621_p9 = scmp.lt.s32.totalorder %s7615_s29, %s7615_s29 }
  0x53   :  { %p7622_p10 = por %p7621_p9, %p7620_p8 }
  0x55   :  { %p7623_p11 = pnand %p7622_p10, %p7616_p7 }
  0x57   :  { %7626 = shalt.err (!%p7623_p11)
}
  0x58   :  { %33 = dma.hbm_to_vmem [thread:$0]  %s16030_s0, 8192, %s28_s12, [#allocation4], %s7778_s19, %s7778_s19, %s7779_s21  }
  0x59   :  { %s7780_s11 = smov [#allocation8]   ;;  %s7781_s15 = smov [#allocation11]  }
  0x5a   :  { %s50_s13 = sshll.u32 %s7780_s11, 4  ;;  %s69_s17 = sshll.u32 %s7781_s15, 4  ;;  %s51_s13 = int_to_ptr.vmem [resolvable:$true] %s50_s13  ;;  %s70_s17 = int_to_ptr.vmem [resolvable:$true] %s69_s17 }
  0x5b   :  { %s7627_s18 = scalar_lea.hbm %s16032_s2, 16 }
  0x5c   :  { %p7628_p12 = scmp.ne.s32.totalorder %s16032_s2, %s7627_s18  ;;  %p7631_p13 = scmp.lt.u32.totalorder %s7627_s18, %s16032_s2 }
  0x5e   :  { %p7633_p0 = pnand %p7631_p13, %p7628_p12 }
  0x60   :  { %7636 = shalt.err (!%p7633_p0)
}
  0x61   :  { %s7637_s0 = scalar_lea.vmem %s51_s13, 16  ;;  %s7641_s12 = scalar_lea.vmem %s51_s13, 32 }
  0x62   :  { %p7638_p1 = scmp.ne.s32.totalorder %s51_s13, %s7637_s0  ;;  %p7642_p2 = scmp.lt.s32.totalorder %s51_s13, %s51_s13 }
  0x63   :  { %p7643_p3 = scmp.lt.s32.totalorder %s7641_s12, %s7637_s0 }
  0x65   :  { %p7644_p4 = por %p7643_p3, %p7642_p2 }
  0x67   :  { %p7645_p5 = pnand %p7644_p4, %p7638_p1 }
  0x69   :  { %7648 = shalt.err (!%p7645_p5)
}
  0x6a   :  { %53 = dma.hbm_to_vmem [thread:$0]  %s16032_s2, 16, %s51_s13, [#allocation7]  }
  0x6b   :  { %s7649_s3 = scalar_lea.hbm %s16034_s4, 256 }
  0x6c   :  { %p7650_p6 = scmp.ne.s32.totalorder %s16034_s4, %s7649_s3  ;;  %p7653_p7 = scmp.lt.u32.totalorder %s7649_s3, %s16034_s4 }
  0x6e   :  { %p7655_p8 = pnand %p7653_p7, %p7650_p6 }
  0x70   :  { %7658 = shalt.err (!%p7655_p8)
}
  0x71   :  { %s7659_s30 = scalar_lea.vmem %s70_s17, 256  ;;  %p7664_p10 = scmp.lt.s32.totalorder %s70_s17, %s70_s17 }
  0x72   :  { %p7660_p9 = scmp.ne.s32.totalorder %s70_s17, %s7659_s30  ;;  %p7665_p11 = scmp.lt.s32.totalorder %s7659_s30, %s7659_s30 }
  0x74   :  { %p7666_p12 = por %p7665_p11, %p7664_p10 }
  0x76   :  { %p7667_p13 = pnand %p7666_p12, %p7660_p9 }
  0x78   :  { %7670 = shalt.err (!%p7667_p13)
}
  0x79   :  { %75 = dma.hbm_to_vmem [thread:$0]  %s16034_s4, 256, %s70_s17, [#allocation10], %s7778_s19, %s7778_s19, %s7779_s21  }
  0x7a   :  { %s7782_s13 = smov [#allocation14]   ;;  %s7783_s1 = smov [#allocation17]  }
  0x7b   :  { %s92_s15 = sshll.u32 %s7782_s13, 4  ;;  %s114_s14 = sshll.u32 %s7783_s1, 4  ;;  %s93_s15 = int_to_ptr.vmem [resolvable:$true] %s92_s15  ;;  %s115_s14 = int_to_ptr.vmem [resolvable:$true] %s114_s14 }
  0x7c   :  { %s7671_s5 = scalar_lea.hbm %s16036_s6, 16 }
  0x7d   :  { %p7672_p0 = scmp.ne.s32.totalorder %s16036_s6, %s7671_s5  ;;  %p7675_p1 = scmp.lt.u32.totalorder %s7671_s5, %s16036_s6 }
  0x7f   :  { %p7677_p2 = pnand %p7675_p1, %p7672_p0 }
  0x81   :  { %7680 = shalt.err (!%p7677_p2)
}
  0x82   :  { %s7681_s4 = scalar_lea.vmem %s93_s15, 16  ;;  %s7685_s17 = scalar_lea.vmem %s93_s15, 32 }
  0x83   :  { %p7682_p3 = scmp.ne.s32.totalorder %s93_s15, %s7681_s4  ;;  %p7686_p4 = scmp.lt.s32.totalorder %s93_s15, %s93_s15 }
  0x84   :  { %p7687_p5 = scmp.lt.s32.totalorder %s7685_s17, %s7681_s4 }
  0x86   :  { %p7688_p6 = por %p7687_p5, %p7686_p4 }
  0x88   :  { %p7689_p7 = pnand %p7688_p6, %p7682_p3 }
  0x8a   :  { %7692 = shalt.err (!%p7689_p7)
}
  0x8b   :  { %95 = dma.hbm_to_vmem [thread:$0]  %s16036_s6, 16, %s93_s15, [#allocation13]  }
  0x8c   :  { %s7693_s3 = scalar_lea.hbm %s16038_s8, 16 }
  0x8d   :  { %p7694_p8 = scmp.ne.s32.totalorder %s16038_s8, %s7693_s3  ;;  %p7697_p9 = scmp.lt.u32.totalorder %s7693_s3, %s16038_s8 }
  0x8f   :  { %p7699_p10 = pnand %p7697_p9, %p7694_p8 }
  0x91   :  { %7702 = shalt.err (!%p7699_p10)
}
  0x92   :  { %s7703_s30 = scalar_lea.vmem %s115_s14, 16  ;;  %s7707_s2 = scalar_lea.vmem %s115_s14, 32 }
  0x93   :  { %p7704_p11 = scmp.ne.s32.totalorder %s115_s14, %s7703_s30  ;;  %p7708_p12 = scmp.lt.s32.totalorder %s115_s14, %s115_s14 }
  0x94   :  { %p7709_p13 = scmp.lt.s32.totalorder %s7707_s2, %s7703_s30 }
  0x96   :  { %p7710_p0 = por %p7709_p13, %p7708_p12 }
  0x98   :  { %p7711_p1 = pnand %p7710_p0, %p7704_p11 }
  0x9a   :  { %7714 = shalt.err (!%p7711_p1)
}
  0x9b   :  { %117 = dma.hbm_to_vmem [thread:$0]  %s16038_s8, 16, %s115_s14, [#allocation16]  }
  0x9c   :  { %s7784_s13 = smov [#allocation18]   ;;  %s7715_s20 = scalar_lea.hbm %s16039_s9, 16 }
  0x9d   :  { %s124_s15 = sshll.u32 %s7784_s13, 4  ;;  %p7716_p2 = scmp.ne.s32.totalorder %s16039_s9, %s7715_s20  ;;  %s125_s15 = int_to_ptr.vmem [resolvable:$true] %s124_s15 }
  0x9e   :  { %p7719_p3 = scmp.lt.u32.totalorder %s7715_s20, %s16039_s9 }
  0xa0   :  { %p7721_p4 = pnand %p7719_p3, %p7716_p2 }
  0xa2   :  { %7724 = shalt.err (!%p7721_p4)
}
  0xa3   :  { %s7725_s12 = scalar_lea.vmem %s125_s15, 16  ;;  %s7729_s8 = scalar_lea.vmem %s125_s15, 32 }
  0xa4   :  { %p7726_p5 = scmp.ne.s32.totalorder %s125_s15, %s7725_s12  ;;  %p7730_p6 = scmp.lt.s32.totalorder %s125_s15, %s125_s15 }
  0xa5   :  { %p7731_p7 = scmp.lt.s32.totalorder %s7729_s8, %s7725_s12 }
  0xa7   :  { %p7732_p8 = por %p7731_p7, %p7730_p6 }
  0xa9   :  { %p7733_p9 = pnand %p7732_p8, %p7726_p5 }
  0xab   :  { %7736 = shalt.err (!%p7733_p9)
}
  0xac   :  { %127 = dma.hbm_to_vmem [thread:$0]  %s16039_s9, 16, %s125_s15, [#allocation19]  }
  0xad   :  { %7759 = dma.done.wait [#allocation4], 8192  }
  0xae   :  { %7760 = vsyncadd [#allocation4], 4294959104 }
  0xaf   :  { %7761 = dma.done.wait [#allocation7], 80  }
  0xb0   :  { %7762 = vsyncadd [#allocation7], 4294967216 }
  0xb1   :  { %7763 = dma.done.wait [#allocation10], 272  }
  0xb2   :  { %7764 = vsyncadd [#allocation10], 4294967024 }
  0xb3   :  { %7765 = dma.done.wait [#allocation13], 32  }
  0xb4   :  { %7766 = vsyncadd [#allocation13], 4294967264 }
  0xb5   :  { %7767 = dma.done.wait [#allocation16], 272  }
  0xb6   :  { %7768 = vsyncadd [#allocation16], 4294967024 }
  0xb7   :  { %7769 = dma.done.wait [#allocation19], 16  }
  0xb8   :  { %7770 = vsyncadd [#allocation19], 4294967280  ;;  %vm416_vm0 = vcmask 1043456   ;;  %vm223_vm1 = vcmask 31744   ;;  %v222_v0 = vld [vmem:[#allocation6] sm:$0xf] }
  0xb9   :  { %v158_v1 = vld [vmem:[#allocation3] sm:$0xff]  ;;  %v159_v2 = vld [vmem:[#allocation3 + $0x8] sm:$0xff]  ;;  %7074 = vmatprep.subr.msk.mxu0 %vm416_vm0, %v222_v0  ;;  %v160_v3 = vld [vmem:[#allocation3 + $0x10] sm:$0xff]  ;;  %vm807_vm2 = vcmask 130048   ;;  %vm1429_vm3 = vcmask 122880   ;;  %v7785_v53 = vmov 0.0  }
  0xba   :  { %7076 = vmatprep.mubr.msk.f32.mxu0 %vm223_vm1, %v158_v1  ;;  %7075 = vmatpush3.msk.msra.mxu0 %vm416_vm0, %v222_v0  ;;  %v161_v4 = vld [vmem:[#allocation3 + $0x18] sm:$0xff]  ;;  %v162_v5 = vld [vmem:[#allocation3 + $0x20] sm:$0xff]  ;;  %v163_v6 = vld [vmem:[#allocation3 + $0x28] sm:$0xff]  ;;  %1433 = vst.msk [vmem:[#allocation2 + $0x48] sm:$0x1] %vm1429_vm3, %v7785_v53  ;;  %vm1417_vm4 = vcmask 123904  }
  0xbb   :  { %7077 = vmatmul.mubr.msk.f32.vlgmr.msra.gmra.mrb[0].mxu0 %vm223_vm1, %v159_v2  ;;  %v164_v7 = vld [vmem:[#allocation3 + $0x30] sm:$0xff]  ;;  %v165_v8 = vld [vmem:[#allocation3 + $0x38] sm:$0xff]  ;;  %v166_v9 = vld [vmem:[#allocation3 + $0x40] sm:$0xff]  ;;  %1415 = vst.msk [vmem:[#allocation2] sm:$0xff] %vm807_vm2, %v7785_v53  ;;  %vm2005_vm5 = vcmask 1046528   ;;  %vm2491_vm6 = vcmask 1045504  }
  0xbc   :  { %7079 = vmatprep.mubr.msk.f32.mxu0 %vm223_vm1, %v160_v3  ;;  %v167_v10 = vld [vmem:[#allocation3 + $0x48] sm:$0xff]  ;;  %v168_v11 = vld [vmem:[#allocation3 + $0x50] sm:$0xff]  ;;  %v169_v12 = vld [vmem:[#allocation3 + $0x58] sm:$0xff]  ;;  %1416 = vst.msk [vmem:[#allocation2 + $0x8] sm:$0xff] %vm807_vm2, %v7785_v53  ;;  %s7786_s9 = smov [#allocation20]  }
  0xbd   :  { %v170_v13 = vld [vmem:[#allocation3 + $0x60] sm:$0xff]  ;;  %v171_v14 = vld [vmem:[#allocation3 + $0x68] sm:$0xff]  ;;  %v172_v15 = vld [vmem:[#allocation3 + $0x70] sm:$0xff]  ;;  %1419 = vst.msk [vmem:[#allocation2 + $0x1b0] sm:$0xff] %vm807_vm2, %v7785_v53  ;;  %s15984_s17 = sshll.u32 %s7786_s9, 4  ;;  %s6789_s17 = int_to_ptr.vmem [resolvable:$true] %s15984_s17 }
  0xbe   :  { %v173_v16 = vld [vmem:[#allocation3 + $0x78] sm:$0xff]  ;;  %v174_v17 = vld [vmem:[#allocation3 + $0x80] sm:$0xff]  ;;  %v175_v18 = vld [vmem:[#allocation3 + $0x88] sm:$0xff]  ;;  %1420 = vst.msk [vmem:[#allocation2 + $0x1b8] sm:$0xff] %vm807_vm2, %v7785_v53  ;;  %s7737_s24 = scalar_lea.vmem %s6789_s17, 8192  ;;  %p7742_p11 = scmp.lt.s32.totalorder %s6789_s17, %s6789_s17 }
  0xbf   :  { %7080 = vmatmul.mubr.msk.f32.gmra.mrb[2].mxu0 %vm223_vm1, %v161_v4  ;;  %v176_v19 = vld [vmem:[#allocation3 + $0x90] sm:$0xff]  ;;  %v177_v20 = vld [vmem:[#allocation3 + $0x98] sm:$0xff]  ;;  %v178_v21 = vld [vmem:[#allocation3 + $0xa0] sm:$0xff]  ;;  %1423 = vst.msk [vmem:[#allocation2 + $0x198] sm:$0xff] %vm807_vm2, %v7785_v53  ;;  %p7738_p10 = scmp.ne.s32.totalorder %s6789_s17, %s7737_s24  ;;  %p7743_p12 = scmp.lt.s32.totalorder %s7737_s24, %s7737_s24 }
  0xc0   :  { %7082 = vmatprep.mubr.msk.f32.mxu0 %vm223_vm1, %v162_v5  ;;  %v179_v22 = vld [vmem:[#allocation3 + $0xa8] sm:$0xff]  ;;  %v180_v23 = vld [vmem:[#allocation3 + $0xb0] sm:$0xff]  ;;  %v181_v24 = vld [vmem:[#allocation3 + $0xb8] sm:$0xff]  ;;  %1424 = vst.msk [vmem:[#allocation2 + $0x1a0] sm:$0xff] %vm807_vm2, %v7785_v53 }
  0xc1   :  { %v182_v25 = vld [vmem:[#allocation3 + $0xc0] sm:$0xff]  ;;  %v183_v26 = vld [vmem:[#allocation3 + $0xc8] sm:$0xff]  ;;  %v184_v27 = vld [vmem:[#allocation3 + $0xd0] sm:$0xff]  ;;  %1426 = vst.msk [vmem:[#allocation2 + $0x348] sm:$0xff] %vm807_vm2, %v7785_v53  ;;  %p7744_p13 = por %p7743_p12, %p7742_p11 }
  0xc2   :  { %v185_v28 = vld [vmem:[#allocation3 + $0xd8] sm:$0xff]  ;;  %v186_v29 = vld [vmem:[#allocation3 + $0xe0] sm:$0xff]  ;;  %v187_v30 = vld [vmem:[#allocation3 + $0xe8] sm:$0xff]  ;;  %1427 = vst.msk [vmem:[#allocation2 + $0x350] sm:$0xff] %vm807_vm2, %v7785_v53 }
  0xc3   :  { %7083 = vmatmul.mubr.msk.f32.gmra.mrb[4].mxu0 %vm223_vm1, %v163_v6  ;;  %v188_v31 = vld [vmem:[#allocation3 + $0xf0] sm:$0xff]  ;;  %v189_v32 = vld [vmem:[#allocation3 + $0xf8] sm:$0xff]  ;;  %v190_v33 = vld [vmem:[#allocation3 + $0x100] sm:$0xff]  ;;  %1431 = vst.msk [vmem:[#allocation2 + $0x18] sm:$0x1] %vm1429_vm3, %v7785_v53  ;;  %p7745_p0 = pnand %p7744_p13, %p7738_p10 }
  0xc4   :  { %7085 = vmatprep.mubr.msk.f32.mxu0 %vm223_vm1, %v164_v7  ;;  %v191_v34 = vld [vmem:[#allocation3 + $0x108] sm:$0xff]  ;;  %v192_v35 = vld [vmem:[#allocation3 + $0x110] sm:$0xff]  ;;  %v193_v36 = vld [vmem:[#allocation3 + $0x118] sm:$0xff]  ;;  %1432 = vst.msk [vmem:[#allocation2 + $0x30] sm:$0x1] %vm1429_vm3, %v7785_v53 }
  0xc5   :  { %v194_v37 = vld [vmem:[#allocation3 + $0x120] sm:$0xff]  ;;  %v195_v38 = vld [vmem:[#allocation3 + $0x128] sm:$0xff]  ;;  %v196_v39 = vld [vmem:[#allocation3 + $0x130] sm:$0xff]  ;;  %1434 = vst.msk [vmem:[#allocation2 + $0x60] sm:$0x1] %vm1429_vm3, %v7785_v53 }
  0xc6   :  { %v197_v40 = vld [vmem:[#allocation3 + $0x138] sm:$0xff]  ;;  %v198_v41 = vld [vmem:[#allocation3 + $0x140] sm:$0xff]  ;;  %v199_v42 = vld [vmem:[#allocation3 + $0x148] sm:$0xff]  ;;  %1435 = vst.msk [vmem:[#allocation2 + $0x78] sm:$0x1] %vm1429_vm3, %v7785_v53 }
  0xc7   :  { %7086 = vmatmul.mubr.msk.f32.gmra.mrb[6].mxu0 %vm223_vm1, %v165_v8  ;;  %v200_v43 = vld [vmem:[#allocation3 + $0x150] sm:$0xff]  ;;  %v201_v44 = vld [vmem:[#allocation3 + $0x158] sm:$0xff]  ;;  %v202_v45 = vld [vmem:[#allocation3 + $0x160] sm:$0xff]  ;;  %1436 = vst.msk [vmem:[#allocation2 + $0x90] sm:$0x1] %vm1429_vm3, %v7785_v53 }
  0xc8   :  { %7088 = vmatprep.mubr.msk.f32.mxu0 %vm223_vm1, %v166_v9  ;;  %v203_v46 = vld [vmem:[#allocation3 + $0x168] sm:$0xff]  ;;  %v204_v47 = vld [vmem:[#allocation3 + $0x170] sm:$0xff]  ;;  %v205_v48 = vld [vmem:[#allocation3 + $0x178] sm:$0xff]  ;;  %1437 = vst.msk [vmem:[#allocation2 + $0xa8] sm:$0x1] %vm1429_vm3, %v7785_v53 }
  0xc9   :  { %v206_v49 = vld [vmem:[#allocation3 + $0x180] sm:$0xff]  ;;  %v207_v50 = vld [vmem:[#allocation3 + $0x188] sm:$0xff]  ;;  %v208_v51 = vld [vmem:[#allocation3 + $0x190] sm:$0xff]  ;;  %1438 = vst.msk [vmem:[#allocation2 + $0xc0] sm:$0x1] %vm1429_vm3, %v7785_v53 }
  0xca   :  { %v8022_v52 = vld [vmem:[#allocation3 + $0x198] sm:$0xff]  ;;  %1439 = vst.msk [vmem:[#allocation2 + $0xd8] sm:$0x1] %vm1429_vm3, %v7785_v53  ;;  %1440 = vst.msk [vmem:[#allocation2 + $0xf0] sm:$0x1] %vm1429_vm3, %v7785_v53  ;;  %v210_v54 = vld [vmem:[#allocation3 + $0x1a0] sm:$0xff] }
  0xcb   :  { %7089 = vmatmul.mubr.msk.f32.gmra.mrb[8].mxu0 %vm223_vm1, %v167_v10  ;;  %1441 = vst.msk [vmem:[#allocation2 + $0x108] sm:$0x1] %vm1429_vm3, %v7785_v53  ;;  %1442 = vst.msk [vmem:[#allocation2 + $0x120] sm:$0x1] %vm1429_vm3, %v7785_v53  ;;  %v211_v55 = vld [vmem:[#allocation3 + $0x1a8] sm:$0xff]  ;;  %v212_v56 = vld [vmem:[#allocation3 + $0x1b0] sm:$0xff] }
  0xcc   :  { %7091 = vmatprep.mubr.msk.f32.mxu0 %vm223_vm1, %v168_v11  ;;  %1443 = vst.msk [vmem:[#allocation2 + $0x138] sm:$0x1] %vm1429_vm3, %v7785_v53  ;;  %1444 = vst.msk [vmem:[#allocation2 + $0x150] sm:$0x1] %vm1429_vm3, %v7785_v53  ;;  %v213_v57 = vld [vmem:[#allocation3 + $0x1b8] sm:$0xff]  ;;  %v214_v58 = vld [vmem:[#allocation3 + $0x1c0] sm:$0xff] }
  0xcd   :  { %1445 = vst.msk [vmem:[#allocation2 + $0x168] sm:$0x1] %vm1429_vm3, %v7785_v53  ;;  %1446 = vst.msk [vmem:[#allocation2 + $0x180] sm:$0x1] %vm1429_vm3, %v7785_v53  ;;  %v215_v59 = vld [vmem:[#allocation3 + $0x1c8] sm:$0xff]  ;;  %v216_v60 = vld [vmem:[#allocation3 + $0x1d0] sm:$0xff] }
  0xce   :  { %1449 = vst.msk [vmem:[#allocation2 + $0x1c8] sm:$0x1] %vm1429_vm3, %v7785_v53  ;;  %1450 = vst.msk [vmem:[#allocation2 + $0x1e0] sm:$0x1] %vm1429_vm3, %v7785_v53  ;;  %v217_v61 = vld [vmem:[#allocation3 + $0x1d8] sm:$0xff]  ;;  %v218_v62 = vld [vmem:[#allocation3 + $0x1e0] sm:$0xff] }
  0xcf   :  { %7092 = vmatmul.mubr.msk.f32.gmra.mrb[10].mxu0 %vm223_vm1, %v169_v12  ;;  %1451 = vst.msk [vmem:[#allocation2 + $0x1f8] sm:$0x1] %vm1429_vm3, %v7785_v53  ;;  %1452 = vst.msk [vmem:[#allocation2 + $0x210] sm:$0x1] %vm1429_vm3, %v7785_v53  ;;  %v219_v63 = vld [vmem:[#allocation3 + $0x1e8] sm:$0xff]  ;;  %v220_v0 = vld [vmem:[#allocation3 + $0x1f0] sm:$0xff] }
  0xd0   :  { %7094 = vmatprep.mubr.msk.f32.mxu0 %vm223_vm1, %v170_v13  ;;  %1453 = vst.msk [vmem:[#allocation2 + $0x228] sm:$0x1] %vm1429_vm3, %v7785_v53  ;;  %1454 = vst.msk [vmem:[#allocation2 + $0x240] sm:$0x1] %vm1429_vm3, %v7785_v53  ;;  %v221_v1 = vld [vmem:[#allocation3 + $0x1f8] sm:$0xff] }
  0xd1   :  { %1455 = vst.msk [vmem:[#allocation2 + $0x258] sm:$0x1] %vm1429_vm3, %v7785_v53  ;;  %1456 = vst.msk [vmem:[#allocation2 + $0x270] sm:$0x1] %vm1429_vm3, %v7785_v53 }
  0xd2   :  { %1457 = vst.msk [vmem:[#allocation2 + $0x288] sm:$0x1] %vm1429_vm3, %v7785_v53  ;;  %1458 = vst.msk [vmem:[#allocation2 + $0x2a0] sm:$0x1] %vm1429_vm3, %v7785_v53 }
  0xd3   :  { %7095 = vmatmul.mubr.msk.f32.gmra.mrb[12].mxu0 %vm223_vm1, %v171_v14  ;;  %1459 = vst.msk [vmem:[#allocation2 + $0x2b8] sm:$0x1] %vm1429_vm3, %v7785_v53  ;;  %1460 = vst.msk [vmem:[#allocation2 + $0x2d0] sm:$0x1] %vm1429_vm3, %v7785_v53 }
  0xd4   :  { %7097 = vmatprep.mubr.msk.f32.mxu0 %vm223_vm1, %v172_v15  ;;  %1461 = vst.msk [vmem:[#allocation2 + $0x2e8] sm:$0x1] %vm1429_vm3, %v7785_v53  ;;  %1462 = vst.msk [vmem:[#allocation2 + $0x300] sm:$0x1] %vm1429_vm3, %v7785_v53 }
  0xd5   :  { %1463 = vst.msk [vmem:[#allocation2 + $0x318] sm:$0x1] %vm1429_vm3, %v7785_v53  ;;  %1464 = vst.msk [vmem:[#allocation2 + $0x330] sm:$0x1] %vm1429_vm3, %v7785_v53 }
  0xd6   :  { %1467 = vst.msk [vmem:[#allocation2 + $0x29] sm:$0x1] %vm1429_vm3, %v7785_v53  ;;  %1468 = vst.msk [vmem:[#allocation2 + $0x41] sm:$0x1] %vm1429_vm3, %v7785_v53 }
  0xd7   :  { %7098 = vmatmul.mubr.msk.f32.gmra.mrb[14].mxu0 %vm223_vm1, %v173_v16  ;;  %1469 = vst.msk [vmem:[#allocation2 + $0x59] sm:$0x1] %vm1429_vm3, %v7785_v53  ;;  %1470 = vst.msk [vmem:[#allocation2 + $0x71] sm:$0x1] %vm1429_vm3, %v7785_v53 }
  0xd8   :  { %7100 = vmatprep.mubr.msk.f32.mxu0 %vm223_vm1, %v174_v17  ;;  %1471 = vst.msk [vmem:[#allocation2 + $0x89] sm:$0x1] %vm1429_vm3, %v7785_v53  ;;  %1472 = vst.msk [vmem:[#allocation2 + $0xa1] sm:$0x1] %vm1429_vm3, %v7785_v53 }
  0xd9   :  { %1473 = vst.msk [vmem:[#allocation2 + $0xb9] sm:$0x1] %vm1429_vm3, %v7785_v53  ;;  %1474 = vst.msk [vmem:[#allocation2 + $0xd1] sm:$0x1] %vm1429_vm3, %v7785_v53 }
  0xda   :  { %1475 = vst.msk [vmem:[#allocation2 + $0xe9] sm:$0x1] %vm1429_vm3, %v7785_v53  ;;  %1476 = vst.msk [vmem:[#allocation2 + $0x101] sm:$0x1] %vm1429_vm3, %v7785_v53 }
  0xdb   :  { %7101 = vmatmul.mubr.msk.f32.gmra.mrb[16].mxu0 %vm223_vm1, %v175_v18  ;;  %1477 = vst.msk [vmem:[#allocation2 + $0x119] sm:$0x1] %vm1429_vm3, %v7785_v53  ;;  %1478 = vst.msk [vmem:[#allocation2 + $0x131] sm:$0x1] %vm1429_vm3, %v7785_v53 }
  0xdc   :  { %7103 = vmatprep.mubr.msk.f32.mxu0 %vm223_vm1, %v176_v19  ;;  %1479 = vst.msk [vmem:[#allocation2 + $0x149] sm:$0x1] %vm1429_vm3, %v7785_v53  ;;  %1480 = vst.msk [vmem:[#allocation2 + $0x161] sm:$0x1] %vm1429_vm3, %v7785_v53 }
  0xdd   :  { %1481 = vst.msk [vmem:[#allocation2 + $0x179] sm:$0x1] %vm1429_vm3, %v7785_v53  ;;  %1482 = vst.msk [vmem:[#allocation2 + $0x191] sm:$0x1] %vm1429_vm3, %v7785_v53 }
  0xde   :  { %1485 = vst.msk [vmem:[#allocation2 + $0x1d9] sm:$0x1] %vm1429_vm3, %v7785_v53  ;;  %1486 = vst.msk [vmem:[#allocation2 + $0x1f1] sm:$0x1] %vm1429_vm3, %v7785_v53 }
  0xdf   :  { %7104 = vmatmul.mubr.msk.f32.gmra.mrb[18].mxu0 %vm223_vm1, %v177_v20  ;;  %1487 = vst.msk [vmem:[#allocation2 + $0x209] sm:$0x1] %vm1429_vm3, %v7785_v53  ;;  %1488 = vst.msk [vmem:[#allocation2 + $0x221] sm:$0x1] %vm1429_vm3, %v7785_v53 }
  0xe0   :  { %7106 = vmatprep.mubr.msk.f32.mxu0 %vm223_vm1, %v178_v21  ;;  %1489 = vst.msk [vmem:[#allocation2 + $0x239] sm:$0x1] %vm1429_vm3, %v7785_v53  ;;  %1490 = vst.msk [vmem:[#allocation2 + $0x251] sm:$0x1] %vm1429_vm3, %v7785_v53 }
  0xe1   :  { %1491 = vst.msk [vmem:[#allocation2 + $0x269] sm:$0x1] %vm1429_vm3, %v7785_v53  ;;  %1492 = vst.msk [vmem:[#allocation2 + $0x281] sm:$0x1] %vm1429_vm3, %v7785_v53 }
  0xe2   :  { %1493 = vst.msk [vmem:[#allocation2 + $0x299] sm:$0x1] %vm1429_vm3, %v7785_v53  ;;  %1494 = vst.msk [vmem:[#allocation2 + $0x2b1] sm:$0x1] %vm1429_vm3, %v7785_v53 }
  0xe3   :  { %7107 = vmatmul.mubr.msk.f32.gmra.mrb[20].mxu0 %vm223_vm1, %v179_v22  ;;  %1495 = vst.msk [vmem:[#allocation2 + $0x2c9] sm:$0x1] %vm1429_vm3, %v7785_v53  ;;  %1496 = vst.msk [vmem:[#allocation2 + $0x2e1] sm:$0x1] %vm1429_vm3, %v7785_v53 }
  0xe4   :  { %7109 = vmatprep.mubr.msk.f32.mxu0 %vm223_vm1, %v180_v23  ;;  %1497 = vst.msk [vmem:[#allocation2 + $0x2f9] sm:$0x1] %vm1429_vm3, %v7785_v53  ;;  %1498 = vst.msk [vmem:[#allocation2 + $0x311] sm:$0x1] %vm1429_vm3, %v7785_v53 }
  0xe5   :  { %1499 = vst.msk [vmem:[#allocation2 + $0x329] sm:$0x1] %vm1429_vm3, %v7785_v53  ;;  %1500 = vst.msk [vmem:[#allocation2 + $0x341] sm:$0x1] %vm1429_vm3, %v7785_v53 }
  0xe6   :  { %1430 = vst.msk [vmem:[#allocation2] sm:$0x1] %vm1429_vm3, %v7785_v53  ;;  %1447 = vst.msk [vmem:[#allocation2 + $0x198] sm:$0x1] %vm1429_vm3, %v7785_v53 }
  0xe7   :  { %7110 = vmatmul.mubr.msk.f32.gmra.mrb[22].mxu0 %vm223_vm1, %v181_v24  ;;  %1448 = vst.msk [vmem:[#allocation2 + $0x1b0] sm:$0x1] %vm1429_vm3, %v7785_v53  ;;  %1465 = vst.msk [vmem:[#allocation2 + $0x348] sm:$0x1] %vm1429_vm3, %v7785_v53 }
  0xe8   :  { %7112 = vmatprep.mubr.msk.f32.mxu0 %vm223_vm1, %v182_v25  ;;  %1425 = vst.msk [vmem:[#allocation2 + $0x1a8] sm:$0x3] %vm1417_vm4, %v7785_v53  ;;  %1418 = vst.msk [vmem:[#allocation2 + $0x10] sm:$0x3] %vm1417_vm4, %v7785_v53 }
  0xe9   :  { %1421 = vst.msk [vmem:[#allocation2 + $0x1c0] sm:$0x3] %vm1417_vm4, %v7785_v53  ;;  %1428 = vst.msk [vmem:[#allocation2 + $0x358] sm:$0x3] %vm1417_vm4, %v7785_v53 }
  0xea   :  { %1483 = vst.msk [vmem:[#allocation2 + $0x1a9] sm:$0x1] %vm1429_vm3, %v7785_v53  ;;  %1466 = vst.msk [vmem:[#allocation2 + $0x11] sm:$0x1] %vm1429_vm3, %v7785_v53 }
  0xeb   :  { %7113 = vmatmul.mubr.msk.f32.gmra.mrb[24].mxu0 %vm223_vm1, %v183_v26  ;;  %1484 = vst.msk [vmem:[#allocation2 + $0x1c1] sm:$0x1] %vm1429_vm3, %v7785_v53  ;;  %1501 = vst.msk [vmem:[#allocation2 + $0x359] sm:$0x1] %vm1429_vm3, %v7785_v53 }
  0xec   :  { %7115 = vmatprep.mubr.msk.f32.mxu0 %vm223_vm1, %v184_v27 }
  0xef   :  { %7116 = vmatmul.mubr.msk.f32.gmra.mrb[26].mxu0 %vm223_vm1, %v185_v28 }
  0xf0   :  { %7118 = vmatprep.mubr.msk.f32.mxu0 %vm223_vm1, %v186_v29 }
  0xf3   :  { %7119 = vmatmul.mubr.msk.f32.gmra.mrb[28].mxu0 %vm223_vm1, %v187_v30 }
  0xf4   :  { %7121 = vmatprep.mubr.msk.f32.mxu0 %vm223_vm1, %v188_v31 }
  0xf7   :  { %7122 = vmatmul.mubr.msk.f32.gmra.mrb[30].mxu0 %vm223_vm1, %v189_v32 }
  0xf8   :  { %7124 = vmatprep.mubr.msk.f32.mxu0 %vm223_vm1, %v190_v33 }
  0xfb   :  { %7125 = vmatmul.mubr.msk.f32.gmra.mrb[32].mxu0 %vm223_vm1, %v191_v34 }
  0xfc   :  { %7127 = vmatprep.mubr.msk.f32.mxu0 %vm223_vm1, %v192_v35 }
  0xff   :  { %7128 = vmatmul.mubr.msk.f32.gmra.mrb[34].mxu0 %vm223_vm1, %v193_v36 }
 0x100   :  { %7130 = vmatprep.mubr.msk.f32.mxu0 %vm223_vm1, %v194_v37 }
 0x103   :  { %7131 = vmatmul.mubr.msk.f32.gmra.mrb[36].mxu0 %vm223_vm1, %v195_v38 }
 0x104   :  { %7133 = vmatprep.mubr.msk.f32.mxu0 %vm223_vm1, %v196_v39 }
 0x107   :  { %7134 = vmatmul.mubr.msk.f32.gmra.mrb[38].mxu0 %vm223_vm1, %v197_v40 }
 0x108   :  { %7136 = vmatprep.mubr.msk.f32.mxu0 %vm223_vm1, %v198_v41 }
 0x10b   :  { %7137 = vmatmul.mubr.msk.f32.gmra.mrb[40].mxu0 %vm223_vm1, %v199_v42 }
 0x10c   :  { %7139 = vmatprep.mubr.msk.f32.mxu0 %vm223_vm1, %v200_v43 }
 0x10f   :  { %7140 = vmatmul.mubr.msk.f32.gmra.mrb[42].mxu0 %vm223_vm1, %v201_v44 }
 0x110   :  { %7142 = vmatprep.mubr.msk.f32.mxu0 %vm223_vm1, %v202_v45 }
 0x113   :  { %7143 = vmatmul.mubr.msk.f32.gmra.mrb[44].mxu0 %vm223_vm1, %v203_v46 }
 0x114   :  { %7145 = vmatprep.mubr.msk.f32.mxu0 %vm223_vm1, %v204_v47 }
 0x117   :  { %7146 = vmatmul.mubr.msk.f32.gmra.mrb[46].mxu0 %vm223_vm1, %v205_v48 }
 0x118   :  { %7148 = vmatprep.mubr.msk.f32.mxu0 %vm223_vm1, %v206_v49 }
 0x11b   :  { %7149 = vmatmul.mubr.msk.f32.gmra.mrb[48].mxu0 %vm223_vm1, %v207_v50 }
 0x11c   :  { %7151 = vmatprep.mubr.msk.f32.mxu0 %vm223_vm1, %v208_v51 }
 0x11f   :  { %7152 = vmatmul.mubr.msk.f32.gmra.mrb[50].mxu0 %vm223_vm1, %v8022_v52 }
 0x120   :  { %7154 = vmatprep.mubr.msk.f32.mxu0 %vm223_vm1, %v210_v54 }
 0x123   :  { %7155 = vmatmul.mubr.msk.f32.gmra.mrb[52].mxu0 %vm223_vm1, %v211_v55 }
 0x124   :  { %7157 = vmatprep.mubr.msk.f32.mxu0 %vm223_vm1, %v212_v56 }
 0x127   :  { %7158 = vmatmul.mubr.msk.f32.gmra.mrb[54].mxu0 %vm223_vm1, %v213_v57 }
 0x128   :  { %7160 = vmatprep.mubr.msk.f32.mxu0 %vm223_vm1, %v214_v58 }
 0x12b   :  { %7161 = vmatmul.mubr.msk.f32.gmra.mrb[56].mxu0 %vm223_vm1, %v215_v59 }
 0x12c   :  { %7163 = vmatprep.mubr.msk.f32.mxu0 %vm223_vm1, %v216_v60 }
 0x12f   :  { %7164 = vmatmul.mubr.msk.f32.gmra.mrb[58].mxu0 %vm223_vm1, %v217_v61 }
 0x130   :  { %7166 = vmatprep.mubr.msk.f32.mxu0 %vm223_vm1, %v218_v62 }
 0x133   :  { %7167 = vmatmul.mubr.msk.f32.gmra.mrb[60].mxu0 %vm223_vm1, %v219_v63 }
 0x134   :  { %7169 = vmatprep.mubr.msk.f32.mxu0 %vm223_vm1, %v220_v0 }
 0x137   :  { %7170 = vmatmul.mubr.msk.f32.gmra.mrb[62].mxu0 %vm223_vm1, %v221_v1 }
 0x18e   :  { %v8202_v2 = vpop.f32.mrb[0].mxu0 }
 0x18f   :  { %v809_v3 = vsel %vm807_vm2, %v8202_v2, 0.0  ;;  %v942_v4 = vmul.f32 %v8202_v2, %v8202_v2  ;;  %v8208_v5 = vpop.f32.mrb[1].mxu0 }
 0x190   :  { %v808_v6 = vsel %vm807_vm2, %v8208_v5, 0.0  ;;  %v941_v7 = vmul.f32 %v8208_v5, %v8208_v5 }
 0x191   :  { %v1006_v8 = vsel %vm807_vm2, %v942_v4, 0.0  ;;  %v810_v9 = vadd.f32 %v809_v3, %v808_v6 }
 0x192   :  { %v1005_v10 = vsel %vm807_vm2, %v941_v7, 0.0  ;;  %v8216_v11 = vpop.f32.mrb[2].mxu0 }
 0x193   :  { %v1007_v12 = vadd.f32 %v1006_v8, %v1005_v10  ;;  %v8218_v13 = vpop.f32.mrb[3].mxu0  ;;  %v944_v14 = vmul.f32 %v8216_v11, %v8216_v11  ;;  %v813_v18 = vsel %vm807_vm2, %v8216_v11, 0.0 }
 0x194   :  { %v811_v15 = vsel %vm807_vm2, %v8218_v13, 0.0  ;;  %v943_v16 = vmul.f32 %v8218_v13, %v8218_v13 }
 0x195   :  { %v812_v17 = vadd.f32 %v811_v15, %v810_v9  ;;  %v1010_v24 = vsel %vm807_vm2, %v944_v14, 0.0 }
 0x196   :  { %v1008_v19 = vsel %vm807_vm2, %v943_v16, 0.0  ;;  %v8229_v20 = vpop.f32.mrb[4].mxu0 }
 0x197   :  { %v814_v21 = vadd.f32 %v813_v18, %v812_v17  ;;  %v1009_v22 = vadd.f32 %v1008_v19, %v1007_v12  ;;  %v8231_v23 = vpop.f32.mrb[5].mxu0  ;;  %v946_v25 = vmul.f32 %v8229_v20, %v8229_v20  ;;  %v817_v30 = vsel %vm807_vm2, %v8229_v20, 0.0 }
 0x198   :  { %v815_v26 = vsel %vm807_vm2, %v8231_v23, 0.0  ;;  %v945_v27 = vmul.f32 %v8231_v23, %v8231_v23 }
 0x199   :  { %v1011_v28 = vadd.f32 %v1010_v24, %v1009_v22  ;;  %v816_v29 = vadd.f32 %v815_v26, %v814_v21  ;;  %v1014_v36 = vsel %vm807_vm2, %v946_v25, 0.0 }
 0x19a   :  { %v1012_v31 = vsel %vm807_vm2, %v945_v27, 0.0  ;;  %v8243_v32 = vpop.f32.mrb[6].mxu0 }
 0x19b   :  { %v1013_v33 = vadd.f32 %v1012_v31, %v1011_v28  ;;  %v8245_v34 = vpop.f32.mrb[7].mxu0  ;;  %v818_v35 = vadd.f32 %v817_v30, %v816_v29  ;;  %v948_v37 = vmul.f32 %v8243_v32, %v8243_v32  ;;  %v821_v42 = vsel %vm807_vm2, %v8243_v32, 0.0 }
 0x19c   :  { %v819_v38 = vsel %vm807_vm2, %v8245_v34, 0.0  ;;  %v947_v39 = vmul.f32 %v8245_v34, %v8245_v34 }
 0x19d   :  { %v820_v40 = vadd.f32 %v819_v38, %v818_v35  ;;  %v1015_v41 = vadd.f32 %v1014_v36, %v1013_v33  ;;  %v1018_v48 = vsel %vm807_vm2, %v948_v37, 0.0 }
 0x19e   :  { %v1016_v43 = vsel %vm807_vm2, %v947_v39, 0.0  ;;  %v8257_v44 = vpop.f32.mrb[8].mxu0 }
 0x19f   :  { %v1017_v45 = vadd.f32 %v1016_v43, %v1015_v41  ;;  %v8259_v46 = vpop.f32.mrb[9].mxu0  ;;  %v822_v47 = vadd.f32 %v821_v42, %v820_v40  ;;  %v950_v49 = vmul.f32 %v8257_v44, %v8257_v44  ;;  %v825_v54 = vsel %vm807_vm2, %v8257_v44, 0.0 }
 0x1a0   :  { %v823_v50 = vsel %vm807_vm2, %v8259_v46, 0.0  ;;  %v949_v51 = vmul.f32 %v8259_v46, %v8259_v46 }
 0x1a1   :  { %v824_v52 = vadd.f32 %v823_v50, %v822_v47  ;;  %v1019_v53 = vadd.f32 %v1018_v48, %v1017_v45  ;;  %v1022_v60 = vsel %vm807_vm2, %v950_v49, 0.0 }
 0x1a2   :  { %v1020_v55 = vsel %vm807_vm2, %v949_v51, 0.0  ;;  %v8271_v56 = vpop.f32.mrb[10].mxu0 }
 0x1a3   :  { %v1021_v57 = vadd.f32 %v1020_v55, %v1019_v53  ;;  %v8273_v58 = vpop.f32.mrb[11].mxu0  ;;  %v826_v59 = vadd.f32 %v825_v54, %v824_v52  ;;  %v952_v61 = vmul.f32 %v8271_v56, %v8271_v56  ;;  %v829_v3 = vsel %vm807_vm2, %v8271_v56, 0.0 }
 0x1a4   :  { %v827_v62 = vsel %vm807_vm2, %v8273_v58, 0.0  ;;  %v951_v63 = vmul.f32 %v8273_v58, %v8273_v58 }
 0x1a5   :  { %v828_v0 = vadd.f32 %v827_v62, %v826_v59  ;;  %v1023_v1 = vadd.f32 %v1022_v60, %v1021_v57  ;;  %v1026_v10 = vsel %vm807_vm2, %v952_v61, 0.0 }
 0x1a6   :  { %v1024_v4 = vsel %vm807_vm2, %v951_v63, 0.0  ;;  %v8285_v6 = vpop.f32.mrb[12].mxu0 }
 0x1a7   :  { %v1025_v7 = vadd.f32 %v1024_v4, %v1023_v1  ;;  %v8287_v8 = vpop.f32.mrb[13].mxu0  ;;  %v830_v9 = vadd.f32 %v829_v3, %v828_v0  ;;  %v954_v12 = vmul.f32 %v8285_v6, %v8285_v6  ;;  %v833_v18 = vsel %vm807_vm2, %v8285_v6, 0.0 }
 0x1a8   :  { %v831_v14 = vsel %vm807_vm2, %v8287_v8, 0.0  ;;  %v953_v15 = vmul.f32 %v8287_v8, %v8287_v8 }
 0x1a9   :  { %v832_v16 = vadd.f32 %v831_v14, %v830_v9  ;;  %v1027_v17 = vadd.f32 %v1026_v10, %v1025_v7  ;;  %v1030_v26 = vsel %vm807_vm2, %v954_v12, 0.0 }
 0x1aa   :  { %v1028_v19 = vsel %vm807_vm2, %v953_v15, 0.0  ;;  %v8299_v21 = vpop.f32.mrb[14].mxu0 }
 0x1ab   :  { %v1029_v22 = vadd.f32 %v1028_v19, %v1027_v17  ;;  %v8301_v24 = vpop.f32.mrb[15].mxu0  ;;  %v834_v25 = vadd.f32 %v833_v18, %v832_v16  ;;  %v956_v27 = vmul.f32 %v8299_v21, %v8299_v21  ;;  %v837_v33 = vsel %vm807_vm2, %v8299_v21, 0.0 }
 0x1ac   :  { %v835_v28 = vsel %vm807_vm2, %v8301_v24, 0.0  ;;  %v955_v29 = vmul.f32 %v8301_v24, %v8301_v24 }
 0x1ad   :  { %v836_v30 = vadd.f32 %v835_v28, %v834_v25  ;;  %v1031_v31 = vadd.f32 %v1030_v26, %v1029_v22  ;;  %v1034_v40 = vsel %vm807_vm2, %v956_v27, 0.0 }
 0x1ae   :  { %v1032_v35 = vsel %vm807_vm2, %v955_v29, 0.0  ;;  %v8313_v36 = vpop.f32.mrb[16].mxu0 }
 0x1af   :  { %v1033_v37 = vadd.f32 %v1032_v35, %v1031_v31  ;;  %v8315_v38 = vpop.f32.mrb[17].mxu0  ;;  %v838_v39 = vadd.f32 %v837_v33, %v836_v30  ;;  %v958_v41 = vmul.f32 %v8313_v36, %v8313_v36  ;;  %v841_v48 = vsel %vm807_vm2, %v8313_v36, 0.0 }
 0x1b0   :  { %v839_v42 = vsel %vm807_vm2, %v8315_v38, 0.0  ;;  %v957_v43 = vmul.f32 %v8315_v38, %v8315_v38 }
 0x1b1   :  { %v840_v45 = vadd.f32 %v839_v42, %v838_v39  ;;  %v1035_v47 = vadd.f32 %v1034_v40, %v1033_v37  ;;  %v1038_v54 = vsel %vm807_vm2, %v958_v41, 0.0 }
 0x1b2   :  { %v1036_v49 = vsel %vm807_vm2, %v957_v43, 0.0  ;;  %v8327_v50 = vpop.f32.mrb[18].mxu0 }
 0x1b3   :  { %v1037_v51 = vadd.f32 %v1036_v49, %v1035_v47  ;;  %v8329_v52 = vpop.f32.mrb[19].mxu0  ;;  %v842_v53 = vadd.f32 %v841_v48, %v840_v45  ;;  %v960_v55 = vmul.f32 %v8327_v50, %v8327_v50  ;;  %v845_v62 = vsel %vm807_vm2, %v8327_v50, 0.0 }
 0x1b4   :  { %v843_v57 = vsel %vm807_vm2, %v8329_v52, 0.0  ;;  %v959_v59 = vmul.f32 %v8329_v52, %v8329_v52 }
 0x1b5   :  { %v844_v60 = vadd.f32 %v843_v57, %v842_v53  ;;  %v1039_v61 = vadd.f32 %v1038_v54, %v1037_v51  ;;  %v1042_v7 = vsel %vm807_vm2, %v960_v55, 0.0 }
 0x1b6   :  { %v1040_v63 = vsel %vm807_vm2, %v959_v59, 0.0  ;;  %v8341_v0 = vpop.f32.mrb[20].mxu0 }
 0x1b7   :  { %v1041_v1 = vadd.f32 %v1040_v63, %v1039_v61  ;;  %v8343_v3 = vpop.f32.mrb[21].mxu0  ;;  %v846_v4 = vadd.f32 %v845_v62, %v844_v60  ;;  %v962_v9 = vmul.f32 %v8341_v0, %v8341_v0  ;;  %v849_v16 = vsel %vm807_vm2, %v8341_v0, 0.0 }
 0x1b8   :  { %v847_v10 = vsel %vm807_vm2, %v8343_v3, 0.0  ;;  %v961_v12 = vmul.f32 %v8343_v3, %v8343_v3 }
 0x1b9   :  { %v848_v14 = vadd.f32 %v847_v10, %v846_v4  ;;  %v1043_v15 = vadd.f32 %v1042_v7, %v1041_v1  ;;  %v1046_v26 = vsel %vm807_vm2, %v962_v9, 0.0 }
 0x1ba   :  { %v1044_v17 = vsel %vm807_vm2, %v961_v12, 0.0  ;;  %v8355_v18 = vpop.f32.mrb[22].mxu0 }
 0x1bb   :  { %v1045_v19 = vadd.f32 %v1044_v17, %v1043_v15  ;;  %v8357_v22 = vpop.f32.mrb[23].mxu0  ;;  %v850_v25 = vadd.f32 %v849_v16, %v848_v14  ;;  %v964_v27 = vmul.f32 %v8355_v18, %v8355_v18  ;;  %v853_v33 = vsel %vm807_vm2, %v8355_v18, 0.0 }
 0x1bc   :  { %v851_v28 = vsel %vm807_vm2, %v8357_v22, 0.0  ;;  %v963_v29 = vmul.f32 %v8357_v22, %v8357_v22 }
 0x1bd   :  { %v852_v30 = vadd.f32 %v851_v28, %v850_v25  ;;  %v1047_v31 = vadd.f32 %v1046_v26, %v1045_v19  ;;  %v1050_v42 = vsel %vm807_vm2, %v964_v27, 0.0 }
 0x1be   :  { %v1048_v35 = vsel %vm807_vm2, %v963_v29, 0.0  ;;  %v8369_v37 = vpop.f32.mrb[24].mxu0 }
 0x1bf   :  { %v1049_v39 = vadd.f32 %v1048_v35, %v1047_v31  ;;  %v8371_v40 = vpop.f32.mrb[25].mxu0  ;;  %v854_v41 = vadd.f32 %v853_v33, %v852_v30  ;;  %v966_v43 = vmul.f32 %v8369_v37, %v8369_v37  ;;  %v857_v51 = vsel %vm807_vm2, %v8369_v37, 0.0 }
 0x1c0   :  { %v855_v45 = vsel %vm807_vm2, %v8371_v40, 0.0  ;;  %v965_v47 = vmul.f32 %v8371_v40, %v8371_v40 }
 0x1c1   :  { %v856_v48 = vadd.f32 %v855_v45, %v854_v41  ;;  %v1051_v49 = vadd.f32 %v1050_v42, %v1049_v39  ;;  %v1054_v60 = vsel %vm807_vm2, %v966_v43, 0.0 }
 0x1c2   :  { %v1052_v53 = vsel %vm807_vm2, %v965_v47, 0.0  ;;  %v8383_v54 = vpop.f32.mrb[26].mxu0 }
 0x1c3   :  { %v1053_v55 = vadd.f32 %v1052_v53, %v1051_v49  ;;  %v8385_v57 = vpop.f32.mrb[27].mxu0  ;;  %v858_v59 = vadd.f32 %v857_v51, %v856_v48  ;;  %v968_v61 = vmul.f32 %v8383_v54, %v8383_v54  ;;  %v861_v7 = vsel %vm807_vm2, %v8383_v54, 0.0 }
 0x1c4   :  { %v859_v62 = vsel %vm807_vm2, %v8385_v57, 0.0  ;;  %v967_v63 = vmul.f32 %v8385_v57, %v8385_v57 }
 0x1c5   :  { %v860_v1 = vadd.f32 %v859_v62, %v858_v59  ;;  %v1055_v4 = vadd.f32 %v1054_v60, %v1053_v55  ;;  %v1058_v16 = vsel %vm807_vm2, %v968_v61, 0.0 }
 0x1c6   :  { %v1056_v9 = vsel %vm807_vm2, %v967_v63, 0.0  ;;  %v8397_v10 = vpop.f32.mrb[28].mxu0 }
 0x1c7   :  { %v1057_v12 = vadd.f32 %v1056_v9, %v1055_v4  ;;  %v8399_v14 = vpop.f32.mrb[29].mxu0  ;;  %v862_v15 = vadd.f32 %v861_v7, %v860_v1  ;;  %v970_v17 = vmul.f32 %v8397_v10, %v8397_v10  ;;  %v865_v28 = vsel %vm807_vm2, %v8397_v10, 0.0 }
 0x1c8   :  { %v863_v19 = vsel %vm807_vm2, %v8399_v14, 0.0  ;;  %v969_v25 = vmul.f32 %v8399_v14, %v8399_v14 }
 0x1c9   :  { %v864_v26 = vadd.f32 %v863_v19, %v862_v15  ;;  %v1059_v27 = vadd.f32 %v1058_v16, %v1057_v12  ;;  %v1062_v39 = vsel %vm807_vm2, %v970_v17, 0.0 }
 0x1ca   :  { %v1060_v29 = vsel %vm807_vm2, %v969_v25, 0.0  ;;  %v8411_v30 = vpop.f32.mrb[30].mxu0 }
 0x1cb   :  { %v1061_v31 = vadd.f32 %v1060_v29, %v1059_v27  ;;  %v8413_v33 = vpop.f32.mrb[31].mxu0  ;;  %v866_v35 = vadd.f32 %v865_v28, %v864_v26  ;;  %v972_v41 = vmul.f32 %v8411_v30, %v8411_v30  ;;  %v869_v48 = vsel %vm807_vm2, %v8411_v30, 0.0 }
 0x1cc   :  { %v867_v42 = vsel %vm807_vm2, %v8413_v33, 0.0  ;;  %v971_v43 = vmul.f32 %v8413_v33, %v8413_v33 }
 0x1cd   :  { %v868_v45 = vadd.f32 %v867_v42, %v866_v35  ;;  %v1063_v47 = vadd.f32 %v1062_v39, %v1061_v31  ;;  %v1066_v60 = vsel %vm807_vm2, %v972_v41, 0.0 }
 0x1ce   :  { %v1064_v49 = vsel %vm807_vm2, %v971_v43, 0.0  ;;  %v8425_v51 = vpop.f32.mrb[32].mxu0 }
 0x1cf   :  { %v1065_v53 = vadd.f32 %v1064_v49, %v1063_v47  ;;  %v8427_v55 = vpop.f32.mrb[33].mxu0  ;;  %v870_v59 = vadd.f32 %v869_v48, %v868_v45  ;;  %v974_v61 = vmul.f32 %v8425_v51, %v8425_v51  ;;  %v873_v7 = vsel %vm807_vm2, %v8425_v51, 0.0 }
 0x1d0   :  { %v871_v62 = vsel %vm807_vm2, %v8427_v55, 0.0  ;;  %v973_v63 = vmul.f32 %v8427_v55, %v8427_v55 }
 0x1d1   :  { %v872_v1 = vadd.f32 %v871_v62, %v870_v59  ;;  %v1067_v4 = vadd.f32 %v1066_v60, %v1065_v53  ;;  %v1070_v19 = vsel %vm807_vm2, %v974_v61, 0.0 }
 0x1d2   :  { %v1068_v9 = vsel %vm807_vm2, %v973_v63, 0.0  ;;  %v8439_v12 = vpop.f32.mrb[34].mxu0 }
 0x1d3   :  { %16484 = vst [vmem:[#allocation28_spill] sm:$0xff] %v8439_v12  ;;  %v1069_v15 = vadd.f32 %v1068_v9, %v1067_v4  ;;  %v8441_v16 = vpop.f32.mrb[35].mxu0  ;;  %v874_v17 = vadd.f32 %v873_v7, %v872_v1  ;;  %v976_v25 = vmul.f32 %v8439_v12, %v8439_v12  ;;  %v877_v31 = vsel %vm807_vm2, %v8439_v12, 0.0 }
 0x1d4   :  { %16485 = vst [vmem:[#allocation29_spill] sm:$0xff] %v8441_v16  ;;  %v875_v26 = vsel %vm807_vm2, %v8441_v16, 0.0  ;;  %v975_v27 = vmul.f32 %v8441_v16, %v8441_v16 }
 0x1d5   :  { %v876_v28 = vadd.f32 %v875_v26, %v874_v17  ;;  %v1071_v29 = vadd.f32 %v1070_v19, %v1069_v15  ;;  %v1074_v45 = vsel %vm807_vm2, %v976_v25, 0.0 }
 0x1d6   :  { %v1072_v35 = vsel %vm807_vm2, %v975_v27, 0.0  ;;  %v8453_v39 = vpop.f32.mrb[36].mxu0 }
 0x1d7   :  { %16486 = vst [vmem:[#allocation30_spill] sm:$0xff] %v8453_v39  ;;  %v1073_v41 = vadd.f32 %v1072_v35, %v1071_v29  ;;  %v8455_v42 = vpop.f32.mrb[37].mxu0  ;;  %v878_v43 = vadd.f32 %v877_v31, %v876_v28  ;;  %v978_v47 = vmul.f32 %v8453_v39, %v8453_v39  ;;  %v881_v60 = vsel %vm807_vm2, %v8453_v39, 0.0 }
 0x1d8   :  { %16487 = vst [vmem:[#allocation31_spill] sm:$0xff] %v8455_v42  ;;  %v879_v48 = vsel %vm807_vm2, %v8455_v42, 0.0  ;;  %v977_v49 = vmul.f32 %v8455_v42, %v8455_v42 }
 0x1d9   :  { %v880_v53 = vadd.f32 %v879_v48, %v878_v43  ;;  %v1075_v59 = vadd.f32 %v1074_v45, %v1073_v41  ;;  %v1078_v7 = vsel %vm807_vm2, %v978_v47, 0.0 }
 0x1da   :  { %v1076_v61 = vsel %vm807_vm2, %v977_v49, 0.0  ;;  %v8467_v62 = vpop.f32.mrb[38].mxu0 }
 0x1db   :  { %16488 = vst [vmem:[#allocation32_spill] sm:$0xff] %v8467_v62  ;;  %v1077_v63 = vadd.f32 %v1076_v61, %v1075_v59  ;;  %v8469_v1 = vpop.f32.mrb[39].mxu0  ;;  %v882_v4 = vadd.f32 %v881_v60, %v880_v53  ;;  %v980_v9 = vmul.f32 %v8467_v62, %v8467_v62  ;;  %v885_v26 = vsel %vm807_vm2, %v8467_v62, 0.0 }
 0x1dc   :  { %16489 = vst [vmem:[#allocation33_spill] sm:$0xff] %v8469_v1  ;;  %v883_v15 = vsel %vm807_vm2, %v8469_v1, 0.0  ;;  %v979_v17 = vmul.f32 %v8469_v1, %v8469_v1 }
 0x1dd   :  { %v884_v19 = vadd.f32 %v883_v15, %v882_v4  ;;  %v1079_v25 = vadd.f32 %v1078_v7, %v1077_v63  ;;  %v1082_v41 = vsel %vm807_vm2, %v980_v9, 0.0 }
 0x1de   :  { %v1080_v27 = vsel %vm807_vm2, %v979_v17, 0.0  ;;  %v8481_v28 = vpop.f32.mrb[40].mxu0 }
 0x1df   :  { %16490 = vst [vmem:[#allocation34_spill] sm:$0xff] %v8481_v28  ;;  %v1081_v29 = vadd.f32 %v1080_v27, %v1079_v25  ;;  %v8483_v31 = vpop.f32.mrb[41].mxu0  ;;  %v886_v35 = vadd.f32 %v885_v26, %v884_v19  ;;  %v982_v43 = vmul.f32 %v8481_v28, %v8481_v28  ;;  %v889_v53 = vsel %vm807_vm2, %v8481_v28, 0.0 }
 0x1e0   :  { %16491 = vst [vmem:[#allocation35_spill] sm:$0xff] %v8483_v31  ;;  %v887_v45 = vsel %vm807_vm2, %v8483_v31, 0.0  ;;  %v981_v47 = vmul.f32 %v8483_v31, %v8483_v31 }
 0x1e1   :  { %v888_v48 = vadd.f32 %v887_v45, %v886_v35  ;;  %v1083_v49 = vadd.f32 %v1082_v41, %v1081_v29  ;;  %v1086_v7 = vsel %vm807_vm2, %v982_v43, 0.0 }
 0x1e2   :  { %v1084_v59 = vsel %vm807_vm2, %v981_v47, 0.0  ;;  %v8495_v60 = vpop.f32.mrb[42].mxu0 }
 0x1e3   :  { %16492 = vst [vmem:[#allocation36_spill] sm:$0xff] %v8495_v60  ;;  %v1085_v61 = vadd.f32 %v1084_v59, %v1083_v49  ;;  %v8497_v63 = vpop.f32.mrb[43].mxu0  ;;  %v890_v4 = vadd.f32 %v889_v53, %v888_v48  ;;  %v984_v9 = vmul.f32 %v8495_v60, %v8495_v60  ;;  %v893_v26 = vsel %vm807_vm2, %v8495_v60, 0.0 }
 0x1e4   :  { %16493 = vst [vmem:[#allocation37_spill] sm:$0xff] %v8497_v63  ;;  %v891_v15 = vsel %vm807_vm2, %v8497_v63, 0.0  ;;  %v983_v17 = vmul.f32 %v8497_v63, %v8497_v63 }
 0x1e5   :  { %v892_v19 = vadd.f32 %v891_v15, %v890_v4  ;;  %v1087_v25 = vadd.f32 %v1086_v7, %v1085_v61  ;;  %v1090_v45 = vsel %vm807_vm2, %v984_v9, 0.0 }
 0x1e6   :  { %v1088_v27 = vsel %vm807_vm2, %v983_v17, 0.0  ;;  %v8509_v29 = vpop.f32.mrb[44].mxu0 }
 0x1e7   :  { %16494 = vst [vmem:[#allocation38_spill] sm:$0xff] %v8509_v29  ;;  %v1089_v35 = vadd.f32 %v1088_v27, %v1087_v25  ;;  %v8511_v41 = vpop.f32.mrb[45].mxu0  ;;  %v894_v43 = vadd.f32 %v893_v26, %v892_v19  ;;  %v986_v47 = vmul.f32 %v8509_v29, %v8509_v29  ;;  %v897_v61 = vsel %vm807_vm2, %v8509_v29, 0.0 }
 0x1e8   :  { %16495 = vst [vmem:[#allocation39_spill] sm:$0xff] %v8511_v41  ;;  %v895_v48 = vsel %vm807_vm2, %v8511_v41, 0.0  ;;  %v985_v49 = vmul.f32 %v8511_v41, %v8511_v41 }
 0x1e9   :  { %v896_v53 = vadd.f32 %v895_v48, %v894_v43  ;;  %v1091_v59 = vadd.f32 %v1090_v45, %v1089_v35  ;;  %v1094_v19 = vsel %vm807_vm2, %v986_v47, 0.0 }
 0x1ea   :  { %v1092_v4 = vsel %vm807_vm2, %v985_v49, 0.0  ;;  %v8523_v7 = vpop.f32.mrb[46].mxu0 }
 0x1eb   :  { %16496 = vst [vmem:[#allocation40_spill] sm:$0xff] %v8523_v7  ;;  %v1093_v15 = vadd.f32 %v1092_v4, %v1091_v59  ;;  %v8525_v9 = vpop.f32.mrb[47].mxu0  ;;  %v898_v17 = vadd.f32 %v897_v61, %v896_v53  ;;  %v988_v25 = vmul.f32 %v8523_v7, %v8523_v7  ;;  %v901_v45 = vsel %vm807_vm2, %v8523_v7, 0.0 }
 0x1ec   :  { %16497 = vst [vmem:[#allocation41_spill] sm:$0xff] %v8525_v9  ;;  %v899_v26 = vsel %vm807_vm2, %v8525_v9, 0.0  ;;  %v987_v27 = vmul.f32 %v8525_v9, %v8525_v9 }
 0x1ed   :  { %v900_v35 = vadd.f32 %v899_v26, %v898_v17  ;;  %v1095_v43 = vadd.f32 %v1094_v19, %v1093_v15  ;;  %v1098_v61 = vsel %vm807_vm2, %v988_v25, 0.0 }
 0x1ee   :  { %v1096_v48 = vsel %vm807_vm2, %v987_v27, 0.0  ;;  %v8537_v49 = vpop.f32.mrb[48].mxu0 }
 0x1ef   :  { %16498 = vst [vmem:[#allocation42_spill] sm:$0xff] %v8537_v49  ;;  %v1097_v53 = vadd.f32 %v1096_v48, %v1095_v43  ;;  %v8539_v47 = vpop.f32.mrb[49].mxu0  ;;  %v902_v59 = vadd.f32 %v901_v45, %v900_v35  ;;  %v990_v4 = vmul.f32 %v8537_v49, %v8537_v49  ;;  %v905_v27 = vsel %vm807_vm2, %v8537_v49, 0.0 }
 0x1f0   :  { %16499 = vst [vmem:[#allocation43_spill] sm:$0xff] %v8539_v47  ;;  %v903_v17 = vsel %vm807_vm2, %v8539_v47, 0.0  ;;  %v989_v15 = vmul.f32 %v8539_v47, %v8539_v47 }
 0x1f1   :  { %v904_v19 = vadd.f32 %v903_v17, %v902_v59  ;;  %v1099_v26 = vadd.f32 %v1098_v61, %v1097_v53  ;;  %v1102_v7 = vsel %vm807_vm2, %v990_v4, 0.0 }
 0x1f2   :  { %v1100_v43 = vsel %vm807_vm2, %v989_v15, 0.0  ;;  %v8551_v48 = vpop.f32.mrb[50].mxu0 }
 0x1f3   :  { %16500 = vst [vmem:[#allocation44_spill] sm:$0xff] %v8551_v48  ;;  %v1101_v35 = vadd.f32 %v1100_v43, %v1099_v26  ;;  %v8553_v25 = vpop.f32.mrb[51].mxu0  ;;  %v906_v45 = vadd.f32 %v905_v27, %v904_v19  ;;  %v992_v9 = vmul.f32 %v8551_v48, %v8551_v48  ;;  %v909_v15 = vsel %vm807_vm2, %v8551_v48, 0.0 }
 0x1f4   :  { %16501 = vst [vmem:[#allocation45_spill] sm:$0xff] %v8553_v25  ;;  %v907_v59 = vsel %vm807_vm2, %v8553_v25, 0.0  ;;  %v991_v53 = vmul.f32 %v8553_v25, %v8553_v25 }
 0x1f5   :  { %v908_v61 = vadd.f32 %v907_v59, %v906_v45  ;;  %v1103_v17 = vadd.f32 %v1102_v7, %v1101_v35  ;;  %v1106_v49 = vsel %vm807_vm2, %v992_v9, 0.0 }
 0x1f6   :  { %v1104_v26 = vsel %vm807_vm2, %v991_v53, 0.0  ;;  %v8565_v43 = vpop.f32.mrb[52].mxu0 }
 0x1f7   :  { %16502 = vst [vmem:[#allocation46_spill] sm:$0xff] %v8565_v43  ;;  %v1105_v19 = vadd.f32 %v1104_v26, %v1103_v17  ;;  %v8567_v4 = vpop.f32.mrb[53].mxu0  ;;  %v910_v27 = vadd.f32 %v909_v15, %v908_v61  ;;  %v994_v47 = vmul.f32 %v8565_v43, %v8565_v43  ;;  %v913_v53 = vsel %vm807_vm2, %v8565_v43, 0.0 }
 0x1f8   :  { %16503 = vst [vmem:[#allocation47_spill] sm:$0xff] %v8567_v4  ;;  %v911_v45 = vsel %vm807_vm2, %v8567_v4, 0.0  ;;  %v993_v7 = vmul.f32 %v8567_v4, %v8567_v4 }
 0x1f9   :  { %v912_v35 = vadd.f32 %v911_v45, %v910_v27  ;;  %v1107_v59 = vadd.f32 %v1106_v49, %v1105_v19  ;;  %v1110_v48 = vsel %vm807_vm2, %v994_v47, 0.0 }
 0x1fa   :  { %v1108_v17 = vsel %vm807_vm2, %v993_v7, 0.0  ;;  %v8579_v26 = vpop.f32.mrb[54].mxu0 }
 0x1fb   :  { %16504 = vst [vmem:[#allocation48_spill] sm:$0xff] %v8579_v26  ;;  %v1109_v61 = vadd.f32 %v1108_v17, %v1107_v59  ;;  %v8581_v9 = vpop.f32.mrb[55].mxu0  ;;  %v914_v15 = vadd.f32 %v913_v53, %v912_v35  ;;  %v996_v25 = vmul.f32 %v8579_v26, %v8579_v26  ;;  %v917_v7 = vsel %vm807_vm2, %v8579_v26, 0.0 }
 0x1fc   :  { %16505 = vst [vmem:[#allocation49_spill] sm:$0xff] %v8581_v9  ;;  %v915_v27 = vsel %vm807_vm2, %v8581_v9, 0.0  ;;  %v995_v49 = vmul.f32 %v8581_v9, %v8581_v9 }
 0x1fd   :  { %v916_v19 = vadd.f32 %v915_v27, %v914_v15  ;;  %v1111_v45 = vadd.f32 %v1110_v48, %v1109_v61  ;;  %v1114_v43 = vsel %vm807_vm2, %v996_v25, 0.0 }
 0x1fe   :  { %v1112_v59 = vsel %vm807_vm2, %v995_v49, 0.0  ;;  %v8593_v17 = vpop.f32.mrb[56].mxu0 }
 0x1ff   :  { %16506 = vst [vmem:[#allocation50_spill] sm:$0xff] %v8593_v17  ;;  %v1113_v35 = vadd.f32 %v1112_v59, %v1111_v45  ;;  %v8595_v47 = vpop.f32.mrb[57].mxu0  ;;  %v918_v53 = vadd.f32 %v917_v7, %v916_v19  ;;  %v998_v4 = vmul.f32 %v8593_v17, %v8593_v17  ;;  %v921_v49 = vsel %vm807_vm2, %v8593_v17, 0.0 }
 0x200   :  { %16507 = vst [vmem:[#allocation51_spill] sm:$0xff] %v8595_v47  ;;  %v919_v15 = vsel %vm807_vm2, %v8595_v47, 0.0  ;;  %v997_v48 = vmul.f32 %v8595_v47, %v8595_v47 }
 0x201   :  { %v920_v61 = vadd.f32 %v919_v15, %v918_v53  ;;  %v1115_v27 = vadd.f32 %v1114_v43, %v1113_v35  ;;  %v1118_v26 = vsel %vm807_vm2, %v998_v4, 0.0 }
 0x202   :  { %v1116_v45 = vsel %vm807_vm2, %v997_v48, 0.0  ;;  %v8607_v59 = vpop.f32.mrb[58].mxu0 }
 0x203   :  { %v1117_v19 = vadd.f32 %v1116_v45, %v1115_v27  ;;  %v8609_v25 = vpop.f32.mrb[59].mxu0  ;;  %v922_v7 = vadd.f32 %v921_v49, %v920_v61  ;;  %v1000_v9 = vmul.f32 %v8607_v59, %v8607_v59  ;;  %v925_v48 = vsel %vm807_vm2, %v8607_v59, 0.0 }
 0x204   :  { %v923_v53 = vsel %vm807_vm2, %v8609_v25, 0.0  ;;  %v999_v43 = vmul.f32 %v8609_v25, %v8609_v25 }
 0x205   :  { %v924_v35 = vadd.f32 %v923_v53, %v922_v7  ;;  %v1119_v15 = vadd.f32 %v1118_v26, %v1117_v19  ;;  %v1122_v17 = vsel %vm807_vm2, %v1000_v9, 0.0 }
 0x206   :  { %v1120_v27 = vsel %vm807_vm2, %v999_v43, 0.0  ;;  %v7168_v45 = vpop.f32.mrb[60].mxu0 }
 0x207   :  { %v1121_v61 = vadd.f32 %v1120_v27, %v1119_v15  ;;  %v786_v49 = vpop.f32.mrb[61].mxu0  ;;  %v926_v4 = vadd.f32 %v925_v48, %v924_v35  ;;  %v1002_v47 = vmul.f32 %v7168_v45, %v7168_v45  ;;  %v929_v7 = vsel %vm807_vm2, %v7168_v45, 0.0 }
 0x208   :  { %v927_v29 = vsel %vm807_vm2, %v786_v49, 0.0  ;;  %v1001_v41 = vmul.f32 %v786_v49, %v786_v49 }
 0x209   :  { %v928_v60 = vadd.f32 %v927_v29, %v926_v4  ;;  %v1123_v63 = vadd.f32 %v1122_v17, %v1121_v61  ;;  %v1126_v15 = vsel %vm807_vm2, %v1002_v47, 0.0 }
 0x20a   :  { %v1124_v26 = vsel %vm807_vm2, %v1001_v41, 0.0  ;;  %v7171_v19 = vpop.f32.mrb[62].mxu0 }
 0x20b   :  { %v1125_v53 = vadd.f32 %v1124_v26, %v1123_v63  ;;  %v796_v28 = vpop.f32.mrb[63].mxu0  ;;  %v930_v43 = vadd.f32 %v929_v7, %v928_v60  ;;  %v1004_v27 = vmul.f32 %v7171_v19, %v7171_v19  ;;  %v933_v62 = vsel %vm807_vm2, %v7171_v19, 0.0 }
 0x20c   :  { %v931_v35 = vsel %vm807_vm2, %v796_v28, 0.0  ;;  %v1003_v9 = vmul.f32 %v796_v28, %v796_v28 }
 0x20d   :  { %v932_v48 = vadd.f32 %v931_v35, %v930_v43  ;;  %v1127_v31 = vadd.f32 %v1126_v15, %v1125_v53  ;;  %v1130_v41 = vsel %vm807_vm2, %v1004_v27, 0.0  ;;  %v1148_v27 = vlaneseq }
 0x20e   :  { %v1128_v29 = vsel %vm807_vm2, %v1003_v9, 0.0 }
 0x20f   :  { %v934_v17 = vadd.f32 %v933_v62, %v932_v48  ;;  %v1129_v61 = vadd.f32 %v1128_v29, %v1127_v31  ;;  %v1149_v48 = vshrl.u32 %v1148_v27, 7  ;;  %v805_v29 = vld [vmem:[#allocation8] sm:$0x1] }
 0x211   :  { %v935_v4 = vrot.slane %v934_v17, 4  ;;  %v1131_v63 = vadd.f32 %v1130_v41, %v1129_v61 }
 0x213   :  { %v936_v26 = vadd.f32 %v935_v4, %v934_v17  ;;  %v1132_v60 = vrot.slane %v1131_v63, 4  ;;  %v8630_v17 = vsub.s32 0, %v1149_v48  ;;  %v806_v4 = vld [vmem:[#allocation9] sm:$0x1] }
 0x215   :  { %v937_v7 = vrot.slane %v936_v26, 2  ;;  %v1133_v47 = vadd.f32 %v1132_v60, %v1131_v63  ;;  %16508 = vst [vmem:[#allocation52_spill] sm:$0xff] %v8630_v17 }
 0x217   :  { %v938_v1 = vadd.f32 %v937_v7, %v936_v26  ;;  %v1134_v39 = vrot.slane %v1133_v47, 2 }
 0x219   :  { %v939_v42 = vrot.slane %v938_v1, 1  ;;  %v1135_v12 = vadd.f32 %v1134_v39, %v1133_v47 }
 0x21b   :  { %v940_v43 = vadd.f32 %v939_v42, %v938_v1  ;;  %v1136_v53 = vrot.slane %v1135_v12, 1 }
 0x21d   :  { %v1137_v15 = vadd.f32 %v1136_v53, %v1135_v12  ;;  %v1138_v35 = vmul.f32 0.001953125, %v940_v43 }
 0x21f   :  { %v1139_v16 = vmul.f32 0.001953125, %v1137_v15  ;;  %v1140_v9 = vmul.f32 %v1138_v35, %v1138_v35 }
 0x221   :  { %v1141_v62 = vsub.f32 %v1139_v16, %v1140_v9 }
 0x223   :  { %v1142_v31 = vadd.f32 1e-05, %v1141_v62 }
 0x225   :  { %7290 = vrsqrt.f32 %v1142_v31 }
 0x22f   :  { %v7291_v61 = vpop.eup %7290 }
 0x230   :  { %v1144_v41 = vmul.f32 %v7291_v61, %v805_v29 }
 0x232   :  { %v1145_v63 = vmul.f32 %v1144_v41, %v1138_v35  ;;  %v8633_v39 = vrot.slane %v1144_v41, %v8630_v17 }
 0x234   :  { %v1146_v42 = vsub.f32 %v806_v4, %v1145_v63  ;;  %v1211_v12 = vmul.f32 %v8633_v39, %v8609_v25  ;;  %v1212_v16 = vmul.f32 %v8607_v59, %v8633_v39  ;;  %v1213_v1 = vmul.f32 %v8633_v39, %v786_v49 }
 0x235   :  { %v1214_v26 = vmul.f32 %v7168_v45, %v8633_v39  ;;  %v1215_v60 = vmul.f32 %v8633_v39, %v796_v28  ;;  %v1216_v7 = vmul.f32 %v7171_v19, %v8633_v39  ;;  %v8645_v47 = vmul.f32 %v8633_v39, %v8208_v5 }
 0x236   :  { %v8648_v43 = vrot.slane %v1146_v42, %v8630_v17  ;;  %v8652_v25 = vmul.f32 %v8202_v2, %v8633_v39  ;;  %v8656_v59 = vmul.f32 %v8633_v39, %v8218_v13  ;;  %v8660_v28 = vmul.f32 %v8216_v11, %v8633_v39  ;;  %v16532_v17 = vld [vmem:[#allocation49_spill] sm:$0xff] }
 0x237   :  { %v8664_v45 = vmul.f32 %v8633_v39, %v8231_v23  ;;  %v8668_v5 = vmul.f32 %v8229_v20, %v8633_v39  ;;  %v8672_v2 = vmul.f32 %v8633_v39, %v8245_v34  ;;  %v8676_v13 = vmul.f32 %v8243_v32, %v8633_v39 }
 0x238   :  { %v1281_v49 = vadd.f32 %v8648_v43, %v1211_v12  ;;  %v1282_v11 = vadd.f32 %v8648_v43, %v1212_v16  ;;  %v1283_v19 = vadd.f32 %v8648_v43, %v1213_v1  ;;  %v1284_v23 = vadd.f32 %v8648_v43, %v1214_v26 }
 0x239   :  { %v1285_v53 = vadd.f32 %v8648_v43, %v1215_v60  ;;  %v1286_v20 = vadd.f32 %v8648_v43, %v1216_v7  ;;  %v8686_v34 = vmul.f32 %v8633_v39, %v8259_v46  ;;  %v8690_v32 = vmul.f32 %v8257_v44, %v8633_v39  ;;  %v16512_v60 = vld [vmem:[#allocation29_spill] sm:$0xff] }
 0x23a   :  { %v1345_v15 = vmax.f32 %v1281_v49, 0.0  ;;  %v1346_v35 = vmax.f32 %v1282_v11, 0.0  ;;  %v1347_v9 = vmax.f32 %v1283_v19, 0.0  ;;  %v1348_v62 = vmax.f32 %v1284_v23, 0.0  ;;  %v16514_v49 = vld [vmem:[#allocation31_spill] sm:$0xff]  ;;  %v16516_v19 = vld [vmem:[#allocation33_spill] sm:$0xff] }
 0x23b   :  { %v1349_v31 = vmax.f32 %v1285_v53, 0.0  ;;  %v1350_v27 = vmax.f32 %v1286_v20, 0.0  ;;  %v8694_v48 = vmul.f32 %v8633_v39, %v8273_v58  ;;  %v8698_v29 = vmul.f32 %v8271_v56, %v8633_v39  ;;  %v16518_v53 = vld [vmem:[#allocation35_spill] sm:$0xff]  ;;  %v16519_v20 = vld [vmem:[#allocation34_spill] sm:$0xff] }
 0x23c   :  { %v1409_v46 = vmin.f32 %v1345_v15, 6.0  ;;  %v1410_v61 = vmin.f32 %v1346_v35, 6.0  ;;  %v1411_v41 = vmin.f32 %v1347_v9, 6.0  ;;  %v1412_v4 = vmin.f32 %v1348_v62, 6.0  ;;  %v16520_v35 = vld [vmem:[#allocation37_spill] sm:$0xff]  ;;  %v16521_v62 = vld [vmem:[#allocation36_spill] sm:$0xff] }
 0x23d   :  { %16509 = vst [vmem:[#allocation53_spill] sm:$0xff] %v8698_v29  ;;  %v1413_v44 = vmin.f32 %v1349_v31, 6.0  ;;  %v1414_v63 = vmin.f32 %v1350_v27, 6.0  ;;  %v8702_v42 = vmul.f32 %v8633_v39, %v8287_v8  ;;  %v8706_v12 = vmul.f32 %v8285_v6, %v8633_v39  ;;  %v16522_v27 = vld [vmem:[#allocation39_spill] sm:$0xff] }
 0x23e   :  { %1561 = vst.msk [vmem:[#allocation2 + $0x301] sm:$0xff] %vm807_vm2, %v1409_v46  ;;  %1562 = vst.msk [vmem:[#allocation2 + $0x309] sm:$0xff] %vm807_vm2, %v1410_v61  ;;  %v1167_v56 = vmul.f32 %v8633_v39, %v8301_v24  ;;  %v1168_v58 = vmul.f32 %v8299_v21, %v8633_v39  ;;  %v1169_v8 = vmul.f32 %v8633_v39, %v8315_v38  ;;  %v16523_v61 = vld [vmem:[#allocation38_spill] sm:$0xff] }
 0x23f   :  { %16510 = vst [vmem:[#allocation54_spill] sm:$0xff] %v8702_v42  ;;  %16511 = vst [vmem:[#allocation55_spill] sm:$0xff] %v8706_v12  ;;  %v1170_v6 = vmul.f32 %v8313_v36, %v8633_v39  ;;  %v1171_v16 = vmul.f32 %v8633_v39, %v8329_v52  ;;  %v1172_v1 = vmul.f32 %v8327_v50, %v8633_v39  ;;  %v16534_v42 = vld [vmem:[#allocation51_spill] sm:$0xff] }
 0x240   :  { %1563 = vst.msk [vmem:[#allocation2 + $0x319] sm:$0xff] %vm807_vm2, %v1411_v41  ;;  %1564 = vst.msk [vmem:[#allocation2 + $0x321] sm:$0xff] %vm807_vm2, %v1412_v4  ;;  %v1173_v24 = vmul.f32 %v8633_v39, %v8343_v3  ;;  %v1174_v21 = vmul.f32 %v8341_v0, %v8633_v39  ;;  %v1175_v38 = vmul.f32 %v8633_v39, %v8357_v22  ;;  %v16524_v4 = vld [vmem:[#allocation41_spill] sm:$0xff] }
 0x241   :  { %1565 = vst.msk [vmem:[#allocation2 + $0x331] sm:$0xff] %vm807_vm2, %v1413_v44  ;;  %1566 = vst.msk [vmem:[#allocation2 + $0x339] sm:$0xff] %vm807_vm2, %v1414_v63  ;;  %v1176_v36 = vmul.f32 %v8355_v18, %v8633_v39  ;;  %v1177_v26 = vmul.f32 %v8633_v39, %v8371_v40  ;;  %v1178_v52 = vmul.f32 %v8369_v37, %v8633_v39  ;;  %v16525_v63 = vld [vmem:[#allocation40_spill] sm:$0xff] }
 0x242   :  { %v1179_v50 = vmul.f32 %v8633_v39, %v8385_v57  ;;  %v1180_v3 = vmul.f32 %v8383_v54, %v8633_v39  ;;  %v1181_v0 = vmul.f32 %v8633_v39, %v8399_v14  ;;  %v1182_v22 = vmul.f32 %v8397_v10, %v8633_v39  ;;  %v16513_v14 = vld [vmem:[#allocation28_spill] sm:$0xff] }
 0x243   :  { %v1183_v18 = vmul.f32 %v8633_v39, %v8413_v33  ;;  %v1184_v40 = vmul.f32 %v8411_v30, %v8633_v39  ;;  %v1185_v37 = vmul.f32 %v8633_v39, %v8427_v55  ;;  %v1186_v57 = vmul.f32 %v8425_v51, %v8633_v39  ;;  %v16515_v33 = vld [vmem:[#allocation30_spill] sm:$0xff]  ;;  %v16517_v55 = vld [vmem:[#allocation32_spill] sm:$0xff] }
 0x244   :  { %v1187_v54 = vmul.f32 %v8633_v39, %v16512_v60  ;;  %v1188_v7 = vmul.f32 %v16513_v14, %v8633_v39  ;;  %v1189_v10 = vmul.f32 %v8633_v39, %v16514_v49  ;;  %v1190_v11 = vmul.f32 %v16515_v33, %v8633_v39  ;;  %v16526_v14 = vld [vmem:[#allocation43_spill] sm:$0xff]  ;;  %v16527_v33 = vld [vmem:[#allocation42_spill] sm:$0xff] }
 0x245   :  { %v1191_v30 = vmul.f32 %v8633_v39, %v16516_v19  ;;  %v1192_v23 = vmul.f32 %v16517_v55, %v8633_v39  ;;  %v1193_v51 = vmul.f32 %v8633_v39, %v16518_v53  ;;  %v1194_v15 = vmul.f32 %v16519_v20, %v8633_v39  ;;  %v16528_v55 = vld [vmem:[#allocation45_spill] sm:$0xff]  ;;  %v16529_v20 = vld [vmem:[#allocation44_spill] sm:$0xff] }
 0x246   :  { %v1195_v9 = vmul.f32 %v8633_v39, %v16520_v35  ;;  %v1196_v31 = vmul.f32 %v16521_v62, %v8633_v39  ;;  %v1197_v46 = vmul.f32 %v8633_v39, %v16522_v27  ;;  %v1198_v41 = vmul.f32 %v16523_v61, %v8633_v39  ;;  %v16530_v62 = vld [vmem:[#allocation47_spill] sm:$0xff]  ;;  %v16531_v61 = vld [vmem:[#allocation46_spill] sm:$0xff] }
 0x247   :  { %v1199_v44 = vmul.f32 %v8633_v39, %v16524_v4  ;;  %v1200_v60 = vmul.f32 %v16525_v63, %v8633_v39  ;;  %v1201_v49 = vmul.f32 %v8633_v39, %v16526_v14  ;;  %v1202_v19 = vmul.f32 %v16527_v33, %v8633_v39  ;;  %v16533_v14 = vld [vmem:[#allocation48_spill] sm:$0xff] }
 0x248   :  { %v1203_v53 = vmul.f32 %v8633_v39, %v16528_v55  ;;  %v1204_v35 = vmul.f32 %v16529_v20, %v8633_v39  ;;  %v1205_v27 = vmul.f32 %v8633_v39, %v16530_v62  ;;  %v1206_v4 = vmul.f32 %v16531_v61, %v8633_v39  ;;  %v16535_v55 = vld [vmem:[#allocation50_spill] sm:$0xff] }
 0x249   :  { %v1207_v63 = vmul.f32 %v8633_v39, %v16532_v17  ;;  %v1208_v12 = vmul.f32 %v16533_v14, %v8633_v39  ;;  %v1209_v33 = vmul.f32 %v8633_v39, %v16534_v42  ;;  %v1210_v29 = vmul.f32 %v16535_v55, %v8633_v39  ;;  %v16539_v14 = vld [vmem:[#allocation54_spill] sm:$0xff]  ;;  %v16540_v55 = vld [vmem:[#allocation55_spill] sm:$0xff] }
 0x24a   :  { %v8804_v20 = vadd.f32 %v8648_v43, %v8645_v47  ;;  %v8808_v62 = vadd.f32 %v8648_v43, %v8652_v25  ;;  %v8812_v17 = vadd.f32 %v8648_v43, %v8656_v59  ;;  %v8816_v61 = vadd.f32 %v8648_v43, %v8660_v28 }
 0x24b   :  { %v8820_v42 = vadd.f32 %v8648_v43, %v8664_v45  ;;  %v8824_v39 = vadd.f32 %v8648_v43, %v8668_v5  ;;  %v8828_v47 = vadd.f32 %v8648_v43, %v8672_v2  ;;  %v8832_v25 = vadd.f32 %v8648_v43, %v8676_v13  ;;  %v16537_v5 = vld [vmem:[#allocation53_spill] sm:$0xff] }
 0x24c   :  { %v8836_v59 = vadd.f32 %v8648_v43, %v8686_v34  ;;  %v8840_v28 = vadd.f32 %v8648_v43, %v8690_v32  ;;  %v8844_v45 = vadd.f32 %v8648_v43, %v8694_v48  ;;  %v8848_v2 = vadd.f32 %v8648_v43, %v16537_v5 }
 0x24d   :  { %v8852_v13 = vadd.f32 %v8648_v43, %v16539_v14  ;;  %v8856_v34 = vadd.f32 %v8648_v43, %v16540_v55  ;;  %v8862_v32 = vadd.f32 %v8648_v43, %v1168_v58  ;;  %v8865_v48 = vadd.f32 %v8648_v43, %v1169_v8 }
 0x24e   :  { %16536 = vst [vmem:[#allocation29_spill] sm:$0xff] %v8836_v59  ;;  %16538 = vst [vmem:[#allocation28_spill] sm:$0xff] %v8848_v2  ;;  %v8859_v59 = vadd.f32 %v8648_v43, %v1167_v56  ;;  %v8868_v5 = vadd.f32 %v8648_v43, %v1170_v6  ;;  %v8871_v2 = vadd.f32 %v8648_v43, %v1171_v16 }
 0x24f   :  { %v8874_v14 = vadd.f32 %v8648_v43, %v1172_v1  ;;  %v8877_v55 = vadd.f32 %v8648_v43, %v1173_v24  ;;  %v8880_v56 = vadd.f32 %v8648_v43, %v1174_v21  ;;  %v8883_v58 = vadd.f32 %v8648_v43, %v1175_v38 }
 0x250   :  { %v8886_v8 = vadd.f32 %v8648_v43, %v1176_v36  ;;  %v8889_v6 = vadd.f32 %v8648_v43, %v1177_v26  ;;  %v8892_v16 = vadd.f32 %v8648_v43, %v1178_v52  ;;  %v8895_v1 = vadd.f32 %v8648_v43, %v1179_v50 }
 0x251   :  { %v8898_v24 = vadd.f32 %v8648_v43, %v1180_v3  ;;  %v8901_v21 = vadd.f32 %v8648_v43, %v1181_v0  ;;  %v8904_v38 = vadd.f32 %v8648_v43, %v1182_v22  ;;  %v8907_v36 = vadd.f32 %v8648_v43, %v1183_v18 }
 0x252   :  { %v8910_v26 = vadd.f32 %v8648_v43, %v1184_v40  ;;  %v8913_v52 = vadd.f32 %v8648_v43, %v1185_v37  ;;  %v8916_v50 = vadd.f32 %v8648_v43, %v1186_v57  ;;  %v8919_v3 = vadd.f32 %v8648_v43, %v1187_v54 }
 0x253   :  { %v8922_v0 = vadd.f32 %v8648_v43, %v1188_v7  ;;  %v8925_v22 = vadd.f32 %v8648_v43, %v1189_v10  ;;  %v8928_v18 = vadd.f32 %v8648_v43, %v1190_v11  ;;  %v8931_v40 = vadd.f32 %v8648_v43, %v1191_v30 }
 0x254   :  { %v8934_v37 = vadd.f32 %v8648_v43, %v1192_v23  ;;  %v8937_v57 = vadd.f32 %v8648_v43, %v1193_v51  ;;  %v8940_v54 = vadd.f32 %v8648_v43, %v1194_v15  ;;  %v8943_v7 = vadd.f32 %v8648_v43, %v1195_v9 }
 0x255   :  { %v8946_v10 = vadd.f32 %v8648_v43, %v1196_v31  ;;  %v8949_v11 = vadd.f32 %v8648_v43, %v1197_v46  ;;  %v8952_v30 = vadd.f32 %v8648_v43, %v1198_v41  ;;  %v8955_v23 = vadd.f32 %v8648_v43, %v1199_v44 }
 0x256   :  { %16541 = vst [vmem:[#allocation31_spill] sm:$0xff] %v8940_v54  ;;  %v8958_v51 = vadd.f32 %v8648_v43, %v1200_v60  ;;  %v8961_v15 = vadd.f32 %v8648_v43, %v1201_v49  ;;  %v8964_v9 = vadd.f32 %v8648_v43, %v1202_v19  ;;  %v8967_v31 = vadd.f32 %v8648_v43, %v1203_v53 }
 0x257   :  { %16542 = vst [vmem:[#allocation30_spill] sm:$0xff] %v8946_v10  ;;  %16543 = vst [vmem:[#allocation33_spill] sm:$0xff] %v8949_v11  ;;  %v8970_v46 = vadd.f32 %v8648_v43, %v1204_v35  ;;  %v8973_v41 = vadd.f32 %v8648_v43, %v1205_v27  ;;  %v8976_v44 = vadd.f32 %v8648_v43, %v1206_v4  ;;  %v1287_v35 = vmax.f32 %v8804_v20, 0.0  ;;  %v16555_v20 = vld [vmem:[#allocation28_spill] sm:$0xff] }
 0x258   :  { %16544 = vst [vmem:[#allocation32_spill] sm:$0xff] %v8952_v30  ;;  %16545 = vst [vmem:[#allocation35_spill] sm:$0xff] %v8958_v51  ;;  %v8979_v60 = vadd.f32 %v8648_v43, %v1207_v63  ;;  %v8982_v49 = vadd.f32 %v8648_v43, %v1208_v12  ;;  %v8985_v19 = vadd.f32 %v8648_v43, %v1209_v33  ;;  %v1288_v27 = vmax.f32 %v8808_v62, 0.0 }
 0x259   :  { %16546 = vst [vmem:[#allocation34_spill] sm:$0xff] %v8961_v15  ;;  %16547 = vst [vmem:[#allocation37_spill] sm:$0xff] %v8964_v9  ;;  %v8988_v53 = vadd.f32 %v8648_v43, %v1210_v29  ;;  %v1290_v4 = vmax.f32 %v8816_v61, 0.0  ;;  %v1291_v63 = vmax.f32 %v8820_v42, 0.0  ;;  %v1293_v12 = vmax.f32 %v8828_v47, 0.0 }
 0x25a   :  { %16548 = vst [vmem:[#allocation36_spill] sm:$0xff] %v8967_v31  ;;  %16549 = vst [vmem:[#allocation39_spill] sm:$0xff] %v8970_v46  ;;  %v1294_v33 = vmax.f32 %v8832_v25, 0.0  ;;  %v1296_v43 = vmax.f32 %v8840_v28, 0.0  ;;  %v1297_v29 = vmax.f32 %v8844_v45, 0.0  ;;  %v1298_v62 = vmax.f32 %v16555_v20, 0.0 }
 0x25b   :  { %16550 = vst [vmem:[#allocation38_spill] sm:$0xff] %v8973_v41  ;;  %16551 = vst [vmem:[#allocation41_spill] sm:$0xff] %v8979_v60  ;;  %v1289_v41 = vmax.f32 %v8812_v17, 0.0  ;;  %v1292_v60 = vmax.f32 %v8824_v39, 0.0  ;;  %v1299_v17 = vmax.f32 %v8852_v13, 0.0  ;;  %v1300_v61 = vmax.f32 %v8856_v34, 0.0 }
 0x25c   :  { %16552 = vst [vmem:[#allocation40_spill] sm:$0xff] %v8982_v49  ;;  %16553 = vst [vmem:[#allocation43_spill] sm:$0xff] %v8985_v19  ;;  %v16554_v19 = vld [vmem:[#allocation29_spill] sm:$0xff]  ;;  %v1344_v25 = vmax.f32 %v8988_v53, 0.0  ;;  %v1351_v51 = vmin.f32 %v1287_v35, 6.0  ;;  %v1354_v28 = vmin.f32 %v1290_v4, 6.0 }
 0x25d   :  { %v1295_v49 = vmax.f32 %v16554_v19, 0.0  ;;  %v1352_v19 = vmin.f32 %v1288_v27, 6.0  ;;  %v1353_v15 = vmin.f32 %v1289_v41, 6.0  ;;  %v1355_v9 = vmin.f32 %v1291_v63, 6.0 }
 0x25e   :  { %v1356_v45 = vmin.f32 %v1292_v60, 6.0  ;;  %v1357_v31 = vmin.f32 %v1293_v12, 6.0  ;;  %v1358_v20 = vmin.f32 %v1294_v33, 6.0  ;;  %v1360_v13 = vmin.f32 %v1296_v43, 6.0  ;;  %1503 = vst.msk [vmem:[#allocation2 + $0x19] sm:$0xff] %vm807_vm2, %v1351_v51  ;;  %1506 = vst.msk [vmem:[#allocation2 + $0x39] sm:$0xff] %vm807_vm2, %v1354_v28 }
 0x25f   :  { %v1359_v46 = vmin.f32 %v1295_v49, 6.0  ;;  %1504 = vst.msk [vmem:[#allocation2 + $0x21] sm:$0xff] %vm807_vm2, %v1352_v19  ;;  %v1361_v42 = vmin.f32 %v1297_v29, 6.0  ;;  %v1362_v39 = vmin.f32 %v1298_v62, 6.0  ;;  %v1363_v34 = vmin.f32 %v1299_v17, 6.0  ;;  %1505 = vst.msk [vmem:[#allocation2 + $0x31] sm:$0xff] %vm807_vm2, %v1353_v15 }
 0x260   :  { %v1364_v47 = vmin.f32 %v1300_v61, 6.0  ;;  %1507 = vst.msk [vmem:[#allocation2 + $0x49] sm:$0xff] %vm807_vm2, %v1355_v9  ;;  %1508 = vst.msk [vmem:[#allocation2 + $0x51] sm:$0xff] %vm807_vm2, %v1356_v45  ;;  %v16560_v41 = vmax.f32 %v8859_v59, 0.0  ;;  %v16561_v49 = vmax.f32 %v8862_v32, 0.0  ;;  %v16562_v35 = vmax.f32 %v8865_v48, 0.0 }
 0x261   :  { %v16563_v4 = vmax.f32 %v8868_v5, 0.0  ;;  %1509 = vst.msk [vmem:[#allocation2 + $0x61] sm:$0xff] %vm807_vm2, %v1357_v31  ;;  %1510 = vst.msk [vmem:[#allocation2 + $0x69] sm:$0xff] %vm807_vm2, %v1358_v20  ;;  %v16564_v59 = vmax.f32 %v8871_v2, 0.0  ;;  %v16565_v32 = vmax.f32 %v8874_v14, 0.0  ;;  %v16566_v48 = vmax.f32 %v8877_v55, 0.0 }
 0x262   :  { %v16556_v54 = vld [vmem:[#allocation38_spill] sm:$0xff]  ;;  %v16557_v10 = vld [vmem:[#allocation41_spill] sm:$0xff]  ;;  %v1365_v60 = vmin.f32 %v16560_v41, 6.0  ;;  %v1366_v51 = vmin.f32 %v16561_v49, 6.0  ;;  %v1367_v27 = vmin.f32 %v16562_v35, 6.0  ;;  %1511 = vst.msk [vmem:[#allocation2 + $0x79] sm:$0xff] %vm807_vm2, %v1359_v46 }
 0x263   :  { %v16558_v11 = vld [vmem:[#allocation40_spill] sm:$0xff]  ;;  %v16559_v30 = vld [vmem:[#allocation43_spill] sm:$0xff]  ;;  %v1368_v63 = vmin.f32 %v16563_v4, 6.0  ;;  %1512 = vst.msk [vmem:[#allocation2 + $0x81] sm:$0xff] %vm807_vm2, %v1360_v13  ;;  %v1369_v15 = vmin.f32 %v16564_v59, 6.0  ;;  %v1370_v9 = vmin.f32 %v16565_v32, 6.0 }
 0x264   :  { %v1371_v12 = vmin.f32 %v16566_v48, 6.0  ;;  %v16567_v5 = vmax.f32 %v8880_v56, 0.0  ;;  %1513 = vst.msk [vmem:[#allocation2 + $0x91] sm:$0xff] %vm807_vm2, %v1361_v42  ;;  %1514 = vst.msk [vmem:[#allocation2 + $0x99] sm:$0xff] %vm807_vm2, %v1362_v39  ;;  %v16568_v2 = vmax.f32 %v8883_v58, 0.0  ;;  %v16569_v14 = vmax.f32 %v8886_v8, 0.0 }
 0x265   :  { %1515 = vst.msk [vmem:[#allocation2 + $0xa9] sm:$0xff] %vm807_vm2, %v1363_v34  ;;  %1516 = vst.msk [vmem:[#allocation2 + $0xb1] sm:$0xff] %vm807_vm2, %v1364_v47  ;;  %v16570_v55 = vmax.f32 %v8889_v6, 0.0  ;;  %v16571_v56 = vmax.f32 %v8892_v16, 0.0  ;;  %v16572_v58 = vmax.f32 %v8895_v1, 0.0  ;;  %v16573_v8 = vmax.f32 %v8898_v24, 0.0 }
 0x266   :  { %v1372_v33 = vmin.f32 %v16567_v5, 6.0  ;;  %v1373_v31 = vmin.f32 %v16568_v2, 6.0  ;;  %v1374_v46 = vmin.f32 %v16569_v14, 6.0  ;;  %1517 = vst.msk [vmem:[#allocation2 + $0xc1] sm:$0xff] %vm807_vm2, %v1365_v60  ;;  %1518 = vst.msk [vmem:[#allocation2 + $0xc9] sm:$0xff] %vm807_vm2, %v1366_v51  ;;  %v16574_v6 = vmax.f32 %v8901_v21, 0.0 }
 0x267   :  { %v1375_v43 = vmin.f32 %v16570_v55, 6.0  ;;  %v1376_v29 = vmin.f32 %v16571_v56, 6.0  ;;  %1519 = vst.msk [vmem:[#allocation2 + $0xd9] sm:$0xff] %vm807_vm2, %v1367_v27  ;;  %1520 = vst.msk [vmem:[#allocation2 + $0xe1] sm:$0xff] %vm807_vm2, %v1368_v63  ;;  %v1377_v62 = vmin.f32 %v16572_v58, 6.0  ;;  %v1378_v17 = vmin.f32 %v16573_v8, 6.0 }
 0x268   :  { %v1379_v61 = vmin.f32 %v16574_v6, 6.0  ;;  %v16575_v16 = vmax.f32 %v8904_v38, 0.0  ;;  %1521 = vst.msk [vmem:[#allocation2 + $0xf1] sm:$0xff] %vm807_vm2, %v1369_v15  ;;  %1522 = vst.msk [vmem:[#allocation2 + $0xf9] sm:$0xff] %vm807_vm2, %v1370_v9  ;;  %v16576_v1 = vmax.f32 %v8907_v36, 0.0  ;;  %v16577_v24 = vmax.f32 %v8910_v26, 0.0 }
 0x269   :  { %1523 = vst.msk [vmem:[#allocation2 + $0x109] sm:$0xff] %vm807_vm2, %v1371_v12  ;;  %1524 = vst.msk [vmem:[#allocation2 + $0x111] sm:$0xff] %vm807_vm2, %v1372_v33  ;;  %v16578_v21 = vmax.f32 %v8913_v52, 0.0  ;;  %v16579_v38 = vmax.f32 %v8916_v50, 0.0  ;;  %v16580_v36 = vmax.f32 %v8919_v3, 0.0  ;;  %v16581_v26 = vmax.f32 %v8922_v0, 0.0 }
 0x26a   :  { %v1380_v42 = vmin.f32 %v16575_v16, 6.0  ;;  %v1381_v39 = vmin.f32 %v16576_v1, 6.0  ;;  %v1382_v47 = vmin.f32 %v16577_v24, 6.0  ;;  %1525 = vst.msk [vmem:[#allocation2 + $0x121] sm:$0xff] %vm807_vm2, %v1373_v31  ;;  %1526 = vst.msk [vmem:[#allocation2 + $0x129] sm:$0xff] %vm807_vm2, %v1374_v46  ;;  %v16582_v52 = vmax.f32 %v8925_v22, 0.0 }
 0x26b   :  { %v1383_v19 = vmin.f32 %v16578_v21, 6.0  ;;  %v1384_v28 = vmin.f32 %v16579_v38, 6.0  ;;  %1527 = vst.msk [vmem:[#allocation2 + $0x139] sm:$0xff] %vm807_vm2, %v1375_v43  ;;  %1528 = vst.msk [vmem:[#allocation2 + $0x141] sm:$0xff] %vm807_vm2, %v1376_v29  ;;  %v1385_v45 = vmin.f32 %v16580_v36, 6.0  ;;  %v1386_v20 = vmin.f32 %v16581_v26, 6.0 }
 0x26c   :  { %v1387_v13 = vmin.f32 %v16582_v52, 6.0  ;;  %v16583_v50 = vmax.f32 %v8928_v18, 0.0  ;;  %1529 = vst.msk [vmem:[#allocation2 + $0x151] sm:$0xff] %vm807_vm2, %v1377_v62  ;;  %1530 = vst.msk [vmem:[#allocation2 + $0x159] sm:$0xff] %vm807_vm2, %v1378_v17  ;;  %v16584_v3 = vmax.f32 %v8931_v40, 0.0  ;;  %v16585_v0 = vmax.f32 %v8934_v37, 0.0 }
 0x26d   :  { %1531 = vst.msk [vmem:[#allocation2 + $0x169] sm:$0xff] %vm807_vm2, %v1379_v61  ;;  %1532 = vst.msk [vmem:[#allocation2 + $0x171] sm:$0xff] %vm807_vm2, %v1380_v42  ;;  %v16586_v22 = vmax.f32 %v8937_v57, 0.0  ;;  %v16587_v51 = vld [vmem:[#allocation31_spill] sm:$0xff]  ;;  %v16589_v40 = vmax.f32 %v8943_v7, 0.0  ;;  %v16590_v4 = vld [vmem:[#allocation30_spill] sm:$0xff] }
 0x26e   :  { %v1388_v34 = vmin.f32 %v16583_v50, 6.0  ;;  %v1389_v41 = vmin.f32 %v16584_v3, 6.0  ;;  %v1390_v60 = vmin.f32 %v16585_v0, 6.0  ;;  %v16588_v18 = vmax.f32 %v16587_v51, 0.0  ;;  %1533 = vst.msk [vmem:[#allocation2 + $0x181] sm:$0xff] %vm807_vm2, %v1381_v39  ;;  %1534 = vst.msk [vmem:[#allocation2 + $0x189] sm:$0xff] %vm807_vm2, %v1382_v47 }
 0x26f   :  { %v1391_v49 = vmin.f32 %v16586_v22, 6.0  ;;  %1535 = vst.msk [vmem:[#allocation2 + $0x1c9] sm:$0xff] %vm807_vm2, %v1383_v19  ;;  %1536 = vst.msk [vmem:[#allocation2 + $0x1d1] sm:$0xff] %vm807_vm2, %v1384_v28  ;;  %v1393_v27 = vmin.f32 %v16589_v40, 6.0  ;;  %v16591_v37 = vmax.f32 %v16590_v4, 0.0  ;;  %v16592_v59 = vld [vmem:[#allocation33_spill] sm:$0xff] }
 0x270   :  { %v1392_v35 = vmin.f32 %v16588_v18, 6.0  ;;  %v16593_v57 = vmax.f32 %v16592_v59, 0.0  ;;  %v16594_v32 = vld [vmem:[#allocation32_spill] sm:$0xff]  ;;  %1537 = vst.msk [vmem:[#allocation2 + $0x1e1] sm:$0xff] %vm807_vm2, %v1385_v45  ;;  %1538 = vst.msk [vmem:[#allocation2 + $0x1e9] sm:$0xff] %vm807_vm2, %v1386_v20  ;;  %v16596_v7 = vmax.f32 %v8955_v23, 0.0 }
 0x271   :  { %v1394_v63 = vmin.f32 %v16591_v37, 6.0  ;;  %v16595_v9 = vmax.f32 %v16594_v32, 0.0  ;;  %1539 = vst.msk [vmem:[#allocation2 + $0x1f9] sm:$0xff] %vm807_vm2, %v1387_v13  ;;  %1540 = vst.msk [vmem:[#allocation2 + $0x201] sm:$0xff] %vm807_vm2, %v1388_v34  ;;  %v16597_v5 = vld [vmem:[#allocation35_spill] sm:$0xff]  ;;  %v16599_v31 = vld [vmem:[#allocation34_spill] sm:$0xff] }
 0x272   :  { %v1395_v15 = vmin.f32 %v16593_v57, 6.0  ;;  %v1397_v12 = vmin.f32 %v16596_v7, 6.0  ;;  %v16598_v33 = vmax.f32 %v16597_v5, 0.0  ;;  %v16600_v14 = vmax.f32 %v16599_v31, 0.0  ;;  %v16601_v55 = vld [vmem:[#allocation37_spill] sm:$0xff]  ;;  %1541 = vst.msk [vmem:[#allocation2 + $0x211] sm:$0xff] %vm807_vm2, %v1389_v41 }
 0x273   :  { %v1396_v48 = vmin.f32 %v16595_v9, 6.0  ;;  %v16602_v43 = vmax.f32 %v16601_v55, 0.0  ;;  %1542 = vst.msk [vmem:[#allocation2 + $0x219] sm:$0xff] %vm807_vm2, %v1390_v60  ;;  %1543 = vst.msk [vmem:[#allocation2 + $0x229] sm:$0xff] %vm807_vm2, %v1391_v49  ;;  %v16603_v29 = vld [vmem:[#allocation36_spill] sm:$0xff]  ;;  %v16605_v62 = vld [vmem:[#allocation39_spill] sm:$0xff] }
 0x274   :  { %v1398_v2 = vmin.f32 %v16598_v33, 6.0  ;;  %v1399_v46 = vmin.f32 %v16600_v14, 6.0  ;;  %1544 = vst.msk [vmem:[#allocation2 + $0x231] sm:$0xff] %vm807_vm2, %v1392_v35  ;;  %v16604_v23 = vmax.f32 %v16603_v29, 0.0  ;;  %v16606_v8 = vmax.f32 %v16605_v62, 0.0  ;;  %1545 = vst.msk [vmem:[#allocation2 + $0x241] sm:$0xff] %vm807_vm2, %v1393_v27 }
 0x275   :  { %v1400_v56 = vmin.f32 %v16602_v43, 6.0  ;;  %v16607_v6 = vmax.f32 %v16556_v54, 0.0  ;;  %v16608_v16 = vmax.f32 %v8976_v44, 0.0  ;;  %1546 = vst.msk [vmem:[#allocation2 + $0x249] sm:$0xff] %vm807_vm2, %v1394_v63  ;;  %1547 = vst.msk [vmem:[#allocation2 + $0x259] sm:$0xff] %vm807_vm2, %v1395_v15  ;;  %v16609_v1 = vmax.f32 %v16557_v10, 0.0 }
 0x276   :  { %v1401_v58 = vmin.f32 %v16604_v23, 6.0  ;;  %v1402_v17 = vmin.f32 %v16606_v8, 6.0  ;;  %1548 = vst.msk [vmem:[#allocation2 + $0x261] sm:$0xff] %vm807_vm2, %v1396_v48  ;;  %v16610_v24 = vmax.f32 %v16558_v11, 0.0  ;;  %v16611_v54 = vmax.f32 %v16559_v30, 0.0  ;;  %1549 = vst.msk [vmem:[#allocation2 + $0x271] sm:$0xff] %vm807_vm2, %v1397_v12 }
 0x277   :  { %v1403_v61 = vmin.f32 %v16607_v6, 6.0  ;;  %v1404_v42 = vmin.f32 %v16608_v16, 6.0  ;;  %v1405_v39 = vmin.f32 %v16609_v1, 6.0  ;;  %v1408_v44 = vmin.f32 %v1344_v25, 6.0  ;;  %1550 = vst.msk [vmem:[#allocation2 + $0x279] sm:$0xff] %vm807_vm2, %v1398_v2  ;;  %1551 = vst.msk [vmem:[#allocation2 + $0x289] sm:$0xff] %vm807_vm2, %v1399_v46 }
 0x278   :  { %v1406_v47 = vmin.f32 %v16610_v24, 6.0  ;;  %v1407_v21 = vmin.f32 %v16611_v54, 6.0  ;;  %1552 = vst.msk [vmem:[#allocation2 + $0x291] sm:$0xff] %vm807_vm2, %v1400_v56  ;;  %1553 = vst.msk [vmem:[#allocation2 + $0x2a1] sm:$0xff] %vm807_vm2, %v1401_v58  ;;  %v9194_v10 = vld [vmem:[#allocation11 + $0x1] ss:$0 sm:$0xff] }
 0x279   :  { %1554 = vst.msk [vmem:[#allocation2 + $0x2a9] sm:$0xff] %vm807_vm2, %v1402_v17  ;;  %1555 = vst.msk [vmem:[#allocation2 + $0x2b9] sm:$0xff] %vm807_vm2, %v1403_v61  ;;  %v1621_v11 = vld [vmem:[#allocation2 + $0x1b0] sm:$0xff]  ;;  %v1622_v30 = vld [vmem:[#allocation2 + $0x1b8] sm:$0xff] }
 0x27a   :  { %1556 = vst.msk [vmem:[#allocation2 + $0x2c1] sm:$0xff] %vm807_vm2, %v1404_v42  ;;  %1557 = vst.msk [vmem:[#allocation2 + $0x2d1] sm:$0xff] %vm807_vm2, %v1405_v39  ;;  %v1861_v53 = vmul.f32 %v9194_v10, %v1621_v11  ;;  %v1862_v25 = vmul.f32 %v9194_v10, %v1622_v30  ;;  %v9198_v19 = vld [vmem:[#allocation11 + $0x2] ss:$0 sm:$0xff]  ;;  %v1618_v38 = vld [vmem:[#allocation2 + $0x198] sm:$0xff] }
 0x27b   :  { %1558 = vst.msk [vmem:[#allocation2 + $0x2d9] sm:$0xff] %vm807_vm2, %v1406_v47  ;;  %1559 = vst.msk [vmem:[#allocation2 + $0x2e9] sm:$0xff] %vm807_vm2, %v1407_v21  ;;  %v1619_v28 = vld [vmem:[#allocation2 + $0x1a0] sm:$0xff]  ;;  %v9200_v45 = vld [vmem:[#allocation11] ss:$0 sm:$0xff]  ;;  %v2347_v13 = vmul.f32 %v9198_v19, %v1621_v11  ;;  %v2348_v50 = vmul.f32 %v9198_v19, %v1622_v30 }
 0x27c   :  { %1560 = vst.msk [vmem:[#allocation2 + $0x2f1] sm:$0xff] %vm807_vm2, %v1408_v44  ;;  %v1623_v36 = vld [vmem:[#allocation2 + $0x1c0] sm:$0x3]  ;;  %v9202_v26 = vld [vmem:[#allocation11 + $0x7] ss:$0 sm:$0xff]  ;;  %v2086_v20 = vrot.slane %v1861_v53, 1  ;;  %v1712_v18 = vmul.f32 %v9200_v45, %v1621_v11  ;;  %v1713_v29 = vmul.f32 %v9200_v45, %v1622_v30 }
 0x27d   :  { %v2087_v52 = vrot.slane %v1862_v25, 1  ;;  %v9206_v34 = vld [vmem:[#allocation11 + $0x8] ss:$0 sm:$0xff]  ;;  %v4066_v3 = vmul.f32 %v9202_v26, %v1618_v38  ;;  %v9210_v41 = vmul.f32 %v9202_v26, %v1619_v28  ;;  %v1863_v0 = vmul.f32 %v9194_v10, %v1623_v36  ;;  %v9217_v49 = vld [vmem:[#allocation11 + $0x6] ss:$0 sm:$0xff]  ;;  %v9222_v37 = vld [vmem:[#allocation2 + $0x300] sm:$0xff] }
 0x27e   :  { %v4551_v60 = vmul.f32 %v9206_v34, %v1618_v38  ;;  %v9215_v22 = vmul.f32 %v9206_v34, %v1619_v28  ;;  %v1620_v51 = vld [vmem:[#allocation2 + $0x1a8] sm:$0x3]  ;;  %v2349_v40 = vmul.f32 %v9198_v19, %v1623_v36  ;;  %v2572_v27 = vrot.slane %v2347_v13, 2  ;;  %v9226_v59 = vld [vmem:[#allocation2 + $0x310] sm:$0x3]  ;;  %v9239_v33 = vld [vmem:[#allocation2 + $0x318] sm:$0xff] }
 0x27f   :  { %v2088_v35 = vsel %vm2005_vm5, %v2086_v20, %v2087_v52  ;;  %v2573_v4 = vrot.slane %v2348_v50, 2  ;;  %v9224_v63 = vld [vmem:[#allocation2 + $0x308] sm:$0xff]  ;;  %v9229_v57 = vmul.f32 %v9217_v49, %v1618_v38  ;;  %v4288_v15 = vrot.slane %v4066_v3, 1  ;;  %v9241_v2 = vld [vmem:[#allocation2 + $0x320] sm:$0xff] }
 0x280   :  { %v16081_v32 = vrot.slane %v9210_v41, 1  ;;  %v2089_v9 = vrot.slane %v1863_v0, 1  ;;  %v9233_v48 = vmul.f32 %v9202_v26, %v1620_v51  ;;  %v9236_v7 = vmul.f32 %v9206_v34, %v1620_v51  ;;  %v9243_v31 = vld [vmem:[#allocation2 + $0x328] sm:$0x3] }
 0x281   :  { %16612 = vst [vmem:[#allocation42_spill] sm:$0xff] %v9229_v57  ;;  %v4773_v12 = vrot.slane %v4551_v60, 2  ;;  %v16080_v5 = vrot.slane %v9215_v22, 2  ;;  %v2262_v14 = vadd.f32 %v2088_v35, %v1712_v18  ;;  %v1903_v46 = vmul.f32 %v9194_v10, %v9222_v37  ;;  %v9277_v24 = vld [vmem:[#allocation2 + $0x348] sm:$0xff]  ;;  %v9308_v18 = vld [vmem:[#allocation2 + $0x350] sm:$0xff] }
 0x282   :  { %v1904_v55 = vmul.f32 %v9194_v10, %v9224_v63  ;;  %v1905_v43 = vmul.f32 %v9194_v10, %v9226_v59  ;;  %v9252_v56 = vmul.f32 %v9217_v49, %v1619_v28  ;;  %v2574_v23 = vsel %vm2491_vm6, %v2572_v27, %v2573_v4  ;;  %v9310_v35 = vld [vmem:[#allocation2 + $0x358] sm:$0x3]  ;;  %v9726_v57 = vld [vmem:[#allocation2 + $0x1c8] sm:$0xff] }
 0x283   :  { %v2575_v58 = vrot.slane %v2349_v40, 2  ;;  %v2090_v62 = vsel %vm2005_vm5, %v2087_v52, %v2089_v9  ;;  %v1906_v8 = vmul.f32 %v9194_v10, %v9239_v33  ;;  %v1907_v17 = vmul.f32 %v9194_v10, %v9241_v2  ;;  %16708 = vst [vmem:[#allocation120_spill] sm:$0xff] %v9726_v57 }
 0x284   :  { %16613 = vst [vmem:[#allocation45_spill] sm:$0xff] %v9252_v56  ;;  %v1908_v6 = vmul.f32 %v9194_v10, %v9243_v31  ;;  %v9266_v61 = vsel %vm2005_vm5, %v4288_v15, %v16081_v32  ;;  %v9272_v42 = vsel %vm2491_vm6, %v4773_v12, %v16080_v5  ;;  %v9275_v39 = vadd.f32 %v2574_v23, %v2262_v14  ;;  %v9724_v56 = vld [vmem:[#allocation2 + $0x148] sm:$0x3] }
 0x285   :  { %16614 = vst [vmem:[#allocation44_spill] sm:$0xff] %v9266_v61  ;;  %16615 = vst [vmem:[#allocation47_spill] sm:$0xff] %v9272_v42  ;;  %v2156_v47 = vrot.slane %v1903_v46, 1  ;;  %v2157_v54 = vrot.slane %v1904_v55, 1  ;;  %v2159_v21 = vrot.slane %v1905_v43, 1  ;;  %v9279_v44 = vadd.f32 %v2090_v62, %v1713_v29 }
 0x286   :  { %16616 = vst [vmem:[#allocation46_spill] sm:$0xff] %v9275_v39  ;;  %v9282_v11 = vsel %vm2491_vm6, %v2573_v4, %v2575_v58  ;;  %v2389_v30 = vmul.f32 %v9198_v19, %v9222_v37  ;;  %v2390_v53 = vmul.f32 %v9198_v19, %v9224_v63  ;;  %v2161_v25 = vrot.slane %v1906_v8, 1  ;;  %v9320_v55 = vld [vmem:[#allocation11 + $0x4] ss:$0 sm:$0xff]  ;;  %v9322_v43 = vld [vmem:[#allocation11 + $0x3] ss:$0 sm:$0xff] }
 0x287   :  { %v2162_v38 = vrot.slane %v1907_v17, 1  ;;  %v2164_v28 = vrot.slane %v1908_v6, 1  ;;  %v2391_v36 = vmul.f32 %v9198_v19, %v9226_v59  ;;  %v2392_v20 = vmul.f32 %v9198_v19, %v9239_v33  ;;  %16707 = vst [vmem:[#allocation119_spill] sm:$0xff] %v9724_v56 }
 0x288   :  { %v2393_v52 = vmul.f32 %v9198_v19, %v9241_v2  ;;  %v9296_v13 = vmul.f32 %v9217_v49, %v9277_v24  ;;  %v9300_v50 = vmul.f32 %v9202_v26, %v9277_v24  ;;  %v1740_v3 = vmul.f32 %v9200_v45, %v9222_v37 }
 0x289   :  { %v2158_v0 = vsel %vm2005_vm5, %v2156_v47, %v2157_v54  ;;  %v2160_v60 = vsel %vm2005_vm5, %v2157_v54, %v2159_v21  ;;  %v2394_v51 = vmul.f32 %v9198_v19, %v9243_v31  ;;  %v1741_v40 = vmul.f32 %v9200_v45, %v9224_v63  ;;  %v9336_v54 = vld [vmem:[#allocation2 + $0x330] sm:$0xff]  ;;  %v9338_v21 = vld [vmem:[#allocation2 + $0x338] sm:$0xff] }
 0x28a   :  { %v1742_v27 = vmul.f32 %v9200_v45, %v9239_v33  ;;  %v2642_v4 = vrot.slane %v2389_v30, 2  ;;  %v2643_v15 = vrot.slane %v2390_v53, 2  ;;  %v1743_v9 = vmul.f32 %v9200_v45, %v9241_v2  ;;  %v9340_v30 = vld [vmem:[#allocation2 + $0x340] sm:$0x3] }
 0x28b   :  { %v2163_v12 = vsel %vm2005_vm5, %v2161_v25, %v2162_v38  ;;  %v2165_v14 = vsel %vm2005_vm5, %v2162_v38, %v2164_v28  ;;  %v2645_v46 = vrot.slane %v2391_v36, 2  ;;  %v2290_v29 = vadd.f32 %v2158_v0, %v1740_v3  ;;  %v9351_v0 = vld [vmem:[#allocation11 + $0x5] ss:$0 sm:$0xff] }
 0x28c   :  { %v2291_v23 = vadd.f32 %v2160_v60, %v1741_v40  ;;  %v2647_v58 = vrot.slane %v2392_v20, 2  ;;  %v2648_v62 = vrot.slane %v2393_v52, 2  ;;  %v2650_v8 = vrot.slane %v2394_v51, 2 }
 0x28d   :  { %v9326_v17 = vmul.f32 %v9217_v49, %v9308_v18  ;;  %v9330_v6 = vmul.f32 %v9202_v26, %v9308_v18  ;;  %v9334_v47 = vmul.f32 %v9202_v26, %v9310_v35  ;;  %v2292_v53 = vadd.f32 %v2163_v12, %v1742_v27 }
 0x28e   :  { %v2293_v25 = vadd.f32 %v2165_v14, %v1743_v9  ;;  %v2644_v38 = vsel %vm2491_vm6, %v2642_v4, %v2643_v15  ;;  %v2646_v36 = vsel %vm2491_vm6, %v2643_v15, %v2645_v46  ;;  %v2845_v20 = vmul.f32 %v9322_v43, %v9239_v33 }
 0x28f   :  { %v3008_v52 = vmul.f32 %v9320_v55, %v9239_v33  ;;  %v3009_v3 = vmul.f32 %v9320_v55, %v9241_v2  ;;  %v2649_v60 = vsel %vm2491_vm6, %v2647_v58, %v2648_v62  ;;  %v2776_v51 = vadd.f32 %v2644_v38, %v2290_v29 }
 0x290   :  { %v2777_v40 = vadd.f32 %v2646_v36, %v2291_v23  ;;  %v3010_v27 = vmul.f32 %v9320_v55, %v9243_v31  ;;  %v2651_v4 = vsel %vm2491_vm6, %v2648_v62, %v2650_v8  ;;  %v3011_v15 = vmul.f32 %v9320_v55, %v9336_v54 }
 0x291   :  { %v3012_v9 = vmul.f32 %v9320_v55, %v9338_v21  ;;  %v3013_v12 = vmul.f32 %v9320_v55, %v9340_v30  ;;  %v2778_v14 = vadd.f32 %v2649_v60, %v2292_v53  ;;  %v2779_v46 = vadd.f32 %v2651_v4, %v2293_v25 }
 0x292   :  { %v2846_v29 = vmul.f32 %v9322_v43, %v9241_v2  ;;  %v2847_v23 = vmul.f32 %v9322_v43, %v9336_v54  ;;  %v3260_v58 = vrot.slane %v3008_v52, 1  ;;  %v3261_v38 = vrot.slane %v3009_v3, 1 }
 0x293   :  { %v3493_v62 = vmul.f32 %v9351_v0, %v9239_v33  ;;  %v3494_v8 = vmul.f32 %v9351_v0, %v9241_v2  ;;  %v2848_v36 = vmul.f32 %v9322_v43, %v9338_v21  ;;  %v2909_v28 = vadd.f32 %v2845_v20, %v2776_v51 }
 0x294   :  { %v2910_v53 = vadd.f32 %v2846_v29, %v2777_v40  ;;  %v3263_v25 = vrot.slane %v3010_v27, 1  ;;  %v3265_v60 = vrot.slane %v3011_v15, 1  ;;  %v3266_v4 = vrot.slane %v3012_v9, 1 }
 0x295   :  { %v3268_v5 = vrot.slane %v3013_v12, 1  ;;  %v3495_v1 = vmul.f32 %v9351_v0, %v9243_v31  ;;  %v2911_v52 = vadd.f32 %v2847_v23, %v2778_v14  ;;  %v3496_v3 = vmul.f32 %v9351_v0, %v9336_v54 }
 0x296   :  { %v3497_v32 = vmul.f32 %v9351_v0, %v9338_v21  ;;  %v3498_v16 = vmul.f32 %v9351_v0, %v9340_v30  ;;  %v2912_v42 = vadd.f32 %v2848_v36, %v2779_v46  ;;  %v3262_v20 = vsel %vm2005_vm5, %v3260_v58, %v3261_v38 }
 0x297   :  { %v3745_v51 = vrot.slane %v3493_v62, 2  ;;  %v3746_v40 = vrot.slane %v3494_v8, 2  ;;  %v3264_v27 = vsel %vm2005_vm5, %v3261_v38, %v3263_v25  ;;  %v3394_v15 = vadd.f32 %v3262_v20, %v2909_v28 }
 0x298   :  { %v4599_v9 = vmul.f32 %v9206_v34, %v9277_v24  ;;  %v9387_v12 = vmul.f32 %v9206_v34, %v9308_v18  ;;  %v3267_v14 = vsel %vm2005_vm5, %v3265_v60, %v3266_v4  ;;  %v3269_v29 = vsel %vm2005_vm5, %v3266_v4, %v3268_v5 }
 0x299   :  { %v3395_v23 = vadd.f32 %v3264_v27, %v2910_v53  ;;  %v3748_v46 = vrot.slane %v3495_v1, 2  ;;  %v3396_v36 = vadd.f32 %v3267_v14, %v2911_v52  ;;  %v3750_v58 = vrot.slane %v3496_v3, 2 }
 0x29a   :  { %16617 = vst [vmem:[#allocation49_spill] sm:$0xff] %v9387_v12  ;;  %v3751_v62 = vrot.slane %v3497_v32, 2  ;;  %v3753_v8 = vrot.slane %v3498_v16, 2  ;;  %v3397_v61 = vadd.f32 %v3269_v29, %v2912_v42  ;;  %v3747_v28 = vsel %vm2491_vm6, %v3745_v51, %v3746_v40 }
 0x29b   :  { %v4111_v24 = vmul.f32 %v9202_v26, %v9336_v54  ;;  %v4112_v18 = vmul.f32 %v9202_v26, %v9338_v21  ;;  %v3879_v38 = vadd.f32 %v3747_v28, %v3394_v15  ;;  %v4113_v25 = vmul.f32 %v9202_v26, %v9340_v30 }
 0x29c   :  { %v4369_v5 = vrot.slane %v9330_v6, 1  ;;  %v4371_v1 = vrot.slane %v9334_v47, 1  ;;  %v3749_v32 = vsel %vm2491_vm6, %v3746_v40, %v3748_v46  ;;  %v9403_v16 = vmul.f32 %v9206_v34, %v9310_v35 }
 0x29d   :  { %v4853_v42 = vrot.slane %v4599_v9, 2  ;;  %v16082_v53 = vrot.slane %v9387_v12, 2  ;;  %v3752_v60 = vsel %vm2491_vm6, %v3750_v58, %v3751_v62  ;;  %v3754_v4 = vsel %vm2491_vm6, %v3751_v62, %v3753_v8  ;;  %v9620_v12 = vld [vmem:[#allocation2 + $0x110] sm:$0xff] }
 0x29e   :  { %16618 = vst [vmem:[#allocation48_spill] sm:$0xff] %v9403_v16  ;;  %v3880_v52 = vadd.f32 %v3749_v32, %v3395_v23  ;;  %v3948_v3 = vmul.f32 %v9217_v49, %v9336_v54  ;;  %v3881_v6 = vadd.f32 %v3752_v60, %v3396_v36  ;;  %v3882_v20 = vadd.f32 %v3754_v4, %v3397_v61  ;;  %v9622_v16 = vld [vmem:[#allocation2 + $0x120] sm:$0xff] }
 0x29f   :  { %v4363_v47 = vrot.slane %v4111_v24, 1  ;;  %v4364_v51 = vrot.slane %v4112_v18, 1  ;;  %v16619_v40 = vrot.slane %v9233_v48, 1  ;;  %v16620_v35 = vrot.slane %v9210_v41, 1  ;;  %v9598_v24 = vld [vmem:[#allocation2 + $0xf8] sm:$0xff]  ;;  %16682 = vst [vmem:[#allocation94_spill] sm:$0xff] %v9620_v12 }
 0x2a0   :  { %v4012_v15 = vadd.f32 %v3948_v3, %v3879_v38  ;;  %v4366_v9 = vrot.slane %v4113_v25, 1  ;;  %v9419_v14 = vmul.f32 %v9206_v34, %v9336_v54  ;;  %v16623_v29 = vrot.slane %v9236_v7, 2  ;;  %v1584_v3 = vld [vmem:[#allocation2 + $0x88] sm:$0x3]  ;;  %16675 = vst [vmem:[#allocation87_spill] sm:$0xff] %v9598_v24  ;;  %16683 = vst [vmem:[#allocation95_spill] sm:$0xff] %v9622_v16 }
 0x2a1   :  { %v9415_v27 = vsel %vm2005_vm5, %v16620_v35, %v16619_v40  ;;  %v16624_v23 = vrot.slane %v9215_v22, 2  ;;  %v9430_v48 = vadd.f32 %v9282_v11, %v9279_v44  ;;  %v3949_v41 = vmul.f32 %v9217_v49, %v9338_v21  ;;  %v9550_v40 = vld [vmem:[#allocation2 + $0xa0] sm:$0x3]  ;;  %v9552_v35 = vld [vmem:[#allocation2 + $0xa8] sm:$0xff] }
 0x2a2   :  { %16621 = vst [vmem:[#allocation51_spill] sm:$0xff] %v9415_v27  ;;  %16622 = vst [vmem:[#allocation50_spill] sm:$0xff] %v9419_v14  ;;  %v9436_v46 = vmul.f32 %v9206_v34, %v9338_v21  ;;  %v16628_v54 = vrot.slane %v9300_v50, 1  ;;  %v9444_v22 = vsel %vm2005_vm5, %v4369_v5, %v4371_v1  ;;  %v9449_v44 = vsel %vm2491_vm6, %v4853_v42, %v16082_v53  ;;  %v9686_v27 = vld [vmem:[#allocation2 + $0x168] sm:$0xff] }
 0x2a3   :  { %v9426_v61 = vsel %vm2491_vm6, %v16624_v23, %v16623_v29  ;;  %16626 = vst [vmem:[#allocation54_spill] sm:$0xff] %v9430_v48  ;;  %16630 = vst [vmem:[#allocation28_spill] sm:$0xff] %v9444_v22  ;;  %v9452_v36 = vadd.f32 %v3949_v41, %v3880_v52  ;;  %v9455_v21 = vadd.f32 %v9296_v13, %v3881_v6  ;;  %v9532_v6 = vld [vmem:[#allocation2 + $0xb0] sm:$0xff]  ;;  %v9572_v23 = vld [vmem:[#allocation2 + $0xb8] sm:$0x3] }
 0x2a4   :  { %16625 = vst [vmem:[#allocation53_spill] sm:$0xff] %v9426_v61  ;;  %16627 = vst [vmem:[#allocation55_spill] sm:$0xff] %v9436_v46  ;;  %v9441_v7 = vsel %vm2005_vm5, %v16628_v54, %v4369_v5  ;;  %v9458_v50 = vadd.f32 %v9326_v17, %v3882_v20  ;;  %v4365_v58 = vsel %vm2005_vm5, %v4363_v47, %v4364_v51  ;;  %v9574_v41 = vld [vmem:[#allocation2 + $0xc8] sm:$0xff]  ;;  %v9576_v54 = vld [vmem:[#allocation2 + $0xd8] sm:$0xff] }
 0x2a5   :  { %16629 = vst [vmem:[#allocation29_spill] sm:$0xff] %v9441_v7  ;;  %16631 = vst [vmem:[#allocation38_spill] sm:$0xff] %v9449_v44  ;;  %v9462_v62 = vsel %vm2005_vm5, %v4364_v51, %v4366_v9  ;;  %v9464_v8 = vadd.f32 %v4365_v58, %v4012_v15  ;;  %v9468_v28 = vmul.f32 %v9206_v34, %v9340_v30  ;;  %v9554_v15 = vld [vmem:[#allocation2 + $0xc0] sm:$0xff]  ;;  %v9642_v7 = vld [vmem:[#allocation2 + $0x128] sm:$0xff] }
 0x2a6   :  { %16632 = vst [vmem:[#allocation41_spill] sm:$0xff] %v9452_v36  ;;  %16633 = vst [vmem:[#allocation40_spill] sm:$0xff] %v9455_v21  ;;  %v9474_v13 = vmul.f32 %v9322_v43, %v9222_v37  ;;  %v9478_v17 = vmul.f32 %v9322_v43, %v9224_v63  ;;  %v9482_v38 = vmul.f32 %v9320_v55, %v9222_v37  ;;  %v9584_v58 = vld [vmem:[#allocation2 + $0xe0] sm:$0xff]  ;;  %v9644_v21 = vld [vmem:[#allocation2 + $0x138] sm:$0xff] }
 0x2a7   :  { %16634 = vst [vmem:[#allocation43_spill] sm:$0xff] %v9458_v50  ;;  %16635 = vst [vmem:[#allocation31_spill] sm:$0xff] %v9462_v62  ;;  %v9486_v30 = vmul.f32 %v9320_v55, %v9224_v63  ;;  %v9490_v25 = vmul.f32 %v9320_v55, %v9226_v59  ;;  %v9494_v5 = vmul.f32 %v9351_v0, %v9222_v37  ;;  %v9640_v46 = vld [vmem:[#allocation2 + $0x100] sm:$0x3] }
 0x2a8   :  { %16636 = vst [vmem:[#allocation30_spill] sm:$0xff] %v9464_v8  ;;  %16637 = vst [vmem:[#allocation33_spill] sm:$0xff] %v9468_v28  ;;  %v9498_v43 = vmul.f32 %v9351_v0, %v9224_v63  ;;  %v9502_v1 = vmul.f32 %v9351_v0, %v9226_v59  ;;  %v9506_v32 = vmul.f32 %v9217_v49, %v9222_v37 }
 0x2a9   :  { %16638 = vst [vmem:[#allocation32_spill] sm:$0xff] %v9474_v13  ;;  %16639 = vst [vmem:[#allocation35_spill] sm:$0xff] %v9478_v17  ;;  %v9510_v55 = vmul.f32 %v9217_v49, %v9224_v63  ;;  %v9514_v42 = vmul.f32 %v9217_v49, %v9239_v33  ;;  %v9518_v60 = vmul.f32 %v9217_v49, %v9241_v2  ;;  %v9748_v17 = vld [vmem:[#allocation2 + $0x1e0] sm:$0xff] }
 0x2aa   :  { %16640 = vst [vmem:[#allocation34_spill] sm:$0xff] %v9482_v38  ;;  %16641 = vst [vmem:[#allocation37_spill] sm:$0xff] %v9486_v30  ;;  %v9522_v0 = vmul.f32 %v9202_v26, %v9222_v37  ;;  %v9526_v4 = vmul.f32 %v9202_v26, %v9224_v63  ;;  %v9530_v52 = vmul.f32 %v9202_v26, %v9226_v59  ;;  %v9744_v30 = vld [vmem:[#allocation2 + $0x160] sm:$0x3]  ;;  %v9746_v38 = vld [vmem:[#allocation2 + $0x1d0] sm:$0xff] }
 0x2ab   :  { %16642 = vst [vmem:[#allocation36_spill] sm:$0xff] %v9490_v25  ;;  %16643 = vst [vmem:[#allocation39_spill] sm:$0xff] %v9494_v5  ;;  %v9536_v20 = vmul.f32 %v9202_v26, %v9239_v33  ;;  %v9540_v49 = vmul.f32 %v9202_v26, %v9241_v2  ;;  %v9544_v47 = vmul.f32 %v9202_v26, %v9243_v31 }
 0x2ac   :  { %16644 = vst [vmem:[#allocation56_spill] sm:$0xff] %v9498_v43  ;;  %16645 = vst [vmem:[#allocation57_spill] sm:$0xff] %v9502_v1  ;;  %v9548_v51 = vmul.f32 %v9206_v34, %v9222_v37  ;;  %v9558_v9 = vmul.f32 %v9206_v34, %v9224_v63  ;;  %v9562_v29 = vmul.f32 %v9206_v34, %v9226_v59  ;;  %v9582_v59 = vld [vmem:[#allocation2 + $0xd0] sm:$0x3] }
 0x2ad   :  { %16646 = vst [vmem:[#allocation58_spill] sm:$0xff] %v9506_v32  ;;  %16647 = vst [vmem:[#allocation59_spill] sm:$0xff] %v9510_v55  ;;  %v9566_v26 = vmul.f32 %v9206_v34, %v9239_v33  ;;  %v9570_v37 = vmul.f32 %v9206_v34, %v9241_v2  ;;  %v9580_v63 = vmul.f32 %v9206_v34, %v9243_v31  ;;  %v9586_v33 = vld [vmem:[#allocation2 + $0xf0] sm:$0xff]  ;;  %v9600_v34 = vld [vmem:[#allocation2 + $0x108] sm:$0xff] }
 0x2ae   :  { %16648 = vst [vmem:[#allocation60_spill] sm:$0xff] %v9514_v42  ;;  %16649 = vst [vmem:[#allocation61_spill] sm:$0xff] %v9518_v60  ;;  %v9590_v2 = vmul.f32 %v9200_v45, %v9532_v6  ;;  %v9593_v53 = vmul.f32 %v9194_v10, %v1584_v3  ;;  %v9596_v11 = vmul.f32 %v9198_v19, %v1584_v3  ;;  %v9618_v3 = vld [vmem:[#allocation2 + $0xe8] sm:$0x3] }
 0x2af   :  { %16650 = vst [vmem:[#allocation62_spill] sm:$0xff] %v9522_v0  ;;  %16651 = vst [vmem:[#allocation63_spill] sm:$0xff] %v9526_v4  ;;  %v9604_v31 = vmul.f32 %v9200_v45, %v9554_v15  ;;  %v9608_v18 = vmul.f32 %v9194_v10, %v9550_v40  ;;  %v9612_v44 = vmul.f32 %v9194_v10, %v9552_v35  ;;  %v9704_v4 = vld [vmem:[#allocation2 + $0x130] sm:$0x3] }
 0x2b0   :  { %16652 = vst [vmem:[#allocation64_spill] sm:$0xff] %v9530_v52  ;;  %16653 = vst [vmem:[#allocation65_spill] sm:$0xff] %v9532_v6  ;;  %v9616_v19 = vmul.f32 %v9194_v10, %v9532_v6  ;;  %v9626_v22 = vmul.f32 %v9200_v45, %v9574_v41  ;;  %v9630_v50 = vmul.f32 %v9200_v45, %v9576_v54  ;;  %v9706_v0 = vld [vmem:[#allocation2 + $0x170] sm:$0xff] }
 0x2b1   :  { %16654 = vst [vmem:[#allocation66_spill] sm:$0xff] %v9536_v20  ;;  %16655 = vst [vmem:[#allocation67_spill] sm:$0xff] %v9540_v49  ;;  %v9634_v8 = vmul.f32 %v9194_v10, %v9572_v23  ;;  %v9638_v14 = vmul.f32 %v9194_v10, %v9554_v15  ;;  %v9648_v62 = vmul.f32 %v9200_v45, %v9584_v58  ;;  %v9830_v6 = vld [vmem:[#allocation2 + $0x230] sm:$0xff] }
 0x2b2   :  { %16656 = vst [vmem:[#allocation68_spill] sm:$0xff] %v9544_v47  ;;  %16657 = vst [vmem:[#allocation69_spill] sm:$0xff] %v9548_v51  ;;  %v9652_v36 = vmul.f32 %v9200_v45, %v9586_v33  ;;  %v9656_v28 = vmul.f32 %v9194_v10, %v9574_v41  ;;  %v9676_v51 = vmul.f32 %v9194_v10, %v9576_v54 }
 0x2b3   :  { %16658 = vst [vmem:[#allocation70_spill] sm:$0xff] %v9550_v40  ;;  %16659 = vst [vmem:[#allocation71_spill] sm:$0xff] %v9552_v35  ;;  %v9680_v61 = vmul.f32 %v9194_v10, %v9584_v58  ;;  %v9690_v47 = vmul.f32 %v9200_v45, %v9620_v12  ;;  %v9694_v49 = vmul.f32 %v9200_v45, %v9622_v16  ;;  %v9832_v35 = vld [vmem:[#allocation2 + $0x240] sm:$0xff] }
 0x2b4   :  { %16660 = vst [vmem:[#allocation72_spill] sm:$0xff] %v9554_v15  ;;  %16661 = vst [vmem:[#allocation73_spill] sm:$0xff] %v9558_v9  ;;  %v9672_v9 = vmul.f32 %v9200_v45, %v9600_v34  ;;  %v9698_v20 = vmul.f32 %v9194_v10, %v9618_v3  ;;  %v9702_v52 = vmul.f32 %v9194_v10, %v9586_v33  ;;  %v9812_v15 = vld [vmem:[#allocation2 + $0x228] sm:$0xff] }
 0x2b5   :  { %16662 = vst [vmem:[#allocation74_spill] sm:$0xff] %v9562_v29  ;;  %16663 = vst [vmem:[#allocation75_spill] sm:$0xff] %v9566_v26  ;;  %v9664_v26 = vld [vmem:[#allocation2 + $0x150] sm:$0xff]  ;;  %v9668_v29 = vmul.f32 %v9200_v45, %v9598_v24  ;;  %v9710_v60 = vmul.f32 %v9200_v45, %v9642_v7  ;;  %v9714_v42 = vmul.f32 %v9200_v45, %v9644_v21 }
 0x2b6   :  { %16664 = vst [vmem:[#allocation76_spill] sm:$0xff] %v9570_v37  ;;  %16665 = vst [vmem:[#allocation77_spill] sm:$0xff] %v9572_v23  ;;  %v9662_v37 = vld [vmem:[#allocation2 + $0x140] sm:$0xff]  ;;  %v9718_v55 = vmul.f32 %v9194_v10, %v9598_v24  ;;  %v9722_v32 = vmul.f32 %v9194_v10, %v9640_v46  ;;  %v9734_v43 = vmul.f32 %v9200_v45, %v9664_v26 }
 0x2b7   :  { %16666 = vst [vmem:[#allocation78_spill] sm:$0xff] %v9574_v41  ;;  %16667 = vst [vmem:[#allocation79_spill] sm:$0xff] %v9576_v54  ;;  %v9730_v1 = vmul.f32 %v9200_v45, %v9662_v37  ;;  %v9738_v5 = vmul.f32 %v9194_v10, %v9600_v34  ;;  %v9742_v25 = vmul.f32 %v9194_v10, %v9620_v12  ;;  %v9766_v12 = vld [vmem:[#allocation2 + $0x1e8] sm:$0xff]  ;;  %v9810_v41 = vld [vmem:[#allocation2 + $0x218] sm:$0xff] }
 0x2b8   :  { %16668 = vst [vmem:[#allocation80_spill] sm:$0xff] %v9580_v63  ;;  %16669 = vst [vmem:[#allocation81_spill] sm:$0xff] %v9582_v59  ;;  %v9660_v63 = vmul.f32 %v9194_v10, %v9582_v59  ;;  %v9756_v48 = vmul.f32 %v9200_v45, %v9686_v27  ;;  %v9776_v24 = vmul.f32 %v9194_v10, %v9642_v7  ;;  %v9808_v59 = vld [vmem:[#allocation2 + $0x1d8] sm:$0x3] }
 0x2b9   :  { %16670 = vst [vmem:[#allocation82_spill] sm:$0xff] %v9584_v58  ;;  %16671 = vst [vmem:[#allocation83_spill] sm:$0xff] %v9586_v33  ;;  %v9786_v33 = vld [vmem:[#allocation2 + $0x178] sm:$0x3]  ;;  %v9790_v58 = vld [vmem:[#allocation2 + $0x210] sm:$0xff]  ;;  %v9794_v54 = vmul.f32 %v9200_v45, %v9726_v57  ;;  %v9816_v23 = vmul.f32 %v9200_v45, %v9746_v38  ;;  %v9836_v40 = vmul.f32 %v9200_v45, %v9766_v12 }
 0x2ba   :  { %16672 = vst [vmem:[#allocation84_spill] sm:$0xff] %v9590_v2  ;;  %16673 = vst [vmem:[#allocation85_spill] sm:$0xff] %v9593_v53  ;;  %v9684_v2 = vld [vmem:[#allocation2 + $0x158] sm:$0xff] }
 0x2bb   :  { %16674 = vst [vmem:[#allocation86_spill] sm:$0xff] %v9596_v11  ;;  %16676 = vst [vmem:[#allocation88_spill] sm:$0xff] %v9600_v34  ;;  %v9752_v13 = vmul.f32 %v9200_v45, %v9684_v2  ;;  %v9764_v11 = vmul.f32 %v9194_v10, %v9622_v16  ;;  %v9768_v34 = vld [vmem:[#allocation2 + $0x1f8] sm:$0xff]  ;;  %v9784_v16 = vmul.f32 %v9194_v10, %v9644_v21 }
 0x2bc   :  { %16677 = vst [vmem:[#allocation89_spill] sm:$0xff] %v9604_v31  ;;  %16678 = vst [vmem:[#allocation90_spill] sm:$0xff] %v9608_v18  ;;  %v9682_v31 = vld [vmem:[#allocation2 + $0x118] sm:$0x3] }
 0x2bd   :  { %16679 = vst [vmem:[#allocation91_spill] sm:$0xff] %v9612_v44  ;;  %16680 = vst [vmem:[#allocation92_spill] sm:$0xff] %v9616_v19  ;;  %v9760_v39 = vmul.f32 %v9194_v10, %v9682_v31 }
 0x2be   :  { %16681 = vst [vmem:[#allocation93_spill] sm:$0xff] %v9618_v3  ;;  %16684 = vst [vmem:[#allocation96_spill] sm:$0xff] %v9626_v22  ;;  %v9788_v3 = vld [vmem:[#allocation2 + $0x200] sm:$0xff] }
 0x2bf   :  { %16685 = vst [vmem:[#allocation97_spill] sm:$0xff] %v9630_v50  ;;  %16686 = vst [vmem:[#allocation98_spill] sm:$0xff] %v9634_v8  ;;  %v9960_v50 = vld [vmem:[#allocation2 + $0x2d0] sm:$0xff] }
 0x2c0   :  { %16687 = vst [vmem:[#allocation99_spill] sm:$0xff] %v9638_v14  ;;  %16688 = vst [vmem:[#allocation100_spill] sm:$0xff] %v9640_v46  ;;  %v9772_v46 = vmul.f32 %v9200_v45, %v9706_v0 }
 0x2c1   :  { %16689 = vst [vmem:[#allocation101_spill] sm:$0xff] %v9642_v7  ;;  %16690 = vst [vmem:[#allocation102_spill] sm:$0xff] %v9644_v21  ;;  %v9798_v7 = vmul.f32 %v9194_v10, %v9662_v37  ;;  %v9806_v21 = vmul.f32 %v9194_v10, %v9664_v26 }
 0x2c2   :  { %16691 = vst [vmem:[#allocation103_spill] sm:$0xff] %v9648_v62  ;;  %16692 = vst [vmem:[#allocation104_spill] sm:$0xff] %v9652_v36  ;;  %v9940_v36 = vld [vmem:[#allocation2 + $0x2b8] sm:$0xff]  ;;  %v9958_v62 = vld [vmem:[#allocation2 + $0x2c0] sm:$0xff] }
 0x2c3   :  { %16693 = vst [vmem:[#allocation105_spill] sm:$0xff] %v9656_v28  ;;  %16694 = vst [vmem:[#allocation106_spill] sm:$0xff] %v9662_v37  ;;  %v9820_v37 = vmul.f32 %v9200_v45, %v9748_v17 }
 0x2c4   :  { %16695 = vst [vmem:[#allocation107_spill] sm:$0xff] %v9664_v26  ;;  %16696 = vst [vmem:[#allocation108_spill] sm:$0xff] %v9668_v29  ;;  %v9828_v26 = vmul.f32 %v9194_v10, %v9744_v30  ;;  %v9938_v29 = vld [vmem:[#allocation2 + $0x2a8] sm:$0xff] }
 0x2c5   :  { %16697 = vst [vmem:[#allocation109_spill] sm:$0xff] %v9672_v9  ;;  %16698 = vst [vmem:[#allocation110_spill] sm:$0xff] %v9682_v31  ;;  %v9780_v31 = vmul.f32 %v9194_v10, %v9704_v4  ;;  %v9936_v9 = vld [vmem:[#allocation2 + $0x238] sm:$0x3] }
 0x2c6   :  { %16699 = vst [vmem:[#allocation111_spill] sm:$0xff] %v9684_v2  ;;  %16700 = vst [vmem:[#allocation112_spill] sm:$0xff] %v9686_v27 }
 0x2c7   :  { %16701 = vst [vmem:[#allocation113_spill] sm:$0xff] %v9690_v47  ;;  %16702 = vst [vmem:[#allocation114_spill] sm:$0xff] %v9694_v49  ;;  %v9916_v49 = vld [vmem:[#allocation2 + $0x290] sm:$0xff]  ;;  %v9918_v47 = vld [vmem:[#allocation2 + $0x2a0] sm:$0xff] }
 0x2c8   :  { %16703 = vst [vmem:[#allocation115_spill] sm:$0xff] %v9704_v4  ;;  %16704 = vst [vmem:[#allocation116_spill] sm:$0xff] %v9706_v0  ;;  %v9802_v4 = vmul.f32 %v9194_v10, %v9724_v56  ;;  %v9824_v56 = vmul.f32 %v9194_v10, %v9684_v2  ;;  %v9844_v2 = vmul.f32 %v9194_v10, %v9686_v27  ;;  %v16918_v19 = vld [vmem:[#allocation101_spill] sm:$0xff]  ;;  %v16920_v53 = vld [vmem:[#allocation102_spill] sm:$0xff] }
 0x2c9   :  { %16705 = vst [vmem:[#allocation117_spill] sm:$0xff] %v9710_v60  ;;  %16706 = vst [vmem:[#allocation118_spill] sm:$0xff] %v9714_v42  ;;  %v9866_v27 = vmul.f32 %v9194_v10, %v9786_v33  ;;  %v9896_v42 = vld [vmem:[#allocation2 + $0x288] sm:$0xff]  ;;  %v9900_v60 = vmul.f32 %v9200_v45, %v9830_v6 }
 0x2ca   :  { %16709 = vst [vmem:[#allocation121_spill] sm:$0xff] %v9730_v1  ;;  %16710 = vst [vmem:[#allocation122_spill] sm:$0xff] %v9734_v43  ;;  %v9876_v43 = vld [vmem:[#allocation2 + $0x270] sm:$0xff]  ;;  %v9894_v1 = vld [vmem:[#allocation2 + $0x278] sm:$0xff] }
 0x2cb   :  { %16711 = vst [vmem:[#allocation123_spill] sm:$0xff] %v9744_v30  ;;  %16712 = vst [vmem:[#allocation124_spill] sm:$0xff] %v9746_v38  ;;  %v9848_v30 = vmul.f32 %v9194_v10, %v9706_v0  ;;  %v9870_v0 = vmul.f32 %v9194_v10, %v9726_v57  ;;  %v9892_v57 = vmul.f32 %v9194_v10, %v9808_v59 }
 0x2cc   :  { %16713 = vst [vmem:[#allocation125_spill] sm:$0xff] %v9748_v17  ;;  %16714 = vst [vmem:[#allocation126_spill] sm:$0xff] %v9752_v13  ;;  %v9874_v13 = vld [vmem:[#allocation2 + $0x260] sm:$0xff]  ;;  %v9964_v22 = vmul.f32 %v9200_v45, %v9894_v1 }
 0x2cd   :  { %16715 = vst [vmem:[#allocation127_spill] sm:$0xff] %v9756_v48  ;;  %16716 = vst [vmem:[#allocation128_spill] sm:$0xff] %v9766_v12  ;;  %v9872_v48 = vld [vmem:[#allocation2 + $0x208] sm:$0x3] }
 0x2ce   :  { %16717 = vst [vmem:[#allocation129_spill] sm:$0xff] %v9768_v34  ;;  %16718 = vst [vmem:[#allocation130_spill] sm:$0xff] %v9772_v46  ;;  %v9854_v46 = vld [vmem:[#allocation2 + $0x258] sm:$0xff] }
 0x2cf   :  { %16719 = vst [vmem:[#allocation131_spill] sm:$0xff] %v9786_v33  ;;  %16720 = vst [vmem:[#allocation132_spill] sm:$0xff] %v9788_v3  ;;  %v9888_v33 = vmul.f32 %v9194_v10, %v9746_v38  ;;  %v9908_v38 = vmul.f32 %v9194_v10, %v9748_v17  ;;  %v16919_v18 = vld [vmem:[#allocation115_spill] sm:$0xff] }
 0x2d0   :  { %16721 = vst [vmem:[#allocation133_spill] sm:$0xff] %v9790_v58  ;;  %16722 = vst [vmem:[#allocation134_spill] sm:$0xff] %v9794_v54  ;;  %v9852_v54 = vld [vmem:[#allocation2 + $0x248] sm:$0xff] }
 0x2d1   :  { %16723 = vst [vmem:[#allocation135_spill] sm:$0xff] %v9808_v59  ;;  %16724 = vst [vmem:[#allocation136_spill] sm:$0xff] %v9810_v41  ;;  %v9912_v59 = vmul.f32 %v9194_v10, %v9766_v12  ;;  %v9934_v12 = vmul.f32 %v9194_v10, %v9768_v34 }
 0x2d2   :  { %16725 = vst [vmem:[#allocation137_spill] sm:$0xff] %v9812_v15  ;;  %16726 = vst [vmem:[#allocation138_spill] sm:$0xff] %v9816_v23  ;;  %v9840_v23 = vmul.f32 %v9200_v45, %v9768_v34  ;;  %v9956_v34 = vmul.f32 %v9194_v10, %v9872_v48 }
 0x2d3   :  { %16727 = vst [vmem:[#allocation139_spill] sm:$0xff] %v9820_v37  ;;  %16728 = vst [vmem:[#allocation140_spill] sm:$0xff] %v9830_v6  ;;  %v9850_v37 = vld [vmem:[#allocation2 + $0x1f0] sm:$0x3] }
 0x2d4   :  { %16729 = vst [vmem:[#allocation141_spill] sm:$0xff] %v9832_v35  ;;  %16730 = vst [vmem:[#allocation142_spill] sm:$0xff] %v9836_v40  ;;  %v9858_v40 = vmul.f32 %v9200_v45, %v9788_v3  ;;  %v9930_v17 = vmul.f32 %v9194_v10, %v9850_v37 }
 0x2d5   :  { %16731 = vst [vmem:[#allocation143_spill] sm:$0xff] %v9840_v23  ;;  %16732 = vst [vmem:[#allocation144_spill] sm:$0xff] %v9850_v37  ;;  %v9862_v23 = vmul.f32 %v9200_v45, %v9790_v58  ;;  %v9952_v37 = vmul.f32 %v9194_v10, %v9788_v3  ;;  %v9972_v3 = vmul.f32 %v9194_v10, %v9790_v58 }
 0x2d6   :  { %16733 = vst [vmem:[#allocation145_spill] sm:$0xff] %v9852_v54  ;;  %16734 = vst [vmem:[#allocation146_spill] sm:$0xff] %v9854_v46 }
 0x2d7   :  { %16735 = vst [vmem:[#allocation147_spill] sm:$0xff] %v9858_v40  ;;  %16736 = vst [vmem:[#allocation148_spill] sm:$0xff] %v9862_v23  ;;  %v9880_v40 = vmul.f32 %v9200_v45, %v9810_v41  ;;  %v9884_v23 = vmul.f32 %v9200_v45, %v9812_v15 }
 0x2d8   :  { %16737 = vst [vmem:[#allocation149_spill] sm:$0xff] %v9872_v48  ;;  %16738 = vst [vmem:[#allocation150_spill] sm:$0xff] %v9874_v13  ;;  %v9976_v48 = vmul.f32 %v9194_v10, %v9810_v41  ;;  %v9998_v41 = vmul.f32 %v9194_v10, %v9812_v15  ;;  %v10018_v15 = vmul.f32 %v9194_v10, %v9936_v9 }
 0x2d9   :  { %16739 = vst [vmem:[#allocation151_spill] sm:$0xff] %v9876_v43  ;;  %16740 = vst [vmem:[#allocation152_spill] sm:$0xff] %v9880_v40  ;;  %v9904_v40 = vmul.f32 %v9200_v45, %v9832_v35 }
 0x2da   :  { %16741 = vst [vmem:[#allocation153_spill] sm:$0xff] %v9884_v23  ;;  %16742 = vst [vmem:[#allocation154_spill] sm:$0xff] %v9894_v1  ;;  %v9914_v23 = vld [vmem:[#allocation2 + $0x220] sm:$0x3] }
 0x2db   :  { %16743 = vst [vmem:[#allocation155_spill] sm:$0xff] %v9896_v42  ;;  %16744 = vst [vmem:[#allocation156_spill] sm:$0xff] %v9900_v60  ;;  %v9922_v60 = vmul.f32 %v9200_v45, %v9852_v54  ;;  %v9994_v58 = vmul.f32 %v9194_v10, %v9914_v23 }
 0x2dc   :  { %16745 = vst [vmem:[#allocation157_spill] sm:$0xff] %v9904_v40  ;;  %16746 = vst [vmem:[#allocation158_spill] sm:$0xff] %v9914_v23  ;;  %v9926_v40 = vmul.f32 %v9200_v45, %v9854_v46  ;;  %v10014_v23 = vmul.f32 %v9194_v10, %v9830_v6  ;;  %v10036_v6 = vmul.f32 %v9194_v10, %v9852_v54 }
 0x2dd   :  { %16747 = vst [vmem:[#allocation159_spill] sm:$0xff] %v9916_v49  ;;  %16748 = vst [vmem:[#allocation160_spill] sm:$0xff] %v9918_v47  ;;  %v10056_v54 = vmul.f32 %v9194_v10, %v9854_v46  ;;  %v10076_v46 = vld [vmem:[#allocation2 + $0x2e0] sm:$0x3] }
 0x2de   :  { %16749 = vst [vmem:[#allocation161_spill] sm:$0xff] %v9922_v60  ;;  %16750 = vst [vmem:[#allocation162_spill] sm:$0xff] %v9926_v40  ;;  %v9944_v60 = vmul.f32 %v9200_v45, %v9874_v13  ;;  %v9948_v40 = vmul.f32 %v9200_v45, %v9876_v43 }
 0x2df   :  { %16751 = vst [vmem:[#allocation163_spill] sm:$0xff] %v9934_v12  ;;  %16752 = vst [vmem:[#allocation164_spill] sm:$0xff] %v9936_v9  ;;  %v10006_v12 = vmul.f32 %v9200_v45, %v9938_v29  ;;  %v10038_v9 = vld [vmem:[#allocation2 + $0x298] sm:$0x3] }
 0x2e0   :  { %16753 = vst [vmem:[#allocation165_spill] sm:$0xff] %v9938_v29  ;;  %16754 = vst [vmem:[#allocation166_spill] sm:$0xff] %v9940_v36 }
 0x2e1   :  { %16755 = vst [vmem:[#allocation167_spill] sm:$0xff] %v9944_v60  ;;  %16756 = vst [vmem:[#allocation168_spill] sm:$0xff] %v9948_v40  ;;  %v9968_v60 = vmul.f32 %v9200_v45, %v9896_v42  ;;  %v9978_v40 = vld [vmem:[#allocation2 + $0x250] sm:$0x3] }
 0x2e2   :  { %16757 = vst [vmem:[#allocation169_spill] sm:$0xff] %v9952_v37  ;;  %16758 = vst [vmem:[#allocation170_spill] sm:$0xff] %v9956_v34  ;;  %v9980_v34 = vld [vmem:[#allocation2 + $0x2d8] sm:$0xff]  ;;  %v9982_v37 = vld [vmem:[#allocation2 + $0x2e8] sm:$0xff] }
 0x2e3   :  { %16759 = vst [vmem:[#allocation171_spill] sm:$0xff] %v9958_v62  ;;  %16760 = vst [vmem:[#allocation172_spill] sm:$0xff] %v9960_v50 }
 0x2e4   :  { %16761 = vst [vmem:[#allocation173_spill] sm:$0xff] %v9964_v22  ;;  %16762 = vst [vmem:[#allocation174_spill] sm:$0xff] %v9968_v60  ;;  %v9986_v22 = vmul.f32 %v9200_v45, %v9916_v49  ;;  %v9990_v60 = vmul.f32 %v9200_v45, %v9918_v47 }
 0x2e5   :  { %16763 = vst [vmem:[#allocation175_spill] sm:$0xff] %v9972_v3  ;;  %16764 = vst [vmem:[#allocation176_spill] sm:$0xff] %v9976_v48  ;;  %v10000_v48 = vld [vmem:[#allocation2 + $0x268] sm:$0x3]  ;;  %v10002_v3 = vld [vmem:[#allocation2 + $0x2f0] sm:$0xff] }
 0x2e6   :  { %16765 = vst [vmem:[#allocation177_spill] sm:$0xff] %v9978_v40  ;;  %16766 = vst [vmem:[#allocation178_spill] sm:$0xff] %v9980_v34 }
 0x2e7   :  { %16767 = vst [vmem:[#allocation179_spill] sm:$0xff] %v9982_v37  ;;  %16768 = vst [vmem:[#allocation180_spill] sm:$0xff] %v9986_v22  ;;  %v10010_v22 = vmul.f32 %v9200_v45, %v9940_v36 }
 0x2e8   :  { %16769 = vst [vmem:[#allocation181_spill] sm:$0xff] %v9990_v60  ;;  %16770 = vst [vmem:[#allocation182_spill] sm:$0xff] %v9998_v41  ;;  %v10020_v60 = vld [vmem:[#allocation2 + $0x280] sm:$0x3]  ;;  %v10024_v41 = vmul.f32 %v9200_v45, %v9958_v62 }
 0x2e9   :  { %16771 = vst [vmem:[#allocation183_spill] sm:$0xff] %v10000_v48  ;;  %16772 = vst [vmem:[#allocation184_spill] sm:$0xff] %v10002_v3 }
 0x2ea   :  { %16773 = vst [vmem:[#allocation185_spill] sm:$0xff] %v10006_v12  ;;  %16774 = vst [vmem:[#allocation186_spill] sm:$0xff] %v10010_v22  ;;  %v10028_v12 = vmul.f32 %v9200_v45, %v9960_v50  ;;  %v10032_v22 = vmul.f32 %v9194_v10, %v9832_v35  ;;  %v10052_v35 = vmul.f32 %v9194_v10, %v9978_v40 }
 0x2eb   :  { %16775 = vst [vmem:[#allocation187_spill] sm:$0xff] %v10014_v23  ;;  %16776 = vst [vmem:[#allocation188_spill] sm:$0xff] %v10018_v15  ;;  %v10040_v15 = vld [vmem:[#allocation2 + $0x2b0] sm:$0x3]  ;;  %v10044_v23 = vmul.f32 %v9200_v45, %v9980_v34  ;;  %v10074_v40 = vmul.f32 %v9194_v10, %v9876_v43  ;;  %v10094_v43 = vld [vmem:[#allocation2 + $0x2f8] sm:$0x3] }
 0x2ec   :  { %16777 = vst [vmem:[#allocation189_spill] sm:$0xff] %v10020_v60  ;;  %16778 = vst [vmem:[#allocation190_spill] sm:$0xff] %v10024_v41  ;;  %v10048_v41 = vmul.f32 %v9200_v45, %v9982_v37 }
 0x2ed   :  { %16779 = vst [vmem:[#allocation191_spill] sm:$0xff] %v10028_v12  ;;  %16780 = vst [vmem:[#allocation192_spill] sm:$0xff] %v10036_v6  ;;  %v10058_v12 = vld [vmem:[#allocation2 + $0x2c8] sm:$0x3]  ;;  %v10062_v6 = vmul.f32 %v9200_v45, %v10002_v3  ;;  %v10084_v45 = vmul.f32 %v9194_v10, %v10020_v60  ;;  %v10106_v60 = vmul.f32 %v9194_v10, %v9938_v29 }
 0x2ee   :  { %16781 = vst [vmem:[#allocation193_spill] sm:$0xff] %v10038_v9  ;;  %16782 = vst [vmem:[#allocation194_spill] sm:$0xff] %v10040_v15  ;;  %v10126_v29 = vmul.f32 %v9194_v10, %v9960_v50  ;;  %v10146_v50 = vmul.f32 %v9194_v10, %v10094_v43 }
 0x2ef   :  { %16783 = vst [vmem:[#allocation195_spill] sm:$0xff] %v10044_v23  ;;  %16784 = vst [vmem:[#allocation196_spill] sm:$0xff] %v10048_v41  ;;  %v10066_v23 = vmul.f32 %v9194_v10, %v9874_v13  ;;  %v10070_v41 = vmul.f32 %v9194_v10, %v10000_v48  ;;  %v10088_v13 = vmul.f32 %v9194_v10, %v9896_v42  ;;  %v16800_v14 = vld [vmem:[#allocation182_spill] sm:$0xff] }
 0x2f0   :  { %16785 = vst [vmem:[#allocation197_spill] sm:$0xff] %v10056_v54  ;;  %16786 = vst [vmem:[#allocation198_spill] sm:$0xff] %v10058_v12  ;;  %v10080_v54 = vmul.f32 %v9194_v10, %v9894_v1  ;;  %v10092_v48 = vmul.f32 %v9194_v10, %v9916_v49  ;;  %v10102_v1 = vmul.f32 %v9194_v10, %v9918_v47 }
 0x2f1   :  { %16787 = vst [vmem:[#allocation199_spill] sm:$0xff] %v10062_v6  ;;  %16788 = vst [vmem:[#allocation200_spill] sm:$0xff] %v10076_v46  ;;  %v10098_v6 = vmul.f32 %v9194_v10, %v10038_v9  ;;  %v10110_v42 = vmul.f32 %v9194_v10, %v10040_v15  ;;  %v10114_v49 = vmul.f32 %v9194_v10, %v9940_v36 }
 0x2f2   :  { %v10118_v9 = vmul.f32 %v9194_v10, %v9958_v62  ;;  %v10122_v47 = vmul.f32 %v9194_v10, %v10058_v12  ;;  %16789 = vst [vmem:[#allocation201_spill] sm:$0xff] %v10126_v29  ;;  %v10130_v15 = vmul.f32 %v9194_v10, %v9980_v34  ;;  %v10134_v36 = vmul.f32 %v9194_v10, %v10076_v46 }
 0x2f3   :  { %v10138_v62 = vmul.f32 %v9194_v10, %v9982_v37  ;;  %v10142_v12 = vmul.f32 %v9194_v10, %v10002_v3  ;;  %v2051_v37 = vrot.slane %v9676_v51, 1  ;;  %v2054_v3 = vrot.slane %v9698_v20, 1 }
 0x2f4   :  { %16790 = vst [vmem:[#allocation202_spill] sm:$0xff] %v10130_v15  ;;  %16791 = vst [vmem:[#allocation203_spill] sm:$0xff] %v10134_v36  ;;  %v2049_v36 = vrot.slane %v9660_v63, 1  ;;  %v2057_v10 = vrot.slane %v9718_v55, 1  ;;  %v2059_v29 = vrot.slane %v9722_v32, 1  ;;  %v2061_v34 = vrot.slane %v9738_v5, 1 }
 0x2f5   :  { %16792 = vst [vmem:[#allocation204_spill] sm:$0xff] %v10138_v62  ;;  %16793 = vst [vmem:[#allocation205_spill] sm:$0xff] %v10142_v12  ;;  %v2052_v62 = vrot.slane %v9680_v61, 1  ;;  %v2056_v12 = vrot.slane %v9702_v52, 1  ;;  %v2062_v15 = vrot.slane %v9742_v25, 1  ;;  %v2064_v46 = vrot.slane %v9760_v39, 1 }
 0x2f6   :  { %v2066_v63 = vrot.slane %v9764_v11, 1  ;;  %v2067_v51 = vrot.slane %v9776_v24, 1  ;;  %v2069_v61 = vrot.slane %v9780_v31, 1  ;;  %v2071_v20 = vrot.slane %v9784_v16, 1  ;;  %v16798_v39 = vld [vmem:[#allocation175_spill] sm:$0xff]  ;;  %v16799_v55 = vld [vmem:[#allocation176_spill] sm:$0xff] }
 0x2f7   :  { %v2072_v52 = vrot.slane %v9798_v7, 1  ;;  %v2074_v32 = vrot.slane %v9802_v4, 1  ;;  %v2076_v5 = vrot.slane %v9806_v21, 1  ;;  %v2077_v25 = vrot.slane %v9824_v56, 1 }
 0x2f8   :  { %v16794_v24 = vrot.slane %v9656_v28, 1  ;;  %v10179_v16 = vsel %vm2005_vm5, %v2051_v37, %v2052_v62  ;;  %v10182_v7 = vsel %vm2005_vm5, %v2052_v62, %v2054_v3  ;;  %v10185_v4 = vsel %vm2005_vm5, %v2056_v12, %v2057_v10  ;;  %v16801_v28 = vld [vmem:[#allocation187_spill] sm:$0xff] }
 0x2f9   :  { %v10188_v56 = vsel %vm2005_vm5, %v2057_v10, %v2059_v29  ;;  %v10191_v21 = vsel %vm2005_vm5, %v2061_v34, %v2062_v15  ;;  %v10194_v11 = vsel %vm2005_vm5, %v2062_v15, %v2064_v46  ;;  %v10200_v37 = vsel %vm2005_vm5, %v2067_v51, %v2069_v61 }
 0x2fa   :  { %v10176_v31 = vsel %vm2005_vm5, %v16794_v24, %v2049_v36  ;;  %v10197_v36 = vsel %vm2005_vm5, %v2066_v63, %v2067_v51  ;;  %v10203_v62 = vsel %vm2005_vm5, %v2071_v20, %v2072_v52  ;;  %v10206_v12 = vsel %vm2005_vm5, %v2072_v52, %v2074_v32  ;;  %v16795_v32 = vld [vmem:[#allocation163_spill] sm:$0xff]  ;;  %v16797_v24 = vld [vmem:[#allocation170_spill] sm:$0xff] }
 0x2fb   :  { %v10209_v29 = vsel %vm2005_vm5, %v2076_v5, %v2077_v25  ;;  %v2079_v34 = vrot.slane %v9828_v26, 1  ;;  %v2081_v46 = vrot.slane %v9844_v2, 1  ;;  %v2082_v15 = vrot.slane %v9848_v30, 1  ;;  %v16796_v5 = vld [vmem:[#allocation169_spill] sm:$0xff] }
 0x2fc   :  { %v2084_v3 = vrot.slane %v9866_v27, 1  ;;  %v2091_v10 = vrot.slane %v9870_v0, 1  ;;  %v2092_v63 = vrot.slane %v9888_v33, 1  ;;  %v2094_v51 = vrot.slane %v9892_v57, 1 }
 0x2fd   :  { %v2096_v61 = vrot.slane %v9908_v38, 1  ;;  %v2097_v20 = vrot.slane %v9912_v59, 1  ;;  %v2099_v52 = vrot.slane %v9930_v17, 1  ;;  %v2101_v26 = vrot.slane %v16795_v32, 1  ;;  %v16802_v17 = vld [vmem:[#allocation188_spill] sm:$0xff] }
 0x2fe   :  { %v2102_v2 = vrot.slane %v16796_v5, 1  ;;  %v2104_v30 = vrot.slane %v16797_v24, 1  ;;  %v2106_v27 = vrot.slane %v16798_v39, 1  ;;  %v2107_v0 = vrot.slane %v16799_v55, 1  ;;  %v16803_v5 = vld [vmem:[#allocation192_spill] sm:$0xff] }
 0x2ff   :  { %v2109_v33 = vrot.slane %v9994_v58, 1  ;;  %v2111_v57 = vrot.slane %v16800_v14, 1  ;;  %v2112_v38 = vrot.slane %v16801_v28, 1  ;;  %v10230_v59 = vsel %vm2005_vm5, %v2077_v25, %v2079_v34 }
 0x300   :  { %v2114_v8 = vrot.slane %v16802_v17, 1  ;;  %v2116_v32 = vrot.slane %v10032_v22, 1  ;;  %v2117_v44 = vrot.slane %v16803_v5, 1  ;;  %v10236_v24 = vsel %vm2005_vm5, %v2081_v46, %v2082_v15  ;;  %v16804_v17 = vld [vmem:[#allocation197_spill] sm:$0xff] }
 0x301   :  { %v10239_v55 = vsel %vm2005_vm5, %v2082_v15, %v2084_v3  ;;  %v10242_v58 = vsel %vm2005_vm5, %v2091_v10, %v2092_v63  ;;  %v2119_v14 = vrot.slane %v10052_v35, 1  ;;  %v2095_v28 = vsel %vm2005_vm5, %v2092_v63, %v2094_v51  ;;  %v16809_v5 = vld [vmem:[#allocation205_spill] sm:$0xff] }
 0x302   :  { %v2098_v25 = vsel %vm2005_vm5, %v2096_v61, %v2097_v20  ;;  %v2100_v39 = vsel %vm2005_vm5, %v2097_v20, %v2099_v52  ;;  %v2103_v22 = vsel %vm2005_vm5, %v2101_v26, %v2102_v2  ;;  %v2105_v34 = vsel %vm2005_vm5, %v2102_v2, %v2104_v30 }
 0x303   :  { %v2108_v46 = vsel %vm2005_vm5, %v2106_v27, %v2107_v0  ;;  %v2110_v15 = vsel %vm2005_vm5, %v2107_v0, %v2109_v33  ;;  %v2113_v3 = vsel %vm2005_vm5, %v2111_v57, %v2112_v38  ;;  %v2115_v10 = vsel %vm2005_vm5, %v2112_v38, %v2114_v8  ;;  %v16805_v33 = vld [vmem:[#allocation201_spill] sm:$0xff]  ;;  %v16806_v57 = vld [vmem:[#allocation202_spill] sm:$0xff]  ;;  %v16807_v38 = vld [vmem:[#allocation203_spill] sm:$0xff] }
 0x304   :  { %v2118_v35 = vsel %vm2005_vm5, %v2116_v32, %v2117_v44  ;;  %v2121_v63 = vrot.slane %v16804_v17, 1  ;;  %v2122_v51 = vrot.slane %v10066_v23, 1  ;;  %v2120_v61 = vsel %vm2005_vm5, %v2117_v44, %v2119_v14  ;;  %v16808_v32 = vld [vmem:[#allocation204_spill] sm:$0xff] }
 0x305   :  { %v2124_v20 = vrot.slane %v10070_v41, 1  ;;  %v2126_v52 = vrot.slane %v10074_v40, 1  ;;  %v2127_v26 = vrot.slane %v10080_v54, 1  ;;  %v2129_v2 = vrot.slane %v10084_v45, 1 }
 0x306   :  { %v2131_v30 = vrot.slane %v10088_v13, 1  ;;  %v2132_v8 = vrot.slane %v10092_v48, 1  ;;  %v2134_v27 = vrot.slane %v10098_v6, 1  ;;  %v2136_v0 = vrot.slane %v10102_v1, 1 }
 0x307   :  { %v2137_v23 = vrot.slane %v10106_v60, 1  ;;  %v2139_v44 = vrot.slane %v10110_v42, 1  ;;  %v2141_v41 = vrot.slane %v10114_v49, 1  ;;  %v2142_v40 = vrot.slane %v10118_v9, 1 }
 0x308   :  { %v2144_v54 = vrot.slane %v10122_v47, 1  ;;  %v2146_v45 = vrot.slane %v16805_v33, 1  ;;  %v2147_v13 = vrot.slane %v16806_v57, 1  ;;  %v2123_v48 = vsel %vm2005_vm5, %v2121_v63, %v2122_v51 }
 0x309   :  { %v2149_v6 = vrot.slane %v16807_v38, 1  ;;  %v2151_v1 = vrot.slane %v16808_v32, 1  ;;  %v2152_v60 = vrot.slane %v16809_v5, 1  ;;  %v2125_v42 = vsel %vm2005_vm5, %v2122_v51, %v2124_v20  ;;  %v16810_v20 = vld [vmem:[#allocation96_spill] sm:$0xff]  ;;  %v16828_v32 = vld [vmem:[#allocation118_spill] sm:$0xff] }
 0x30a   :  { %v2128_v49 = vsel %vm2005_vm5, %v2126_v52, %v2127_v26  ;;  %v2130_v9 = vsel %vm2005_vm5, %v2127_v26, %v2129_v2  ;;  %v2154_v47 = vrot.slane %v10146_v50, 1  ;;  %v2133_v14 = vsel %vm2005_vm5, %v2131_v30, %v2132_v8  ;;  %v16812_v2 = vld [vmem:[#allocation97_spill] sm:$0xff]  ;;  %v16832_v5 = vld [vmem:[#allocation122_spill] sm:$0xff] }
 0x30b   :  { %v2135_v17 = vsel %vm2005_vm5, %v2132_v8, %v2134_v27  ;;  %v2138_v63 = vsel %vm2005_vm5, %v2136_v0, %v2137_v23  ;;  %v2140_v33 = vsel %vm2005_vm5, %v2137_v23, %v2139_v44  ;;  %v2143_v57 = vsel %vm2005_vm5, %v2141_v41, %v2142_v40  ;;  %v16814_v8 = vld [vmem:[#allocation103_spill] sm:$0xff]  ;;  %v16816_v23 = vld [vmem:[#allocation104_spill] sm:$0xff] }
 0x30c   :  { %v2145_v38 = vsel %vm2005_vm5, %v2142_v40, %v2144_v54  ;;  %v2148_v51 = vsel %vm2005_vm5, %v2146_v45, %v2147_v13  ;;  %v10290_v52 = vadd.f32 %v10176_v31, %v16810_v20  ;;  %v2150_v50 = vsel %vm2005_vm5, %v2147_v13, %v2149_v6  ;;  %v16818_v31 = vld [vmem:[#allocation108_spill] sm:$0xff]  ;;  %v16820_v40 = vld [vmem:[#allocation109_spill] sm:$0xff]  ;;  %v16838_v20 = vld [vmem:[#allocation130_spill] sm:$0xff] }
 0x30d   :  { %v2153_v26 = vsel %vm2005_vm5, %v2151_v1, %v2152_v60  ;;  %v10296_v30 = vadd.f32 %v10179_v16, %v16812_v2  ;;  %v10300_v27 = vadd.f32 %v10182_v7, %v16814_v8  ;;  %v2155_v0 = vsel %vm2005_vm5, %v2152_v60, %v2154_v47  ;;  %v16822_v16 = vld [vmem:[#allocation113_spill] sm:$0xff]  ;;  %v16824_v7 = vld [vmem:[#allocation114_spill] sm:$0xff]  ;;  %v16836_v47 = vld [vmem:[#allocation127_spill] sm:$0xff] }
 0x30e   :  { %16811 = vst [vmem:[#allocation163_spill] sm:$0xff] %v10290_v52  ;;  %v10305_v44 = vadd.f32 %v10185_v4, %v16816_v23  ;;  %v10309_v41 = vadd.f32 %v10188_v56, %v16818_v31  ;;  %v10313_v54 = vadd.f32 %v10191_v21, %v16820_v40  ;;  %v10317_v45 = vadd.f32 %v10194_v11, %v16822_v16  ;;  %v16826_v6 = vld [vmem:[#allocation117_spill] sm:$0xff]  ;;  %v16834_v60 = vld [vmem:[#allocation126_spill] sm:$0xff]  ;;  %v16848_v16 = vld [vmem:[#allocation143_spill] sm:$0xff] }
 0x30f   :  { %16813 = vst [vmem:[#allocation169_spill] sm:$0xff] %v10296_v30  ;;  %16815 = vst [vmem:[#allocation170_spill] sm:$0xff] %v10300_v27  ;;  %v10321_v13 = vadd.f32 %v10197_v36, %v16824_v7  ;;  %v10325_v4 = vadd.f32 %v10200_v37, %v16826_v6  ;;  %v10329_v56 = vadd.f32 %v10203_v62, %v16828_v32  ;;  %v16830_v1 = vld [vmem:[#allocation121_spill] sm:$0xff]  ;;  %v16840_v2 = vld [vmem:[#allocation134_spill] sm:$0xff] }
 0x310   :  { %16817 = vst [vmem:[#allocation175_spill] sm:$0xff] %v10305_v44  ;;  %16819 = vst [vmem:[#allocation176_spill] sm:$0xff] %v10309_v41  ;;  %v10333_v21 = vadd.f32 %v10206_v12, %v16830_v1  ;;  %v10337_v11 = vadd.f32 %v10209_v29, %v16832_v5  ;;  %v10341_v36 = vadd.f32 %v10230_v59, %v16834_v60  ;;  %v16842_v8 = vld [vmem:[#allocation138_spill] sm:$0xff]  ;;  %v16844_v29 = vld [vmem:[#allocation139_spill] sm:$0xff] }
 0x311   :  { %16821 = vst [vmem:[#allocation182_spill] sm:$0xff] %v10313_v54  ;;  %16823 = vst [vmem:[#allocation187_spill] sm:$0xff] %v10317_v45  ;;  %v10345_v37 = vadd.f32 %v10236_v24, %v16836_v47  ;;  %v10349_v62 = vadd.f32 %v10239_v55, %v16838_v20  ;;  %v10353_v12 = vadd.f32 %v10242_v58, %v16840_v2  ;;  %v16846_v59 = vld [vmem:[#allocation142_spill] sm:$0xff]  ;;  %v16850_v7 = vld [vmem:[#allocation147_spill] sm:$0xff] }
 0x312   :  { %16825 = vst [vmem:[#allocation188_spill] sm:$0xff] %v10321_v13  ;;  %16827 = vst [vmem:[#allocation192_spill] sm:$0xff] %v10325_v4  ;;  %v10356_v23 = vadd.f32 %v2095_v28, %v16842_v8  ;;  %v10359_v31 = vadd.f32 %v2098_v25, %v16844_v29  ;;  %v10362_v40 = vadd.f32 %v2100_v39, %v16846_v59  ;;  %v16852_v55 = vld [vmem:[#allocation148_spill] sm:$0xff]  ;;  %v16856_v28 = vld [vmem:[#allocation153_spill] sm:$0xff] }
 0x313   :  { %16829 = vst [vmem:[#allocation197_spill] sm:$0xff] %v10329_v56  ;;  %16831 = vst [vmem:[#allocation201_spill] sm:$0xff] %v10333_v21  ;;  %v10365_v24 = vadd.f32 %v2103_v22, %v16848_v16  ;;  %v10368_v6 = vadd.f32 %v2105_v34, %v16850_v7  ;;  %v10371_v32 = vadd.f32 %v2108_v46, %v16852_v55  ;;  %v16854_v58 = vld [vmem:[#allocation152_spill] sm:$0xff]  ;;  %v16860_v39 = vld [vmem:[#allocation157_spill] sm:$0xff] }
 0x314   :  { %16833 = vst [vmem:[#allocation202_spill] sm:$0xff] %v10337_v11  ;;  %16835 = vst [vmem:[#allocation203_spill] sm:$0xff] %v10341_v36  ;;  %v10374_v1 = vadd.f32 %v2110_v15, %v16854_v58  ;;  %v10377_v5 = vadd.f32 %v2113_v3, %v16856_v28  ;;  %v16858_v25 = vld [vmem:[#allocation156_spill] sm:$0xff]  ;;  %v10383_v47 = vadd.f32 %v2118_v35, %v16860_v39  ;;  %v16862_v22 = vld [vmem:[#allocation161_spill] sm:$0xff] }
 0x315   :  { %16837 = vst [vmem:[#allocation204_spill] sm:$0xff] %v10345_v37  ;;  %16839 = vst [vmem:[#allocation205_spill] sm:$0xff] %v10349_v62  ;;  %v10380_v60 = vadd.f32 %v2115_v10, %v16858_v25  ;;  %v10386_v20 = vadd.f32 %v2120_v61, %v16862_v22  ;;  %v16864_v34 = vld [vmem:[#allocation162_spill] sm:$0xff]  ;;  %v16866_v46 = vld [vmem:[#allocation167_spill] sm:$0xff] }
 0x316   :  { %16841 = vst [vmem:[#allocation96_spill] sm:$0xff] %v10353_v12  ;;  %16843 = vst [vmem:[#allocation97_spill] sm:$0xff] %v10356_v23  ;;  %v10389_v2 = vadd.f32 %v2123_v48, %v16864_v34  ;;  %v10392_v8 = vadd.f32 %v2125_v42, %v16866_v46  ;;  %v16868_v15 = vld [vmem:[#allocation168_spill] sm:$0xff]  ;;  %v16870_v3 = vld [vmem:[#allocation173_spill] sm:$0xff] }
 0x317   :  { %16845 = vst [vmem:[#allocation103_spill] sm:$0xff] %v10359_v31  ;;  %16847 = vst [vmem:[#allocation104_spill] sm:$0xff] %v10362_v40  ;;  %v10395_v29 = vadd.f32 %v2128_v49, %v16868_v15  ;;  %v10398_v59 = vadd.f32 %v2130_v9, %v16870_v3  ;;  %v16872_v10 = vld [vmem:[#allocation174_spill] sm:$0xff]  ;;  %v16874_v35 = vld [vmem:[#allocation180_spill] sm:$0xff] }
 0x318   :  { %16849 = vst [vmem:[#allocation108_spill] sm:$0xff] %v10365_v24  ;;  %16851 = vst [vmem:[#allocation109_spill] sm:$0xff] %v10368_v6  ;;  %v10401_v16 = vadd.f32 %v2133_v14, %v16872_v10  ;;  %v10404_v7 = vadd.f32 %v2135_v17, %v16874_v35  ;;  %v16876_v61 = vld [vmem:[#allocation181_spill] sm:$0xff]  ;;  %v16880_v42 = vld [vmem:[#allocation186_spill] sm:$0xff] }
 0x319   :  { %16853 = vst [vmem:[#allocation113_spill] sm:$0xff] %v10371_v32  ;;  %16855 = vst [vmem:[#allocation114_spill] sm:$0xff] %v10374_v1  ;;  %v10407_v55 = vadd.f32 %v2138_v63, %v16876_v61  ;;  %v16878_v48 = vld [vmem:[#allocation185_spill] sm:$0xff]  ;;  %v10413_v28 = vadd.f32 %v2143_v57, %v16880_v42  ;;  %v16882_v49 = vld [vmem:[#allocation190_spill] sm:$0xff] }
 0x31a   :  { %16857 = vst [vmem:[#allocation117_spill] sm:$0xff] %v10377_v5  ;;  %16859 = vst [vmem:[#allocation118_spill] sm:$0xff] %v10380_v60  ;;  %v10410_v58 = vadd.f32 %v2140_v33, %v16878_v48  ;;  %v10416_v25 = vadd.f32 %v2145_v38, %v16882_v49  ;;  %v16884_v9 = vld [vmem:[#allocation191_spill] sm:$0xff]  ;;  %v16888_v17 = vld [vmem:[#allocation196_spill] sm:$0xff] }
 0x31b   :  { %16861 = vst [vmem:[#allocation121_spill] sm:$0xff] %v10383_v47  ;;  %16863 = vst [vmem:[#allocation122_spill] sm:$0xff] %v10386_v20  ;;  %v10419_v39 = vadd.f32 %v2148_v51, %v16884_v9  ;;  %v16886_v14 = vld [vmem:[#allocation195_spill] sm:$0xff]  ;;  %v10425_v34 = vadd.f32 %v2153_v26, %v16888_v17  ;;  %v16892_v15 = vld [vmem:[#allocation70_spill] sm:$0xff] }
 0x31c   :  { %16865 = vst [vmem:[#allocation126_spill] sm:$0xff] %v10389_v2  ;;  %16867 = vst [vmem:[#allocation127_spill] sm:$0xff] %v10392_v8  ;;  %v10422_v22 = vadd.f32 %v2150_v50, %v16886_v14  ;;  %v16890_v63 = vld [vmem:[#allocation199_spill] sm:$0xff]  ;;  %v16896_v51 = vld [vmem:[#allocation65_spill] sm:$0xff] }
 0x31d   :  { %16869 = vst [vmem:[#allocation130_spill] sm:$0xff] %v10395_v29  ;;  %16871 = vst [vmem:[#allocation134_spill] sm:$0xff] %v10398_v59  ;;  %v10428_v46 = vadd.f32 %v2155_v0, %v16890_v63  ;;  %v10430_v33 = vld [vmem:[#allocation11 + $0x2] ss:$0 sm:$0xff]  ;;  %v16898_v10 = vld [vmem:[#allocation77_spill] sm:$0xff] }
 0x31e   :  { %16873 = vst [vmem:[#allocation138_spill] sm:$0xff] %v10401_v16  ;;  %16875 = vst [vmem:[#allocation139_spill] sm:$0xff] %v10404_v7  ;;  %v10434_v57 = vmul.f32 %v10430_v33, %v16892_v15  ;;  %v16894_v38 = vld [vmem:[#allocation71_spill] sm:$0xff]  ;;  %v10442_v50 = vmul.f32 %v10430_v33, %v16896_v51  ;;  %v10446_v26 = vmul.f32 %v10430_v33, %v16898_v10  ;;  %v16900_v0 = vld [vmem:[#allocation72_spill] sm:$0xff] }
 0x31f   :  { %16877 = vst [vmem:[#allocation142_spill] sm:$0xff] %v10407_v55  ;;  %16879 = vst [vmem:[#allocation143_spill] sm:$0xff] %v10410_v58  ;;  %v10438_v3 = vmul.f32 %v10430_v33, %v16894_v38  ;;  %v10450_v35 = vmul.f32 %v10430_v33, %v16900_v0  ;;  %v16902_v61 = vld [vmem:[#allocation78_spill] sm:$0xff]  ;;  %v16904_v42 = vld [vmem:[#allocation81_spill] sm:$0xff] }
 0x320   :  { %16881 = vst [vmem:[#allocation147_spill] sm:$0xff] %v10413_v28  ;;  %16883 = vst [vmem:[#allocation148_spill] sm:$0xff] %v10416_v25  ;;  %v10454_v48 = vmul.f32 %v10430_v33, %v16902_v61  ;;  %v10458_v49 = vmul.f32 %v10430_v33, %v16904_v42  ;;  %v16906_v9 = vld [vmem:[#allocation79_spill] sm:$0xff]  ;;  %v16908_v17 = vld [vmem:[#allocation82_spill] sm:$0xff] }
 0x321   :  { %16885 = vst [vmem:[#allocation152_spill] sm:$0xff] %v10419_v39  ;;  %16887 = vst [vmem:[#allocation153_spill] sm:$0xff] %v10422_v22  ;;  %v10462_v14 = vmul.f32 %v10430_v33, %v16906_v9  ;;  %v10466_v63 = vmul.f32 %v10430_v33, %v16908_v17  ;;  %v16910_v15 = vld [vmem:[#allocation93_spill] sm:$0xff]  ;;  %v16911_v51 = vld [vmem:[#allocation83_spill] sm:$0xff] }
 0x322   :  { %16889 = vst [vmem:[#allocation156_spill] sm:$0xff] %v10425_v34  ;;  %16891 = vst [vmem:[#allocation157_spill] sm:$0xff] %v10428_v46  ;;  %v10470_v38 = vmul.f32 %v10430_v33, %v16910_v15  ;;  %v10474_v10 = vmul.f32 %v10430_v33, %v16911_v51  ;;  %v16912_v0 = vld [vmem:[#allocation87_spill] sm:$0xff]  ;;  %v16913_v42 = vld [vmem:[#allocation100_spill] sm:$0xff] }
 0x323   :  { %16893 = vst [vmem:[#allocation161_spill] sm:$0xff] %v10434_v57  ;;  %16895 = vst [vmem:[#allocation162_spill] sm:$0xff] %v10438_v3  ;;  %v10478_v61 = vmul.f32 %v10430_v33, %v16912_v0  ;;  %v10482_v9 = vmul.f32 %v10430_v33, %v16913_v42  ;;  %v16914_v30 = vld [vmem:[#allocation88_spill] sm:$0xff]  ;;  %v16915_v52 = vld [vmem:[#allocation94_spill] sm:$0xff]  ;;  %v10502_v42 = vmul.f32 %v10430_v33, %v16918_v19 }
 0x324   :  { %16897 = vst [vmem:[#allocation167_spill] sm:$0xff] %v10442_v50  ;;  %16899 = vst [vmem:[#allocation168_spill] sm:$0xff] %v10446_v26  ;;  %v10486_v17 = vmul.f32 %v10430_v33, %v16914_v30  ;;  %v10490_v15 = vmul.f32 %v10430_v33, %v16915_v52  ;;  %v16916_v50 = vld [vmem:[#allocation110_spill] sm:$0xff]  ;;  %v16917_v3 = vld [vmem:[#allocation95_spill] sm:$0xff]  ;;  %v10506_v30 = vmul.f32 %v10430_v33, %v16919_v18 }
 0x325   :  { %16901 = vst [vmem:[#allocation173_spill] sm:$0xff] %v10450_v35  ;;  %16903 = vst [vmem:[#allocation174_spill] sm:$0xff] %v10454_v48  ;;  %v10494_v51 = vmul.f32 %v10430_v33, %v16916_v50  ;;  %v10498_v0 = vmul.f32 %v10430_v33, %v16917_v3  ;;  %v10510_v52 = vmul.f32 %v10430_v33, %v16920_v53  ;;  %v16921_v46 = vld [vmem:[#allocation106_spill] sm:$0xff]  ;;  %v16922_v34 = vld [vmem:[#allocation119_spill] sm:$0xff] }
 0x326   :  { %16905 = vst [vmem:[#allocation180_spill] sm:$0xff] %v10458_v49  ;;  %16907 = vst [vmem:[#allocation181_spill] sm:$0xff] %v10462_v14  ;;  %v10514_v50 = vmul.f32 %v10430_v33, %v16921_v46  ;;  %v10518_v3 = vmul.f32 %v10430_v33, %v16922_v34  ;;  %v16923_v22 = vld [vmem:[#allocation107_spill] sm:$0xff]  ;;  %v16926_v28 = vld [vmem:[#allocation112_spill] sm:$0xff] }
 0x327   :  { %16909 = vst [vmem:[#allocation185_spill] sm:$0xff] %v10466_v63  ;;  %v10522_v19 = vmul.f32 %v10430_v33, %v16923_v22  ;;  %v16924_v39 = vld [vmem:[#allocation111_spill] sm:$0xff]  ;;  %v10534_v46 = vmul.f32 %v10430_v33, %v16926_v28  ;;  %v16927_v58 = vld [vmem:[#allocation116_spill] sm:$0xff]  ;;  %v16932_v29 = vld [vmem:[#allocation125_spill] sm:$0xff] }
 0x328   :  { %v10526_v18 = vmul.f32 %v10430_v33, %v16924_v39  ;;  %v16925_v25 = vld [vmem:[#allocation123_spill] sm:$0xff]  ;;  %v10538_v34 = vmul.f32 %v10430_v33, %v16927_v58  ;;  %v16929_v7 = vld [vmem:[#allocation120_spill] sm:$0xff]  ;;  %v10558_v58 = vmul.f32 %v10430_v33, %v16932_v29  ;;  %v16935_v20 = vld [vmem:[#allocation129_spill] sm:$0xff] }
 0x329   :  { %v10530_v53 = vmul.f32 %v10430_v33, %v16925_v25  ;;  %v16928_v55 = vld [vmem:[#allocation131_spill] sm:$0xff]  ;;  %v10546_v39 = vmul.f32 %v10430_v33, %v16929_v7  ;;  %v16930_v16 = vld [vmem:[#allocation124_spill] sm:$0xff]  ;;  %v16937_v60 = vld [vmem:[#allocation149_spill] sm:$0xff] }
 0x32a   :  { %v10542_v22 = vmul.f32 %v10430_v33, %v16928_v55  ;;  %v10550_v25 = vmul.f32 %v10430_v33, %v16930_v16  ;;  %v16931_v59 = vld [vmem:[#allocation135_spill] sm:$0xff]  ;;  %v16933_v8 = vld [vmem:[#allocation128_spill] sm:$0xff]  ;;  %v10570_v16 = vmul.f32 %v10430_v33, %v16935_v20  ;;  %v10578_v29 = vmul.f32 %v10430_v33, %v16937_v60  ;;  %v16938_v5 = vld [vmem:[#allocation133_spill] sm:$0xff] }
 0x32b   :  { %v10554_v28 = vmul.f32 %v10430_v33, %v16931_v59  ;;  %v10562_v55 = vmul.f32 %v10430_v33, %v16933_v8  ;;  %v16934_v2 = vld [vmem:[#allocation144_spill] sm:$0xff]  ;;  %v10582_v8 = vmul.f32 %v10430_v33, %v16938_v5  ;;  %v16940_v32 = vld [vmem:[#allocation158_spill] sm:$0xff]  ;;  %v16941_v6 = vld [vmem:[#allocation137_spill] sm:$0xff] }
 0x32c   :  { %v10566_v7 = vmul.f32 %v10430_v33, %v16934_v2  ;;  %v16936_v47 = vld [vmem:[#allocation132_spill] sm:$0xff]  ;;  %v10590_v20 = vmul.f32 %v10430_v33, %v16940_v32  ;;  %v16944_v31 = vld [vmem:[#allocation141_spill] sm:$0xff]  ;;  %v16947_v62 = vld [vmem:[#allocation146_spill] sm:$0xff] }
 0x32d   :  { %v10574_v59 = vmul.f32 %v10430_v33, %v16936_v47  ;;  %v16939_v1 = vld [vmem:[#allocation136_spill] sm:$0xff]  ;;  %v10594_v47 = vmul.f32 %v10430_v33, %v16941_v6  ;;  %v16945_v23 = vld [vmem:[#allocation145_spill] sm:$0xff]  ;;  %v16948_v37 = vld [vmem:[#allocation150_spill] sm:$0xff] }
 0x32e   :  { %v10586_v2 = vmul.f32 %v10430_v33, %v16939_v1  ;;  %v16942_v24 = vld [vmem:[#allocation140_spill] sm:$0xff]  ;;  %v10606_v1 = vmul.f32 %v10430_v33, %v16944_v31  ;;  %v10610_v32 = vmul.f32 %v10430_v33, %v16945_v23  ;;  %v16946_v12 = vld [vmem:[#allocation177_spill] sm:$0xff]  ;;  %v16949_v36 = vld [vmem:[#allocation183_spill] sm:$0xff] }
 0x32f   :  { %v10598_v60 = vmul.f32 %v10430_v33, %v16942_v24  ;;  %v16943_v40 = vld [vmem:[#allocation164_spill] sm:$0xff]  ;;  %v10614_v6 = vmul.f32 %v10430_v33, %v16946_v12  ;;  %v10618_v24 = vmul.f32 %v10430_v33, %v16947_v62  ;;  %v10626_v31 = vmul.f32 %v10430_v33, %v16949_v36  ;;  %v16950_v11 = vld [vmem:[#allocation151_spill] sm:$0xff]  ;;  %v16951_v21 = vld [vmem:[#allocation154_spill] sm:$0xff] }
 0x330   :  { %v10602_v5 = vmul.f32 %v10430_v33, %v16943_v40  ;;  %v10622_v40 = vmul.f32 %v10430_v33, %v16948_v37  ;;  %v10630_v23 = vmul.f32 %v10430_v33, %v16950_v11  ;;  %v10634_v12 = vmul.f32 %v10430_v33, %v16951_v21  ;;  %v16952_v56 = vld [vmem:[#allocation189_spill] sm:$0xff]  ;;  %v16953_v4 = vld [vmem:[#allocation155_spill] sm:$0xff]  ;;  %v16958_v54 = vld [vmem:[#allocation160_spill] sm:$0xff] }
 0x331   :  { %v10638_v62 = vmul.f32 %v10430_v33, %v16952_v56  ;;  %v10642_v37 = vmul.f32 %v10430_v33, %v16953_v4  ;;  %v16954_v13 = vld [vmem:[#allocation159_spill] sm:$0xff]  ;;  %v16956_v45 = vld [vmem:[#allocation193_spill] sm:$0xff]  ;;  %v10654_v21 = vmul.f32 %v10430_v33, %v16958_v54  ;;  %v16962_v44 = vld [vmem:[#allocation194_spill] sm:$0xff] }
 0x332   :  { %v10646_v36 = vmul.f32 %v10430_v33, %v16954_v13  ;;  %v10650_v11 = vmul.f32 %v10430_v33, %v16956_v45  ;;  %v16960_v41 = vld [vmem:[#allocation165_spill] sm:$0xff]  ;;  %v10662_v4 = vmul.f32 %v10430_v33, %v16962_v44  ;;  %v16964_v27 = vld [vmem:[#allocation166_spill] sm:$0xff]  ;;  %v10989_v49 = vld [vmem:[#allocation2 + $0x150] sm:$0xff] }
 0x333   :  { %16959 = vst [vmem:[#allocation191_spill] sm:$0xff] %v10654_v21  ;;  %v10658_v56 = vmul.f32 %v10430_v33, %v16960_v41  ;;  %v10666_v13 = vmul.f32 %v10430_v33, %v16964_v27  ;;  %v16970_v21 = vld [vmem:[#allocation172_spill] sm:$0xff]  ;;  %v10992_v48 = vld [vmem:[#allocation2 + $0x158] sm:$0xff]  ;;  %v10995_v57 = vld [vmem:[#allocation2 + $0x168] sm:$0xff] }
 0x334   :  { %16955 = vst [vmem:[#allocation186_spill] sm:$0xff] %v10646_v36  ;;  %16957 = vst [vmem:[#allocation190_spill] sm:$0xff] %v10650_v11  ;;  %v16966_v36 = vld [vmem:[#allocation171_spill] sm:$0xff]  ;;  %v16968_v11 = vld [vmem:[#allocation198_spill] sm:$0xff]  ;;  %v10678_v41 = vmul.f32 %v10430_v33, %v16970_v21  ;;  %v10698_v21 = vmul.f32 %v10430_v33, %v10094_v43  ;;  %v2552_v43 = vrot.slane %v10498_v0, 2 }
 0x335   :  { %16961 = vst [vmem:[#allocation195_spill] sm:$0xff] %v10658_v56  ;;  %16963 = vst [vmem:[#allocation196_spill] sm:$0xff] %v10662_v4  ;;  %v10670_v45 = vmul.f32 %v10430_v33, %v16966_v36  ;;  %v10674_v54 = vmul.f32 %v10430_v33, %v16968_v11  ;;  %v16972_v56 = vld [vmem:[#allocation178_spill] sm:$0xff]  ;;  %v16974_v4 = vld [vmem:[#allocation200_spill] sm:$0xff] }
 0x336   :  { %16965 = vst [vmem:[#allocation199_spill] sm:$0xff] %v10666_v13  ;;  %16971 = vst [vmem:[#allocation65_spill] sm:$0xff] %v10678_v41  ;;  %v10682_v44 = vmul.f32 %v10430_v33, %v16972_v56  ;;  %v10686_v27 = vmul.f32 %v10430_v33, %v16974_v4  ;;  %v16976_v13 = vld [vmem:[#allocation179_spill] sm:$0xff]  ;;  %v16190_v56 = vrot.slane %v10466_v63, 2  ;;  %v2542_v4 = vrot.slane %v10474_v10, 2 }
 0x337   :  { %16967 = vst [vmem:[#allocation70_spill] sm:$0xff] %v10670_v45  ;;  %16969 = vst [vmem:[#allocation71_spill] sm:$0xff] %v10674_v54  ;;  %v10690_v36 = vmul.f32 %v10430_v33, %v16976_v13  ;;  %v16978_v45 = vld [vmem:[#allocation184_spill] sm:$0xff]  ;;  %v2545_v13 = vrot.slane %v10482_v9, 2  ;;  %v2555_v54 = vrot.slane %v10506_v30, 2  ;;  %v2558_v10 = vrot.slane %v10514_v50, 2 }
 0x338   :  { %16973 = vst [vmem:[#allocation77_spill] sm:$0xff] %v10682_v44  ;;  %16975 = vst [vmem:[#allocation72_spill] sm:$0xff] %v10686_v27  ;;  %v10694_v11 = vmul.f32 %v10430_v33, %v16978_v45  ;;  %v2540_v44 = vrot.slane %v10470_v38, 2  ;;  %v2543_v27 = vrot.slane %v10478_v61, 2  ;;  %v2548_v45 = vrot.slane %v10490_v15, 2 }
 0x339   :  { %16977 = vst [vmem:[#allocation78_spill] sm:$0xff] %v10690_v36  ;;  %v2547_v36 = vrot.slane %v10486_v17, 2  ;;  %v2553_v33 = vrot.slane %v10502_v42, 2  ;;  %v2557_v38 = vrot.slane %v10510_v52, 2  ;;  %v2560_v15 = vrot.slane %v10518_v3, 2 }
 0x33a   :  { %16979 = vst [vmem:[#allocation81_spill] sm:$0xff] %v10694_v11  ;;  %v2550_v11 = vrot.slane %v10494_v51, 2  ;;  %v10724_v30 = vsel %vm2491_vm6, %v16190_v56, %v2540_v44  ;;  %v10727_v52 = vsel %vm2491_vm6, %v2542_v4, %v2543_v27  ;;  %v10730_v50 = vsel %vm2491_vm6, %v2543_v27, %v2545_v13 }
 0x33b   :  { %v10733_v17 = vsel %vm2491_vm6, %v2547_v36, %v2548_v45  ;;  %v10739_v0 = vsel %vm2491_vm6, %v2552_v43, %v2553_v33  ;;  %v10742_v42 = vsel %vm2491_vm6, %v2553_v33, %v2555_v54  ;;  %v10745_v44 = vsel %vm2491_vm6, %v2557_v38, %v2558_v10 }
 0x33c   :  { %v10736_v3 = vsel %vm2491_vm6, %v2548_v45, %v2550_v11  ;;  %v2562_v4 = vrot.slane %v10522_v19, 2  ;;  %v10749_v27 = vsel %vm2491_vm6, %v2558_v10, %v2560_v15  ;;  %v2563_v13 = vrot.slane %v10526_v18, 2 }
 0x33d   :  { %v2565_v36 = vrot.slane %v10530_v53, 2  ;;  %v2567_v45 = vrot.slane %v10534_v46, 2  ;;  %v2568_v11 = vrot.slane %v10538_v34, 2  ;;  %v2570_v43 = vrot.slane %v10542_v22, 2  ;;  %v16989_v56 = vld [vmem:[#allocation65_spill] sm:$0xff] }
 0x33e   :  { %v2577_v54 = vrot.slane %v10546_v39, 2  ;;  %v2578_v33 = vrot.slane %v10550_v25, 2  ;;  %v2580_v38 = vrot.slane %v10554_v28, 2  ;;  %v2582_v19 = vrot.slane %v10558_v58, 2  ;;  %17073 = vst [vmem:[#allocation65_spill] sm:$0xff] %v10995_v57 }
 0x33f   :  { %v2583_v10 = vrot.slane %v10562_v55, 2  ;;  %v2585_v18 = vrot.slane %v10566_v7, 2  ;;  %v2587_v53 = vrot.slane %v10570_v16, 2  ;;  %v2588_v46 = vrot.slane %v10574_v59, 2  ;;  %v16990_v51 = vld [vmem:[#allocation77_spill] sm:$0xff]  ;;  %v16991_v9 = vld [vmem:[#allocation72_spill] sm:$0xff] }
 0x340   :  { %v2590_v34 = vrot.slane %v10578_v29, 2  ;;  %v2592_v22 = vrot.slane %v10582_v8, 2  ;;  %v2593_v39 = vrot.slane %v10586_v2, 2  ;;  %v2595_v25 = vrot.slane %v10590_v20, 2  ;;  %v16992_v61 = vld [vmem:[#allocation78_spill] sm:$0xff] }
 0x341   :  { %v2597_v28 = vrot.slane %v10594_v47, 2  ;;  %v2598_v58 = vrot.slane %v10598_v60, 2  ;;  %v10771_v55 = vsel %vm2491_vm6, %v2562_v4, %v2563_v13  ;;  %v2600_v7 = vrot.slane %v10602_v5, 2  ;;  %v16993_v14 = vld [vmem:[#allocation81_spill] sm:$0xff] }
 0x342   :  { %v2602_v16 = vrot.slane %v10606_v1, 2  ;;  %v2603_v59 = vrot.slane %v10610_v32, 2  ;;  %v2566_v29 = vsel %vm2491_vm6, %v2563_v13, %v2565_v36  ;;  %v2569_v8 = vsel %vm2491_vm6, %v2567_v45, %v2568_v11 }
 0x343   :  { %v2571_v2 = vsel %vm2491_vm6, %v2568_v11, %v2570_v43  ;;  %v2579_v20 = vsel %vm2491_vm6, %v2577_v54, %v2578_v33  ;;  %v2581_v47 = vsel %vm2491_vm6, %v2578_v33, %v2580_v38  ;;  %v2584_v60 = vsel %vm2491_vm6, %v2582_v19, %v2583_v10 }
 0x344   :  { %v2586_v15 = vsel %vm2491_vm6, %v2583_v10, %v2585_v18  ;;  %v2589_v5 = vsel %vm2491_vm6, %v2587_v53, %v2588_v46  ;;  %v2591_v1 = vsel %vm2491_vm6, %v2588_v46, %v2590_v34  ;;  %v2594_v32 = vsel %vm2491_vm6, %v2592_v22, %v2593_v39  ;;  %v16981_v53 = vld [vmem:[#allocation186_spill] sm:$0xff] }
 0x345   :  { %v2596_v4 = vsel %vm2491_vm6, %v2593_v39, %v2595_v25  ;;  %v2599_v13 = vsel %vm2491_vm6, %v2597_v28, %v2598_v58  ;;  %v2601_v36 = vsel %vm2491_vm6, %v2598_v58, %v2600_v7  ;;  %v2604_v45 = vsel %vm2491_vm6, %v2602_v16, %v2603_v59  ;;  %v16982_v34 = vld [vmem:[#allocation190_spill] sm:$0xff]  ;;  %v16983_v39 = vld [vmem:[#allocation191_spill] sm:$0xff]  ;;  %v16985_v28 = vld [vmem:[#allocation196_spill] sm:$0xff] }
 0x346   :  { %v2605_v11 = vrot.slane %v10614_v6, 2  ;;  %v2607_v43 = vrot.slane %v10618_v24, 2  ;;  %v2608_v54 = vrot.slane %v10622_v40, 2  ;;  %v2610_v33 = vrot.slane %v10626_v31, 2  ;;  %v16984_v25 = vld [vmem:[#allocation195_spill] sm:$0xff]  ;;  %v16987_v7 = vld [vmem:[#allocation70_spill] sm:$0xff] }
 0x347   :  { %v2612_v38 = vrot.slane %v10630_v23, 2  ;;  %v2613_v19 = vrot.slane %v10634_v12, 2  ;;  %v2615_v10 = vrot.slane %v10638_v62, 2  ;;  %v2617_v18 = vrot.slane %v10642_v37, 2  ;;  %v16986_v58 = vld [vmem:[#allocation199_spill] sm:$0xff]  ;;  %17071 = vst [vmem:[#allocation70_spill] sm:$0xff] %v10989_v49 }
 0x348   :  { %v2618_v46 = vrot.slane %v16981_v53, 2  ;;  %v2620_v22 = vrot.slane %v16982_v34, 2  ;;  %v2622_v6 = vrot.slane %v16983_v39, 2  ;;  %v2623_v24 = vrot.slane %v16984_v25, 2  ;;  %v16988_v16 = vld [vmem:[#allocation71_spill] sm:$0xff] }
 0x349   :  { %v2625_v40 = vrot.slane %v16985_v28, 2  ;;  %v2627_v31 = vrot.slane %v16986_v58, 2  ;;  %v2628_v23 = vrot.slane %v16987_v7, 2  ;;  %v2630_v12 = vrot.slane %v16988_v16, 2  ;;  %17072 = vst [vmem:[#allocation71_spill] sm:$0xff] %v10992_v48 }
 0x34a   :  { %v2632_v62 = vrot.slane %v16989_v56, 2  ;;  %v2633_v37 = vrot.slane %v16990_v51, 2  ;;  %v2606_v53 = vsel %vm2491_vm6, %v2603_v59, %v2605_v11  ;;  %v2635_v34 = vrot.slane %v16991_v9, 2 }
 0x34b   :  { %v2637_v39 = vrot.slane %v16992_v61, 2  ;;  %v2638_v25 = vrot.slane %v16993_v14, 2  ;;  %v2609_v28 = vsel %vm2491_vm6, %v2607_v43, %v2608_v54  ;;  %v2611_v58 = vsel %vm2491_vm6, %v2608_v54, %v2610_v33  ;;  %v16994_v33 = vld [vmem:[#allocation170_spill] sm:$0xff] }
 0x34c   :  { %v2614_v7 = vsel %vm2491_vm6, %v2612_v38, %v2613_v19  ;;  %v2640_v16 = vrot.slane %v10698_v21, 2  ;;  %v2616_v56 = vsel %vm2491_vm6, %v2613_v19, %v2615_v10  ;;  %v2619_v51 = vsel %vm2491_vm6, %v2617_v18, %v2618_v46  ;;  %v16995_v19 = vld [vmem:[#allocation175_spill] sm:$0xff] }
 0x34d   :  { %v2621_v59 = vsel %vm2491_vm6, %v2618_v46, %v2620_v22  ;;  %v2624_v9 = vsel %vm2491_vm6, %v2622_v6, %v2623_v24  ;;  %v2626_v61 = vsel %vm2491_vm6, %v2623_v24, %v2625_v40  ;;  %v2629_v14 = vsel %vm2491_vm6, %v2627_v31, %v2628_v23  ;;  %v16996_v46 = vld [vmem:[#allocation176_spill] sm:$0xff]  ;;  %v16997_v6 = vld [vmem:[#allocation182_spill] sm:$0xff]  ;;  %v16998_v40 = vld [vmem:[#allocation187_spill] sm:$0xff] }
 0x34e   :  { %v2631_v11 = vsel %vm2491_vm6, %v2628_v23, %v2630_v12  ;;  %v2634_v43 = vsel %vm2491_vm6, %v2632_v62, %v2633_v37  ;;  %v2636_v54 = vsel %vm2491_vm6, %v2633_v37, %v2635_v34  ;;  %v2639_v21 = vsel %vm2491_vm6, %v2637_v39, %v2638_v25  ;;  %v17001_v62 = vld [vmem:[#allocation197_spill] sm:$0xff]  ;;  %v17003_v34 = vld [vmem:[#allocation202_spill] sm:$0xff]  ;;  %v17004_v39 = vld [vmem:[#allocation203_spill] sm:$0xff] }
 0x34f   :  { %v10828_v38 = vadd.f32 %v10724_v30, %v16994_v33  ;;  %v10832_v10 = vadd.f32 %v10727_v52, %v16995_v19  ;;  %v2641_v18 = vsel %vm2491_vm6, %v2638_v25, %v2640_v16  ;;  %v10837_v22 = vadd.f32 %v10730_v50, %v16996_v46  ;;  %v16999_v30 = vld [vmem:[#allocation188_spill] sm:$0xff]  ;;  %v17002_v37 = vld [vmem:[#allocation201_spill] sm:$0xff] }
 0x350   :  { %v10841_v24 = vadd.f32 %v10733_v17, %v16997_v6  ;;  %v10845_v31 = vadd.f32 %v10736_v3, %v16998_v40  ;;  %v10849_v23 = vadd.f32 %v10739_v0, %v16999_v30  ;;  %v17000_v52 = vld [vmem:[#allocation192_spill] sm:$0xff]  ;;  %v10857_v50 = vadd.f32 %v10745_v44, %v17001_v62  ;;  %v17008_v46 = vld [vmem:[#allocation97_spill] sm:$0xff] }
 0x351   :  { %v10853_v12 = vadd.f32 %v10742_v42, %v17000_v52  ;;  %v10861_v17 = vadd.f32 %v10749_v27, %v17002_v37  ;;  %v10865_v3 = vadd.f32 %v10771_v55, %v17003_v34  ;;  %v10868_v25 = vadd.f32 %v2566_v29, %v17004_v39  ;;  %v17005_v0 = vld [vmem:[#allocation204_spill] sm:$0xff]  ;;  %v17006_v42 = vld [vmem:[#allocation205_spill] sm:$0xff]  ;;  %v17010_v27 = vld [vmem:[#allocation103_spill] sm:$0xff] }
 0x352   :  { %v10871_v16 = vadd.f32 %v2569_v8, %v17005_v0  ;;  %v10874_v33 = vadd.f32 %v2571_v2, %v17006_v42  ;;  %v17007_v19 = vld [vmem:[#allocation96_spill] sm:$0xff]  ;;  %v10880_v6 = vadd.f32 %v2581_v47, %v17008_v46  ;;  %v10883_v40 = vadd.f32 %v2584_v60, %v17010_v27  ;;  %v17016_v8 = vld [vmem:[#allocation109_spill] sm:$0xff]  ;;  %v17024_v60 = vld [vmem:[#allocation118_spill] sm:$0xff] }
 0x353   :  { %v10877_v44 = vadd.f32 %v2579_v20, %v17007_v19  ;;  %v17012_v55 = vld [vmem:[#allocation104_spill] sm:$0xff]  ;;  %v10892_v62 = vadd.f32 %v2591_v1, %v17016_v8  ;;  %v17018_v2 = vld [vmem:[#allocation113_spill] sm:$0xff]  ;;  %v17020_v20 = vld [vmem:[#allocation114_spill] sm:$0xff]  ;;  %v10904_v0 = vadd.f32 %v2601_v36, %v17024_v60 }
 0x354   :  { %17009 = vst [vmem:[#allocation79_spill] sm:$0xff] %v10880_v6  ;;  %17011 = vst [vmem:[#allocation82_spill] sm:$0xff] %v10883_v40  ;;  %v10886_v30 = vadd.f32 %v2586_v15, %v17012_v55  ;;  %v17014_v29 = vld [vmem:[#allocation108_spill] sm:$0xff]  ;;  %v10895_v37 = vadd.f32 %v2594_v32, %v17018_v2  ;;  %v10898_v34 = vadd.f32 %v2596_v4, %v17020_v20  ;;  %v17022_v47 = vld [vmem:[#allocation117_spill] sm:$0xff] }
 0x355   :  { %v10889_v52 = vadd.f32 %v2589_v5, %v17014_v29  ;;  %17017 = vst [vmem:[#allocation87_spill] sm:$0xff] %v10892_v62  ;;  %v10901_v39 = vadd.f32 %v2599_v13, %v17022_v47  ;;  %17025 = vst [vmem:[#allocation110_spill] sm:$0xff] %v10904_v0  ;;  %v17026_v15 = vld [vmem:[#allocation121_spill] sm:$0xff]  ;;  %v17028_v5 = vld [vmem:[#allocation122_spill] sm:$0xff] }
 0x356   :  { %17013 = vst [vmem:[#allocation93_spill] sm:$0xff] %v10886_v30  ;;  %17019 = vst [vmem:[#allocation100_spill] sm:$0xff] %v10895_v37  ;;  %v10907_v42 = vadd.f32 %v2604_v45, %v17026_v15  ;;  %v10910_v19 = vadd.f32 %v2606_v53, %v17028_v5  ;;  %v17030_v1 = vld [vmem:[#allocation126_spill] sm:$0xff]  ;;  %v17032_v32 = vld [vmem:[#allocation127_spill] sm:$0xff] }
 0x357   :  { %17015 = vst [vmem:[#allocation83_spill] sm:$0xff] %v10889_v52  ;;  %17021 = vst [vmem:[#allocation88_spill] sm:$0xff] %v10898_v34  ;;  %v10913_v46 = vadd.f32 %v2609_v28, %v17030_v1  ;;  %v10916_v27 = vadd.f32 %v2611_v58, %v17032_v32  ;;  %v17034_v4 = vld [vmem:[#allocation130_spill] sm:$0xff]  ;;  %v17040_v45 = vld [vmem:[#allocation139_spill] sm:$0xff] }
 0x358   :  { %17023 = vst [vmem:[#allocation94_spill] sm:$0xff] %v10901_v39  ;;  %17027 = vst [vmem:[#allocation95_spill] sm:$0xff] %v10907_v42  ;;  %v10919_v55 = vadd.f32 %v2614_v7, %v17034_v4  ;;  %v17036_v13 = vld [vmem:[#allocation134_spill] sm:$0xff]  ;;  %v10928_v2 = vadd.f32 %v2621_v59, %v17040_v45  ;;  %v17044_v28 = vld [vmem:[#allocation143_spill] sm:$0xff] }
 0x359   :  { %17029 = vst [vmem:[#allocation101_spill] sm:$0xff] %v10910_v19  ;;  %17031 = vst [vmem:[#allocation115_spill] sm:$0xff] %v10913_v46  ;;  %v10922_v29 = vadd.f32 %v2616_v56, %v17036_v13  ;;  %v17038_v36 = vld [vmem:[#allocation138_spill] sm:$0xff]  ;;  %v10934_v47 = vadd.f32 %v2626_v61, %v17044_v28  ;;  %v17046_v58 = vld [vmem:[#allocation147_spill] sm:$0xff] }
 0x35a   :  { %17033 = vst [vmem:[#allocation102_spill] sm:$0xff] %v10916_v27  ;;  %17035 = vst [vmem:[#allocation106_spill] sm:$0xff] %v10919_v55  ;;  %v10925_v8 = vadd.f32 %v2619_v51, %v17038_v36  ;;  %v17042_v53 = vld [vmem:[#allocation142_spill] sm:$0xff]  ;;  %v10937_v60 = vadd.f32 %v2629_v14, %v17046_v58  ;;  %v17048_v7 = vld [vmem:[#allocation148_spill] sm:$0xff] }
 0x35b   :  { %17037 = vst [vmem:[#allocation119_spill] sm:$0xff] %v10922_v29  ;;  %17041 = vst [vmem:[#allocation111_spill] sm:$0xff] %v10928_v2  ;;  %v10931_v20 = vadd.f32 %v2624_v9, %v17042_v53  ;;  %v10940_v15 = vadd.f32 %v2631_v11, %v17048_v7  ;;  %v17050_v56 = vld [vmem:[#allocation152_spill] sm:$0xff]  ;;  %v17052_v51 = vld [vmem:[#allocation153_spill] sm:$0xff] }
 0x35c   :  { %17039 = vst [vmem:[#allocation107_spill] sm:$0xff] %v10925_v8  ;;  %17045 = vst [vmem:[#allocation112_spill] sm:$0xff] %v10934_v47  ;;  %v10943_v5 = vadd.f32 %v2634_v43, %v17050_v56  ;;  %v10946_v1 = vadd.f32 %v2636_v54, %v17052_v51  ;;  %v10948_v59 = vld [vmem:[#allocation2 + $0x180] sm:$0xff]  ;;  %v17055_v32 = vld [vmem:[#allocation156_spill] sm:$0xff] }
 0x35d   :  { %17043 = vst [vmem:[#allocation123_spill] sm:$0xff] %v10931_v20  ;;  %17047 = vst [vmem:[#allocation131_spill] sm:$0xff] %v10937_v60  ;;  %v10951_v9 = vadd.f32 %v2639_v21, %v17055_v32  ;;  %v17057_v4 = vld [vmem:[#allocation157_spill] sm:$0xff]  ;;  %v7297_v13 = vld [vmem:[#allocation11 + $0x3] ss:$0 sm:$0xff] }
 0x35e   :  { %17049 = vst [vmem:[#allocation135_spill] sm:$0xff] %v10940_v15  ;;  %17051 = vst [vmem:[#allocation144_spill] sm:$0xff] %v10943_v5  ;;  %v10954_v61 = vadd.f32 %v2641_v18, %v17057_v4  ;;  %v10956_v14 = vld [vmem:[#allocation2 + $0xe0] sm:$0xff]  ;;  %v10961_v36 = vld [vmem:[#allocation2 + $0xf0] sm:$0xff]  ;;  %v2811_v35 = vmul.f32 %v10989_v49, %v7297_v13  ;;  %v2812_v26 = vmul.f32 %v10992_v48, %v7297_v13 }
 0x35f   :  { %17053 = vst [vmem:[#allocation149_spill] sm:$0xff] %v10946_v1  ;;  %17054 = vst [vmem:[#allocation158_spill] sm:$0xff] %v10948_v59  ;;  %v10959_v11 = vmul.f32 %v10956_v14, %v7297_v13  ;;  %v10964_v43 = vmul.f32 %v10961_v36, %v7297_v13  ;;  %v10966_v54 = vld [vmem:[#allocation2 + $0x188] sm:$0xff]  ;;  %v10968_v45 = vld [vmem:[#allocation2 + $0xf8] sm:$0xff]  ;;  %v2813_v41 = vmul.f32 %v10995_v57, %v7297_v13 }
 0x360   :  { %17056 = vst [vmem:[#allocation164_spill] sm:$0xff] %v10951_v9  ;;  %17058 = vst [vmem:[#allocation177_spill] sm:$0xff] %v10954_v61  ;;  %v2804_v21 = vmul.f32 %v10968_v45, %v7297_v13  ;;  %v10971_v53 = vld [vmem:[#allocation2 + $0x108] sm:$0xff]  ;;  %v10974_v28 = vld [vmem:[#allocation2 + $0x110] sm:$0xff] }
 0x361   :  { %17059 = vst [vmem:[#allocation183_spill] sm:$0xff] %v10956_v14  ;;  %17060 = vst [vmem:[#allocation189_spill] sm:$0xff] %v10959_v11  ;;  %v2805_v18 = vmul.f32 %v10971_v53, %v7297_v13  ;;  %v2806_v58 = vmul.f32 %v10974_v28, %v7297_v13  ;;  %v10977_v7 = vld [vmem:[#allocation2 + $0x120] sm:$0xff]  ;;  %v10980_v51 = vld [vmem:[#allocation2 + $0x128] sm:$0xff] }
 0x362   :  { %17061 = vst [vmem:[#allocation193_spill] sm:$0xff] %v10961_v36  ;;  %17062 = vst [vmem:[#allocation194_spill] sm:$0xff] %v10964_v43  ;;  %v2807_v56 = vmul.f32 %v10977_v7, %v7297_v13  ;;  %v2808_v32 = vmul.f32 %v10980_v51, %v7297_v13  ;;  %v10983_v4 = vld [vmem:[#allocation2 + $0x138] sm:$0xff]  ;;  %v10986_v11 = vld [vmem:[#allocation2 + $0x140] sm:$0xff] }
 0x363   :  { %17063 = vst [vmem:[#allocation198_spill] sm:$0xff] %v10966_v54  ;;  %17064 = vst [vmem:[#allocation200_spill] sm:$0xff] %v10968_v45  ;;  %v2809_v43 = vmul.f32 %v10983_v4, %v7297_v13  ;;  %v2810_v63 = vmul.f32 %v10986_v11, %v7297_v13  ;;  %v17076_v45 = vld [vmem:[#allocation124_spill] sm:$0xff]  ;;  %v17077_v14 = vld [vmem:[#allocation125_spill] sm:$0xff] }
 0x364   :  { %17065 = vst [vmem:[#allocation186_spill] sm:$0xff] %v10971_v53  ;;  %17066 = vst [vmem:[#allocation190_spill] sm:$0xff] %v10974_v28  ;;  %v2816_v28 = vmul.f32 %v7297_v13, %v10966_v54  ;;  %v17075_v53 = vld [vmem:[#allocation120_spill] sm:$0xff]  ;;  %v2818_v36 = vmul.f32 %v7297_v13, %v17076_v45  ;;  %v2819_v49 = vmul.f32 %v7297_v13, %v17077_v14  ;;  %v17079_v1 = vld [vmem:[#allocation129_spill] sm:$0xff] }
 0x365   :  { %17067 = vst [vmem:[#allocation191_spill] sm:$0xff] %v10977_v7  ;;  %17068 = vst [vmem:[#allocation195_spill] sm:$0xff] %v10980_v51  ;;  %v17074_v51 = vld [vmem:[#allocation116_spill] sm:$0xff]  ;;  %v2821_v48 = vmul.f32 %v7297_v13, %v17079_v1  ;;  %v17081_v60 = vld [vmem:[#allocation133_spill] sm:$0xff] }
 0x366   :  { %17069 = vst [vmem:[#allocation196_spill] sm:$0xff] %v10983_v4  ;;  %17070 = vst [vmem:[#allocation199_spill] sm:$0xff] %v10986_v11  ;;  %v2814_v7 = vmul.f32 %v7297_v13, %v17074_v51  ;;  %v2815_v4 = vmul.f32 %v7297_v13, %v10948_v59  ;;  %v2817_v11 = vmul.f32 %v7297_v13, %v17075_v53  ;;  %v17078_v61 = vld [vmem:[#allocation128_spill] sm:$0xff]  ;;  %v17083_v20 = vld [vmem:[#allocation137_spill] sm:$0xff] }
 0x367   :  { %v2820_v9 = vmul.f32 %v7297_v13, %v17078_v61  ;;  %v17080_v5 = vld [vmem:[#allocation132_spill] sm:$0xff]  ;;  %v2823_v57 = vmul.f32 %v7297_v13, %v17081_v60  ;;  %v2825_v59 = vmul.f32 %v7297_v13, %v17083_v20  ;;  %v17085_v8 = vld [vmem:[#allocation141_spill] sm:$0xff]  ;;  %v17087_v55 = vld [vmem:[#allocation146_spill] sm:$0xff] }
 0x368   :  { %v2822_v15 = vmul.f32 %v7297_v13, %v17080_v5  ;;  %v17082_v47 = vld [vmem:[#allocation136_spill] sm:$0xff]  ;;  %v2827_v53 = vmul.f32 %v7297_v13, %v17085_v8  ;;  %v17086_v29 = vld [vmem:[#allocation145_spill] sm:$0xff]  ;;  %v2829_v14 = vmul.f32 %v7297_v13, %v17087_v55  ;;  %v17088_v27 = vld [vmem:[#allocation150_spill] sm:$0xff] }
 0x369   :  { %v2824_v51 = vmul.f32 %v7297_v13, %v17082_v47  ;;  %v17084_v2 = vld [vmem:[#allocation140_spill] sm:$0xff]  ;;  %v2828_v45 = vmul.f32 %v7297_v13, %v17086_v29  ;;  %v2830_v61 = vmul.f32 %v7297_v13, %v17088_v27  ;;  %v17089_v46 = vld [vmem:[#allocation151_spill] sm:$0xff]  ;;  %v17090_v19 = vld [vmem:[#allocation154_spill] sm:$0xff] }
 0x36a   :  { %v2826_v54 = vmul.f32 %v7297_v13, %v17084_v2  ;;  %v2831_v1 = vmul.f32 %v7297_v13, %v17089_v46  ;;  %v2832_v5 = vmul.f32 %v7297_v13, %v17090_v19  ;;  %v17091_v42 = vld [vmem:[#allocation155_spill] sm:$0xff]  ;;  %v17093_v39 = vld [vmem:[#allocation160_spill] sm:$0xff]  ;;  %v17094_v34 = vld [vmem:[#allocation165_spill] sm:$0xff] }
 0x36b   :  { %v2833_v60 = vmul.f32 %v7297_v13, %v17091_v42  ;;  %v17092_v0 = vld [vmem:[#allocation159_spill] sm:$0xff]  ;;  %v2835_v20 = vmul.f32 %v7297_v13, %v17093_v39  ;;  %v2836_v2 = vmul.f32 %v7297_v13, %v17094_v34  ;;  %v17095_v37 = vld [vmem:[#allocation166_spill] sm:$0xff]  ;;  %v17097_v52 = vld [vmem:[#allocation172_spill] sm:$0xff]  ;;  %v11028_v42 = vadd.f32 %v2804_v21, %v10828_v38 }
 0x36c   :  { %v2834_v47 = vmul.f32 %v7297_v13, %v17092_v0  ;;  %v2837_v8 = vmul.f32 %v7297_v13, %v17095_v37  ;;  %v17096_v62 = vld [vmem:[#allocation171_spill] sm:$0xff]  ;;  %v2839_v55 = vmul.f32 %v7297_v13, %v17097_v52  ;;  %v17098_v30 = vld [vmem:[#allocation178_spill] sm:$0xff]  ;;  %v17100_v6 = vld [vmem:[#allocation184_spill] sm:$0xff]  ;;  %v11031_v0 = vadd.f32 %v2805_v18, %v10832_v10 }
 0x36d   :  { %v2838_v29 = vmul.f32 %v7297_v13, %v17096_v62  ;;  %v2840_v27 = vmul.f32 %v7297_v13, %v17098_v30  ;;  %v17099_v40 = vld [vmem:[#allocation179_spill] sm:$0xff]  ;;  %v2842_v19 = vmul.f32 %v7297_v13, %v17100_v6  ;;  %17101 = vst [vmem:[#allocation77_spill] sm:$0xff] %v11028_v42  ;;  %v11034_v34 = vadd.f32 %v2806_v58, %v10837_v22 }
 0x36e   :  { %v2841_v46 = vmul.f32 %v7297_v13, %v17099_v40  ;;  %17102 = vst [vmem:[#allocation72_spill] sm:$0xff] %v11031_v0  ;;  %v11037_v37 = vadd.f32 %v2807_v56, %v10841_v24  ;;  %v11040_v52 = vadd.f32 %v2808_v32, %v10845_v31  ;;  %v11043_v30 = vadd.f32 %v2809_v43, %v10849_v23  ;;  %v17127_v39 = vld [vmem:[#allocation87_spill] sm:$0xff] }
 0x36f   :  { %17103 = vst [vmem:[#allocation78_spill] sm:$0xff] %v11034_v34  ;;  %v11046_v6 = vadd.f32 %v2810_v63, %v10853_v12  ;;  %v11049_v38 = vadd.f32 %v2811_v35, %v10857_v50  ;;  %v11052_v10 = vadd.f32 %v2812_v26, %v10861_v17  ;;  %v11055_v22 = vadd.f32 %v2813_v41, %v10865_v3  ;;  %v17114_v63 = vld [vmem:[#allocation46_spill] sm:$0xff]  ;;  %v17119_v41 = vld [vmem:[#allocation79_spill] sm:$0xff] }
 0x370   :  { %17104 = vst [vmem:[#allocation81_spill] sm:$0xff] %v11037_v37  ;;  %17105 = vst [vmem:[#allocation170_spill] sm:$0xff] %v11040_v52  ;;  %v11058_v24 = vadd.f32 %v2814_v7, %v10868_v25  ;;  %v11061_v31 = vadd.f32 %v2815_v4, %v10871_v16  ;;  %v11064_v23 = vadd.f32 %v2816_v28, %v10874_v33  ;;  %v17116_v35 = vld [vmem:[#allocation54_spill] sm:$0xff]  ;;  %v17123_v16 = vld [vmem:[#allocation93_spill] sm:$0xff] }
 0x371   :  { %17106 = vst [vmem:[#allocation175_spill] sm:$0xff] %v11043_v30  ;;  %17107 = vst [vmem:[#allocation176_spill] sm:$0xff] %v11046_v6  ;;  %v11067_v12 = vadd.f32 %v2817_v11, %v17114_v63  ;;  %v11070_v50 = vadd.f32 %v2818_v36, %v17116_v35  ;;  %v11073_v26 = vadd.f32 %v2819_v49, %v10877_v44  ;;  %v17121_v3 = vld [vmem:[#allocation82_spill] sm:$0xff]  ;;  %v17125_v33 = vld [vmem:[#allocation83_spill] sm:$0xff] }
 0x372   :  { %17108 = vst [vmem:[#allocation182_spill] sm:$0xff] %v11049_v38  ;;  %17109 = vst [vmem:[#allocation187_spill] sm:$0xff] %v11052_v10  ;;  %v11076_v17 = vadd.f32 %v2820_v9, %v17119_v41  ;;  %v11079_v25 = vadd.f32 %v2821_v48, %v17121_v3  ;;  %v11082_v40 = vadd.f32 %v2822_v15, %v17123_v16  ;;  %v17129_v11 = vld [vmem:[#allocation100_spill] sm:$0xff]  ;;  %v17133_v9 = vld [vmem:[#allocation94_spill] sm:$0xff] }
 0x373   :  { %17110 = vst [vmem:[#allocation188_spill] sm:$0xff] %v11055_v22  ;;  %17111 = vst [vmem:[#allocation192_spill] sm:$0xff] %v11058_v24  ;;  %v11085_v62 = vadd.f32 %v2823_v57, %v17125_v33  ;;  %v11088_v13 = vadd.f32 %v2824_v51, %v17127_v39  ;;  %v11091_v36 = vadd.f32 %v2825_v59, %v17129_v11  ;;  %v17131_v49 = vld [vmem:[#allocation88_spill] sm:$0xff]  ;;  %v17135_v48 = vld [vmem:[#allocation110_spill] sm:$0xff] }
 0x374   :  { %17112 = vst [vmem:[#allocation197_spill] sm:$0xff] %v11061_v31  ;;  %17113 = vst [vmem:[#allocation201_spill] sm:$0xff] %v11064_v23  ;;  %v11094_v44 = vadd.f32 %v2826_v54, %v17131_v49  ;;  %v11097_v43 = vadd.f32 %v2827_v53, %v17133_v9  ;;  %v11100_v21 = vadd.f32 %v2828_v45, %v17135_v48  ;;  %v17137_v15 = vld [vmem:[#allocation95_spill] sm:$0xff]  ;;  %v17139_v57 = vld [vmem:[#allocation101_spill] sm:$0xff] }
 0x375   :  { %17115 = vst [vmem:[#allocation202_spill] sm:$0xff] %v11067_v12  ;;  %17117 = vst [vmem:[#allocation203_spill] sm:$0xff] %v11070_v50  ;;  %v11103_v18 = vadd.f32 %v2829_v14, %v17137_v15  ;;  %v11106_v28 = vadd.f32 %v2830_v61, %v17139_v57  ;;  %v17141_v58 = vld [vmem:[#allocation115_spill] sm:$0xff]  ;;  %v17143_v59 = vld [vmem:[#allocation102_spill] sm:$0xff] }
 0x376   :  { %17118 = vst [vmem:[#allocation204_spill] sm:$0xff] %v11073_v26  ;;  %17120 = vst [vmem:[#allocation205_spill] sm:$0xff] %v11076_v17  ;;  %v11109_v7 = vadd.f32 %v2831_v1, %v17141_v58  ;;  %v11112_v56 = vadd.f32 %v2832_v5, %v17143_v59  ;;  %v17145_v54 = vld [vmem:[#allocation106_spill] sm:$0xff]  ;;  %v17147_v4 = vld [vmem:[#allocation119_spill] sm:$0xff] }
 0x377   :  { %17122 = vst [vmem:[#allocation96_spill] sm:$0xff] %v11079_v25  ;;  %17124 = vst [vmem:[#allocation97_spill] sm:$0xff] %v11082_v40  ;;  %v11115_v32 = vadd.f32 %v2833_v60, %v17145_v54  ;;  %v11118_v51 = vadd.f32 %v2834_v47, %v17147_v4  ;;  %v17149_v53 = vld [vmem:[#allocation107_spill] sm:$0xff]  ;;  %v17155_v1 = vld [vmem:[#allocation112_spill] sm:$0xff] }
 0x378   :  { %17126 = vst [vmem:[#allocation103_spill] sm:$0xff] %v11085_v62  ;;  %17128 = vst [vmem:[#allocation104_spill] sm:$0xff] %v11088_v13  ;;  %v11121_v45 = vadd.f32 %v2835_v20, %v17149_v53  ;;  %v17151_v14 = vld [vmem:[#allocation111_spill] sm:$0xff]  ;;  %v11130_v41 = vadd.f32 %v2838_v29, %v17155_v1  ;;  %v17161_v47 = vld [vmem:[#allocation144_spill] sm:$0xff] }
 0x379   :  { %17130 = vst [vmem:[#allocation108_spill] sm:$0xff] %v11091_v36  ;;  %17132 = vst [vmem:[#allocation109_spill] sm:$0xff] %v11094_v44  ;;  %v11124_v63 = vadd.f32 %v2836_v2, %v17151_v14  ;;  %v17153_v61 = vld [vmem:[#allocation123_spill] sm:$0xff]  ;;  %v11139_v33 = vadd.f32 %v2841_v46, %v17161_v47  ;;  %v17163_v20 = vld [vmem:[#allocation149_spill] sm:$0xff] }
 0x37a   :  { %17134 = vst [vmem:[#allocation113_spill] sm:$0xff] %v11097_v43  ;;  %17136 = vst [vmem:[#allocation114_spill] sm:$0xff] %v11100_v21  ;;  %v11127_v35 = vadd.f32 %v2837_v8, %v17153_v61  ;;  %v17157_v5 = vld [vmem:[#allocation131_spill] sm:$0xff]  ;;  %v11142_v39 = vadd.f32 %v2842_v19, %v17163_v20  ;;  %v17165_v2 = vld [vmem:[#allocation164_spill] sm:$0xff] }
 0x37b   :  { %17138 = vst [vmem:[#allocation117_spill] sm:$0xff] %v11103_v18  ;;  %17140 = vst [vmem:[#allocation118_spill] sm:$0xff] %v11106_v28  ;;  %v11133_v3 = vadd.f32 %v2839_v55, %v17157_v5  ;;  %v17159_v60 = vld [vmem:[#allocation135_spill] sm:$0xff]  ;;  %v17166_v11 = vld [vmem:[#allocation32_spill] sm:$0xff] }
 0x37c   :  { %17142 = vst [vmem:[#allocation121_spill] sm:$0xff] %v11109_v7  ;;  %17144 = vst [vmem:[#allocation122_spill] sm:$0xff] %v11112_v56  ;;  %v11136_v16 = vadd.f32 %v2840_v27, %v17159_v60  ;;  %v11146_v49 = vadd.f32 %v17166_v11, %v17165_v2  ;;  %v17168_v8 = vld [vmem:[#allocation177_spill] sm:$0xff]  ;;  %v17169_v9 = vld [vmem:[#allocation35_spill] sm:$0xff] }
 0x37d   :  { %17146 = vst [vmem:[#allocation126_spill] sm:$0xff] %v11115_v32  ;;  %17148 = vst [vmem:[#allocation127_spill] sm:$0xff] %v11118_v51  ;;  %v11150_v29 = vadd.f32 %v17169_v9, %v17168_v8  ;;  %v11152_v48 = vld [vmem:[#allocation11 + $0x4] ss:$0 sm:$0xff]  ;;  %v7311_v55 = vld [vmem:[#allocation2 + $0xa0] sm:$0x3] }
 0x37e   :  { %17150 = vst [vmem:[#allocation130_spill] sm:$0xff] %v11121_v45  ;;  %17152 = vst [vmem:[#allocation134_spill] sm:$0xff] %v11124_v63  ;;  %v11155_v27 = vmul.f32 %v7311_v55, %v11152_v48  ;;  %v11157_v15 = vld [vmem:[#allocation2 + $0xb8] sm:$0x3]  ;;  %v11163_v19 = vld [vmem:[#allocation2 + $0xd0] sm:$0x3] }
 0x37f   :  { %17154 = vst [vmem:[#allocation138_spill] sm:$0xff] %v11127_v35  ;;  %17156 = vst [vmem:[#allocation139_spill] sm:$0xff] %v11130_v41  ;;  %v11161_v46 = vmul.f32 %v11157_v15, %v11152_v48  ;;  %v11167_v57 = vmul.f32 %v11163_v19, %v11152_v48  ;;  %v7314_v58 = vld [vmem:[#allocation2 + $0xd8] sm:$0xff]  ;;  %v17177_v54 = vld [vmem:[#allocation183_spill] sm:$0xff] }
 0x380   :  { %17158 = vst [vmem:[#allocation142_spill] sm:$0xff] %v11133_v3  ;;  %17160 = vst [vmem:[#allocation143_spill] sm:$0xff] %v11136_v16  ;;  %v11170_v59 = vmul.f32 %v7314_v58, %v11152_v48  ;;  %v11174_v4 = vmul.f32 %v11152_v48, %v17177_v54  ;;  %v11176_v53 = vld [vmem:[#allocation2 + $0xe8] sm:$0x3]  ;;  %v17181_v61 = vld [vmem:[#allocation193_spill] sm:$0xff] }
 0x381   :  { %17162 = vst [vmem:[#allocation147_spill] sm:$0xff] %v11139_v33  ;;  %17164 = vst [vmem:[#allocation148_spill] sm:$0xff] %v11142_v39  ;;  %v11180_v14 = vmul.f32 %v11176_v53, %v11152_v48  ;;  %v11184_v1 = vmul.f32 %v11152_v48, %v17181_v61  ;;  %v17183_v5 = vld [vmem:[#allocation200_spill] sm:$0xff]  ;;  %v11190_v47 = vld [vmem:[#allocation2 + $0x100] sm:$0x3] }
 0x382   :  { %17167 = vst [vmem:[#allocation152_spill] sm:$0xff] %v11146_v49  ;;  %17170 = vst [vmem:[#allocation153_spill] sm:$0xff] %v11150_v29  ;;  %v11188_v60 = vmul.f32 %v11152_v48, %v17183_v5  ;;  %v11194_v20 = vmul.f32 %v11190_v47, %v11152_v48  ;;  %v17187_v2 = vld [vmem:[#allocation186_spill] sm:$0xff]  ;;  %v11204_v55 = vld [vmem:[#allocation2 + $0x118] sm:$0x3] }
 0x383   :  { %17171 = vst [vmem:[#allocation156_spill] sm:$0xff] %v11155_v27  ;;  %17172 = vst [vmem:[#allocation157_spill] sm:$0xff] %v11157_v15  ;;  %v11198_v11 = vmul.f32 %v11152_v48, %v17187_v2  ;;  %v17189_v8 = vld [vmem:[#allocation190_spill] sm:$0xff]  ;;  %v11208_v58 = vmul.f32 %v11204_v55, %v11152_v48  ;;  %v11210_v54 = vld [vmem:[#allocation2 + $0x190] sm:$0x3] }
 0x384   :  { %17173 = vst [vmem:[#allocation116_spill] sm:$0xff] %v11161_v46  ;;  %17174 = vst [vmem:[#allocation120_spill] sm:$0xff] %v11163_v19  ;;  %v11202_v9 = vmul.f32 %v11152_v48, %v17189_v8  ;;  %v17193_v0 = vld [vmem:[#allocation191_spill] sm:$0xff]  ;;  %v11220_v2 = vld [vmem:[#allocation2 + $0x130] sm:$0x3]  ;;  %v11280_v3 = vmul.f32 %v11152_v48, %v11210_v54 }
 0x385   :  { %17175 = vst [vmem:[#allocation124_spill] sm:$0xff] %v11167_v57  ;;  %17176 = vst [vmem:[#allocation125_spill] sm:$0xff] %v11170_v59  ;;  %v11214_v42 = vmul.f32 %v11152_v48, %v17193_v0  ;;  %v11224_v8 = vmul.f32 %v11220_v2, %v11152_v48  ;;  %v17197_v5 = vld [vmem:[#allocation199_spill] sm:$0xff]  ;;  %v17202_v29 = vld [vmem:[#allocation65_spill] sm:$0xff] }
 0x386   :  { %17178 = vst [vmem:[#allocation128_spill] sm:$0xff] %v11174_v4  ;;  %17179 = vst [vmem:[#allocation129_spill] sm:$0xff] %v11176_v53  ;;  %v17194_v4 = vld [vmem:[#allocation195_spill] sm:$0xff]  ;;  %v11232_v61 = vmul.f32 %v11152_v48, %v17197_v5  ;;  %v17199_v53 = vld [vmem:[#allocation70_spill] sm:$0xff]  ;;  %v11256_v49 = vmul.f32 %v11152_v48, %v17202_v29 }
 0x387   :  { %17180 = vst [vmem:[#allocation132_spill] sm:$0xff] %v11180_v14  ;;  %17182 = vst [vmem:[#allocation133_spill] sm:$0xff] %v11184_v1  ;;  %v11218_v59 = vmul.f32 %v11152_v48, %v17194_v4  ;;  %v11234_v0 = vld [vmem:[#allocation2 + $0x148] sm:$0x3]  ;;  %v11242_v19 = vmul.f32 %v11152_v48, %v17199_v53  ;;  %v11264_v39 = vld [vmem:[#allocation2 + $0x178] sm:$0x3] }
 0x388   :  { %17184 = vst [vmem:[#allocation136_spill] sm:$0xff] %v11188_v60  ;;  %17185 = vst [vmem:[#allocation137_spill] sm:$0xff] %v11190_v47  ;;  %v17196_v47 = vld [vmem:[#allocation196_spill] sm:$0xff]  ;;  %v11238_v4 = vmul.f32 %v11234_v0, %v11152_v48  ;;  %v17205_v33 = vld [vmem:[#allocation158_spill] sm:$0xff] }
 0x389   :  { %17186 = vst [vmem:[#allocation140_spill] sm:$0xff] %v11194_v20  ;;  %17188 = vst [vmem:[#allocation141_spill] sm:$0xff] %v11198_v11  ;;  %v17206_v16 = vld [vmem:[#allocation198_spill] sm:$0xff]  ;;  %v11294_v35 = vld [vmem:[#allocation2 + $0x1d8] sm:$0x3] }
 0x38a   :  { %17190 = vst [vmem:[#allocation145_spill] sm:$0xff] %v11202_v9  ;;  %17191 = vst [vmem:[#allocation146_spill] sm:$0xff] %v11204_v55  ;;  %v11228_v55 = vmul.f32 %v11152_v48, %v17196_v47  ;;  %v11248_v47 = vld [vmem:[#allocation2 + $0x160] sm:$0x3]  ;;  %v11276_v29 = vmul.f32 %v11152_v48, %v17206_v16  ;;  %v11298_v16 = vmul.f32 %v11294_v35, %v11152_v48  ;;  %v17271_v20 = vld [vmem:[#allocation36_spill] sm:$0xff] }
 0x38b   :  { %17192 = vst [vmem:[#allocation150_spill] sm:$0xff] %v11210_v54  ;;  %17195 = vst [vmem:[#allocation151_spill] sm:$0xff] %v11220_v2  ;;  %v17200_v2 = vld [vmem:[#allocation71_spill] sm:$0xff]  ;;  %v11252_v5 = vmul.f32 %v11248_v47, %v11152_v48  ;;  %v11300_v54 = vld [vmem:[#allocation2 + $0x1e0] sm:$0xff] }
 0x38c   :  { %17198 = vst [vmem:[#allocation154_spill] sm:$0xff] %v11234_v0  ;;  %v11246_v15 = vmul.f32 %v11152_v48, %v17200_v2  ;;  %17201 = vst [vmem:[#allocation155_spill] sm:$0xff] %v11248_v47  ;;  %v11258_v0 = vld [vmem:[#allocation2 + $0x170] sm:$0xff]  ;;  %v11268_v2 = vmul.f32 %v11264_v39, %v11152_v48  ;;  %v11272_v47 = vmul.f32 %v11152_v48, %v17205_v33  ;;  %v17269_v11 = vld [vmem:[#allocation34_spill] sm:$0xff] }
 0x38d   :  { %17203 = vst [vmem:[#allocation159_spill] sm:$0xff] %v11258_v0  ;;  %v11262_v53 = vmul.f32 %v11258_v0, %v11152_v48  ;;  %17204 = vst [vmem:[#allocation160_spill] sm:$0xff] %v11264_v39  ;;  %v11282_v0 = vld [vmem:[#allocation2 + $0x1c8] sm:$0xff]  ;;  %v11288_v39 = vld [vmem:[#allocation2 + $0x1d0] sm:$0xff]  ;;  %v11304_v63 = vmul.f32 %v11300_v54, %v11152_v48 }
 0x38e   :  { %17207 = vst [vmem:[#allocation165_spill] sm:$0xff] %v11282_v0  ;;  %v11286_v41 = vmul.f32 %v11282_v0, %v11152_v48  ;;  %17208 = vst [vmem:[#allocation166_spill] sm:$0xff] %v11288_v39  ;;  %v11292_v33 = vmul.f32 %v11288_v39, %v11152_v48  ;;  %v11306_v0 = vld [vmem:[#allocation2 + $0x1e8] sm:$0xff]  ;;  %v11312_v39 = vld [vmem:[#allocation2 + $0x1f0] sm:$0x3] }
 0x38f   :  { %17209 = vst [vmem:[#allocation171_spill] sm:$0xff] %v11294_v35  ;;  %17210 = vst [vmem:[#allocation172_spill] sm:$0xff] %v11300_v54  ;;  %v11310_v45 = vmul.f32 %v11306_v0, %v11152_v48  ;;  %v11316_v51 = vmul.f32 %v11312_v39, %v11152_v48  ;;  %v11318_v35 = vld [vmem:[#allocation2 + $0x1f8] sm:$0xff]  ;;  %v11324_v54 = vld [vmem:[#allocation2 + $0x200] sm:$0xff] }
 0x390   :  { %17211 = vst [vmem:[#allocation178_spill] sm:$0xff] %v11306_v0  ;;  %17212 = vst [vmem:[#allocation179_spill] sm:$0xff] %v11312_v39  ;;  %v11322_v32 = vmul.f32 %v11318_v35, %v11152_v48  ;;  %v11328_v56 = vmul.f32 %v11324_v54, %v11152_v48  ;;  %v11330_v0 = vld [vmem:[#allocation2 + $0x208] sm:$0x3]  ;;  %v11336_v39 = vld [vmem:[#allocation2 + $0x210] sm:$0xff] }
 0x391   :  { %17213 = vst [vmem:[#allocation184_spill] sm:$0xff] %v11318_v35  ;;  %17214 = vst [vmem:[#allocation46_spill] sm:$0xff] %v11324_v54  ;;  %v11334_v7 = vmul.f32 %v11330_v0, %v11152_v48  ;;  %v11340_v28 = vmul.f32 %v11336_v39, %v11152_v48  ;;  %v11342_v35 = vld [vmem:[#allocation2 + $0x218] sm:$0xff]  ;;  %v11348_v54 = vld [vmem:[#allocation2 + $0x220] sm:$0x3] }
 0x392   :  { %17215 = vst [vmem:[#allocation54_spill] sm:$0xff] %v11330_v0  ;;  %17216 = vst [vmem:[#allocation79_spill] sm:$0xff] %v11336_v39  ;;  %v11346_v18 = vmul.f32 %v11342_v35, %v11152_v48  ;;  %v11352_v21 = vmul.f32 %v11348_v54, %v11152_v48  ;;  %v11354_v0 = vld [vmem:[#allocation2 + $0x228] sm:$0xff]  ;;  %v11360_v39 = vld [vmem:[#allocation2 + $0x230] sm:$0xff] }
 0x393   :  { %17217 = vst [vmem:[#allocation82_spill] sm:$0xff] %v11342_v35  ;;  %17218 = vst [vmem:[#allocation93_spill] sm:$0xff] %v11348_v54  ;;  %v11358_v43 = vmul.f32 %v11354_v0, %v11152_v48  ;;  %v11364_v44 = vmul.f32 %v11360_v39, %v11152_v48  ;;  %v11366_v35 = vld [vmem:[#allocation2 + $0x238] sm:$0x3]  ;;  %v11372_v54 = vld [vmem:[#allocation2 + $0x240] sm:$0xff] }
 0x394   :  { %17219 = vst [vmem:[#allocation83_spill] sm:$0xff] %v11354_v0  ;;  %17220 = vst [vmem:[#allocation87_spill] sm:$0xff] %v11360_v39  ;;  %v11370_v36 = vmul.f32 %v11366_v35, %v11152_v48  ;;  %v11376_v13 = vmul.f32 %v11372_v54, %v11152_v48  ;;  %v11378_v0 = vld [vmem:[#allocation2 + $0x248] sm:$0xff]  ;;  %v11384_v39 = vld [vmem:[#allocation2 + $0x250] sm:$0x3] }
 0x395   :  { %17221 = vst [vmem:[#allocation100_spill] sm:$0xff] %v11366_v35  ;;  %17222 = vst [vmem:[#allocation88_spill] sm:$0xff] %v11372_v54  ;;  %v11382_v62 = vmul.f32 %v11378_v0, %v11152_v48  ;;  %v11388_v40 = vmul.f32 %v11384_v39, %v11152_v48  ;;  %v11390_v35 = vld [vmem:[#allocation2 + $0x258] sm:$0xff]  ;;  %v11396_v54 = vld [vmem:[#allocation2 + $0x260] sm:$0xff] }
 0x396   :  { %17223 = vst [vmem:[#allocation94_spill] sm:$0xff] %v11378_v0  ;;  %17224 = vst [vmem:[#allocation110_spill] sm:$0xff] %v11384_v39  ;;  %v11394_v25 = vmul.f32 %v11390_v35, %v11152_v48  ;;  %v11400_v17 = vmul.f32 %v11396_v54, %v11152_v48  ;;  %v11402_v0 = vld [vmem:[#allocation2 + $0x268] sm:$0x3]  ;;  %v11408_v39 = vld [vmem:[#allocation2 + $0x270] sm:$0xff] }
 0x397   :  { %17225 = vst [vmem:[#allocation95_spill] sm:$0xff] %v11390_v35  ;;  %17226 = vst [vmem:[#allocation101_spill] sm:$0xff] %v11396_v54  ;;  %v11406_v26 = vmul.f32 %v11402_v0, %v11152_v48  ;;  %v11412_v50 = vmul.f32 %v11408_v39, %v11152_v48  ;;  %v11414_v35 = vld [vmem:[#allocation2 + $0x278] sm:$0xff]  ;;  %v11420_v54 = vld [vmem:[#allocation2 + $0x280] sm:$0x3] }
 0x398   :  { %17227 = vst [vmem:[#allocation115_spill] sm:$0xff] %v11402_v0  ;;  %17228 = vst [vmem:[#allocation102_spill] sm:$0xff] %v11408_v39  ;;  %v11418_v12 = vmul.f32 %v11414_v35, %v11152_v48  ;;  %v11424_v23 = vmul.f32 %v11420_v54, %v11152_v48  ;;  %v11426_v0 = vld [vmem:[#allocation2 + $0x288] sm:$0xff]  ;;  %v11432_v39 = vld [vmem:[#allocation2 + $0x290] sm:$0xff] }
 0x399   :  { %17229 = vst [vmem:[#allocation106_spill] sm:$0xff] %v11414_v35  ;;  %17230 = vst [vmem:[#allocation119_spill] sm:$0xff] %v11420_v54  ;;  %v11430_v31 = vmul.f32 %v11426_v0, %v11152_v48  ;;  %v11436_v24 = vmul.f32 %v11432_v39, %v11152_v48  ;;  %v11438_v35 = vld [vmem:[#allocation2 + $0x298] sm:$0x3]  ;;  %v11444_v54 = vld [vmem:[#allocation2 + $0x2a0] sm:$0xff] }
 0x39a   :  { %17231 = vst [vmem:[#allocation107_spill] sm:$0xff] %v11426_v0  ;;  %17232 = vst [vmem:[#allocation111_spill] sm:$0xff] %v11432_v39  ;;  %v11442_v22 = vmul.f32 %v11438_v35, %v11152_v48  ;;  %v11448_v10 = vmul.f32 %v11444_v54, %v11152_v48  ;;  %v11450_v0 = vld [vmem:[#allocation2 + $0x2a8] sm:$0xff]  ;;  %v11456_v39 = vld [vmem:[#allocation2 + $0x2b0] sm:$0x3] }
 0x39b   :  { %17233 = vst [vmem:[#allocation123_spill] sm:$0xff] %v11438_v35  ;;  %17234 = vst [vmem:[#allocation112_spill] sm:$0xff] %v11444_v54  ;;  %v11454_v38 = vmul.f32 %v11450_v0, %v11152_v48  ;;  %v11460_v6 = vmul.f32 %v11456_v39, %v11152_v48  ;;  %v11462_v35 = vld [vmem:[#allocation2 + $0x2b8] sm:$0xff]  ;;  %v11468_v54 = vld [vmem:[#allocation2 + $0x2c0] sm:$0xff] }
 0x39c   :  { %17235 = vst [vmem:[#allocation131_spill] sm:$0xff] %v11448_v10  ;;  %17236 = vst [vmem:[#allocation135_spill] sm:$0xff] %v11450_v0  ;;  %v11466_v30 = vmul.f32 %v11462_v35, %v11152_v48  ;;  %v11472_v52 = vmul.f32 %v11468_v54, %v11152_v48  ;;  %v11474_v0 = vld [vmem:[#allocation2 + $0x2c8] sm:$0x3]  ;;  %v3168_v10 = vrot.slane %v11224_v8, 1  ;;  %v17371_v60 = vld [vmem:[#allocation196_spill] sm:$0xff] }
 0x39d   :  { %17237 = vst [vmem:[#allocation144_spill] sm:$0xff] %v11454_v38  ;;  %17238 = vst [vmem:[#allocation149_spill] sm:$0xff] %v11456_v39  ;;  %v11478_v37 = vmul.f32 %v11474_v0, %v11152_v48  ;;  %v11480_v39 = vld [vmem:[#allocation2 + $0x2d0] sm:$0xff]  ;;  %v3163_v38 = vrot.slane %v11208_v58, 1  ;;  %v3178_v58 = vrot.slane %v11252_v5, 1  ;;  %v17370_v1 = vld [vmem:[#allocation151_spill] sm:$0xff] }
 0x39e   :  { %17239 = vst [vmem:[#allocation164_spill] sm:$0xff] %v11460_v6  ;;  %17240 = vst [vmem:[#allocation32_spill] sm:$0xff] %v11462_v35  ;;  %v11484_v34 = vmul.f32 %v11480_v39, %v11152_v48  ;;  %v11486_v35 = vld [vmem:[#allocation2 + $0x2d8] sm:$0xff]  ;;  %v3175_v6 = vrot.slane %v11242_v19, 1  ;;  %v17372_v14 = vld [vmem:[#allocation199_spill] sm:$0xff] }
 0x39f   :  { %17241 = vst [vmem:[#allocation177_spill] sm:$0xff] %v11466_v30  ;;  %17242 = vst [vmem:[#allocation35_spill] sm:$0xff] %v11468_v54  ;;  %v11490_v30 = vmul.f32 %v11486_v35, %v11152_v48  ;;  %v11492_v54 = vld [vmem:[#allocation2 + $0x2e0] sm:$0x3] }
 0x3a0   :  { %17243 = vst [vmem:[#allocation183_spill] sm:$0xff] %v11472_v52  ;;  %17244 = vst [vmem:[#allocation206_spill] sm:$0xff] %v11474_v0  ;;  %v11496_v52 = vmul.f32 %v11492_v54, %v11152_v48  ;;  %v11498_v0 = vld [vmem:[#allocation2 + $0x2e8] sm:$0xff]  ;;  %v17373_v46 = vld [vmem:[#allocation154_spill] sm:$0xff] }
 0x3a1   :  { %17245 = vst [vmem:[#allocation207_spill] sm:$0xff] %v11478_v37  ;;  %17246 = vst [vmem:[#allocation208_spill] sm:$0xff] %v11480_v39  ;;  %v11502_v37 = vmul.f32 %v11498_v0, %v11152_v48  ;;  %v11504_v39 = vld [vmem:[#allocation2 + $0x2f0] sm:$0xff] }
 0x3a2   :  { %17247 = vst [vmem:[#allocation209_spill] sm:$0xff] %v11484_v34  ;;  %17248 = vst [vmem:[#allocation210_spill] sm:$0xff] %v11486_v35  ;;  %v11508_v34 = vmul.f32 %v11504_v39, %v11152_v48  ;;  %v11510_v35 = vld [vmem:[#allocation2 + $0x2f8] sm:$0x3] }
 0x3a3   :  { %17249 = vst [vmem:[#allocation211_spill] sm:$0xff] %v11490_v30  ;;  %17250 = vst [vmem:[#allocation212_spill] sm:$0xff] %v11492_v54  ;;  %v11514_v30 = vmul.f32 %v11510_v35, %v11152_v48  ;;  %v3170_v48 = vrot.slane %v11228_v55, 1  ;;  %v3171_v54 = vrot.slane %v11232_v61, 1  ;;  %v3183_v55 = vrot.slane %v11268_v2, 1 }
 0x3a4   :  { %17251 = vst [vmem:[#allocation213_spill] sm:$0xff] %v11496_v52  ;;  %17252 = vst [vmem:[#allocation214_spill] sm:$0xff] %v11498_v0  ;;  %v3173_v52 = vrot.slane %v11238_v4, 1  ;;  %v3176_v0 = vrot.slane %v11246_v15, 1  ;;  %v3185_v61 = vrot.slane %v11272_v47, 1  ;;  %v3186_v4 = vrot.slane %v11276_v29, 1 }
 0x3a5   :  { %17253 = vst [vmem:[#allocation215_spill] sm:$0xff] %v11502_v37  ;;  %17254 = vst [vmem:[#allocation216_spill] sm:$0xff] %v11504_v39  ;;  %v3165_v39 = vrot.slane %v11214_v42, 1  ;;  %v3180_v42 = vrot.slane %v11256_v49, 1  ;;  %v17257_v37 = vrot.slane %v11202_v9, 1  ;;  %v11552_v2 = vsel %vm2005_vm5, %v3170_v48, %v3171_v54  ;;  %v17270_v9 = vld [vmem:[#allocation37_spill] sm:$0xff] }
 0x3a6   :  { %17255 = vst [vmem:[#allocation217_spill] sm:$0xff] %v11508_v34  ;;  %17256 = vst [vmem:[#allocation218_spill] sm:$0xff] %v11510_v35  ;;  %v3166_v34 = vrot.slane %v11218_v59, 1  ;;  %v3181_v59 = vrot.slane %v11262_v53, 1  ;;  %v11555_v29 = vsel %vm2005_vm5, %v3171_v54, %v3173_v52  ;;  %v11558_v47 = vsel %vm2005_vm5, %v3175_v6, %v3176_v0 }
 0x3a7   :  { %v11543_v5 = vsel %vm2005_vm5, %v17257_v37, %v3163_v38  ;;  %v11561_v15 = vsel %vm2005_vm5, %v3176_v0, %v3178_v58  ;;  %v3188_v38 = vrot.slane %v11280_v3, 1  ;;  %v3191_v52 = vrot.slane %v11292_v33, 1 }
 0x3a8   :  { %v11546_v49 = vsel %vm2005_vm5, %v3165_v39, %v3166_v34  ;;  %v11549_v53 = vsel %vm2005_vm5, %v3166_v34, %v3168_v10  ;;  %v11564_v37 = vsel %vm2005_vm5, %v3180_v42, %v3181_v59  ;;  %v3190_v34 = vrot.slane %v11286_v41, 1 }
 0x3a9   :  { %v11569_v10 = vsel %vm2005_vm5, %v3181_v59, %v3183_v55  ;;  %v11572_v39 = vsel %vm2005_vm5, %v3185_v61, %v3186_v4  ;;  %v3193_v6 = vrot.slane %v11298_v16, 1  ;;  %v3195_v0 = vrot.slane %v11304_v63, 1 }
 0x3aa   :  { %v3196_v54 = vrot.slane %v11310_v45, 1  ;;  %v3198_v48 = vrot.slane %v11316_v51, 1  ;;  %v3200_v3 = vrot.slane %v11322_v32, 1  ;;  %v3201_v41 = vrot.slane %v11328_v56, 1 }
 0x3ab   :  { %v3203_v58 = vrot.slane %v11334_v7, 1  ;;  %v3205_v42 = vrot.slane %v11340_v28, 1  ;;  %v3206_v59 = vrot.slane %v11346_v18, 1  ;;  %v3208_v33 = vrot.slane %v11352_v21, 1 }
 0x3ac   :  { %v3210_v16 = vrot.slane %v11358_v43, 1  ;;  %v3211_v63 = vrot.slane %v11364_v44, 1  ;;  %v3213_v45 = vrot.slane %v11370_v36, 1  ;;  %v11589_v51 = vsel %vm2005_vm5, %v3186_v4, %v3188_v38  ;;  %v17267_v19 = vld [vmem:[#allocation215_spill] sm:$0xff] }
 0x3ad   :  { %v3215_v32 = vrot.slane %v11376_v13, 1  ;;  %v3216_v56 = vrot.slane %v11382_v62, 1  ;;  %v3218_v7 = vrot.slane %v11388_v40, 1  ;;  %v11595_v28 = vsel %vm2005_vm5, %v3190_v34, %v3191_v52  ;;  %v17268_v8 = vld [vmem:[#allocation217_spill] sm:$0xff] }
 0x3ae   :  { %v11598_v21 = vsel %vm2005_vm5, %v3191_v52, %v3193_v6  ;;  %v3220_v43 = vrot.slane %v11394_v25, 1  ;;  %v3221_v44 = vrot.slane %v11400_v17, 1  ;;  %v3197_v36 = vsel %vm2005_vm5, %v3195_v0, %v3196_v54 }
 0x3af   :  { %v3199_v18 = vsel %vm2005_vm5, %v3196_v54, %v3198_v48  ;;  %v3202_v13 = vsel %vm2005_vm5, %v3200_v3, %v3201_v41  ;;  %v3204_v62 = vsel %vm2005_vm5, %v3201_v41, %v3203_v58  ;;  %v3207_v40 = vsel %vm2005_vm5, %v3205_v42, %v3206_v59  ;;  %v17258_v41 = vld [vmem:[#allocation131_spill] sm:$0xff]  ;;  %v17259_v42 = vld [vmem:[#allocation144_spill] sm:$0xff] }
 0x3b0   :  { %v3209_v55 = vsel %vm2005_vm5, %v3206_v59, %v3208_v33  ;;  %v3212_v61 = vsel %vm2005_vm5, %v3210_v16, %v3211_v63  ;;  %v3214_v4 = vsel %vm2005_vm5, %v3211_v63, %v3213_v45  ;;  %v3217_v25 = vsel %vm2005_vm5, %v3215_v32, %v3216_v56  ;;  %v17260_v33 = vld [vmem:[#allocation164_spill] sm:$0xff]  ;;  %v17261_v16 = vld [vmem:[#allocation177_spill] sm:$0xff]  ;;  %v17262_v63 = vld [vmem:[#allocation183_spill] sm:$0xff] }
 0x3b1   :  { %v3219_v17 = vsel %vm2005_vm5, %v3216_v56, %v3218_v7  ;;  %v3223_v38 = vrot.slane %v11406_v26, 1  ;;  %v3225_v34 = vrot.slane %v11412_v50, 1  ;;  %v3222_v52 = vsel %vm2005_vm5, %v3220_v43, %v3221_v44  ;;  %v17263_v32 = vld [vmem:[#allocation207_spill] sm:$0xff]  ;;  %v17264_v56 = vld [vmem:[#allocation209_spill] sm:$0xff] }
 0x3b2   :  { %v3226_v6 = vrot.slane %v11418_v12, 1  ;;  %v3228_v0 = vrot.slane %v11424_v23, 1  ;;  %v3230_v54 = vrot.slane %v11430_v31, 1  ;;  %v3231_v48 = vrot.slane %v11436_v24, 1  ;;  %v17265_v7 = vld [vmem:[#allocation211_spill] sm:$0xff]  ;;  %v17266_v43 = vld [vmem:[#allocation213_spill] sm:$0xff] }
 0x3b3   :  { %v3233_v3 = vrot.slane %v11442_v22, 1  ;;  %v3235_v58 = vrot.slane %v17258_v41, 1  ;;  %v3236_v59 = vrot.slane %v17259_v42, 1  ;;  %v3238_v26 = vrot.slane %v17260_v33, 1 }
 0x3b4   :  { %v3240_v50 = vrot.slane %v17261_v16, 1  ;;  %v3241_v45 = vrot.slane %v17262_v63, 1  ;;  %v3243_v12 = vrot.slane %v17263_v32, 1  ;;  %v3245_v23 = vrot.slane %v17264_v56, 1 }
 0x3b5   :  { %v3246_v31 = vrot.slane %v17265_v7, 1  ;;  %v3248_v24 = vrot.slane %v17266_v43, 1  ;;  %v3250_v22 = vrot.slane %v17267_v19, 1  ;;  %v3251_v41 = vrot.slane %v17268_v8, 1 }
 0x3b6   :  { %v3253_v42 = vrot.slane %v11514_v30, 1  ;;  %v3255_v33 = vrot.slane %v17269_v11, 1  ;;  %v3256_v16 = vrot.slane %v17270_v9, 1  ;;  %v3224_v63 = vsel %vm2005_vm5, %v3221_v44, %v3223_v38 }
 0x3b7   :  { %v3227_v32 = vsel %vm2005_vm5, %v3225_v34, %v3226_v6  ;;  %v3229_v56 = vsel %vm2005_vm5, %v3226_v6, %v3228_v0  ;;  %v3258_v7 = vrot.slane %v17271_v20, 1  ;;  %v3232_v43 = vsel %vm2005_vm5, %v3230_v54, %v3231_v48  ;;  %v17272_v0 = vld [vmem:[#allocation78_spill] sm:$0xff] }
 0x3b8   :  { %v3234_v19 = vsel %vm2005_vm5, %v3231_v48, %v3233_v3  ;;  %v3237_v8 = vsel %vm2005_vm5, %v3235_v58, %v3236_v59  ;;  %v3239_v30 = vsel %vm2005_vm5, %v3236_v59, %v3238_v26  ;;  %v3242_v11 = vsel %vm2005_vm5, %v3240_v50, %v3241_v45  ;;  %v17274_v3 = vld [vmem:[#allocation81_spill] sm:$0xff]  ;;  %v17276_v59 = vld [vmem:[#allocation170_spill] sm:$0xff]  ;;  %v17278_v50 = vld [vmem:[#allocation175_spill] sm:$0xff] }
 0x3b9   :  { %v3244_v9 = vsel %vm2005_vm5, %v3241_v45, %v3243_v12  ;;  %v3247_v44 = vsel %vm2005_vm5, %v3245_v23, %v3246_v31  ;;  %v3249_v38 = vsel %vm2005_vm5, %v3246_v31, %v3248_v24  ;;  %v3252_v34 = vsel %vm2005_vm5, %v3250_v22, %v3251_v41  ;;  %v17280_v12 = vld [vmem:[#allocation176_spill] sm:$0xff]  ;;  %v17284_v24 = vld [vmem:[#allocation187_spill] sm:$0xff] }
 0x3ba   :  { %v3254_v20 = vsel %vm2005_vm5, %v3251_v41, %v3253_v42  ;;  %v3257_v6 = vsel %vm2005_vm5, %v3255_v33, %v3256_v16  ;;  %v11651_v54 = vadd.f32 %v11543_v5, %v17272_v0  ;;  %v3259_v48 = vsel %vm2005_vm5, %v3256_v16, %v3258_v7  ;;  %v17282_v5 = vld [vmem:[#allocation182_spill] sm:$0xff]  ;;  %v17286_v22 = vld [vmem:[#allocation188_spill] sm:$0xff]  ;;  %v17290_v42 = vld [vmem:[#allocation197_spill] sm:$0xff] }
 0x3bb   :  { %v11656_v58 = vadd.f32 %v11546_v49, %v17274_v3  ;;  %v11660_v26 = vadd.f32 %v11549_v53, %v17276_v59  ;;  %v11664_v45 = vadd.f32 %v11552_v2, %v17278_v50  ;;  %v11668_v23 = vadd.f32 %v11555_v29, %v17280_v12  ;;  %v17288_v41 = vld [vmem:[#allocation192_spill] sm:$0xff]  ;;  %v17292_v33 = vld [vmem:[#allocation201_spill] sm:$0xff]  ;;  %v17294_v16 = vld [vmem:[#allocation202_spill] sm:$0xff] }
 0x3bc   :  { %17273 = vst [vmem:[#allocation131_spill] sm:$0xff] %v11651_v54  ;;  %v11672_v31 = vadd.f32 %v11558_v47, %v17282_v5  ;;  %v11676_v49 = vadd.f32 %v11561_v15, %v17284_v24  ;;  %v11680_v53 = vadd.f32 %v11564_v37, %v17286_v22  ;;  %v11684_v2 = vadd.f32 %v11569_v10, %v17288_v41  ;;  %v17296_v7 = vld [vmem:[#allocation203_spill] sm:$0xff]  ;;  %v17298_v0 = vld [vmem:[#allocation204_spill] sm:$0xff]  ;;  %v17300_v10 = vld [vmem:[#allocation205_spill] sm:$0xff] }
 0x3bd   :  { %17275 = vst [vmem:[#allocation144_spill] sm:$0xff] %v11656_v58  ;;  %17277 = vst [vmem:[#allocation164_spill] sm:$0xff] %v11660_v26  ;;  %v11688_v29 = vadd.f32 %v11572_v39, %v17290_v42  ;;  %v11692_v47 = vadd.f32 %v11589_v51, %v17292_v33  ;;  %v11696_v15 = vadd.f32 %v11595_v28, %v17294_v16  ;;  %v17302_v39 = vld [vmem:[#allocation96_spill] sm:$0xff]  ;;  %v17304_v12 = vld [vmem:[#allocation97_spill] sm:$0xff] }
 0x3be   :  { %17279 = vst [vmem:[#allocation177_spill] sm:$0xff] %v11664_v45  ;;  %17281 = vst [vmem:[#allocation183_spill] sm:$0xff] %v11668_v23  ;;  %v11700_v37 = vadd.f32 %v11598_v21, %v17296_v7  ;;  %v11703_v3 = vadd.f32 %v3197_v36, %v17298_v0  ;;  %v11706_v59 = vadd.f32 %v3199_v18, %v17300_v10  ;;  %v17306_v5 = vld [vmem:[#allocation103_spill] sm:$0xff]  ;;  %v17308_v28 = vld [vmem:[#allocation104_spill] sm:$0xff] }
 0x3bf   :  { %17283 = vst [vmem:[#allocation207_spill] sm:$0xff] %v11672_v31  ;;  %17285 = vst [vmem:[#allocation209_spill] sm:$0xff] %v11676_v49  ;;  %v11709_v50 = vadd.f32 %v3202_v13, %v17302_v39  ;;  %v11712_v51 = vadd.f32 %v3204_v62, %v17304_v12  ;;  %v11715_v24 = vadd.f32 %v3207_v40, %v17306_v5  ;;  %v17310_v21 = vld [vmem:[#allocation108_spill] sm:$0xff]  ;;  %v17312_v36 = vld [vmem:[#allocation109_spill] sm:$0xff] }
 0x3c0   :  { %17287 = vst [vmem:[#allocation211_spill] sm:$0xff] %v11680_v53  ;;  %17289 = vst [vmem:[#allocation213_spill] sm:$0xff] %v11684_v2  ;;  %v11718_v22 = vadd.f32 %v3209_v55, %v17308_v28  ;;  %v11721_v41 = vadd.f32 %v3212_v61, %v17310_v21  ;;  %v11724_v42 = vadd.f32 %v3214_v4, %v17312_v36  ;;  %v17314_v18 = vld [vmem:[#allocation113_spill] sm:$0xff]  ;;  %v17316_v13 = vld [vmem:[#allocation114_spill] sm:$0xff] }
 0x3c1   :  { %17291 = vst [vmem:[#allocation215_spill] sm:$0xff] %v11688_v29  ;;  %17293 = vst [vmem:[#allocation217_spill] sm:$0xff] %v11692_v47  ;;  %v11727_v33 = vadd.f32 %v3217_v25, %v17314_v18  ;;  %v11730_v16 = vadd.f32 %v3219_v17, %v17316_v13  ;;  %v17318_v62 = vld [vmem:[#allocation117_spill] sm:$0xff]  ;;  %v17320_v40 = vld [vmem:[#allocation118_spill] sm:$0xff] }
 0x3c2   :  { %17295 = vst [vmem:[#allocation34_spill] sm:$0xff] %v11696_v15  ;;  %17297 = vst [vmem:[#allocation37_spill] sm:$0xff] %v11700_v37  ;;  %v11733_v7 = vadd.f32 %v3222_v52, %v17318_v62  ;;  %v11736_v0 = vadd.f32 %v3224_v63, %v17320_v40  ;;  %v17322_v55 = vld [vmem:[#allocation121_spill] sm:$0xff]  ;;  %v17324_v61 = vld [vmem:[#allocation122_spill] sm:$0xff] }
 0x3c3   :  { %17299 = vst [vmem:[#allocation36_spill] sm:$0xff] %v11703_v3  ;;  %17301 = vst [vmem:[#allocation78_spill] sm:$0xff] %v11706_v59  ;;  %v11739_v10 = vadd.f32 %v3227_v32, %v17322_v55  ;;  %v11742_v39 = vadd.f32 %v3229_v56, %v17324_v61  ;;  %v17326_v4 = vld [vmem:[#allocation126_spill] sm:$0xff]  ;;  %v17328_v25 = vld [vmem:[#allocation127_spill] sm:$0xff] }
 0x3c4   :  { %17303 = vst [vmem:[#allocation81_spill] sm:$0xff] %v11709_v50  ;;  %17305 = vst [vmem:[#allocation170_spill] sm:$0xff] %v11712_v51  ;;  %v11745_v12 = vadd.f32 %v3232_v43, %v17326_v4  ;;  %v11748_v5 = vadd.f32 %v3234_v19, %v17328_v25  ;;  %v17330_v17 = vld [vmem:[#allocation130_spill] sm:$0xff]  ;;  %v17336_v32 = vld [vmem:[#allocation139_spill] sm:$0xff] }
 0x3c5   :  { %17307 = vst [vmem:[#allocation175_spill] sm:$0xff] %v11715_v24  ;;  %17309 = vst [vmem:[#allocation176_spill] sm:$0xff] %v11718_v22  ;;  %v11751_v28 = vadd.f32 %v3237_v8, %v17330_v17  ;;  %v17332_v52 = vld [vmem:[#allocation134_spill] sm:$0xff]  ;;  %v11760_v18 = vadd.f32 %v3244_v9, %v17336_v32  ;;  %v17340_v43 = vld [vmem:[#allocation143_spill] sm:$0xff] }
 0x3c6   :  { %17311 = vst [vmem:[#allocation182_spill] sm:$0xff] %v11721_v41  ;;  %17313 = vst [vmem:[#allocation187_spill] sm:$0xff] %v11724_v42  ;;  %v11754_v21 = vadd.f32 %v3239_v30, %v17332_v52  ;;  %v17334_v63 = vld [vmem:[#allocation138_spill] sm:$0xff]  ;;  %v11766_v62 = vadd.f32 %v3249_v38, %v17340_v43  ;;  %v17342_v19 = vld [vmem:[#allocation147_spill] sm:$0xff] }
 0x3c7   :  { %17315 = vst [vmem:[#allocation188_spill] sm:$0xff] %v11727_v33  ;;  %17317 = vst [vmem:[#allocation192_spill] sm:$0xff] %v11730_v16  ;;  %v11757_v36 = vadd.f32 %v3242_v11, %v17334_v63  ;;  %v17338_v56 = vld [vmem:[#allocation142_spill] sm:$0xff]  ;;  %v11769_v40 = vadd.f32 %v3252_v34, %v17342_v19  ;;  %v17344_v8 = vld [vmem:[#allocation148_spill] sm:$0xff] }
 0x3c8   :  { %17319 = vst [vmem:[#allocation197_spill] sm:$0xff] %v11733_v7  ;;  %17321 = vst [vmem:[#allocation201_spill] sm:$0xff] %v11736_v0  ;;  %v11763_v13 = vadd.f32 %v3247_v44, %v17338_v56  ;;  %v11772_v55 = vadd.f32 %v3254_v20, %v17344_v8  ;;  %v17346_v30 = vld [vmem:[#allocation152_spill] sm:$0xff]  ;;  %v17348_v11 = vld [vmem:[#allocation153_spill] sm:$0xff] }
 0x3c9   :  { %17323 = vst [vmem:[#allocation202_spill] sm:$0xff] %v11739_v10  ;;  %17325 = vst [vmem:[#allocation203_spill] sm:$0xff] %v11742_v39  ;;  %v11775_v61 = vadd.f32 %v3257_v6, %v17346_v30  ;;  %v11778_v4 = vadd.f32 %v3259_v48, %v17348_v11  ;;  %v11780_v9 = vld [vmem:[#allocation11 + $0x5] ss:$0 sm:$0xff]  ;;  %v17350_v25 = vld [vmem:[#allocation157_spill] sm:$0xff] }
 0x3ca   :  { %17327 = vst [vmem:[#allocation204_spill] sm:$0xff] %v11745_v12  ;;  %17329 = vst [vmem:[#allocation205_spill] sm:$0xff] %v11748_v5  ;;  %v11784_v44 = vmul.f32 %v11780_v9, %v17350_v25  ;;  %v17352_v38 = vld [vmem:[#allocation120_spill] sm:$0xff]  ;;  %v17354_v34 = vld [vmem:[#allocation129_spill] sm:$0xff]  ;;  %v11836_v57 = vmul.f32 %v11780_v9, %v17372_v14  ;;  %v11840_v27 = vmul.f32 %v11780_v9, %v17373_v46 }
 0x3cb   :  { %17331 = vst [vmem:[#allocation96_spill] sm:$0xff] %v11751_v28  ;;  %17333 = vst [vmem:[#allocation97_spill] sm:$0xff] %v11754_v21  ;;  %v11788_v17 = vmul.f32 %v11780_v9, %v17352_v38  ;;  %v11792_v20 = vmul.f32 %v11780_v9, %v17354_v34  ;;  %v17356_v52 = vld [vmem:[#allocation193_spill] sm:$0xff]  ;;  %v17358_v48 = vld [vmem:[#allocation200_spill] sm:$0xff] }
 0x3cc   :  { %17335 = vst [vmem:[#allocation103_spill] sm:$0xff] %v11757_v36  ;;  %17337 = vst [vmem:[#allocation104_spill] sm:$0xff] %v11760_v18  ;;  %v11796_v6 = vmul.f32 %v11780_v9, %v17356_v52  ;;  %v11800_v63 = vmul.f32 %v11780_v9, %v17358_v48  ;;  %v17360_v32 = vld [vmem:[#allocation137_spill] sm:$0xff]  ;;  %v17362_v43 = vld [vmem:[#allocation186_spill] sm:$0xff] }
 0x3cd   :  { %17339 = vst [vmem:[#allocation108_spill] sm:$0xff] %v11763_v13  ;;  %17341 = vst [vmem:[#allocation109_spill] sm:$0xff] %v11766_v62  ;;  %v11804_v56 = vmul.f32 %v11780_v9, %v17360_v32  ;;  %v11808_v19 = vmul.f32 %v11780_v9, %v17362_v43  ;;  %v17364_v8 = vld [vmem:[#allocation190_spill] sm:$0xff]  ;;  %v17368_v38 = vld [vmem:[#allocation191_spill] sm:$0xff]  ;;  %v11828_v43 = vmul.f32 %v11780_v9, %v17370_v1 }
 0x3ce   :  { %17343 = vst [vmem:[#allocation113_spill] sm:$0xff] %v11769_v40  ;;  %17345 = vst [vmem:[#allocation114_spill] sm:$0xff] %v11772_v55  ;;  %v11812_v30 = vmul.f32 %v11780_v9, %v17364_v8  ;;  %v17366_v11 = vld [vmem:[#allocation146_spill] sm:$0xff]  ;;  %v11820_v52 = vmul.f32 %v11780_v9, %v17368_v38  ;;  %v17369_v48 = vld [vmem:[#allocation195_spill] sm:$0xff]  ;;  %v11832_v8 = vmul.f32 %v11780_v9, %v17371_v60 }
 0x3cf   :  { %17347 = vst [vmem:[#allocation117_spill] sm:$0xff] %v11775_v61  ;;  %17349 = vst [vmem:[#allocation118_spill] sm:$0xff] %v11778_v4  ;;  %v11816_v25 = vmul.f32 %v11780_v9, %v17366_v11  ;;  %v11824_v54 = vmul.f32 %v11780_v9, %v17369_v48  ;;  %v17374_v11 = vld [vmem:[#allocation70_spill] sm:$0xff]  ;;  %v17375_v34 = vld [vmem:[#allocation71_spill] sm:$0xff] }
 0x3d0   :  { %17351 = vst [vmem:[#allocation121_spill] sm:$0xff] %v11784_v44  ;;  %17353 = vst [vmem:[#allocation122_spill] sm:$0xff] %v11788_v17  ;;  %v11844_v32 = vmul.f32 %v11780_v9, %v17374_v11  ;;  %v11848_v1 = vmul.f32 %v11780_v9, %v17375_v34  ;;  %v17376_v48 = vld [vmem:[#allocation155_spill] sm:$0xff]  ;;  %v17377_v38 = vld [vmem:[#allocation65_spill] sm:$0xff] }
 0x3d1   :  { %17355 = vst [vmem:[#allocation126_spill] sm:$0xff] %v11792_v20  ;;  %17357 = vst [vmem:[#allocation127_spill] sm:$0xff] %v11796_v6  ;;  %v11852_v60 = vmul.f32 %v11780_v9, %v17376_v48  ;;  %v11856_v14 = vmul.f32 %v11780_v9, %v17377_v38  ;;  %v17378_v4 = vld [vmem:[#allocation159_spill] sm:$0xff]  ;;  %v17379_v61 = vld [vmem:[#allocation160_spill] sm:$0xff] }
 0x3d2   :  { %17359 = vst [vmem:[#allocation130_spill] sm:$0xff] %v11800_v63  ;;  %17361 = vst [vmem:[#allocation134_spill] sm:$0xff] %v11804_v56  ;;  %v11860_v46 = vmul.f32 %v11780_v9, %v17378_v4  ;;  %v11864_v11 = vmul.f32 %v11780_v9, %v17379_v61  ;;  %v17380_v55 = vld [vmem:[#allocation158_spill] sm:$0xff]  ;;  %v17383_v13 = vld [vmem:[#allocation165_spill] sm:$0xff] }
 0x3d3   :  { %17363 = vst [vmem:[#allocation138_spill] sm:$0xff] %v11808_v19  ;;  %17365 = vst [vmem:[#allocation139_spill] sm:$0xff] %v11812_v30  ;;  %v11868_v34 = vmul.f32 %v11780_v9, %v17380_v55  ;;  %v17381_v40 = vld [vmem:[#allocation198_spill] sm:$0xff]  ;;  %v11880_v4 = vmul.f32 %v11780_v9, %v17383_v13  ;;  %v17385_v36 = vld [vmem:[#allocation171_spill] sm:$0xff] }
 0x3d4   :  { %17367 = vst [vmem:[#allocation142_spill] sm:$0xff] %v11816_v25  ;;  %v11872_v48 = vmul.f32 %v11780_v9, %v17381_v40  ;;  %v17382_v62 = vld [vmem:[#allocation150_spill] sm:$0xff]  ;;  %v11888_v55 = vmul.f32 %v11780_v9, %v17385_v36  ;;  %v17386_v21 = vld [vmem:[#allocation172_spill] sm:$0xff]  ;;  %v17388_v5 = vld [vmem:[#allocation179_spill] sm:$0xff] }
 0x3d5   :  { %v11876_v38 = vmul.f32 %v11780_v9, %v17382_v62  ;;  %v17384_v18 = vld [vmem:[#allocation166_spill] sm:$0xff]  ;;  %v11892_v40 = vmul.f32 %v11780_v9, %v17386_v21  ;;  %v11900_v13 = vmul.f32 %v11780_v9, %v17388_v5  ;;  %v17389_v12 = vld [vmem:[#allocation184_spill] sm:$0xff]  ;;  %v17392_v0 = vld [vmem:[#allocation79_spill] sm:$0xff] }
 0x3d6   :  { %v11884_v61 = vmul.f32 %v11780_v9, %v17384_v18  ;;  %v17387_v28 = vld [vmem:[#allocation178_spill] sm:$0xff]  ;;  %v11904_v18 = vmul.f32 %v11780_v9, %v17389_v12  ;;  %v17394_v16 = vld [vmem:[#allocation93_spill] sm:$0xff]  ;;  %v17395_v33 = vld [vmem:[#allocation83_spill] sm:$0xff] }
 0x3d7   :  { %v11896_v62 = vmul.f32 %v11780_v9, %v17387_v28  ;;  %v17390_v39 = vld [vmem:[#allocation46_spill] sm:$0xff]  ;;  %v11916_v28 = vmul.f32 %v11780_v9, %v17392_v0  ;;  %v11924_v12 = vmul.f32 %v11780_v9, %v17394_v16  ;;  %v17396_v42 = vld [vmem:[#allocation87_spill] sm:$0xff]  ;;  %v17397_v41 = vld [vmem:[#allocation100_spill] sm:$0xff] }
 0x3d8   :  { %v11908_v36 = vmul.f32 %v11780_v9, %v17390_v39  ;;  %v17391_v10 = vld [vmem:[#allocation54_spill] sm:$0xff]  ;;  %v11928_v39 = vmul.f32 %v11780_v9, %v17395_v33  ;;  %v11936_v0 = vmul.f32 %v11780_v9, %v17397_v41  ;;  %v17398_v22 = vld [vmem:[#allocation88_spill] sm:$0xff]  ;;  %v17401_v50 = vld [vmem:[#allocation95_spill] sm:$0xff] }
 0x3d9   :  { %v11912_v21 = vmul.f32 %v11780_v9, %v17391_v10  ;;  %v17393_v7 = vld [vmem:[#allocation82_spill] sm:$0xff]  ;;  %v11932_v10 = vmul.f32 %v11780_v9, %v17396_v42  ;;  %v11952_v42 = vmul.f32 %v11780_v9, %v17401_v50  ;;  %v17402_v59 = vld [vmem:[#allocation101_spill] sm:$0xff]  ;;  %v17403_v3 = vld [vmem:[#allocation115_spill] sm:$0xff] }
 0x3da   :  { %v11920_v5 = vmul.f32 %v11780_v9, %v17393_v7  ;;  %v11940_v7 = vmul.f32 %v11780_v9, %v17398_v22  ;;  %v17399_v24 = vld [vmem:[#allocation94_spill] sm:$0xff]  ;;  %v11956_v41 = vmul.f32 %v11780_v9, %v17402_v59  ;;  %v11960_v22 = vmul.f32 %v11780_v9, %v17403_v3  ;;  %v17406_v47 = vld [vmem:[#allocation119_spill] sm:$0xff]  ;;  %v17410_v49 = vld [vmem:[#allocation112_spill] sm:$0xff] }
 0x3db   :  { %v11944_v16 = vmul.f32 %v11780_v9, %v17399_v24  ;;  %v17400_v51 = vld [vmem:[#allocation110_spill] sm:$0xff]  ;;  %v11972_v50 = vmul.f32 %v11780_v9, %v17406_v47  ;;  %v17407_v29 = vld [vmem:[#allocation107_spill] sm:$0xff]  ;;  %v17414_v23 = vld [vmem:[#allocation149_spill] sm:$0xff] }
 0x3dc   :  { %v11948_v33 = vmul.f32 %v11780_v9, %v17400_v51  ;;  %v17404_v37 = vld [vmem:[#allocation102_spill] sm:$0xff]  ;;  %v11976_v59 = vmul.f32 %v11780_v9, %v17407_v29  ;;  %v17408_v2 = vld [vmem:[#allocation111_spill] sm:$0xff]  ;;  %v11996_v29 = vmul.f32 %v11780_v9, %v17414_v23  ;;  %v17416_v45 = vld [vmem:[#allocation32_spill] sm:$0xff] }
 0x3dd   :  { %v11964_v24 = vmul.f32 %v11780_v9, %v17404_v37  ;;  %v17405_v15 = vld [vmem:[#allocation106_spill] sm:$0xff]  ;;  %v11980_v3 = vmul.f32 %v11780_v9, %v17408_v2  ;;  %v17409_v53 = vld [vmem:[#allocation123_spill] sm:$0xff]  ;;  %v12000_v2 = vmul.f32 %v11780_v9, %v17416_v45  ;;  %v17443_v25 = vld [vmem:[#allocation57_spill] sm:$0xff] }
 0x3de   :  { %v11968_v51 = vmul.f32 %v11780_v9, %v17405_v15  ;;  %v11984_v37 = vmul.f32 %v11780_v9, %v17409_v53  ;;  %v11988_v15 = vmul.f32 %v11780_v9, %v17410_v49  ;;  %v17412_v31 = vld [vmem:[#allocation135_spill] sm:$0xff]  ;;  %17415 = vst [vmem:[#allocation148_spill] sm:$0xff] %v11996_v29  ;;  %v17420_v58 = vld [vmem:[#allocation206_spill] sm:$0xff]  ;;  %v17425_v29 = vld [vmem:[#allocation212_spill] sm:$0xff] }
 0x3df   :  { %v11992_v47 = vmul.f32 %v11780_v9, %v17412_v31  ;;  %17417 = vst [vmem:[#allocation152_spill] sm:$0xff] %v12000_v2  ;;  %v17418_v26 = vld [vmem:[#allocation35_spill] sm:$0xff]  ;;  %v12008_v49 = vmul.f32 %v11780_v9, %v17420_v58  ;;  %v12020_v45 = vmul.f32 %v11780_v9, %v17425_v29  ;;  %v17427_v2 = vld [vmem:[#allocation214_spill] sm:$0xff]  ;;  %v3650_v29 = vrot.slane %v11820_v52, 2  ;;  %v17513_v6 = vld [vmem:[#allocation184_spill] sm:$0xff] }
 0x3e0   :  { %17411 = vst [vmem:[#allocation143_spill] sm:$0xff] %v11988_v15  ;;  %v12004_v53 = vmul.f32 %v11780_v9, %v17418_v26  ;;  %v17421_v15 = vld [vmem:[#allocation208_spill] sm:$0xff]  ;;  %v12024_v26 = vmul.f32 %v11780_v9, %v17427_v2  ;;  %v3653_v2 = vrot.slane %v11828_v43, 2  ;;  %v3666_v52 = vrot.slane %v11860_v46, 2  ;;  %v17508_v19 = vld [vmem:[#allocation159_spill] sm:$0xff]  ;;  %v17510_v20 = vld [vmem:[#allocation198_spill] sm:$0xff] }
 0x3e1   :  { %17413 = vst [vmem:[#allocation147_spill] sm:$0xff] %v11992_v47  ;;  %v12012_v31 = vmul.f32 %v11780_v9, %v17421_v15  ;;  %v17423_v47 = vld [vmem:[#allocation210_spill] sm:$0xff]  ;;  %17426 = vst [vmem:[#allocation193_spill] sm:$0xff] %v12020_v45  ;;  %v12032_v15 = vmul.f32 %v11780_v9, %v11510_v35  ;;  %v3651_v45 = vrot.slane %v11824_v54, 2  ;;  %v17442_v43 = vld [vmem:[#allocation56_spill] sm:$0xff] }
 0x3e2   :  { %17419 = vst [vmem:[#allocation153_spill] sm:$0xff] %v12004_v53  ;;  %v12016_v23 = vmul.f32 %v11780_v9, %v17423_v47  ;;  %17428 = vst [vmem:[#allocation200_spill] sm:$0xff] %v12024_v26  ;;  %v17429_v53 = vld [vmem:[#allocation216_spill] sm:$0xff]  ;;  %v3655_v26 = vrot.slane %v11832_v8, 2  ;;  %v3663_v47 = vrot.slane %v11852_v60, 2  ;;  %v3671_v60 = vrot.slane %v11872_v48, 2 }
 0x3e3   :  { %17422 = vst [vmem:[#allocation157_spill] sm:$0xff] %v12012_v31  ;;  %v12028_v58 = vmul.f32 %v11780_v9, %v17429_v53  ;;  %v3656_v53 = vrot.slane %v11836_v57, 2  ;;  %v3660_v9 = vrot.slane %v11844_v32, 2  ;;  %v3661_v31 = vrot.slane %v11848_v1, 2  ;;  %v17441_v32 = vld [vmem:[#allocation39_spill] sm:$0xff]  ;;  %v17514_v63 = vld [vmem:[#allocation46_spill] sm:$0xff] }
 0x3e4   :  { %17424 = vst [vmem:[#allocation120_spill] sm:$0xff] %v12016_v23  ;;  %v3665_v23 = vrot.slane %v11856_v14, 2  ;;  %v3668_v57 = vrot.slane %v11864_v11, 2  ;;  %v3670_v1 = vrot.slane %v11868_v34, 2  ;;  %v12058_v46 = vsel %vm2491_vm6, %v3650_v29, %v3651_v45  ;;  %v17515_v17 = vld [vmem:[#allocation79_spill] sm:$0xff]  ;;  %v17516_v44 = vld [vmem:[#allocation82_spill] sm:$0xff] }
 0x3e5   :  { %17430 = vst [vmem:[#allocation186_spill] sm:$0xff] %v12028_v58  ;;  %v3658_v58 = vrot.slane %v11840_v27, 2  ;;  %v12061_v54 = vsel %vm2491_vm6, %v3651_v45, %v3653_v2  ;;  %v12064_v8 = vsel %vm2491_vm6, %v3655_v26, %v3656_v53  ;;  %v12070_v27 = vsel %vm2491_vm6, %v3660_v9, %v3661_v31  ;;  %v17517_v35 = vld [vmem:[#allocation83_spill] sm:$0xff] }
 0x3e6   :  { %v12073_v34 = vsel %vm2491_vm6, %v3661_v31, %v3663_v47  ;;  %v12076_v48 = vsel %vm2491_vm6, %v3665_v23, %v3666_v52  ;;  %v12079_v29 = vsel %vm2491_vm6, %v3666_v52, %v3668_v57  ;;  %v3673_v45 = vrot.slane %v11876_v38, 2 }
 0x3e7   :  { %v12067_v11 = vsel %vm2491_vm6, %v3656_v53, %v3658_v58  ;;  %v3675_v26 = vrot.slane %v11880_v4, 2  ;;  %v3676_v2 = vrot.slane %v11884_v61, 2  ;;  %v12085_v58 = vsel %vm2491_vm6, %v3670_v1, %v3671_v60 }
 0x3e8   :  { %v3678_v53 = vrot.slane %v11888_v55, 2  ;;  %v3680_v31 = vrot.slane %v11892_v40, 2  ;;  %v3681_v47 = vrot.slane %v11896_v62, 2  ;;  %v3683_v23 = vrot.slane %v11900_v13, 2 }
 0x3e9   :  { %v3685_v9 = vrot.slane %v11904_v18, 2  ;;  %v3686_v52 = vrot.slane %v11908_v36, 2  ;;  %v3688_v38 = vrot.slane %v11912_v21, 2  ;;  %v3690_v4 = vrot.slane %v11916_v28, 2 }
 0x3ea   :  { %v3691_v61 = vrot.slane %v11920_v5, 2  ;;  %v3693_v57 = vrot.slane %v11924_v12, 2  ;;  %v3695_v55 = vrot.slane %v11928_v39, 2  ;;  %v3696_v40 = vrot.slane %v11932_v10, 2 }
 0x3eb   :  { %v3698_v62 = vrot.slane %v11936_v0, 2  ;;  %v3700_v13 = vrot.slane %v11940_v7, 2  ;;  %v3701_v18 = vrot.slane %v11944_v16, 2  ;;  %v12103_v36 = vsel %vm2491_vm6, %v3671_v60, %v3673_v45 }
 0x3ec   :  { %v3703_v21 = vrot.slane %v11948_v33, 2  ;;  %v3705_v28 = vrot.slane %v11952_v42, 2  ;;  %v3706_v5 = vrot.slane %v11956_v41, 2  ;;  %v3677_v12 = vsel %vm2491_vm6, %v3675_v26, %v3676_v2  ;;  %v17440_v14 = vld [vmem:[#allocation186_spill] sm:$0xff] }
 0x3ed   :  { %v3679_v39 = vsel %vm2491_vm6, %v3676_v2, %v3678_v53  ;;  %v3682_v10 = vsel %vm2491_vm6, %v3680_v31, %v3681_v47  ;;  %v3708_v0 = vrot.slane %v11960_v22, 2  ;;  %v3684_v7 = vsel %vm2491_vm6, %v3681_v47, %v3683_v23 }
 0x3ee   :  { %v3687_v16 = vsel %vm2491_vm6, %v3685_v9, %v3686_v52  ;;  %v3689_v1 = vsel %vm2491_vm6, %v3686_v52, %v3688_v38  ;;  %v3692_v33 = vsel %vm2491_vm6, %v3690_v4, %v3691_v61  ;;  %v3694_v42 = vsel %vm2491_vm6, %v3691_v61, %v3693_v57  ;;  %v17431_v38 = vld [vmem:[#allocation143_spill] sm:$0xff] }
 0x3ef   :  { %v3697_v41 = vsel %vm2491_vm6, %v3695_v55, %v3696_v40  ;;  %v3699_v60 = vsel %vm2491_vm6, %v3696_v40, %v3698_v62  ;;  %v3702_v45 = vsel %vm2491_vm6, %v3700_v13, %v3701_v18  ;;  %v3704_v26 = vsel %vm2491_vm6, %v3701_v18, %v3703_v21  ;;  %v17432_v61 = vld [vmem:[#allocation147_spill] sm:$0xff]  ;;  %v17433_v55 = vld [vmem:[#allocation148_spill] sm:$0xff]  ;;  %v17435_v13 = vld [vmem:[#allocation153_spill] sm:$0xff] }
 0x3f0   :  { %v3707_v22 = vsel %vm2491_vm6, %v3705_v28, %v3706_v5  ;;  %v3710_v2 = vrot.slane %v11964_v24, 2  ;;  %v3711_v53 = vrot.slane %v11968_v51, 2  ;;  %v3709_v31 = vsel %vm2491_vm6, %v3706_v5, %v3708_v0  ;;  %v17434_v62 = vld [vmem:[#allocation152_spill] sm:$0xff]  ;;  %v17436_v21 = vld [vmem:[#allocation157_spill] sm:$0xff] }
 0x3f1   :  { %v3713_v47 = vrot.slane %v11972_v50, 2  ;;  %v3715_v23 = vrot.slane %v11976_v59, 2  ;;  %v3716_v9 = vrot.slane %v11980_v3, 2  ;;  %v3718_v52 = vrot.slane %v11984_v37, 2  ;;  %v17437_v28 = vld [vmem:[#allocation120_spill] sm:$0xff]  ;;  %v17438_v5 = vld [vmem:[#allocation193_spill] sm:$0xff] }
 0x3f2   :  { %v3720_v4 = vrot.slane %v17431_v38, 2  ;;  %v3721_v57 = vrot.slane %v17432_v61, 2  ;;  %v3723_v40 = vrot.slane %v17433_v55, 2  ;;  %v3725_v24 = vrot.slane %v17434_v62, 2  ;;  %v17439_v0 = vld [vmem:[#allocation200_spill] sm:$0xff] }
 0x3f3   :  { %v3726_v51 = vrot.slane %v17435_v13, 2  ;;  %v3728_v18 = vrot.slane %v12008_v49, 2  ;;  %v3730_v50 = vrot.slane %v17436_v21, 2  ;;  %v3731_v59 = vrot.slane %v17437_v28, 2 }
 0x3f4   :  { %v3733_v3 = vrot.slane %v17438_v5, 2  ;;  %v3735_v37 = vrot.slane %v17439_v0, 2  ;;  %v3736_v38 = vrot.slane %v17440_v14, 2  ;;  %v3712_v61 = vsel %vm2491_vm6, %v3710_v2, %v3711_v53 }
 0x3f5   :  { %v3738_v55 = vrot.slane %v12032_v15, 2  ;;  %v3740_v62 = vrot.slane %v17441_v32, 2  ;;  %v3741_v13 = vrot.slane %v17442_v43, 2  ;;  %v3714_v49 = vsel %vm2491_vm6, %v3711_v53, %v3713_v47  ;;  %v17444_v47 = vld [vmem:[#allocation144_spill] sm:$0xff] }
 0x3f6   :  { %v3717_v21 = vsel %vm2491_vm6, %v3715_v23, %v3716_v9  ;;  %v3719_v28 = vsel %vm2491_vm6, %v3716_v9, %v3718_v52  ;;  %v3743_v5 = vrot.slane %v17443_v25, 2  ;;  %v3722_v0 = vsel %vm2491_vm6, %v3720_v4, %v3721_v57  ;;  %v17445_v52 = vld [vmem:[#allocation164_spill] sm:$0xff] }
 0x3f7   :  { %v3724_v14 = vsel %vm2491_vm6, %v3721_v57, %v3723_v40  ;;  %v3727_v2 = vsel %vm2491_vm6, %v3725_v24, %v3726_v51  ;;  %v3729_v15 = vsel %vm2491_vm6, %v3726_v51, %v3728_v18  ;;  %v3732_v32 = vsel %vm2491_vm6, %v3730_v50, %v3731_v59  ;;  %v17446_v57 = vld [vmem:[#allocation177_spill] sm:$0xff]  ;;  %v17447_v51 = vld [vmem:[#allocation183_spill] sm:$0xff] }
 0x3f8   :  { %v3734_v43 = vsel %vm2491_vm6, %v3731_v59, %v3733_v3  ;;  %v3737_v53 = vsel %vm2491_vm6, %v3735_v37, %v3736_v38  ;;  %v12157_v23 = vadd.f32 %v12058_v46, %v17444_v47  ;;  %v3739_v25 = vsel %vm2491_vm6, %v3736_v38, %v3738_v55  ;;  %v17448_v46 = vld [vmem:[#allocation207_spill] sm:$0xff]  ;;  %v17449_v59 = vld [vmem:[#allocation209_spill] sm:$0xff] }
 0x3f9   :  { %v3742_v9 = vsel %vm2491_vm6, %v3740_v62, %v3741_v13  ;;  %v12163_v4 = vadd.f32 %v12061_v54, %v17445_v52  ;;  %v12167_v40 = vadd.f32 %v12064_v8, %v17446_v57  ;;  %v3744_v24 = vsel %vm2491_vm6, %v3741_v13, %v3743_v5  ;;  %v17450_v54 = vld [vmem:[#allocation211_spill] sm:$0xff]  ;;  %v17451_v8 = vld [vmem:[#allocation213_spill] sm:$0xff]  ;;  %v17454_v13 = vld [vmem:[#allocation34_spill] sm:$0xff] }
 0x3fa   :  { %v12172_v18 = vadd.f32 %v12067_v11, %v17447_v51  ;;  %v12176_v50 = vadd.f32 %v12070_v27, %v17448_v46  ;;  %v12180_v3 = vadd.f32 %v12073_v34, %v17449_v59  ;;  %v12184_v37 = vadd.f32 %v12076_v48, %v17450_v54  ;;  %v17452_v55 = vld [vmem:[#allocation215_spill] sm:$0xff]  ;;  %v17453_v62 = vld [vmem:[#allocation217_spill] sm:$0xff]  ;;  %v17456_v48 = vld [vmem:[#allocation36_spill] sm:$0xff] }
 0x3fb   :  { %v12188_v38 = vadd.f32 %v12079_v29, %v17451_v8  ;;  %v12192_v11 = vadd.f32 %v12085_v58, %v17452_v55  ;;  %v12196_v27 = vadd.f32 %v12103_v36, %v17453_v62  ;;  %v12199_v5 = vadd.f32 %v3677_v12, %v17454_v13  ;;  %v17455_v34 = vld [vmem:[#allocation37_spill] sm:$0xff]  ;;  %v17457_v57 = vld [vmem:[#allocation78_spill] sm:$0xff]  ;;  %v17460_v36 = vld [vmem:[#allocation175_spill] sm:$0xff] }
 0x3fc   :  { %v12202_v47 = vadd.f32 %v3679_v39, %v17455_v34  ;;  %v12205_v52 = vadd.f32 %v3682_v10, %v17456_v48  ;;  %v12208_v29 = vadd.f32 %v3684_v7, %v17457_v57  ;;  %v17458_v51 = vld [vmem:[#allocation81_spill] sm:$0xff]  ;;  %v17459_v58 = vld [vmem:[#allocation170_spill] sm:$0xff]  ;;  %v12217_v54 = vadd.f32 %v3692_v33, %v17460_v36  ;;  %v17461_v12 = vld [vmem:[#allocation176_spill] sm:$0xff] }
 0x3fd   :  { %v12211_v46 = vadd.f32 %v3687_v16, %v17458_v51  ;;  %v12214_v59 = vadd.f32 %v3689_v1, %v17459_v58  ;;  %v12220_v8 = vadd.f32 %v3694_v42, %v17461_v12  ;;  %v17462_v39 = vld [vmem:[#allocation182_spill] sm:$0xff]  ;;  %v17463_v10 = vld [vmem:[#allocation187_spill] sm:$0xff]  ;;  %v17464_v7 = vld [vmem:[#allocation188_spill] sm:$0xff] }
 0x3fe   :  { %v12223_v55 = vadd.f32 %v3697_v41, %v17462_v39  ;;  %v12226_v62 = vadd.f32 %v3699_v60, %v17463_v10  ;;  %v12229_v13 = vadd.f32 %v3702_v45, %v17464_v7  ;;  %v17465_v16 = vld [vmem:[#allocation192_spill] sm:$0xff]  ;;  %v17467_v1 = vld [vmem:[#allocation197_spill] sm:$0xff]  ;;  %v17471_v42 = vld [vmem:[#allocation202_spill] sm:$0xff] }
 0x3ff   :  { %v12232_v34 = vadd.f32 %v3704_v26, %v17465_v16  ;;  %v12235_v48 = vadd.f32 %v3707_v22, %v17467_v1  ;;  %v17469_v33 = vld [vmem:[#allocation201_spill] sm:$0xff]  ;;  %v12241_v51 = vadd.f32 %v3712_v61, %v17471_v42  ;;  %v17473_v41 = vld [vmem:[#allocation203_spill] sm:$0xff]  ;;  %v17475_v60 = vld [vmem:[#allocation204_spill] sm:$0xff] }
 0x400   :  { %v12238_v57 = vadd.f32 %v3709_v31, %v17469_v33  ;;  %v12244_v58 = vadd.f32 %v3714_v49, %v17473_v41  ;;  %v12247_v36 = vadd.f32 %v3717_v21, %v17475_v60  ;;  %v17477_v45 = vld [vmem:[#allocation205_spill] sm:$0xff]  ;;  %v17479_v26 = vld [vmem:[#allocation96_spill] sm:$0xff]  ;;  %v17483_v31 = vld [vmem:[#allocation103_spill] sm:$0xff] }
 0x401   :  { %17466 = vst [vmem:[#allocation190_spill] sm:$0xff] %v12232_v34  ;;  %17468 = vst [vmem:[#allocation165_spill] sm:$0xff] %v12235_v48  ;;  %v12250_v12 = vadd.f32 %v3719_v28, %v17477_v45  ;;  %v12253_v39 = vadd.f32 %v3722_v0, %v17479_v26  ;;  %v17481_v22 = vld [vmem:[#allocation97_spill] sm:$0xff]  ;;  %v12259_v7 = vadd.f32 %v3727_v2, %v17483_v31  ;;  %v17485_v61 = vld [vmem:[#allocation104_spill] sm:$0xff] }
 0x402   :  { %17470 = vst [vmem:[#allocation166_spill] sm:$0xff] %v12238_v57  ;;  %17472 = vst [vmem:[#allocation171_spill] sm:$0xff] %v12241_v51  ;;  %v12256_v10 = vadd.f32 %v3724_v14, %v17481_v22  ;;  %v12262_v16 = vadd.f32 %v3729_v15, %v17485_v61  ;;  %v17487_v49 = vld [vmem:[#allocation108_spill] sm:$0xff]  ;;  %v17489_v21 = vld [vmem:[#allocation109_spill] sm:$0xff] }
 0x403   :  { %17474 = vst [vmem:[#allocation143_spill] sm:$0xff] %v12244_v58  ;;  %17476 = vst [vmem:[#allocation147_spill] sm:$0xff] %v12247_v36  ;;  %v12265_v1 = vadd.f32 %v3732_v32, %v17487_v49  ;;  %v12268_v33 = vadd.f32 %v3734_v43, %v17489_v21  ;;  %v17491_v28 = vld [vmem:[#allocation113_spill] sm:$0xff]  ;;  %v17493_v0 = vld [vmem:[#allocation114_spill] sm:$0xff] }
 0x404   :  { %17478 = vst [vmem:[#allocation148_spill] sm:$0xff] %v12250_v12  ;;  %17480 = vst [vmem:[#allocation152_spill] sm:$0xff] %v12253_v39  ;;  %v12271_v42 = vadd.f32 %v3737_v53, %v17491_v28  ;;  %v12274_v41 = vadd.f32 %v3739_v25, %v17493_v0  ;;  %v17495_v14 = vld [vmem:[#allocation117_spill] sm:$0xff]  ;;  %v17497_v2 = vld [vmem:[#allocation118_spill] sm:$0xff] }
 0x405   :  { %17482 = vst [vmem:[#allocation153_spill] sm:$0xff] %v12256_v10  ;;  %17484 = vst [vmem:[#allocation157_spill] sm:$0xff] %v12259_v7  ;;  %v12277_v60 = vadd.f32 %v3742_v9, %v17495_v14  ;;  %v12280_v45 = vadd.f32 %v3744_v24, %v17497_v2  ;;  %v7363_v15 = vld [vmem:[#allocation11 + $0x6] ss:$0 sm:$0xff]  ;;  %v17503_v43 = vld [vmem:[#allocation196_spill] sm:$0xff] }
 0x406   :  { %17486 = vst [vmem:[#allocation120_spill] sm:$0xff] %v12262_v16  ;;  %17488 = vst [vmem:[#allocation193_spill] sm:$0xff] %v12265_v1  ;;  %v17499_v26 = vld [vmem:[#allocation191_spill] sm:$0xff]  ;;  %v3910_v61 = vmul.f32 %v7363_v15, %v17503_v43  ;;  %v17505_v21 = vld [vmem:[#allocation70_spill] sm:$0xff]  ;;  %v3915_v24 = vmul.f32 %v7363_v15, %v17508_v19  ;;  %v3922_v43 = vmul.f32 %v7363_v15, %v17513_v6 }
 0x407   :  { %17490 = vst [vmem:[#allocation200_spill] sm:$0xff] %v12268_v33  ;;  %17492 = vst [vmem:[#allocation186_spill] sm:$0xff] %v12271_v42  ;;  %v12283_v22 = vmul.f32 %v7363_v15, %v17499_v26  ;;  %v17501_v32 = vld [vmem:[#allocation195_spill] sm:$0xff]  ;;  %v3912_v25 = vmul.f32 %v7363_v15, %v17505_v21  ;;  %v17507_v9 = vld [vmem:[#allocation65_spill] sm:$0xff]  ;;  %v3917_v26 = vmul.f32 %v7363_v15, %v17510_v20 }
 0x408   :  { %17494 = vst [vmem:[#allocation39_spill] sm:$0xff] %v12274_v41  ;;  %17496 = vst [vmem:[#allocation56_spill] sm:$0xff] %v12277_v60  ;;  %v12286_v31 = vmul.f32 %v7363_v15, %v17501_v32  ;;  %v17504_v53 = vld [vmem:[#allocation199_spill] sm:$0xff]  ;;  %v3914_v14 = vmul.f32 %v7363_v15, %v17507_v9  ;;  %v17509_v2 = vld [vmem:[#allocation158_spill] sm:$0xff]  ;;  %v3924_v21 = vmul.f32 %v7363_v15, %v17515_v17 }
 0x409   :  { %17498 = vst [vmem:[#allocation57_spill] sm:$0xff] %v12280_v45  ;;  %17500 = vst [vmem:[#allocation144_spill] sm:$0xff] %v12283_v22  ;;  %v3911_v49 = vmul.f32 %v7363_v15, %v17504_v53  ;;  %v17506_v28 = vld [vmem:[#allocation71_spill] sm:$0xff]  ;;  %v3916_v30 = vmul.f32 %v7363_v15, %v17509_v2  ;;  %v17511_v22 = vld [vmem:[#allocation172_spill] sm:$0xff]  ;;  %v3923_v53 = vmul.f32 %v7363_v15, %v17514_v63 }
 0x40a   :  { %17502 = vst [vmem:[#allocation164_spill] sm:$0xff] %v12286_v31  ;;  %v3913_v0 = vmul.f32 %v7363_v15, %v17506_v28  ;;  %v3920_v56 = vmul.f32 %v7363_v15, %v17511_v22  ;;  %v17512_v32 = vld [vmem:[#allocation178_spill] sm:$0xff]  ;;  %v3925_v28 = vmul.f32 %v7363_v15, %v17516_v44  ;;  %v3926_v9 = vmul.f32 %v7363_v15, %v17517_v35  ;;  %v17518_v45 = vld [vmem:[#allocation87_spill] sm:$0xff]  ;;  %v17519_v60 = vld [vmem:[#allocation88_spill] sm:$0xff] }
 0x40b   :  { %v3921_v31 = vmul.f32 %v7363_v15, %v17512_v32  ;;  %v3927_v19 = vmul.f32 %v7363_v15, %v17518_v45  ;;  %v3928_v2 = vmul.f32 %v7363_v15, %v17519_v60  ;;  %v17520_v41 = vld [vmem:[#allocation94_spill] sm:$0xff]  ;;  %v17521_v42 = vld [vmem:[#allocation95_spill] sm:$0xff]  ;;  %v17522_v33 = vld [vmem:[#allocation101_spill] sm:$0xff] }
 0x40c   :  { %v3929_v20 = vmul.f32 %v7363_v15, %v17520_v41  ;;  %v3930_v22 = vmul.f32 %v7363_v15, %v17521_v42  ;;  %v3931_v32 = vmul.f32 %v7363_v15, %v17522_v33  ;;  %v17523_v1 = vld [vmem:[#allocation102_spill] sm:$0xff]  ;;  %v17525_v7 = vld [vmem:[#allocation107_spill] sm:$0xff]  ;;  %v17527_v39 = vld [vmem:[#allocation112_spill] sm:$0xff] }
 0x40d   :  { %v3932_v6 = vmul.f32 %v7363_v15, %v17523_v1  ;;  %v17524_v16 = vld [vmem:[#allocation106_spill] sm:$0xff]  ;;  %v3934_v17 = vmul.f32 %v7363_v15, %v17525_v7  ;;  %v17526_v10 = vld [vmem:[#allocation111_spill] sm:$0xff]  ;;  %v3936_v35 = vmul.f32 %v7363_v15, %v17527_v39  ;;  %v17529_v36 = vld [vmem:[#allocation32_spill] sm:$0xff]  ;;  %v12321_v7 = vadd.f32 %v3910_v61, %v12157_v23 }
 0x40e   :  { %v3933_v63 = vmul.f32 %v7363_v15, %v17524_v16  ;;  %v3935_v44 = vmul.f32 %v7363_v15, %v17526_v10  ;;  %v17528_v12 = vld [vmem:[#allocation135_spill] sm:$0xff]  ;;  %v3938_v60 = vmul.f32 %v7363_v15, %v17529_v36  ;;  %v17531_v51 = vld [vmem:[#allocation208_spill] sm:$0xff]  ;;  %v17532_v57 = vld [vmem:[#allocation210_spill] sm:$0xff]  ;;  %v12324_v10 = vadd.f32 %v3911_v49, %v12163_v4 }
 0x40f   :  { %v3937_v45 = vmul.f32 %v7363_v15, %v17528_v12  ;;  %v17530_v58 = vld [vmem:[#allocation35_spill] sm:$0xff]  ;;  %v3940_v42 = vmul.f32 %v7363_v15, %v17531_v51  ;;  %v3941_v33 = vmul.f32 %v7363_v15, %v17532_v57  ;;  %v17533_v48 = vld [vmem:[#allocation214_spill] sm:$0xff]  ;;  %v17534_v34 = vld [vmem:[#allocation216_spill] sm:$0xff]  ;;  %17535 = vst [vmem:[#allocation177_spill] sm:$0xff] %v12321_v7  ;;  %v12327_v12 = vadd.f32 %v3912_v25, %v12167_v40 }
 0x410   :  { %v3939_v41 = vmul.f32 %v7363_v15, %v17530_v58  ;;  %v3942_v1 = vmul.f32 %v7363_v15, %v17533_v48  ;;  %v3943_v16 = vmul.f32 %v7363_v15, %v17534_v34  ;;  %17536 = vst [vmem:[#allocation183_spill] sm:$0xff] %v12324_v10  ;;  %v12330_v36 = vadd.f32 %v3913_v0, %v12172_v18  ;;  %v17543_v4 = vld [vmem:[#allocation42_spill] sm:$0xff]  ;;  %v17545_v40 = vld [vmem:[#allocation45_spill] sm:$0xff]  ;;  %v17618_v10 = vld [vmem:[#allocation159_spill] sm:$0xff] }
 0x411   :  { %17537 = vst [vmem:[#allocation207_spill] sm:$0xff] %v12327_v12  ;;  %v12333_v51 = vadd.f32 %v3914_v14, %v12176_v50  ;;  %v12336_v57 = vadd.f32 %v3915_v24, %v12180_v3  ;;  %v12339_v15 = vadd.f32 %v3916_v30, %v12184_v37  ;;  %v12342_v23 = vadd.f32 %v3917_v26, %v12188_v38  ;;  %v17572_v14 = vld [vmem:[#allocation152_spill] sm:$0xff] }
 0x412   :  { %17538 = vst [vmem:[#allocation209_spill] sm:$0xff] %v12330_v36  ;;  %v12346_v61 = vadd.f32 %v17543_v4, %v12192_v11  ;;  %v12350_v18 = vadd.f32 %v17545_v40, %v12196_v27  ;;  %v12353_v50 = vadd.f32 %v3920_v56, %v12199_v5  ;;  %v12356_v3 = vadd.f32 %v3921_v31, %v12202_v47  ;;  %v17594_v40 = vld [vmem:[#allocation61_spill] sm:$0xff] }
 0x413   :  { %17539 = vst [vmem:[#allocation211_spill] sm:$0xff] %v12333_v51  ;;  %17540 = vst [vmem:[#allocation213_spill] sm:$0xff] %v12336_v57  ;;  %v12359_v30 = vadd.f32 %v3922_v43, %v12205_v52  ;;  %v12362_v37 = vadd.f32 %v3923_v53, %v12208_v29  ;;  %v12365_v38 = vadd.f32 %v3924_v21, %v12211_v46  ;;  %v17558_v29 = vld [vmem:[#allocation190_spill] sm:$0xff] }
 0x414   :  { %17541 = vst [vmem:[#allocation215_spill] sm:$0xff] %v12339_v15  ;;  %17542 = vst [vmem:[#allocation217_spill] sm:$0xff] %v12342_v23  ;;  %v12368_v11 = vadd.f32 %v3925_v28, %v12214_v59  ;;  %v12371_v27 = vadd.f32 %v3926_v9, %v12217_v54  ;;  %v12374_v56 = vadd.f32 %v3927_v19, %v12220_v8  ;;  %v17560_v59 = vld [vmem:[#allocation165_spill] sm:$0xff]  ;;  %v17562_v54 = vld [vmem:[#allocation166_spill] sm:$0xff] }
 0x415   :  { %17544 = vst [vmem:[#allocation34_spill] sm:$0xff] %v12346_v61  ;;  %17546 = vst [vmem:[#allocation37_spill] sm:$0xff] %v12350_v18  ;;  %v12377_v5 = vadd.f32 %v3928_v2, %v12223_v55  ;;  %v12380_v47 = vadd.f32 %v3929_v20, %v12226_v62  ;;  %v12383_v52 = vadd.f32 %v3930_v22, %v12229_v13  ;;  %v17564_v19 = vld [vmem:[#allocation171_spill] sm:$0xff]  ;;  %v17570_v13 = vld [vmem:[#allocation148_spill] sm:$0xff] }
 0x416   :  { %17547 = vst [vmem:[#allocation36_spill] sm:$0xff] %v12353_v50  ;;  %17548 = vst [vmem:[#allocation78_spill] sm:$0xff] %v12356_v3  ;;  %v12386_v46 = vadd.f32 %v3931_v32, %v17558_v29  ;;  %v12389_v31 = vadd.f32 %v3932_v6, %v17560_v59  ;;  %v12392_v49 = vadd.f32 %v3933_v63, %v17562_v54  ;;  %v17566_v55 = vld [vmem:[#allocation143_spill] sm:$0xff]  ;;  %v17574_v6 = vld [vmem:[#allocation153_spill] sm:$0xff] }
 0x417   :  { %17549 = vst [vmem:[#allocation81_spill] sm:$0xff] %v12359_v30  ;;  %17550 = vst [vmem:[#allocation170_spill] sm:$0xff] %v12362_v37  ;;  %v12395_v8 = vadd.f32 %v3934_v17, %v17564_v19  ;;  %v12398_v25 = vadd.f32 %v3935_v44, %v17566_v55  ;;  %v17568_v62 = vld [vmem:[#allocation147_spill] sm:$0xff]  ;;  %v12404_v22 = vadd.f32 %v3937_v45, %v17570_v13  ;;  %v17576_v63 = vld [vmem:[#allocation157_spill] sm:$0xff] }
 0x418   :  { %17551 = vst [vmem:[#allocation175_spill] sm:$0xff] %v12365_v38  ;;  %17552 = vst [vmem:[#allocation176_spill] sm:$0xff] %v12368_v11  ;;  %v12401_v0 = vadd.f32 %v3936_v35, %v17568_v62  ;;  %v12407_v24 = vadd.f32 %v3938_v60, %v17572_v14  ;;  %v12410_v26 = vadd.f32 %v3939_v41, %v17574_v6  ;;  %v17578_v17 = vld [vmem:[#allocation120_spill] sm:$0xff]  ;;  %v17580_v44 = vld [vmem:[#allocation193_spill] sm:$0xff] }
 0x419   :  { %17553 = vst [vmem:[#allocation182_spill] sm:$0xff] %v12371_v27  ;;  %17554 = vst [vmem:[#allocation187_spill] sm:$0xff] %v12374_v56  ;;  %v12413_v32 = vadd.f32 %v3940_v42, %v17576_v63  ;;  %v12416_v43 = vadd.f32 %v3941_v33, %v17578_v17  ;;  %v12419_v53 = vadd.f32 %v3942_v1, %v17580_v44  ;;  %v17582_v35 = vld [vmem:[#allocation200_spill] sm:$0xff]  ;;  %v17584_v45 = vld [vmem:[#allocation186_spill] sm:$0xff] }
 0x41a   :  { %17555 = vst [vmem:[#allocation188_spill] sm:$0xff] %v12377_v5  ;;  %17556 = vst [vmem:[#allocation192_spill] sm:$0xff] %v12380_v47  ;;  %v12422_v21 = vadd.f32 %v3943_v16, %v17582_v35  ;;  %v17585_v28 = vld [vmem:[#allocation58_spill] sm:$0xff]  ;;  %v17587_v60 = vld [vmem:[#allocation39_spill] sm:$0xff] }
 0x41b   :  { %17557 = vst [vmem:[#allocation197_spill] sm:$0xff] %v12383_v52  ;;  %17559 = vst [vmem:[#allocation201_spill] sm:$0xff] %v12386_v46  ;;  %v12426_v9 = vadd.f32 %v17585_v28, %v17584_v45  ;;  %v17588_v2 = vld [vmem:[#allocation59_spill] sm:$0xff]  ;;  %v17590_v20 = vld [vmem:[#allocation56_spill] sm:$0xff] }
 0x41c   :  { %17561 = vst [vmem:[#allocation202_spill] sm:$0xff] %v12389_v31  ;;  %17563 = vst [vmem:[#allocation203_spill] sm:$0xff] %v12392_v49  ;;  %v12430_v41 = vadd.f32 %v17588_v2, %v17587_v60  ;;  %v17591_v42 = vld [vmem:[#allocation60_spill] sm:$0xff]  ;;  %v17593_v33 = vld [vmem:[#allocation57_spill] sm:$0xff] }
 0x41d   :  { %17565 = vst [vmem:[#allocation204_spill] sm:$0xff] %v12395_v8  ;;  %17567 = vst [vmem:[#allocation205_spill] sm:$0xff] %v12398_v25  ;;  %v12434_v4 = vadd.f32 %v17591_v42, %v17590_v20  ;;  %v12438_v29 = vadd.f32 %v17594_v40, %v17593_v33  ;;  %v12440_v1 = vld [vmem:[#allocation11 + $0x7] ss:$0 sm:$0xff]  ;;  %v17596_v16 = vld [vmem:[#allocation129_spill] sm:$0xff] }
 0x41e   :  { %17569 = vst [vmem:[#allocation96_spill] sm:$0xff] %v12401_v0  ;;  %17571 = vst [vmem:[#allocation97_spill] sm:$0xff] %v12404_v22  ;;  %v12444_v59 = vmul.f32 %v12440_v1, %v17596_v16  ;;  %v17598_v54 = vld [vmem:[#allocation137_spill] sm:$0xff]  ;;  %v17600_v55 = vld [vmem:[#allocation146_spill] sm:$0xff]  ;;  %v12510_v7 = vmul.f32 %v12440_v1, %v17618_v10 }
 0x41f   :  { %17573 = vst [vmem:[#allocation103_spill] sm:$0xff] %v12407_v24  ;;  %17575 = vst [vmem:[#allocation104_spill] sm:$0xff] %v12410_v26  ;;  %v12448_v19 = vmul.f32 %v12440_v1, %v17598_v54  ;;  %v12452_v62 = vmul.f32 %v12440_v1, %v17600_v55  ;;  %v12454_v13 = vld [vmem:[#allocation2 + $0x120] sm:$0xff]  ;;  %v12460_v6 = vld [vmem:[#allocation2 + $0x128] sm:$0xff] }
 0x420   :  { %17577 = vst [vmem:[#allocation108_spill] sm:$0xff] %v12413_v32  ;;  %17579 = vst [vmem:[#allocation109_spill] sm:$0xff] %v12416_v43  ;;  %v12458_v14 = vmul.f32 %v12454_v13, %v12440_v1  ;;  %v12464_v63 = vmul.f32 %v12460_v6, %v12440_v1  ;;  %v17606_v17 = vld [vmem:[#allocation151_spill] sm:$0xff]  ;;  %v12470_v35 = vld [vmem:[#allocation2 + $0x138] sm:$0xff] }
 0x421   :  { %17581 = vst [vmem:[#allocation113_spill] sm:$0xff] %v12419_v53  ;;  %17583 = vst [vmem:[#allocation114_spill] sm:$0xff] %v12422_v21  ;;  %v12468_v44 = vmul.f32 %v12440_v1, %v17606_v17  ;;  %v12474_v45 = vmul.f32 %v12470_v35, %v12440_v1  ;;  %v12476_v28 = vld [vmem:[#allocation2 + $0x140] sm:$0xff]  ;;  %v12486_v42 = vld [vmem:[#allocation2 + $0x150] sm:$0xff] }
 0x422   :  { %17586 = vst [vmem:[#allocation117_spill] sm:$0xff] %v12426_v9  ;;  %17589 = vst [vmem:[#allocation118_spill] sm:$0xff] %v12430_v41  ;;  %v12480_v60 = vmul.f32 %v12476_v28, %v12440_v1  ;;  %v17612_v2 = vld [vmem:[#allocation154_spill] sm:$0xff]  ;;  %v12490_v33 = vmul.f32 %v12486_v42, %v12440_v1  ;;  %v12492_v40 = vld [vmem:[#allocation2 + $0x158] sm:$0xff] }
 0x423   :  { %17592 = vst [vmem:[#allocation191_spill] sm:$0xff] %v12434_v4  ;;  %17595 = vst [vmem:[#allocation195_spill] sm:$0xff] %v12438_v29  ;;  %v12484_v20 = vmul.f32 %v12440_v1, %v17612_v2  ;;  %v12496_v16 = vmul.f32 %v12492_v40, %v12440_v1  ;;  %v17616_v54 = vld [vmem:[#allocation155_spill] sm:$0xff]  ;;  %v17624_v29 = vld [vmem:[#allocation178_spill] sm:$0xff] }
 0x424   :  { %17597 = vst [vmem:[#allocation196_spill] sm:$0xff] %v12444_v59  ;;  %17599 = vst [vmem:[#allocation199_spill] sm:$0xff] %v12448_v19  ;;  %v12500_v55 = vmul.f32 %v12440_v1, %v17616_v54  ;;  %v12502_v17 = vld [vmem:[#allocation2 + $0x168] sm:$0xff]  ;;  %v12538_v4 = vmul.f32 %v12440_v1, %v17624_v29  ;;  %v17626_v9 = vld [vmem:[#allocation184_spill] sm:$0xff]  ;;  %v4273_v57 = vrot.slane %v12490_v33, 1 }
 0x425   :  { %17601 = vst [vmem:[#allocation70_spill] sm:$0xff] %v12452_v62  ;;  %17602 = vst [vmem:[#allocation71_spill] sm:$0xff] %v12454_v13  ;;  %v12506_v2 = vmul.f32 %v12502_v17, %v12440_v1  ;;  %v17623_v13 = vld [vmem:[#allocation172_spill] sm:$0xff]  ;;  %v17627_v21 = vld [vmem:[#allocation46_spill] sm:$0xff] }
 0x426   :  { %17603 = vst [vmem:[#allocation65_spill] sm:$0xff] %v12458_v14  ;;  %17604 = vst [vmem:[#allocation158_spill] sm:$0xff] %v12460_v6  ;;  %v17622_v6 = vld [vmem:[#allocation150_spill] sm:$0xff]  ;;  %v17629_v43 = vld [vmem:[#allocation79_spill] sm:$0xff]  ;;  %v4294_v12 = vrot.slane %v12538_v4, 1 }
 0x427   :  { %17605 = vst [vmem:[#allocation198_spill] sm:$0xff] %v12464_v63  ;;  %17607 = vst [vmem:[#allocation112_spill] sm:$0xff] %v12468_v44  ;;  %v12530_v10 = vmul.f32 %v12440_v1, %v17622_v6  ;;  %v12550_v6 = vmul.f32 %v12440_v1, %v17627_v21  ;;  %v17628_v53 = vld [vmem:[#allocation54_spill] sm:$0xff]  ;;  %v12558_v29 = vmul.f32 %v12440_v1, %v17629_v43  ;;  %v17631_v26 = vld [vmem:[#allocation93_spill] sm:$0xff]  ;;  %v4278_v36 = vrot.slane %v12506_v2, 1 }
 0x428   :  { %17608 = vst [vmem:[#allocation35_spill] sm:$0xff] %v12470_v35  ;;  %17609 = vst [vmem:[#allocation214_spill] sm:$0xff] %v12474_v45  ;;  %v12522_v35 = vld [vmem:[#allocation2 + $0x188] sm:$0xff]  ;;  %v17630_v32 = vld [vmem:[#allocation82_spill] sm:$0xff] }
 0x429   :  { %17610 = vst [vmem:[#allocation216_spill] sm:$0xff] %v12476_v28  ;;  %17611 = vst [vmem:[#allocation42_spill] sm:$0xff] %v12480_v60  ;;  %v17632_v24 = vld [vmem:[#allocation83_spill] sm:$0xff]  ;;  %v17634_v0 = vld [vmem:[#allocation100_spill] sm:$0xff] }
 0x42a   :  { %17613 = vst [vmem:[#allocation45_spill] sm:$0xff] %v12484_v20  ;;  %17614 = vst [vmem:[#allocation190_spill] sm:$0xff] %v12486_v42  ;;  %v17619_v42 = vld [vmem:[#allocation160_spill] sm:$0xff]  ;;  %v12570_v21 = vmul.f32 %v12440_v1, %v17632_v24  ;;  %v17633_v22 = vld [vmem:[#allocation87_spill] sm:$0xff]  ;;  %v12578_v43 = vmul.f32 %v12440_v1, %v17634_v0 }
 0x42b   :  { %17615 = vst [vmem:[#allocation165_spill] sm:$0xff] %v12492_v40  ;;  %17617 = vst [vmem:[#allocation166_spill] sm:$0xff] %v12502_v17  ;;  %v12514_v28 = vmul.f32 %v12440_v1, %v17619_v42  ;;  %v12516_v40 = vld [vmem:[#allocation2 + $0x180] sm:$0xff]  ;;  %v12526_v17 = vmul.f32 %v12522_v35, %v12440_v1  ;;  %v12534_v42 = vmul.f32 %v12440_v1, %v17623_v13  ;;  %v17635_v25 = vld [vmem:[#allocation88_spill] sm:$0xff] }
 0x42c   :  { %17620 = vst [vmem:[#allocation171_spill] sm:$0xff] %v12516_v40  ;;  %v12520_v54 = vmul.f32 %v12516_v40, %v12440_v1  ;;  %17621 = vst [vmem:[#allocation143_spill] sm:$0xff] %v12522_v35  ;;  %v17625_v40 = vld [vmem:[#allocation179_spill] sm:$0xff]  ;;  %v12546_v35 = vmul.f32 %v12440_v1, %v17626_v9  ;;  %v12554_v13 = vmul.f32 %v12440_v1, %v17628_v53  ;;  %v17636_v8 = vld [vmem:[#allocation94_spill] sm:$0xff]  ;;  %v4311_v4 = vrot.slane %v12578_v43, 1 }
 0x42d   :  { %v12542_v41 = vmul.f32 %v12440_v1, %v17625_v40  ;;  %v12562_v40 = vmul.f32 %v12440_v1, %v17630_v32  ;;  %v12566_v9 = vmul.f32 %v12440_v1, %v17631_v26  ;;  %v12574_v53 = vmul.f32 %v12440_v1, %v17633_v22  ;;  %v17637_v49 = vld [vmem:[#allocation110_spill] sm:$0xff]  ;;  %v17638_v31 = vld [vmem:[#allocation95_spill] sm:$0xff]  ;;  %v17639_v46 = vld [vmem:[#allocation101_spill] sm:$0xff] }
 0x42e   :  { %v12582_v32 = vmul.f32 %v12440_v1, %v17635_v25  ;;  %v12586_v26 = vmul.f32 %v12440_v1, %v17636_v8  ;;  %v12590_v24 = vmul.f32 %v12440_v1, %v17637_v49  ;;  %v12594_v22 = vmul.f32 %v12440_v1, %v17638_v31  ;;  %v17640_v52 = vld [vmem:[#allocation115_spill] sm:$0xff]  ;;  %v17641_v47 = vld [vmem:[#allocation102_spill] sm:$0xff]  ;;  %v17648_v30 = vld [vmem:[#allocation149_spill] sm:$0xff] }
 0x42f   :  { %v12598_v0 = vmul.f32 %v12440_v1, %v17639_v46  ;;  %v12602_v25 = vmul.f32 %v12440_v1, %v17640_v52  ;;  %v12606_v8 = vmul.f32 %v12440_v1, %v17641_v47  ;;  %v17642_v5 = vld [vmem:[#allocation106_spill] sm:$0xff]  ;;  %v17643_v56 = vld [vmem:[#allocation119_spill] sm:$0xff]  ;;  %v17649_v3 = vld [vmem:[#allocation32_spill] sm:$0xff]  ;;  %v4293_v33 = vrot.slane %v12534_v42, 1 }
 0x430   :  { %v12610_v49 = vmul.f32 %v12440_v1, %v17642_v5  ;;  %v12614_v31 = vmul.f32 %v12440_v1, %v17643_v56  ;;  %v17644_v27 = vld [vmem:[#allocation107_spill] sm:$0xff]  ;;  %v12630_v5 = vmul.f32 %v12440_v1, %v17527_v39  ;;  %v17650_v50 = vld [vmem:[#allocation206_spill] sm:$0xff]  ;;  %v17651_v18 = vld [vmem:[#allocation208_spill] sm:$0xff]  ;;  %v4304_v42 = vrot.slane %v12562_v40, 1 }
 0x431   :  { %v12618_v46 = vmul.f32 %v12440_v1, %v17644_v27  ;;  %v17645_v11 = vld [vmem:[#allocation111_spill] sm:$0xff]  ;;  %v12638_v27 = vmul.f32 %v12440_v1, %v17648_v30  ;;  %v12650_v39 = vmul.f32 %v12440_v1, %v17650_v50  ;;  %v17652_v61 = vld [vmem:[#allocation210_spill] sm:$0xff]  ;;  %v17653_v23 = vld [vmem:[#allocation212_spill] sm:$0xff]  ;;  %v12670_v50 = vmul.f32 %v12440_v1, %v17534_v34 }
 0x432   :  { %v12622_v52 = vmul.f32 %v12440_v1, %v17645_v11  ;;  %v17646_v38 = vld [vmem:[#allocation123_spill] sm:$0xff]  ;;  %v12642_v11 = vmul.f32 %v12440_v1, %v17649_v3  ;;  %v12658_v30 = vmul.f32 %v12440_v1, %v17652_v61  ;;  %v12662_v3 = vmul.f32 %v12440_v1, %v17653_v23  ;;  %v17655_v15 = vld [vmem:[#allocation218_spill] sm:$0xff] }
 0x433   :  { %v12626_v47 = vmul.f32 %v12440_v1, %v17646_v38  ;;  %v17647_v37 = vld [vmem:[#allocation135_spill] sm:$0xff]  ;;  %v12646_v38 = vmul.f32 %v12440_v1, %v17530_v58  ;;  %v12666_v58 = vmul.f32 %v12440_v1, %v17533_v48  ;;  %17654 = vst [vmem:[#allocation147_spill] sm:$0xff] %v12670_v50  ;;  %v4274_v61 = vrot.slane %v12496_v16, 1  ;;  %v17752_v16 = vld [vmem:[#allocation165_spill] sm:$0xff] }
 0x434   :  { %v12634_v56 = vmul.f32 %v12440_v1, %v17647_v37  ;;  %v12654_v37 = vmul.f32 %v12440_v1, %v17651_v18  ;;  %v12674_v18 = vmul.f32 %v12440_v1, %v17655_v15  ;;  %v4276_v23 = vrot.slane %v12500_v55, 1 }
 0x435   :  { %v4279_v48 = vrot.slane %v12510_v7, 1  ;;  %v4281_v34 = vrot.slane %v12514_v28, 1  ;;  %v4283_v50 = vrot.slane %v12520_v54, 1  ;;  %v4284_v15 = vrot.slane %v12526_v17, 1 }
 0x436   :  { %v12694_v28 = vsel %vm2005_vm5, %v4273_v57, %v4274_v61  ;;  %v12697_v54 = vsel %vm2005_vm5, %v4274_v61, %v4276_v23  ;;  %v4286_v1 = vrot.slane %v12530_v10, 1  ;;  %v4296_v57 = vrot.slane %v12542_v41, 1 }
 0x437   :  { %v12700_v17 = vsel %vm2005_vm5, %v4278_v36, %v4279_v48  ;;  %v12705_v55 = vsel %vm2005_vm5, %v4279_v48, %v4281_v34  ;;  %v12708_v2 = vsel %vm2005_vm5, %v4283_v50, %v4284_v15  ;;  %v4298_v61 = vrot.slane %v12546_v35, 1 }
 0x438   :  { %v4299_v23 = vrot.slane %v12550_v6, 1  ;;  %v4301_v36 = vrot.slane %v12554_v13, 1  ;;  %v4303_v10 = vrot.slane %v12558_v29, 1  ;;  %v4306_v48 = vrot.slane %v12566_v9, 1 }
 0x439   :  { %v4308_v34 = vrot.slane %v12570_v21, 1  ;;  %v4309_v50 = vrot.slane %v12574_v53, 1  ;;  %v4313_v41 = vrot.slane %v12582_v32, 1  ;;  %v4314_v35 = vrot.slane %v12586_v26, 1 }
 0x43a   :  { %v4316_v6 = vrot.slane %v12590_v24, 1  ;;  %v4287_v13 = vsel %vm2005_vm5, %v4284_v15, %v4286_v1  ;;  %v4318_v29 = vrot.slane %v12594_v22, 1  ;;  %v4319_v40 = vrot.slane %v12598_v0, 1 }
 0x43b   :  { %v4321_v9 = vrot.slane %v12602_v25, 1  ;;  %v4295_v21 = vsel %vm2005_vm5, %v4293_v33, %v4294_v12  ;;  %v4297_v53 = vsel %vm2005_vm5, %v4294_v12, %v4296_v57  ;;  %v4323_v43 = vrot.slane %v12606_v8, 1 }
 0x43c   :  { %v4324_v32 = vrot.slane %v12610_v49, 1  ;;  %v4300_v26 = vsel %vm2005_vm5, %v4298_v61, %v4299_v23  ;;  %v4302_v24 = vsel %vm2005_vm5, %v4299_v23, %v4301_v36  ;;  %v4305_v15 = vsel %vm2005_vm5, %v4303_v10, %v4304_v42 }
 0x43d   :  { %v4307_v22 = vsel %vm2005_vm5, %v4304_v42, %v4306_v48  ;;  %v4310_v0 = vsel %vm2005_vm5, %v4308_v34, %v4309_v50  ;;  %v4312_v25 = vsel %vm2005_vm5, %v4309_v50, %v4311_v4  ;;  %v4315_v1 = vsel %vm2005_vm5, %v4313_v41, %v4314_v35  ;;  %v17656_v41 = vld [vmem:[#allocation147_spill] sm:$0xff] }
 0x43e   :  { %v4317_v12 = vsel %vm2005_vm5, %v4314_v35, %v4316_v6  ;;  %v4320_v8 = vsel %vm2005_vm5, %v4318_v29, %v4319_v40  ;;  %v4322_v49 = vsel %vm2005_vm5, %v4319_v40, %v4321_v9  ;;  %v4326_v33 = vrot.slane %v12614_v31, 1  ;;  %v17657_v35 = vld [vmem:[#allocation62_spill] sm:$0xff]  ;;  %v17658_v6 = vld [vmem:[#allocation63_spill] sm:$0xff]  ;;  %v17659_v29 = vld [vmem:[#allocation64_spill] sm:$0xff] }
 0x43f   :  { %v4328_v57 = vrot.slane %v12618_v46, 1  ;;  %v4325_v61 = vsel %vm2005_vm5, %v4323_v43, %v4324_v32  ;;  %v4329_v23 = vrot.slane %v12622_v52, 1  ;;  %v4331_v36 = vrot.slane %v12626_v47, 1  ;;  %v17660_v40 = vld [vmem:[#allocation66_spill] sm:$0xff]  ;;  %v17661_v9 = vld [vmem:[#allocation67_spill] sm:$0xff]  ;;  %v17662_v43 = vld [vmem:[#allocation68_spill] sm:$0xff] }
 0x440   :  { %v4333_v10 = vrot.slane %v12630_v5, 1  ;;  %v4334_v42 = vrot.slane %v12634_v56, 1  ;;  %v4336_v48 = vrot.slane %v12638_v27, 1  ;;  %v4338_v34 = vrot.slane %v12642_v11, 1 }
 0x441   :  { %v4339_v50 = vrot.slane %v12646_v38, 1  ;;  %v4341_v31 = vrot.slane %v12650_v39, 1  ;;  %v4343_v46 = vrot.slane %v12654_v37, 1  ;;  %v4344_v4 = vrot.slane %v12658_v30, 1 }
 0x442   :  { %v4346_v52 = vrot.slane %v12662_v3, 1  ;;  %v4348_v47 = vrot.slane %v12666_v58, 1  ;;  %v4349_v5 = vrot.slane %v17656_v41, 1  ;;  %v4351_v56 = vrot.slane %v12674_v18, 1 }
 0x443   :  { %v4353_v27 = vrot.slane %v17657_v35, 1  ;;  %v4354_v11 = vrot.slane %v17658_v6, 1  ;;  %v4356_v38 = vrot.slane %v17659_v29, 1  ;;  %v4358_v39 = vrot.slane %v17660_v40, 1 }
 0x444   :  { %v4359_v37 = vrot.slane %v17661_v9, 1  ;;  %v4327_v30 = vsel %vm2005_vm5, %v4324_v32, %v4326_v33  ;;  %v4330_v3 = vsel %vm2005_vm5, %v4328_v57, %v4329_v23  ;;  %v4332_v58 = vsel %vm2005_vm5, %v4329_v23, %v4331_v36 }
 0x445   :  { %v4361_v41 = vrot.slane %v17662_v43, 1  ;;  %v4335_v18 = vsel %vm2005_vm5, %v4333_v10, %v4334_v42  ;;  %v4337_v35 = vsel %vm2005_vm5, %v4334_v42, %v4336_v48  ;;  %v4340_v6 = vsel %vm2005_vm5, %v4338_v34, %v4339_v50  ;;  %v17663_v10 = vld [vmem:[#allocation207_spill] sm:$0xff]  ;;  %v17665_v34 = vld [vmem:[#allocation209_spill] sm:$0xff] }
 0x446   :  { %v4342_v29 = vsel %vm2005_vm5, %v4339_v50, %v4341_v31  ;;  %v4345_v40 = vsel %vm2005_vm5, %v4343_v46, %v4344_v4  ;;  %v4347_v9 = vsel %vm2005_vm5, %v4344_v4, %v4346_v52  ;;  %v4350_v32 = vsel %vm2005_vm5, %v4348_v47, %v4349_v5  ;;  %v17669_v4 = vld [vmem:[#allocation213_spill] sm:$0xff]  ;;  %v17671_v47 = vld [vmem:[#allocation215_spill] sm:$0xff] }
 0x447   :  { %v4352_v33 = vsel %vm2005_vm5, %v4349_v5, %v4351_v56  ;;  %v4355_v57 = vsel %vm2005_vm5, %v4353_v27, %v4354_v11  ;;  %v4357_v23 = vsel %vm2005_vm5, %v4354_v11, %v4356_v38  ;;  %v4360_v36 = vsel %vm2005_vm5, %v4358_v39, %v4359_v37  ;;  %v17675_v27 = vld [vmem:[#allocation34_spill] sm:$0xff]  ;;  %v17676_v11 = vld [vmem:[#allocation44_spill] sm:$0xff]  ;;  %v17679_v39 = vld [vmem:[#allocation51_spill] sm:$0xff] }
 0x448   :  { %v12781_v42 = vadd.f32 %v12694_v28, %v17663_v10  ;;  %v4362_v48 = vsel %vm2005_vm5, %v4359_v37, %v4361_v41  ;;  %v12786_v50 = vadd.f32 %v12697_v54, %v17665_v34  ;;  %v17667_v31 = vmov %v12333_v51  ;;  %v17673_v28 = vld [vmem:[#allocation217_spill] sm:$0xff]  ;;  %v17687_v34 = vld [vmem:[#allocation170_spill] sm:$0xff] }
 0x449   :  { %v12790_v46 = vadd.f32 %v12700_v17, %v17667_v31  ;;  %v12794_v52 = vadd.f32 %v12705_v55, %v17669_v4  ;;  %v12798_v5 = vadd.f32 %v12708_v2, %v17671_v47  ;;  %v12801_v56 = vadd.f32 %v4287_v13, %v17673_v28  ;;  %v17678_v54 = vld [vmem:[#allocation37_spill] sm:$0xff]  ;;  %v17681_v17 = vld [vmem:[#allocation36_spill] sm:$0xff]  ;;  %v17683_v55 = vld [vmem:[#allocation78_spill] sm:$0xff] }
 0x44a   :  { %17664 = vst [vmem:[#allocation148_spill] sm:$0xff] %v12781_v42  ;;  %17666 = vst [vmem:[#allocation152_spill] sm:$0xff] %v12786_v50  ;;  %v12805_v38 = vadd.f32 %v17676_v11, %v17675_v27  ;;  %v12809_v37 = vadd.f32 %v17679_v39, %v17678_v54  ;;  %v12812_v43 = vadd.f32 %v4295_v21, %v17681_v17  ;;  %v17685_v10 = vld [vmem:[#allocation81_spill] sm:$0xff]  ;;  %v17689_v31 = vld [vmem:[#allocation175_spill] sm:$0xff] }
 0x44b   :  { %17668 = vst [vmem:[#allocation153_spill] sm:$0xff] %v12790_v46  ;;  %17670 = vst [vmem:[#allocation157_spill] sm:$0xff] %v12794_v52  ;;  %v12815_v41 = vadd.f32 %v4297_v53, %v17683_v55  ;;  %v12818_v2 = vadd.f32 %v4300_v26, %v17685_v10  ;;  %v12821_v13 = vadd.f32 %v4302_v24, %v17687_v34  ;;  %v17691_v47 = vld [vmem:[#allocation176_spill] sm:$0xff]  ;;  %v17693_v27 = vld [vmem:[#allocation182_spill] sm:$0xff] }
 0x44c   :  { %17672 = vst [vmem:[#allocation120_spill] sm:$0xff] %v12798_v5  ;;  %17674 = vst [vmem:[#allocation193_spill] sm:$0xff] %v12801_v56  ;;  %v12824_v4 = vadd.f32 %v4305_v15, %v17689_v31  ;;  %v12827_v28 = vadd.f32 %v4307_v22, %v17691_v47  ;;  %v12830_v11 = vadd.f32 %v4310_v0, %v17693_v27  ;;  %v17695_v21 = vld [vmem:[#allocation187_spill] sm:$0xff]  ;;  %v17697_v53 = vld [vmem:[#allocation188_spill] sm:$0xff] }
 0x44d   :  { %17677 = vst [vmem:[#allocation200_spill] sm:$0xff] %v12805_v38  ;;  %17680 = vst [vmem:[#allocation186_spill] sm:$0xff] %v12809_v37  ;;  %v12833_v54 = vadd.f32 %v4312_v25, %v17695_v21  ;;  %v12836_v39 = vadd.f32 %v4315_v1, %v17697_v53  ;;  %v17699_v26 = vld [vmem:[#allocation192_spill] sm:$0xff]  ;;  %v17701_v24 = vld [vmem:[#allocation197_spill] sm:$0xff] }
 0x44e   :  { %17682 = vst [vmem:[#allocation58_spill] sm:$0xff] %v12812_v43  ;;  %17684 = vst [vmem:[#allocation39_spill] sm:$0xff] %v12815_v41  ;;  %v12839_v17 = vadd.f32 %v4317_v12, %v17699_v26  ;;  %v12842_v55 = vadd.f32 %v4320_v8, %v17701_v24  ;;  %v17703_v15 = vld [vmem:[#allocation201_spill] sm:$0xff]  ;;  %v5596_v34 = vld [vmem:[#allocation15 + $0x8] sm:$0xff] }
 0x44f   :  { %17686 = vst [vmem:[#allocation59_spill] sm:$0xff] %v12818_v2  ;;  %17688 = vst [vmem:[#allocation56_spill] sm:$0xff] %v12821_v13  ;;  %v12845_v10 = vadd.f32 %v4322_v49, %v17703_v15  ;;  %v5595_v22 = vld [vmem:[#allocation15] sm:$0xff]  ;;  %v17707_v47 = vld [vmem:[#allocation203_spill] sm:$0xff] }
 0x450   :  { %17690 = vst [vmem:[#allocation60_spill] sm:$0xff] %v12824_v4  ;;  %17692 = vst [vmem:[#allocation57_spill] sm:$0xff] %v12827_v28  ;;  %v17705_v31 = vld [vmem:[#allocation202_spill] sm:$0xff]  ;;  %v12851_v25 = vadd.f32 %v4327_v30, %v17707_v47  ;;  %v17709_v27 = vld [vmem:[#allocation204_spill] sm:$0xff] }
 0x451   :  { %17694 = vst [vmem:[#allocation61_spill] sm:$0xff] %v12830_v11  ;;  %17696 = vst [vmem:[#allocation129_spill] sm:$0xff] %v12833_v54  ;;  %v12848_v0 = vadd.f32 %v4325_v61, %v17705_v31  ;;  %v12854_v1 = vadd.f32 %v4330_v3, %v17709_v27  ;;  %v17711_v21 = vld [vmem:[#allocation205_spill] sm:$0xff]  ;;  %v17713_v53 = vld [vmem:[#allocation96_spill] sm:$0xff] }
 0x452   :  { %17698 = vst [vmem:[#allocation137_spill] sm:$0xff] %v12836_v39  ;;  %17700 = vst [vmem:[#allocation146_spill] sm:$0xff] %v12839_v17  ;;  %v12857_v12 = vadd.f32 %v4332_v58, %v17711_v21  ;;  %v12860_v8 = vadd.f32 %v4335_v18, %v17713_v53  ;;  %v17715_v26 = vld [vmem:[#allocation97_spill] sm:$0xff]  ;;  %v17717_v24 = vld [vmem:[#allocation103_spill] sm:$0xff]  ;;  %v7272_v18 = vpack.c.bf16 %v5596_v34, %v5595_v22 }
 0x453   :  { %17702 = vst [vmem:[#allocation151_spill] sm:$0xff] %v12842_v55  ;;  %17704 = vst [vmem:[#allocation154_spill] sm:$0xff] %v12845_v10  ;;  %v12863_v49 = vadd.f32 %v4337_v35, %v17715_v26  ;;  %v12866_v15 = vadd.f32 %v4340_v6, %v17717_v24  ;;  %v17719_v61 = vld [vmem:[#allocation104_spill] sm:$0xff]  ;;  %v17723_v3 = vld [vmem:[#allocation109_spill] sm:$0xff] }
 0x454   :  { %17706 = vst [vmem:[#allocation155_spill] sm:$0xff] %v12848_v0  ;;  %17708 = vst [vmem:[#allocation159_spill] sm:$0xff] %v12851_v25  ;;  %v12869_v31 = vadd.f32 %v4342_v29, %v17719_v61  ;;  %v17721_v30 = vld [vmem:[#allocation108_spill] sm:$0xff]  ;;  %v12875_v27 = vadd.f32 %v4347_v9, %v17723_v3  ;;  %v17725_v58 = vld [vmem:[#allocation113_spill] sm:$0xff]  ;;  %7273 = vmatprep.subr.bf16.mxu1 %v7272_v18 }
 0x455   :  { %17710 = vst [vmem:[#allocation160_spill] sm:$0xff] %v12854_v1  ;;  %17712 = vst [vmem:[#allocation150_spill] sm:$0xff] %v12857_v12  ;;  %v12872_v47 = vadd.f32 %v4345_v40, %v17721_v30  ;;  %v12878_v21 = vadd.f32 %v4350_v32, %v17725_v58  ;;  %v17727_v53 = vld [vmem:[#allocation114_spill] sm:$0xff]  ;;  %v17729_v35 = vld [vmem:[#allocation117_spill] sm:$0xff]  ;;  %7275 = vmatpush3.bf16.msra.mxu1 %v7272_v18 }
 0x456   :  { %17714 = vst [vmem:[#allocation172_spill] sm:$0xff] %v12860_v8  ;;  %17716 = vst [vmem:[#allocation178_spill] sm:$0xff] %v12863_v49  ;;  %v12881_v7 = vadd.f32 %v4352_v33, %v17727_v53  ;;  %v12884_v26 = vadd.f32 %v4355_v57, %v17729_v35  ;;  %v17731_v6 = vld [vmem:[#allocation118_spill] sm:$0xff]  ;;  %v17733_v29 = vld [vmem:[#allocation191_spill] sm:$0xff] }
 0x457   :  { %17718 = vst [vmem:[#allocation179_spill] sm:$0xff] %v12866_v15  ;;  %17720 = vst [vmem:[#allocation184_spill] sm:$0xff] %v12869_v31  ;;  %v12887_v24 = vadd.f32 %v4357_v23, %v17731_v6  ;;  %v12890_v61 = vadd.f32 %v4360_v36, %v17733_v29  ;;  %v17735_v40 = vld [vmem:[#allocation195_spill] sm:$0xff]  ;;  %v12895_v9 = vld [vmem:[#allocation11 + $0x8] ss:$0 sm:$0xff] }
 0x458   :  { %17722 = vst [vmem:[#allocation46_spill] sm:$0xff] %v12872_v47  ;;  %17724 = vst [vmem:[#allocation54_spill] sm:$0xff] %v12875_v27  ;;  %v12893_v30 = vadd.f32 %v4362_v48, %v17735_v40  ;;  %v7375_v32 = vld [vmem:[#allocation2 + $0xe8] sm:$0x3]  ;;  %v7376_v33 = vld [vmem:[#allocation2 + $0x100] sm:$0x3] }
 0x459   :  { %17726 = vst [vmem:[#allocation79_spill] sm:$0xff] %v12878_v21  ;;  %17728 = vst [vmem:[#allocation82_spill] sm:$0xff] %v12881_v7  ;;  %v12898_v22 = vmul.f32 %v7375_v32, %v12895_v9  ;;  %v12901_v34 = vmul.f32 %v7376_v33, %v12895_v9  ;;  %v7377_v57 = vld [vmem:[#allocation2 + $0x118] sm:$0x3]  ;;  %v17740_v36 = vld [vmem:[#allocation71_spill] sm:$0xff] }
 0x45a   :  { %17730 = vst [vmem:[#allocation93_spill] sm:$0xff] %v12884_v26  ;;  %17732 = vst [vmem:[#allocation83_spill] sm:$0xff] %v12887_v24  ;;  %v12904_v23 = vmul.f32 %v7377_v57, %v12895_v9  ;;  %v12908_v3 = vmul.f32 %v12895_v9, %v17740_v36  ;;  %v17742_v48 = vld [vmem:[#allocation158_spill] sm:$0xff]  ;;  %v7378_v53 = vld [vmem:[#allocation2 + $0x130] sm:$0x3] }
 0x45b   :  { %17734 = vst [vmem:[#allocation87_spill] sm:$0xff] %v12890_v61  ;;  %17736 = vst [vmem:[#allocation100_spill] sm:$0xff] %v12893_v30  ;;  %v12912_v58 = vmul.f32 %v12895_v9, %v17742_v48  ;;  %v12915_v35 = vmul.f32 %v7378_v53, %v12895_v9  ;;  %v17745_v6 = vld [vmem:[#allocation35_spill] sm:$0xff]  ;;  %v17747_v40 = vld [vmem:[#allocation216_spill] sm:$0xff]  ;;  %v12934_v53 = vmul.f32 %v12895_v9, %v17752_v16 }
 0x45c   :  { %17737 = vst [vmem:[#allocation88_spill] sm:$0xff] %v12898_v22  ;;  %17738 = vst [vmem:[#allocation94_spill] sm:$0xff] %v12901_v34  ;;  %v12919_v29 = vmul.f32 %v12895_v9, %v17745_v6  ;;  %v12923_v32 = vmul.f32 %v12895_v9, %v17747_v40  ;;  %v7379_v33 = vld [vmem:[#allocation2 + $0x148] sm:$0x3]  ;;  %v17750_v36 = vld [vmem:[#allocation190_spill] sm:$0xff] }
 0x45d   :  { %17739 = vst [vmem:[#allocation110_spill] sm:$0xff] %v12904_v23  ;;  %17741 = vst [vmem:[#allocation95_spill] sm:$0xff] %v12908_v3  ;;  %v12926_v57 = vmul.f32 %v7379_v33, %v12895_v9  ;;  %v12930_v48 = vmul.f32 %v12895_v9, %v17750_v36  ;;  %v7380_v51 = vld [vmem:[#allocation2 + $0x160] sm:$0x3]  ;;  %v7381_v30 = vld [vmem:[#allocation2 + $0x170] sm:$0xff] }
 0x45e   :  { %17743 = vst [vmem:[#allocation101_spill] sm:$0xff] %v12912_v58  ;;  %17744 = vst [vmem:[#allocation115_spill] sm:$0xff] %v12915_v35  ;;  %v12937_v6 = vmul.f32 %v7380_v51, %v12895_v9  ;;  %v17754_v18 = vld [vmem:[#allocation166_spill] sm:$0xff]  ;;  %v12944_v33 = vmul.f32 %v7381_v30, %v12895_v9  ;;  %v7382_v61 = vld [vmem:[#allocation2 + $0x178] sm:$0x3] }
 0x45f   :  { %17746 = vst [vmem:[#allocation102_spill] sm:$0xff] %v12919_v29  ;;  %17748 = vst [vmem:[#allocation106_spill] sm:$0xff] %v12923_v32  ;;  %v12941_v40 = vmul.f32 %v12895_v9, %v17754_v18  ;;  %v12947_v36 = vmul.f32 %v7382_v61, %v12895_v9  ;;  %v17755_v24 = vld [vmem:[#allocation171_spill] sm:$0xff]  ;;  %v7383_v7 = vld [vmem:[#allocation2 + $0x190] sm:$0x3] }
 0x460   :  { %17749 = vst [vmem:[#allocation119_spill] sm:$0xff] %v12926_v57  ;;  %17751 = vst [vmem:[#allocation107_spill] sm:$0xff] %v12930_v48  ;;  %v12951_v16 = vmul.f32 %v12895_v9, %v17755_v24  ;;  %v17757_v26 = vld [vmem:[#allocation143_spill] sm:$0xff]  ;;  %v12958_v18 = vmul.f32 %v7383_v7, %v12895_v9  ;;  %v7384_v21 = vld [vmem:[#allocation2 + $0x1e0] sm:$0xff] }
 0x461   :  { %17753 = vst [vmem:[#allocation111_spill] sm:$0xff] %v12934_v53  ;;  %v12955_v51 = vmul.f32 %v12895_v9, %v17757_v26  ;;  %v12961_v30 = vmul.f32 %v7384_v21, %v12895_v9  ;;  %v7385_v27 = vld [vmem:[#allocation2 + $0x1e8] sm:$0xff]  ;;  %v7386_v47 = vld [vmem:[#allocation2 + $0x1f0] sm:$0x3]  ;;  %v7387_v31 = vld [vmem:[#allocation2 + $0x1f8] sm:$0xff] }
 0x462   :  { %17756 = vst [vmem:[#allocation123_spill] sm:$0xff] %v12951_v16  ;;  %17759 = vst [vmem:[#allocation149_spill] sm:$0xff] %v12958_v18  ;;  %v12964_v61 = vmul.f32 %v7385_v27, %v12895_v9  ;;  %v12967_v24 = vmul.f32 %v7386_v47, %v12895_v9  ;;  %v12970_v26 = vmul.f32 %v7387_v31, %v12895_v9  ;;  %v7388_v15 = vld [vmem:[#allocation2 + $0x200] sm:$0xff]  ;;  %v7389_v49 = vld [vmem:[#allocation2 + $0x208] sm:$0x3] }
 0x463   :  { %17758 = vst [vmem:[#allocation135_spill] sm:$0xff] %v12955_v51  ;;  %17760 = vst [vmem:[#allocation32_spill] sm:$0xff] %v12961_v30  ;;  %v12973_v7 = vmul.f32 %v7388_v15, %v12895_v9  ;;  %v12976_v21 = vmul.f32 %v7389_v49, %v12895_v9  ;;  %v7390_v8 = vld [vmem:[#allocation2 + $0x210] sm:$0xff]  ;;  %v7391_v12 = vld [vmem:[#allocation2 + $0x218] sm:$0xff] }
 0x464   :  { %17761 = vst [vmem:[#allocation206_spill] sm:$0xff] %v12964_v61  ;;  %17762 = vst [vmem:[#allocation208_spill] sm:$0xff] %v12967_v24  ;;  %v12979_v27 = vmul.f32 %v7390_v8, %v12895_v9  ;;  %v12982_v47 = vmul.f32 %v7391_v12, %v12895_v9  ;;  %v7392_v1 = vld [vmem:[#allocation2 + $0x220] sm:$0x3]  ;;  %v7393_v25 = vld [vmem:[#allocation2 + $0x228] sm:$0xff] }
 0x465   :  { %17763 = vst [vmem:[#allocation210_spill] sm:$0xff] %v12970_v26  ;;  %17764 = vst [vmem:[#allocation212_spill] sm:$0xff] %v12973_v7  ;;  %v12985_v31 = vmul.f32 %v7392_v1, %v12895_v9  ;;  %v12988_v15 = vmul.f32 %v7393_v25, %v12895_v9  ;;  %v7394_v0 = vld [vmem:[#allocation2 + $0x230] sm:$0xff]  ;;  %v7395_v10 = vld [vmem:[#allocation2 + $0x238] sm:$0x3] }
 0x466   :  { %17765 = vst [vmem:[#allocation218_spill] sm:$0xff] %v12976_v21  ;;  %17766 = vst [vmem:[#allocation147_spill] sm:$0xff] %v12979_v27  ;;  %v12991_v49 = vmul.f32 %v7394_v0, %v12895_v9  ;;  %v12994_v8 = vmul.f32 %v7395_v10, %v12895_v9  ;;  %v7396_v55 = vld [vmem:[#allocation2 + $0x240] sm:$0xff]  ;;  %v7397_v17 = vld [vmem:[#allocation2 + $0x248] sm:$0xff] }
 0x467   :  { %17767 = vst [vmem:[#allocation62_spill] sm:$0xff] %v12982_v47  ;;  %17768 = vst [vmem:[#allocation63_spill] sm:$0xff] %v12985_v31  ;;  %v12997_v12 = vmul.f32 %v7396_v55, %v12895_v9  ;;  %v13000_v1 = vmul.f32 %v7397_v17, %v12895_v9  ;;  %v7398_v39 = vld [vmem:[#allocation2 + $0x250] sm:$0x3]  ;;  %v7399_v54 = vld [vmem:[#allocation2 + $0x258] sm:$0xff] }
 0x468   :  { %17769 = vst [vmem:[#allocation64_spill] sm:$0xff] %v12988_v15  ;;  %17770 = vst [vmem:[#allocation66_spill] sm:$0xff] %v12991_v49  ;;  %v13003_v25 = vmul.f32 %v7398_v39, %v12895_v9  ;;  %v13006_v0 = vmul.f32 %v7399_v54, %v12895_v9  ;;  %v7400_v11 = vld [vmem:[#allocation2 + $0x260] sm:$0xff]  ;;  %v7401_v28 = vld [vmem:[#allocation2 + $0x268] sm:$0x3] }
 0x469   :  { %17771 = vst [vmem:[#allocation67_spill] sm:$0xff] %v12994_v8  ;;  %17772 = vst [vmem:[#allocation68_spill] sm:$0xff] %v12997_v12  ;;  %v13009_v10 = vmul.f32 %v7400_v11, %v12895_v9  ;;  %v13012_v55 = vmul.f32 %v7401_v28, %v12895_v9  ;;  %v7402_v4 = vld [vmem:[#allocation2 + $0x270] sm:$0xff]  ;;  %v7403_v13 = vld [vmem:[#allocation2 + $0x278] sm:$0xff] }
 0x46a   :  { %17773 = vst [vmem:[#allocation207_spill] sm:$0xff] %v13000_v1  ;;  %17774 = vst [vmem:[#allocation209_spill] sm:$0xff] %v13003_v25  ;;  %v13015_v17 = vmul.f32 %v7402_v4, %v12895_v9  ;;  %v13018_v39 = vmul.f32 %v7403_v13, %v12895_v9  ;;  %v7404_v25 = vld [vmem:[#allocation2 + $0x280] sm:$0x3]  ;;  %v13107_v2 = vld [vmem:[#allocation2 + $0x90] sm:$0xff] }
 0x46b   :  { %17775 = vst [vmem:[#allocation211_spill] sm:$0xff] %v13006_v0  ;;  %17776 = vst [vmem:[#allocation213_spill] sm:$0xff] %v13009_v10  ;;  %v13021_v54 = vmul.f32 %v7404_v25, %v12895_v9  ;;  %v7405_v0 = vld [vmem:[#allocation2 + $0x288] sm:$0xff]  ;;  %v7406_v10 = vld [vmem:[#allocation2 + $0x290] sm:$0xff] }
 0x46c   :  { %17777 = vst [vmem:[#allocation215_spill] sm:$0xff] %v13012_v55  ;;  %17778 = vst [vmem:[#allocation217_spill] sm:$0xff] %v13015_v17  ;;  %v13024_v11 = vmul.f32 %v7405_v0, %v12895_v9  ;;  %v13027_v28 = vmul.f32 %v7406_v10, %v12895_v9  ;;  %v7407_v55 = vld [vmem:[#allocation2 + $0x298] sm:$0x3]  ;;  %v7408_v17 = vld [vmem:[#allocation2 + $0x2a0] sm:$0xff] }
 0x46d   :  { %17779 = vst [vmem:[#allocation34_spill] sm:$0xff] %v13018_v39  ;;  %17780 = vst [vmem:[#allocation44_spill] sm:$0xff] %v13021_v54  ;;  %v13030_v4 = vmul.f32 %v7407_v55, %v12895_v9  ;;  %v13033_v13 = vmul.f32 %v7408_v17, %v12895_v9  ;;  %v7409_v39 = vld [vmem:[#allocation2 + $0x2a8] sm:$0xff]  ;;  %v7410_v54 = vld [vmem:[#allocation2 + $0x2b0] sm:$0x3] }
 0x46e   :  { %17781 = vst [vmem:[#allocation37_spill] sm:$0xff] %v13024_v11  ;;  %17782 = vst [vmem:[#allocation51_spill] sm:$0xff] %v13027_v28  ;;  %v13036_v25 = vmul.f32 %v7409_v39, %v12895_v9  ;;  %v13039_v0 = vmul.f32 %v7410_v54, %v12895_v9  ;;  %v7411_v11 = vld [vmem:[#allocation2 + $0x2b8] sm:$0xff]  ;;  %v7412_v28 = vld [vmem:[#allocation2 + $0x2c0] sm:$0xff] }
 0x46f   :  { %17783 = vst [vmem:[#allocation36_spill] sm:$0xff] %v13030_v4  ;;  %17784 = vst [vmem:[#allocation78_spill] sm:$0xff] %v13033_v13  ;;  %v13042_v10 = vmul.f32 %v7411_v11, %v12895_v9  ;;  %v13045_v55 = vmul.f32 %v7412_v28, %v12895_v9  ;;  %v7413_v4 = vld [vmem:[#allocation2 + $0x2c8] sm:$0x3]  ;;  %v7414_v13 = vld [vmem:[#allocation2 + $0x2d0] sm:$0xff] }
 0x470   :  { %17785 = vst [vmem:[#allocation81_spill] sm:$0xff] %v13036_v25  ;;  %17786 = vst [vmem:[#allocation170_spill] sm:$0xff] %v13039_v0  ;;  %v13048_v17 = vmul.f32 %v7413_v4, %v12895_v9  ;;  %v13051_v39 = vmul.f32 %v7414_v13, %v12895_v9  ;;  %v7415_v25 = vld [vmem:[#allocation2 + $0x2d8] sm:$0xff]  ;;  %v7416_v0 = vld [vmem:[#allocation2 + $0x2e0] sm:$0x3] }
 0x471   :  { %17787 = vst [vmem:[#allocation175_spill] sm:$0xff] %v13042_v10  ;;  %17788 = vst [vmem:[#allocation176_spill] sm:$0xff] %v13045_v55  ;;  %v13054_v54 = vmul.f32 %v7415_v25, %v12895_v9  ;;  %v13057_v11 = vmul.f32 %v7416_v0, %v12895_v9  ;;  %v7417_v10 = vld [vmem:[#allocation2 + $0x2e8] sm:$0xff]  ;;  %v7418_v55 = vld [vmem:[#allocation2 + $0x2f0] sm:$0xff]  ;;  %v4761_v25 = vrot.slane %v12937_v6, 2  ;;  %v4764_v0 = vrot.slane %v12944_v33, 2 }
 0x472   :  { %17789 = vst [vmem:[#allocation182_spill] sm:$0xff] %v13048_v17  ;;  %17790 = vst [vmem:[#allocation187_spill] sm:$0xff] %v13051_v39  ;;  %v13060_v28 = vmul.f32 %v7417_v10, %v12895_v9  ;;  %v13063_v4 = vmul.f32 %v7418_v55, %v12895_v9  ;;  %v7419_v17 = vld [vmem:[#allocation2 + $0x2f8] sm:$0x3]  ;;  %v13073_v10 = vld [vmem:[#allocation2 + $0x48] sm:$0xff] }
 0x473   :  { %17791 = vst [vmem:[#allocation188_spill] sm:$0xff] %v13054_v54  ;;  %17792 = vst [vmem:[#allocation192_spill] sm:$0xff] %v13057_v11  ;;  %v13066_v13 = vmul.f32 %v7419_v17, %v12895_v9  ;;  %v4763_v54 = vrot.slane %v12941_v40, 2  ;;  %v4766_v11 = vrot.slane %v12947_v36, 2  ;;  %v13077_v55 = vld [vmem:[#allocation2 + $0x60] sm:$0xff]  ;;  %v13083_v39 = vld [vmem:[#allocation2 + $0x18] sm:$0xff] }
 0x474   :  { %17793 = vst [vmem:[#allocation197_spill] sm:$0xff] %v13060_v28  ;;  %17794 = vst [vmem:[#allocation201_spill] sm:$0xff] %v13063_v4  ;;  %v13075_v28 = vld [vmem:[#allocation2 + $0x50] sm:$0xff]  ;;  %v13085_v40 = vld [vmem:[#allocation2 + $0x68] sm:$0xff]  ;;  %v17805_v4 = vrot.slane %v12934_v53, 2 }
 0x475   :  { %17795 = vst [vmem:[#allocation202_spill] sm:$0xff] %v13066_v13  ;;  %17796 = vst [vmem:[#allocation203_spill] sm:$0xff] %v13073_v10  ;;  %v13087_v33 = vld [vmem:[#allocation2 + $0x78] sm:$0xff]  ;;  %v13093_v41 = vld [vmem:[#allocation2 + $0x20] sm:$0xff]  ;;  %v13115_v6 = vsel %vm2491_vm6, %v4763_v54, %v4764_v0  ;;  %v13118_v1 = vsel %vm2491_vm6, %v4764_v0, %v4766_v11 }
 0x476   :  { %17797 = vst [vmem:[#allocation204_spill] sm:$0xff] %v13075_v28  ;;  %17798 = vst [vmem:[#allocation205_spill] sm:$0xff] %v13077_v55  ;;  %v13095_v9 = vld [vmem:[#allocation2 + $0x30] sm:$0xff]  ;;  %v13101_v43 = vld [vmem:[#allocation2] sm:$0xff]  ;;  %v13112_v37 = vsel %vm2491_vm6, %v17805_v4, %v4761_v25 }
 0x477   :  { %17799 = vst [vmem:[#allocation96_spill] sm:$0xff] %v13085_v40  ;;  %17800 = vst [vmem:[#allocation97_spill] sm:$0xff] %v13087_v33  ;;  %v13103_v36 = vld [vmem:[#allocation2 + $0x38] sm:$0xff]  ;;  %v13105_v13 = vld [vmem:[#allocation2 + $0x80] sm:$0xff] }
 0x478   :  { %17801 = vst [vmem:[#allocation103_spill] sm:$0xff] %v13095_v9  ;;  %17802 = vst [vmem:[#allocation104_spill] sm:$0xff] %v13103_v36  ;;  %v13120_v12 = vld [vmem:[#allocation2 + $0x8] sm:$0xff]  ;;  %v13125_v49 = vld [vmem:[#allocation2 + $0x10] sm:$0x3] }
 0x479   :  { %17803 = vst [vmem:[#allocation108_spill] sm:$0xff] %v13105_v13  ;;  %17804 = vst [vmem:[#allocation109_spill] sm:$0xff] %v13107_v2  ;;  %v7420_v17 = vld [vmem:[#allocation11] ss:$0 sm:$0xff]  ;;  %v13153_v5 = vld [vmem:[#allocation2 + $0x40] sm:$0x3] }
 0x47a   :  { %17806 = vst [vmem:[#allocation113_spill] sm:$0xff] %v13112_v37  ;;  %17807 = vst [vmem:[#allocation114_spill] sm:$0xff] %v13115_v6  ;;  %v13123_v8 = vmul.f32 %v7420_v17, %v13101_v43  ;;  %v13128_v38 = vmul.f32 %v7420_v17, %v13120_v12  ;;  %v13131_v4 = vmul.f32 %v7420_v17, %v13083_v39  ;;  %v13139_v25 = vld [vmem:[#allocation2 + $0x28] sm:$0x3]  ;;  %v13155_v47 = vld [vmem:[#allocation2 + $0x58] sm:$0x3] }
 0x47b   :  { %17808 = vst [vmem:[#allocation117_spill] sm:$0xff] %v13118_v1  ;;  %v13134_v54 = vmul.f32 %v7420_v17, %v13093_v41  ;;  %v13137_v11 = vmul.f32 %v7420_v17, %v13095_v9  ;;  %17809 = vst [vmem:[#allocation118_spill] sm:$0xff] %v13139_v25  ;;  %v13142_v0 = vmul.f32 %v7420_v17, %v13103_v36  ;;  %v13169_v6 = vld [vmem:[#allocation2 + $0x70] sm:$0x3]  ;;  %v7421_v46 = vld [vmem:[#allocation11 + $0x1] ss:$0 sm:$0xff] }
 0x47c   :  { %v13145_v56 = vmul.f32 %v7420_v17, %v13073_v10  ;;  %v13148_v15 = vmul.f32 %v7420_v17, %v13075_v28  ;;  %v13151_v31 = vmul.f32 %v7420_v17, %v13077_v55  ;;  %17810 = vst [vmem:[#allocation191_spill] sm:$0xff] %v13153_v5  ;;  %17811 = vst [vmem:[#allocation195_spill] sm:$0xff] %v13155_v47  ;;  %v13175_v26 = vld [vmem:[#allocation2 + $0x98] sm:$0xff] }
 0x47d   :  { %v13158_v1 = vmul.f32 %v7420_v17, %v13085_v40  ;;  %v13161_v52 = vmul.f32 %v7420_v17, %v13087_v33  ;;  %v13164_v27 = vmul.f32 %v7420_v17, %v13105_v13  ;;  %v13167_v21 = vmul.f32 %v7420_v17, %v13107_v2  ;;  %17812 = vst [vmem:[#allocation71_spill] sm:$0xff] %v13169_v6 }
 0x47e   :  { %v1813_v7 = vmul.f32 %v7421_v46, %v13101_v43  ;;  %v1814_v30 = vmul.f32 %v7421_v46, %v13120_v12  ;;  %v1815_v37 = vmul.f32 %v7421_v46, %v13125_v49  ;;  %v1816_v50 = vmul.f32 %v7421_v46, %v13083_v39  ;;  %17813 = vst [vmem:[#allocation158_spill] sm:$0xff] %v13175_v26 }
 0x47f   :  { %v1817_v24 = vmul.f32 %v7421_v46, %v13093_v41  ;;  %v1818_v42 = vmul.f32 %v7421_v46, %v13139_v25  ;;  %v1819_v48 = vmul.f32 %v7421_v46, %v13095_v9  ;;  %v1820_v53 = vmul.f32 %v7421_v46, %v13103_v36 }
 0x480   :  { %v1821_v18 = vmul.f32 %v7421_v46, %v13153_v5  ;;  %v1822_v57 = vmul.f32 %v7421_v46, %v13073_v10  ;;  %v1823_v16 = vmul.f32 %v7421_v46, %v13075_v28  ;;  %v1824_v51 = vmul.f32 %v7421_v46, %v13155_v47 }
 0x481   :  { %v1825_v29 = vmul.f32 %v7421_v46, %v13077_v55  ;;  %v1826_v32 = vmul.f32 %v7421_v46, %v13085_v40  ;;  %v1827_v61 = vmul.f32 %v7421_v46, %v13169_v6  ;;  %v1828_v35 = vmul.f32 %v7421_v46, %v13087_v33 }
 0x482   :  { %v1829_v23 = vmul.f32 %v7421_v46, %v13105_v13  ;;  %v1831_v58 = vmul.f32 %v7421_v46, %v13107_v2  ;;  %v1832_v3 = vmul.f32 %v7421_v46, %v13175_v26  ;;  %v2006_v34 = vrot.slane %v1813_v7, 1  ;;  %v13193_v46 = vld [vmem:[#allocation2 + $0xa8] sm:$0xff] }
 0x483   :  { %v2007_v22 = vrot.slane %v1814_v30, 1  ;;  %v2009_v20 = vrot.slane %v1815_v37, 1  ;;  %v2011_v45 = vrot.slane %v1816_v50, 1  ;;  %v2012_v60 = vrot.slane %v1817_v24, 1  ;;  %17814 = vst [vmem:[#allocation35_spill] sm:$0xff] %v13193_v46 }
 0x484   :  { %v2014_v62 = vrot.slane %v1818_v42, 1  ;;  %v2016_v44 = vrot.slane %v1819_v48, 1  ;;  %v2017_v14 = vrot.slane %v1820_v53, 1  ;;  %v2019_v63 = vrot.slane %v1821_v18, 1  ;;  %v17823_v18 = vld [vmem:[#allocation98_spill] sm:$0xff] }
 0x485   :  { %v2021_v19 = vrot.slane %v1822_v57, 1  ;;  %v2022_v59 = vrot.slane %v1823_v16, 1  ;;  %v2024_v6 = vrot.slane %v1824_v51, 1  ;;  %v2026_v40 = vrot.slane %v1825_v29, 1 }
 0x486   :  { %v2027_v33 = vrot.slane %v1826_v32, 1  ;;  %v2029_v55 = vrot.slane %v1827_v61, 1  ;;  %v2031_v13 = vrot.slane %v1828_v35, 1  ;;  %v2032_v47 = vrot.slane %v1829_v23, 1 }
 0x487   :  { %v1693_v2 = vmul.f32 %v7420_v17, %v13175_v26  ;;  %v1694_v37 = vmul.f32 %v13193_v46, %v7420_v17  ;;  %v2036_v50 = vrot.slane %v1831_v58, 1  ;;  %v2037_v30 = vrot.slane %v1832_v3, 1  ;;  %v17815_v58 = vld [vmem:[#allocation85_spill] sm:$0xff] }
 0x488   :  { %v2008_v42 = vsel %vm2005_vm5, %v2006_v34, %v2007_v22  ;;  %v2010_v48 = vsel %vm2005_vm5, %v2007_v22, %v2009_v20  ;;  %v2013_v57 = vsel %vm2005_vm5, %v2011_v45, %v2012_v60  ;;  %v2015_v29 = vsel %vm2005_vm5, %v2012_v60, %v2014_v62  ;;  %v17817_v60 = vld [vmem:[#allocation90_spill] sm:$0xff]  ;;  %v17821_v22 = vld [vmem:[#allocation91_spill] sm:$0xff] }
 0x489   :  { %v2018_v32 = vsel %vm2005_vm5, %v2016_v44, %v2017_v14  ;;  %v2020_v23 = vsel %vm2005_vm5, %v2017_v14, %v2019_v63  ;;  %v2023_v35 = vsel %vm2005_vm5, %v2021_v19, %v2022_v59  ;;  %v2025_v53 = vsel %vm2005_vm5, %v2022_v59, %v2024_v6  ;;  %v17819_v63 = vld [vmem:[#allocation92_spill] sm:$0xff] }
 0x48a   :  { %v2028_v16 = vsel %vm2005_vm5, %v2026_v40, %v2027_v33  ;;  %v2030_v3 = vsel %vm2005_vm5, %v2027_v33, %v2029_v55  ;;  %v2033_v34 = vsel %vm2005_vm5, %v2031_v13, %v2032_v47  ;;  %v17816_v20 = vrot.slane %v17815_v58, 1  ;;  %v17826_v13 = vld [vmem:[#allocation105_spill] sm:$0xff]  ;;  %v17828_v55 = vld [vmem:[#allocation99_spill] sm:$0xff] }
 0x48b   :  { %v2038_v62 = vsel %vm2005_vm5, %v2036_v50, %v2037_v30  ;;  %v17818_v44 = vrot.slane %v17817_v60, 1  ;;  %v17820_v19 = vrot.slane %v17819_v63, 1  ;;  %v17822_v59 = vrot.slane %v17821_v22, 1 }
 0x48c   :  { %v2035_v45 = vsel %vm2005_vm5, %v2032_v47, %v17816_v20  ;;  %v17824_v61 = vrot.slane %v17823_v18, 1  ;;  %v17827_v47 = vrot.slane %v17826_v13, 1  ;;  %v17829_v17 = vrot.slane %v17828_v55, 1 }
 0x48d   :  { %v2040_v14 = vsel %vm2005_vm5, %v2037_v30, %v17818_v44  ;;  %v2043_v51 = vsel %vm2005_vm5, %v17822_v59, %v17820_v19  ;;  %v17825_v24 = vmov %v17820_v19  ;;  %v13230_v40 = vadd.f32 %v2008_v42, %v13123_v8  ;;  %v17837_v19 = vld [vmem:[#allocation108_spill] sm:$0xff]  ;;  %v17838_v59 = vld [vmem:[#allocation109_spill] sm:$0xff] }
 0x48e   :  { %v2045_v7 = vsel %vm2005_vm5, %v17825_v24, %v17824_v61  ;;  %v2048_v6 = vsel %vm2005_vm5, %v17829_v17, %v17827_v47  ;;  %v13233_v33 = vadd.f32 %v2010_v48, %v13128_v38  ;;  %v13236_v50 = vadd.f32 %v2013_v57, %v13131_v4 }
 0x48f   :  { %v13239_v30 = vadd.f32 %v2015_v29, %v13134_v54  ;;  %v13242_v58 = vadd.f32 %v2018_v32, %v13137_v11  ;;  %v13245_v20 = vadd.f32 %v2020_v23, %v13142_v0  ;;  %v13248_v60 = vadd.f32 %v2023_v35, %v13145_v56 }
 0x490   :  { %v13251_v8 = vadd.f32 %v2025_v53, %v13148_v15  ;;  %v13254_v38 = vadd.f32 %v2028_v16, %v13151_v31  ;;  %v13257_v4 = vadd.f32 %v2030_v3, %v13158_v1  ;;  %v13260_v54 = vadd.f32 %v2033_v34, %v13161_v52  ;;  %v17830_v15 = vld [vmem:[#allocation84_spill] sm:$0xff]  ;;  %v17831_v31 = vld [vmem:[#allocation89_spill] sm:$0xff]  ;;  %v7423_v1 = vld [vmem:[#allocation11 + $0x2] ss:$0 sm:$0xff] }
 0x491   :  { %v13263_v11 = vadd.f32 %v2035_v45, %v13164_v27  ;;  %v13266_v0 = vadd.f32 %v2038_v62, %v13167_v21  ;;  %v13268_v56 = vadd.f32 %v2040_v14, %v1693_v2  ;;  %v13270_v42 = vadd.f32 %v2043_v51, %v1694_v37  ;;  %v17832_v16 = vld [vmem:[#allocation195_spill] sm:$0xff]  ;;  %v17833_v3 = vld [vmem:[#allocation205_spill] sm:$0xff]  ;;  %v17834_v34 = vld [vmem:[#allocation96_spill] sm:$0xff] }
 0x492   :  { %v13273_v48 = vadd.f32 %v2045_v7, %v17830_v15  ;;  %v13276_v57 = vadd.f32 %v2048_v6, %v17831_v31  ;;  %v2299_v52 = vmul.f32 %v7423_v1, %v13101_v43  ;;  %v2300_v29 = vmul.f32 %v7423_v1, %v13120_v12  ;;  %v17835_v62 = vld [vmem:[#allocation71_spill] sm:$0xff]  ;;  %v17836_v14 = vld [vmem:[#allocation97_spill] sm:$0xff] }
 0x493   :  { %v2301_v27 = vmul.f32 %v7423_v1, %v13125_v49  ;;  %v2302_v21 = vmul.f32 %v7423_v1, %v13083_v39  ;;  %v2303_v2 = vmul.f32 %v7423_v1, %v13093_v41  ;;  %v2304_v37 = vmul.f32 %v7423_v1, %v13139_v25 }
 0x494   :  { %v2305_v32 = vmul.f32 %v7423_v1, %v13095_v9  ;;  %v2306_v23 = vmul.f32 %v7423_v1, %v13103_v36  ;;  %v2307_v35 = vmul.f32 %v7423_v1, %v13153_v5  ;;  %v2308_v53 = vmul.f32 %v7423_v1, %v13073_v10 }
 0x495   :  { %v2309_v43 = vmul.f32 %v7423_v1, %v13075_v28  ;;  %v2310_v12 = vmul.f32 %v7423_v1, %v17832_v16  ;;  %v2311_v49 = vmul.f32 %v7423_v1, %v17833_v3  ;;  %v2312_v45 = vmul.f32 %v7423_v1, %v17834_v34 }
 0x496   :  { %v2313_v44 = vmul.f32 %v7423_v1, %v17835_v62  ;;  %v2314_v63 = vmul.f32 %v7423_v1, %v17836_v14  ;;  %v2315_v22 = vmul.f32 %v7423_v1, %v17837_v19  ;;  %v2317_v51 = vmul.f32 %v7423_v1, %v17838_v59 }
 0x497   :  { %v2318_v18 = vmul.f32 %v7423_v1, %v13175_v26  ;;  %v2492_v61 = vrot.slane %v2299_v52, 2  ;;  %v2493_v24 = vrot.slane %v2300_v29, 2  ;;  %v2495_v7 = vrot.slane %v2301_v27, 2  ;;  %v17839_v29 = vld [vmem:[#allocation162_spill] sm:$0xff] }
 0x498   :  { %v2497_v13 = vrot.slane %v2302_v21, 2  ;;  %v2498_v47 = vrot.slane %v2303_v2, 2  ;;  %v2500_v55 = vrot.slane %v2304_v37, 2  ;;  %v2502_v17 = vrot.slane %v2305_v32, 2  ;;  %v17840_v21 = vld [vmem:[#allocation167_spill] sm:$0xff] }
 0x499   :  { %v2503_v6 = vrot.slane %v2306_v23, 2  ;;  %v2505_v15 = vrot.slane %v2307_v35, 2  ;;  %v2507_v31 = vrot.slane %v2308_v53, 2  ;;  %v2508_v16 = vrot.slane %v2309_v43, 2 }
 0x49a   :  { %v2510_v62 = vrot.slane %v2310_v12, 2  ;;  %v2512_v5 = vrot.slane %v2311_v49, 2  ;;  %v2513_v25 = vrot.slane %v2312_v45, 2  ;;  %v2515_v46 = vrot.slane %v2313_v44, 2  ;;  %v17841_v44 = vld [vmem:[#allocation86_spill] sm:$0xff] }
 0x49b   :  { %v2517_v19 = vrot.slane %v2314_v63, 2  ;;  %v2518_v14 = vrot.slane %v2315_v22, 2  ;;  %v2522_v59 = vrot.slane %v2317_v51, 2  ;;  %v2523_v34 = vrot.slane %v2318_v18, 2  ;;  %v17843_v18 = vld [vmem:[#allocation161_spill] sm:$0xff] }
 0x49c   :  { %v2494_v1 = vsel %vm2491_vm6, %v2492_v61, %v2493_v24  ;;  %v2496_v52 = vsel %vm2491_vm6, %v2493_v24, %v2495_v7  ;;  %v2527_v27 = vrot.slane %v17839_v29, 2  ;;  %v2528_v2 = vrot.slane %v17840_v21, 2 }
 0x49d   :  { %v2499_v37 = vsel %vm2491_vm6, %v2497_v13, %v2498_v47  ;;  %v2501_v32 = vsel %vm2491_vm6, %v2498_v47, %v2500_v55  ;;  %v2504_v23 = vsel %vm2491_vm6, %v2502_v17, %v2503_v6  ;;  %v2506_v35 = vsel %vm2491_vm6, %v2503_v6, %v2505_v15  ;;  %v17845_v13 = vld [vmem:[#allocation168_spill] sm:$0xff]  ;;  %v17854_v6 = vld [vmem:[#allocation185_spill] sm:$0xff] }
 0x49e   :  { %v2509_v53 = vsel %vm2491_vm6, %v2507_v31, %v2508_v16  ;;  %v2511_v43 = vsel %vm2491_vm6, %v2508_v16, %v2510_v62  ;;  %v2514_v12 = vsel %vm2491_vm6, %v2512_v5, %v2513_v25  ;;  %v2516_v49 = vsel %vm2491_vm6, %v2513_v25, %v2515_v46  ;;  %v17847_v62 = vld [vmem:[#allocation174_spill] sm:$0xff]  ;;  %v17849_v46 = vld [vmem:[#allocation173_spill] sm:$0xff]  ;;  %v17851_v55 = vld [vmem:[#allocation180_spill] sm:$0xff] }
 0x49f   :  { %v2519_v45 = vsel %vm2491_vm6, %v2517_v19, %v2518_v14  ;;  %v17842_v63 = vrot.slane %v17841_v44, 2  ;;  %v2524_v51 = vsel %vm2491_vm6, %v2522_v59, %v2523_v34  ;;  %v17844_v61 = vrot.slane %v17843_v18, 2  ;;  %v17856_v15 = vld [vmem:[#allocation181_spill] sm:$0xff] }
 0x4a0   :  { %v2529_v7 = vsel %vm2491_vm6, %v2527_v27, %v2528_v2  ;;  %v17846_v16 = vrot.slane %v17845_v13, 2  ;;  %v17848_v25 = vrot.slane %v17847_v62, 2  ;;  %v17850_v19 = vrot.slane %v17849_v46, 2  ;;  %v13374_v46 = vld [vmem:[#allocation2 + $0xc8] sm:$0xff] }
 0x4a1   :  { %v2521_v22 = vsel %vm2491_vm6, %v2518_v14, %v17842_v63  ;;  %v2526_v24 = vsel %vm2491_vm6, %v2523_v34, %v17844_v61  ;;  %v17852_v14 = vrot.slane %v17851_v55, 2  ;;  %v17855_v34 = vrot.slane %v17854_v6, 2  ;;  %17867 = vst [vmem:[#allocation165_spill] sm:$0xff] %v13374_v46 }
 0x4a2   :  { %v2531_v5 = vsel %vm2491_vm6, %v2528_v2, %v17846_v16  ;;  %v2534_v47 = vsel %vm2491_vm6, %v17850_v19, %v17848_v25  ;;  %v17853_v59 = vmov %v17848_v25  ;;  %v17857_v31 = vrot.slane %v17856_v15, 2 }
 0x4a3   :  { %v2536_v17 = vsel %vm2491_vm6, %v17853_v59, %v17852_v14  ;;  %v2716_v27 = vadd.f32 %v2494_v1, %v13230_v40  ;;  %v2717_v21 = vadd.f32 %v2496_v52, %v13233_v33  ;;  %v2718_v2 = vadd.f32 %v2499_v37, %v13236_v50  ;;  %v17858_v1 = vld [vmem:[#allocation163_spill] sm:$0xff]  ;;  %v17859_v52 = vld [vmem:[#allocation169_spill] sm:$0xff] }
 0x4a4   :  { %v2539_v29 = vsel %vm2491_vm6, %v17857_v31, %v17855_v34  ;;  %v2719_v44 = vadd.f32 %v2501_v32, %v13239_v30  ;;  %v2720_v63 = vadd.f32 %v2504_v23, %v13242_v58  ;;  %v2721_v18 = vadd.f32 %v2506_v35, %v13245_v20  ;;  %v7424_v37 = vld [vmem:[#allocation11 + $0x3] ss:$0 sm:$0xff]  ;;  %v17861_v23 = vld [vmem:[#allocation97_spill] sm:$0xff] }
 0x4a5   :  { %v2722_v61 = vadd.f32 %v2509_v53, %v13248_v60  ;;  %v2723_v13 = vadd.f32 %v2511_v43, %v13251_v8  ;;  %v2724_v16 = vadd.f32 %v2514_v12, %v13254_v38  ;;  %v2725_v62 = vadd.f32 %v2516_v49, %v13257_v4  ;;  %v17862_v53 = vld [vmem:[#allocation108_spill] sm:$0xff]  ;;  %v17863_v12 = vld [vmem:[#allocation109_spill] sm:$0xff] }
 0x4a6   :  { %v2726_v40 = vadd.f32 %v2519_v45, %v13260_v54  ;;  %v2727_v33 = vadd.f32 %v2521_v22, %v13263_v11  ;;  %v2728_v50 = vadd.f32 %v2524_v51, %v13266_v0  ;;  %v2729_v30 = vadd.f32 %v2526_v24, %v13268_v56  ;;  %v17864_v22 = vld [vmem:[#allocation35_spill] sm:$0xff]  ;;  %v13368_v24 = vld [vmem:[#allocation2 + $0xb0] sm:$0xff] }
 0x4a7   :  { %v2730_v58 = vadd.f32 %v2529_v7, %v13270_v42  ;;  %v2731_v20 = vadd.f32 %v2531_v5, %v13273_v48  ;;  %v2732_v60 = vadd.f32 %v2534_v47, %v13276_v57  ;;  %v2733_v8 = vadd.f32 %v2536_v17, %v17858_v1  ;;  %v17860_v57 = vld [vmem:[#allocation96_spill] sm:$0xff]  ;;  %17865 = vst [vmem:[#allocation216_spill] sm:$0xff] %v13368_v24  ;;  %v13371_v5 = vld [vmem:[#allocation2 + $0xc0] sm:$0xff]  ;;  %v13377_v47 = vld [vmem:[#allocation2 + $0xd8] sm:$0xff] }
 0x4a8   :  { %v2734_v38 = vadd.f32 %v2539_v29, %v17859_v52  ;;  %v2785_v4 = vmul.f32 %v7424_v37, %v13083_v39  ;;  %v2786_v54 = vmul.f32 %v7424_v37, %v13093_v41  ;;  %v2787_v11 = vmul.f32 %v7424_v37, %v13095_v9  ;;  %17866 = vst [vmem:[#allocation190_spill] sm:$0xff] %v13371_v5 }
 0x4a9   :  { %v2788_v0 = vmul.f32 %v7424_v37, %v13103_v36  ;;  %v2789_v56 = vmul.f32 %v7424_v37, %v13073_v10  ;;  %v2790_v42 = vmul.f32 %v7424_v37, %v13075_v28  ;;  %v2791_v48 = vmul.f32 %v7424_v37, %v17833_v3  ;;  %17868 = vst [vmem:[#allocation166_spill] sm:$0xff] %v13377_v47 }
 0x4aa   :  { %v2792_v32 = vmul.f32 %v7424_v37, %v17860_v57  ;;  %v2793_v35 = vmul.f32 %v7424_v37, %v17861_v23  ;;  %v2794_v43 = vmul.f32 %v7424_v37, %v17862_v53  ;;  %v2795_v49 = vmul.f32 %v7424_v37, %v17863_v12 }
 0x4ab   :  { %v2796_v45 = vmul.f32 %v7424_v37, %v13175_v26  ;;  %v2797_v51 = vmul.f32 %v7424_v37, %v17864_v22  ;;  %v2798_v7 = vmul.f32 %v13368_v24, %v7424_v37  ;;  %v2799_v25 = vmul.f32 %v13371_v5, %v7424_v37 }
 0x4ac   :  { %v2800_v19 = vmul.f32 %v13374_v46, %v7424_v37  ;;  %v2801_v55 = vmul.f32 %v13377_v47, %v7424_v37  ;;  %v13380_v14 = vadd.f32 %v2785_v4, %v2716_v27  ;;  %v13382_v59 = vadd.f32 %v2786_v54, %v2717_v21  ;;  %v17869_v37 = vld [vmem:[#allocation118_spill] sm:$0xff] }
 0x4ad   :  { %v13384_v17 = vadd.f32 %v2787_v11, %v2718_v2  ;;  %v13386_v6 = vadd.f32 %v2788_v0, %v2719_v44  ;;  %v13388_v34 = vadd.f32 %v2789_v56, %v2720_v63  ;;  %v13390_v15 = vadd.f32 %v2790_v42, %v2721_v18  ;;  %v17873_v42 = vld [vmem:[#allocation195_spill] sm:$0xff] }
 0x4ae   :  { %v13392_v31 = vadd.f32 %v2791_v48, %v2722_v61  ;;  %v13394_v29 = vadd.f32 %v2792_v32, %v2723_v13  ;;  %v13396_v1 = vadd.f32 %v2793_v35, %v2724_v16  ;;  %v13398_v52 = vadd.f32 %v2794_v43, %v2725_v62  ;;  %v7429_v61 = vld [vmem:[#allocation11 + $0x4] ss:$0 sm:$0xff] }
 0x4af   :  { %v13400_v27 = vadd.f32 %v2795_v49, %v2726_v40  ;;  %v13402_v21 = vadd.f32 %v2796_v45, %v2727_v33  ;;  %v13404_v2 = vadd.f32 %v2797_v51, %v2728_v50  ;;  %v13406_v44 = vadd.f32 %v2798_v7, %v2729_v30  ;;  %v17870_v40 = vld [vmem:[#allocation189_spill] sm:$0xff]  ;;  %v17871_v50 = vld [vmem:[#allocation194_spill] sm:$0xff]  ;;  %v17874_v32 = vld [vmem:[#allocation71_spill] sm:$0xff] }
 0x4b0   :  { %v13408_v63 = vadd.f32 %v2799_v25, %v2730_v58  ;;  %v13410_v18 = vadd.f32 %v2800_v19, %v2731_v20  ;;  %v2918_v13 = vmul.f32 %v7429_v61, %v13083_v39  ;;  %v2919_v16 = vmul.f32 %v7429_v61, %v13093_v41  ;;  %v17872_v20 = vld [vmem:[#allocation191_spill] sm:$0xff] }
 0x4b1   :  { %v2920_v62 = vmul.f32 %v7429_v61, %v17869_v37  ;;  %v13415_v4 = vadd.f32 %v2801_v55, %v2732_v60  ;;  %v13418_v33 = vadd.f32 %v17870_v40, %v2733_v8  ;;  %v13421_v54 = vadd.f32 %v17871_v50, %v2734_v38  ;;  %v13434_v7 = vld [vmem:[#allocation2 + $0x88] sm:$0x3] }
 0x4b2   :  { %v2921_v30 = vmul.f32 %v7429_v61, %v13095_v9  ;;  %v2922_v58 = vmul.f32 %v7429_v61, %v13103_v36  ;;  %v2923_v11 = vmul.f32 %v7429_v61, %v17872_v20  ;;  %v2924_v0 = vmul.f32 %v7429_v61, %v13073_v10  ;;  %17875 = vst [vmem:[#allocation171_spill] sm:$0xff] %v13434_v7 }
 0x4b3   :  { %v2925_v56 = vmul.f32 %v7429_v61, %v13075_v28  ;;  %v2926_v48 = vmul.f32 %v7429_v61, %v17873_v42  ;;  %v2927_v60 = vmul.f32 %v7429_v61, %v17833_v3  ;;  %v2928_v8 = vmul.f32 %v7429_v61, %v17860_v57 }
 0x4b4   :  { %v2929_v35 = vmul.f32 %v7429_v61, %v17874_v32  ;;  %v2930_v38 = vmul.f32 %v7429_v61, %v17861_v23  ;;  %v3110_v43 = vrot.slane %v2918_v13, 1  ;;  %v3111_v49 = vrot.slane %v2919_v16, 1 }
 0x4b5   :  { %v3113_v45 = vrot.slane %v2920_v62, 1  ;;  %v2931_v51 = vmul.f32 %v7429_v61, %v17862_v53  ;;  %v2932_v25 = vmul.f32 %v13434_v7, %v7429_v61  ;;  %v2933_v19 = vmul.f32 %v7429_v61, %v17863_v12 }
 0x4b6   :  { %v2934_v55 = vmul.f32 %v7429_v61, %v13175_v26  ;;  %v2936_v40 = vmul.f32 %v7429_v61, %v17864_v22  ;;  %v2937_v50 = vmul.f32 %v7429_v61, %v13368_v24  ;;  %v2939_v47 = vmul.f32 %v7429_v61, %v13371_v5 }
 0x4b7   :  { %v2940_v13 = vmul.f32 %v7429_v61, %v13374_v46  ;;  %v3115_v16 = vrot.slane %v2921_v30, 1  ;;  %v3116_v62 = vrot.slane %v2922_v58, 1  ;;  %v3118_v23 = vrot.slane %v2923_v11, 1 }
 0x4b8   :  { %v3120_v53 = vrot.slane %v2924_v0, 1  ;;  %v3112_v32 = vsel %vm2005_vm5, %v3110_v43, %v3111_v49  ;;  %v3114_v7 = vsel %vm2005_vm5, %v3111_v49, %v3113_v45  ;;  %v3121_v57 = vrot.slane %v2925_v56, 1  ;;  %v17876_v43 = vld [vmem:[#allocation125_spill] sm:$0xff]  ;;  %v17877_v56 = vld [vmem:[#allocation128_spill] sm:$0xff] }
 0x4b9   :  { %v3123_v12 = vrot.slane %v2926_v48, 1  ;;  %v3125_v3 = vrot.slane %v2927_v60, 1  ;;  %v3126_v26 = vrot.slane %v2928_v8, 1  ;;  %v3128_v42 = vrot.slane %v2929_v35, 1 }
 0x4ba   :  { %v3130_v22 = vrot.slane %v2930_v38, 1  ;;  %v3131_v28 = vrot.slane %v2931_v51, 1  ;;  %v3133_v24 = vrot.slane %v2932_v25, 1  ;;  %v3135_v10 = vrot.slane %v2933_v19, 1  ;;  %v17878_v25 = vld [vmem:[#allocation156_spill] sm:$0xff] }
 0x4bb   :  { %v3136_v5 = vrot.slane %v2934_v55, 1  ;;  %v3140_v20 = vrot.slane %v2936_v40, 1  ;;  %v3141_v61 = vrot.slane %v2937_v50, 1  ;;  %v3145_v30 = vrot.slane %v2939_v47, 1  ;;  %v17880_v40 = vld [vmem:[#allocation116_spill] sm:$0xff] }
 0x4bc   :  { %v3146_v58 = vrot.slane %v2940_v13, 1  ;;  %v3117_v11 = vsel %vm2005_vm5, %v3115_v16, %v3116_v62  ;;  %v3119_v0 = vsel %vm2005_vm5, %v3116_v62, %v3118_v23  ;;  %v3150_v49 = vrot.slane %v17876_v43, 1  ;;  %v17886_v50 = vld [vmem:[#allocation136_spill] sm:$0xff]  ;;  %v17888_v13 = vld [vmem:[#allocation133_spill] sm:$0xff] }
 0x4bd   :  { %v3151_v48 = vrot.slane %v17877_v56, 1  ;;  %v3122_v60 = vsel %vm2005_vm5, %v3120_v53, %v3121_v57  ;;  %v3124_v8 = vsel %vm2005_vm5, %v3121_v57, %v3123_v12  ;;  %v3127_v35 = vsel %vm2005_vm5, %v3125_v3, %v3126_v26  ;;  %v17882_v12 = vld [vmem:[#allocation124_spill] sm:$0xff]  ;;  %v17893_v56 = vld [vmem:[#allocation145_spill] sm:$0xff] }
 0x4be   :  { %v3129_v38 = vsel %vm2005_vm5, %v3126_v26, %v3128_v42  ;;  %v3132_v45 = vsel %vm2005_vm5, %v3130_v22, %v3131_v28  ;;  %v3134_v47 = vsel %vm2005_vm5, %v3131_v28, %v3133_v24  ;;  %v3137_v51 = vsel %vm2005_vm5, %v3135_v10, %v3136_v5  ;;  %v17884_v24 = vld [vmem:[#allocation132_spill] sm:$0xff] }
 0x4bf   :  { %v17879_v23 = vrot.slane %v17878_v25, 1  ;;  %v3142_v55 = vsel %vm2005_vm5, %v3140_v20, %v3141_v61  ;;  %v17881_v53 = vrot.slane %v17880_v40, 1  ;;  %v3147_v3 = vsel %vm2005_vm5, %v3145_v30, %v3146_v58  ;;  %v17890_v62 = vld [vmem:[#allocation140_spill] sm:$0xff]  ;;  %v17895_v25 = vld [vmem:[#allocation141_spill] sm:$0xff] }
 0x4c0   :  { %v17883_v26 = vrot.slane %v17882_v12, 1  ;;  %v3152_v28 = vsel %vm2005_vm5, %v3150_v49, %v3151_v48  ;;  %v17885_v10 = vrot.slane %v17884_v24, 1  ;;  %v17889_v20 = vrot.slane %v17888_v13, 1 }
 0x4c1   :  { %v3139_v19 = vsel %vm2005_vm5, %v3136_v5, %v17879_v23  ;;  %v3144_v57 = vsel %vm2005_vm5, %v3141_v61, %v17881_v53  ;;  %v17887_v5 = vrot.slane %v17886_v50, 1  ;;  %v17891_v61 = vrot.slane %v17890_v62, 1  ;;  %v17908_v50 = vld [vmem:[#allocation171_spill] sm:$0xff]  ;;  %v17909_v62 = vld [vmem:[#allocation109_spill] sm:$0xff] }
 0x4c2   :  { %v3149_v22 = vsel %vm2005_vm5, %v3146_v58, %v17883_v26  ;;  %v3154_v42 = vsel %vm2005_vm5, %v3151_v48, %v17885_v10  ;;  %v17894_v58 = vrot.slane %v17893_v56, 1  ;;  %v17896_v49 = vrot.slane %v17895_v25, 1  ;;  %v13566_v56 = vld [vmem:[#allocation2 + $0xa0] sm:$0x3]  ;;  %v17912_v25 = vld [vmem:[#allocation35_spill] sm:$0xff] }
 0x4c3   :  { %v3157_v16 = vsel %vm2005_vm5, %v17889_v20, %v17887_v5  ;;  %v17892_v30 = vmov %v17887_v5  ;;  %v13487_v48 = vadd.f32 %v3112_v32, %v13380_v14  ;;  %v13490_v40 = vadd.f32 %v3114_v7, %v13382_v59  ;;  %17911 = vst [vmem:[#allocation143_spill] sm:$0xff] %v13566_v56 }
 0x4c4   :  { %v3159_v43 = vsel %vm2005_vm5, %v17892_v30, %v17891_v61  ;;  %v3162_v23 = vsel %vm2005_vm5, %v17896_v49, %v17894_v58  ;;  %v13493_v53 = vadd.f32 %v3117_v11, %v13384_v17  ;;  %v13496_v12 = vadd.f32 %v3119_v0, %v13386_v6  ;;  %v17898_v11 = vld [vmem:[#allocation72_spill] sm:$0xff]  ;;  %v17910_v30 = vld [vmem:[#allocation158_spill] sm:$0xff] }
 0x4c5   :  { %v13499_v26 = vadd.f32 %v3122_v60, %v13388_v34  ;;  %v13502_v24 = vadd.f32 %v3124_v8, %v13390_v15  ;;  %v13505_v10 = vadd.f32 %v3127_v35, %v13392_v31  ;;  %v13508_v14 = vadd.f32 %v3129_v38, %v13394_v29  ;;  %v17899_v60 = vld [vmem:[#allocation191_spill] sm:$0xff]  ;;  %v17901_v38 = vld [vmem:[#allocation204_spill] sm:$0xff] }
 0x4c6   :  { %v13511_v59 = vadd.f32 %v3132_v45, %v13396_v1  ;;  %v13514_v17 = vadd.f32 %v3134_v47, %v13398_v52  ;;  %v13517_v6 = vadd.f32 %v3137_v51, %v13400_v27  ;;  %v13520_v34 = vadd.f32 %v3139_v19, %v13402_v21  ;;  %v17900_v8 = vld [vmem:[#allocation203_spill] sm:$0xff] }
 0x4c7   :  { %v13523_v15 = vadd.f32 %v3142_v55, %v13404_v2  ;;  %v13526_v31 = vadd.f32 %v3144_v57, %v13406_v44  ;;  %v13529_v29 = vadd.f32 %v3147_v3, %v13408_v63  ;;  %v13532_v1 = vadd.f32 %v3149_v22, %v13410_v18  ;;  %v17897_v2 = vld [vmem:[#allocation77_spill] sm:$0xff]  ;;  %v7431_v44 = vld [vmem:[#allocation11 + $0x5] ss:$0 sm:$0xff] }
 0x4c8   :  { %v13535_v52 = vadd.f32 %v3152_v28, %v13415_v4  ;;  %v13538_v27 = vadd.f32 %v3154_v42, %v13418_v33  ;;  %v13541_v21 = vadd.f32 %v3157_v16, %v13421_v54  ;;  %v13544_v32 = vadd.f32 %v3159_v43, %v17897_v2  ;;  %v17902_v47 = vld [vmem:[#allocation195_spill] sm:$0xff]  ;;  %v17906_v3 = vld [vmem:[#allocation97_spill] sm:$0xff]  ;;  %v17907_v28 = vld [vmem:[#allocation108_spill] sm:$0xff] }
 0x4c9   :  { %v3403_v7 = vmul.f32 %v7431_v44, %v13083_v39  ;;  %v3404_v63 = vmul.f32 %v7431_v44, %v13093_v41  ;;  %v3405_v18 = vmul.f32 %v7431_v44, %v17869_v37  ;;  %v13550_v0 = vadd.f32 %v3162_v23, %v17898_v11  ;;  %v17903_v39 = vld [vmem:[#allocation205_spill] sm:$0xff]  ;;  %v17904_v41 = vld [vmem:[#allocation96_spill] sm:$0xff]  ;;  %v17905_v37 = vld [vmem:[#allocation71_spill] sm:$0xff] }
 0x4ca   :  { %v3406_v4 = vmul.f32 %v7431_v44, %v13095_v9  ;;  %v3407_v33 = vmul.f32 %v7431_v44, %v13103_v36  ;;  %v3408_v54 = vmul.f32 %v7431_v44, %v17899_v60  ;;  %v3409_v35 = vmul.f32 %v7431_v44, %v17900_v8  ;;  %v17913_v23 = vld [vmem:[#allocation216_spill] sm:$0xff]  ;;  %v17914_v11 = vld [vmem:[#allocation190_spill] sm:$0xff] }
 0x4cb   :  { %v3410_v45 = vmul.f32 %v7431_v44, %v17901_v38  ;;  %v3411_v51 = vmul.f32 %v7431_v44, %v17902_v47  ;;  %v3412_v19 = vmul.f32 %v7431_v44, %v17903_v39  ;;  %v3413_v55 = vmul.f32 %v7431_v44, %v17904_v41 }
 0x4cc   :  { %v3414_v57 = vmul.f32 %v7431_v44, %v17905_v37  ;;  %v3415_v22 = vmul.f32 %v7431_v44, %v17906_v3  ;;  %v3416_v42 = vmul.f32 %v7431_v44, %v17907_v28  ;;  %v3417_v5 = vmul.f32 %v7431_v44, %v17908_v50  ;;  %v17915_v50 = vld [vmem:[#allocation166_spill] sm:$0xff] }
 0x4cd   :  { %v3595_v13 = vrot.slane %v3403_v7, 2  ;;  %v3596_v20 = vrot.slane %v3404_v63, 2  ;;  %v3598_v16 = vrot.slane %v3405_v18, 2  ;;  %v3418_v61 = vmul.f32 %v7431_v44, %v17909_v62  ;;  %v13574_v63 = vld [vmem:[#allocation2 + $0xe0] sm:$0xff] }
 0x4ce   :  { %v3419_v43 = vmul.f32 %v7431_v44, %v17910_v30  ;;  %v3420_v58 = vmul.f32 %v13566_v56, %v7431_v44  ;;  %v3421_v49 = vmul.f32 %v7431_v44, %v17912_v25  ;;  %v3422_v2 = vmul.f32 %v7431_v44, %v17913_v23  ;;  %17916 = vst [vmem:[#allocation85_spill] sm:$0xff] %v13574_v63 }
 0x4cf   :  { %v3424_v37 = vmul.f32 %v7431_v44, %v17914_v11  ;;  %v3425_v47 = vmul.f32 %v7431_v44, %v13374_v46  ;;  %v3427_v7 = vmul.f32 %v7431_v44, %v17915_v50  ;;  %v3428_v18 = vmul.f32 %v13574_v63, %v7431_v44 }
 0x4d0   :  { %v3600_v60 = vrot.slane %v3406_v4, 2  ;;  %v3601_v30 = vrot.slane %v3407_v33, 2  ;;  %v3603_v62 = vrot.slane %v3408_v54, 2  ;;  %v3597_v28 = vsel %vm2491_vm6, %v3595_v13, %v3596_v20 }
 0x4d1   :  { %v3599_v56 = vsel %vm2491_vm6, %v3596_v20, %v3598_v16  ;;  %v3605_v25 = vrot.slane %v3409_v35, 2  ;;  %v3606_v3 = vrot.slane %v3410_v45, 2  ;;  %v3608_v23 = vrot.slane %v3411_v51, 2 }
 0x4d2   :  { %v3610_v41 = vrot.slane %v3412_v19, 2  ;;  %v3611_v11 = vrot.slane %v3413_v55, 2  ;;  %v3613_v39 = vrot.slane %v3414_v57, 2  ;;  %v3615_v46 = vrot.slane %v3415_v22, 2 }
 0x4d3   :  { %v3616_v38 = vrot.slane %v3416_v42, 2  ;;  %v3618_v50 = vrot.slane %v3417_v5, 2  ;;  %v3620_v8 = vrot.slane %v3418_v61, 2  ;;  %v3621_v36 = vrot.slane %v3419_v43, 2  ;;  %v17919_v61 = vld [vmem:[#allocation122_spill] sm:$0xff]  ;;  %v17923_v43 = vld [vmem:[#allocation127_spill] sm:$0xff] }
 0x4d4   :  { %v3623_v9 = vrot.slane %v3420_v58, 2  ;;  %v3625_v44 = vrot.slane %v3421_v49, 2  ;;  %v3626_v4 = vrot.slane %v3422_v2, 2  ;;  %v3602_v33 = vsel %vm2491_vm6, %v3600_v60, %v3601_v30  ;;  %v17928_v49 = vld [vmem:[#allocation126_spill] sm:$0xff] }
 0x4d5   :  { %v3604_v54 = vsel %vm2491_vm6, %v3601_v30, %v3603_v62  ;;  %v3630_v13 = vrot.slane %v3424_v37, 2  ;;  %v3631_v20 = vrot.slane %v3425_v47, 2  ;;  %v3607_v35 = vsel %vm2491_vm6, %v3605_v25, %v3606_v3  ;;  %v17917_v37 = vld [vmem:[#allocation121_spill] sm:$0xff]  ;;  %v17921_v30 = vld [vmem:[#allocation130_spill] sm:$0xff] }
 0x4d6   :  { %v3609_v45 = vsel %vm2491_vm6, %v3606_v3, %v3608_v23  ;;  %v3635_v51 = vrot.slane %v3427_v7, 2  ;;  %v3636_v19 = vrot.slane %v3428_v18, 2  ;;  %v3612_v55 = vsel %vm2491_vm6, %v3610_v41, %v3611_v11  ;;  %v17932_v18 = vld [vmem:[#allocation138_spill] sm:$0xff] }
 0x4d7   :  { %v3614_v57 = vsel %vm2491_vm6, %v3611_v11, %v3613_v39  ;;  %v3617_v22 = vsel %vm2491_vm6, %v3615_v46, %v3616_v38  ;;  %v3619_v42 = vsel %vm2491_vm6, %v3616_v38, %v3618_v50  ;;  %v3622_v60 = vsel %vm2491_vm6, %v3620_v8, %v3621_v36  ;;  %v17925_v50 = vld [vmem:[#allocation134_spill] sm:$0xff]  ;;  %v17930_v11 = vld [vmem:[#allocation139_spill] sm:$0xff] }
 0x4d8   :  { %v3624_v5 = vsel %vm2491_vm6, %v3621_v36, %v3623_v9  ;;  %v3627_v47 = vsel %vm2491_vm6, %v3625_v44, %v3626_v4  ;;  %v17918_v16 = vrot.slane %v17917_v37, 2  ;;  %v3632_v62 = vsel %vm2491_vm6, %v3630_v13, %v3631_v20  ;;  %v17934_v13 = vld [vmem:[#allocation142_spill] sm:$0xff] }
 0x4d9   :  { %v17920_v41 = vrot.slane %v17919_v61, 2  ;;  %v17922_v46 = vrot.slane %v17921_v30, 2  ;;  %v17924_v38 = vrot.slane %v17923_v43, 2  ;;  %v17926_v9 = vrot.slane %v17925_v50, 2 }
 0x4da   :  { %v3629_v3 = vsel %vm2491_vm6, %v3626_v4, %v17918_v16  ;;  %v3637_v25 = vsel %vm2491_vm6, %v3635_v51, %v3636_v19  ;;  %v17929_v23 = vrot.slane %v17928_v49, 2  ;;  %v17931_v7 = vrot.slane %v17930_v11, 2 }
 0x4db   :  { %v3634_v39 = vsel %vm2491_vm6, %v3631_v20, %v17920_v41  ;;  %v3642_v8 = vsel %vm2491_vm6, %v17924_v38, %v17922_v46  ;;  %v17927_v36 = vmov %v17922_v46  ;;  %v17933_v44 = vrot.slane %v17932_v18, 2 }
 0x4dc   :  { %v3644_v58 = vsel %vm2491_vm6, %v17927_v36, %v17926_v9  ;;  %v3639_v2 = vsel %vm2491_vm6, %v3636_v19, %v17929_v23  ;;  %v17935_v20 = vrot.slane %v17934_v13, 2  ;;  %v17936_v37 = vmov %v17931_v7  ;;  %v17950_v36 = vld [vmem:[#allocation190_spill] sm:$0xff]  ;;  %v13665_v13 = vld [vmem:[#allocation2 + $0x108] sm:$0xff] }
 0x4dd   :  { %v3647_v4 = vsel %vm2491_vm6, %v17933_v44, %v17931_v7  ;;  %v3819_v61 = vadd.f32 %v3597_v28, %v13487_v48  ;;  %v3820_v51 = vadd.f32 %v3599_v56, %v13490_v40  ;;  %v3821_v41 = vadd.f32 %v3602_v33, %v13493_v53  ;;  %v17937_v28 = vld [vmem:[#allocation131_spill] sm:$0xff]  ;;  %v17952_v23 = vld [vmem:[#allocation166_spill] sm:$0xff]  ;;  %v13659_v7 = vld [vmem:[#allocation2 + $0xf0] sm:$0xff]  ;;  %17955 = vst [vmem:[#allocation91_spill] sm:$0xff] %v13665_v13 }
 0x4de   :  { %v3649_v16 = vsel %vm2491_vm6, %v17936_v37, %v17935_v20  ;;  %v3822_v19 = vadd.f32 %v3604_v54, %v13496_v12  ;;  %v3823_v30 = vadd.f32 %v3607_v35, %v13499_v26  ;;  %v3824_v46 = vadd.f32 %v3609_v45, %v13502_v24  ;;  %v7434_v56 = vld [vmem:[#allocation11 + $0x6] ss:$0 sm:$0xff]  ;;  %17953 = vst [vmem:[#allocation90_spill] sm:$0xff] %v13659_v7  ;;  %v13662_v44 = vld [vmem:[#allocation2 + $0xf8] sm:$0xff]  ;;  %v13668_v37 = vld [vmem:[#allocation2 + $0x110] sm:$0xff] }
 0x4df   :  { %v3825_v43 = vadd.f32 %v3612_v55, %v13505_v10  ;;  %v3826_v38 = vadd.f32 %v3614_v57, %v13508_v14  ;;  %v3827_v50 = vadd.f32 %v3617_v22, %v13511_v59  ;;  %v3828_v9 = vadd.f32 %v3619_v42, %v13514_v17  ;;  %17954 = vst [vmem:[#allocation92_spill] sm:$0xff] %v13662_v44 }
 0x4e0   :  { %v3829_v48 = vadd.f32 %v3622_v60, %v13517_v6  ;;  %v3830_v40 = vadd.f32 %v3624_v5, %v13520_v34  ;;  %v3831_v53 = vadd.f32 %v3627_v47, %v13523_v15  ;;  %v3832_v12 = vadd.f32 %v3629_v3, %v13526_v31  ;;  %v17938_v15 = vld [vmem:[#allocation103_spill] sm:$0xff]  ;;  %v17939_v31 = vld [vmem:[#allocation104_spill] sm:$0xff]  ;;  %v17947_v5 = vld [vmem:[#allocation158_spill] sm:$0xff]  ;;  %17956 = vst [vmem:[#allocation98_spill] sm:$0xff] %v13668_v37 }
 0x4e1   :  { %v3833_v26 = vadd.f32 %v3632_v62, %v13529_v29  ;;  %v3834_v24 = vadd.f32 %v3634_v39, %v13532_v1  ;;  %v3835_v10 = vadd.f32 %v3637_v25, %v13535_v52  ;;  %v3836_v14 = vadd.f32 %v3639_v2, %v13538_v27  ;;  %v17940_v29 = vld [vmem:[#allocation203_spill] sm:$0xff]  ;;  %v17941_v1 = vld [vmem:[#allocation204_spill] sm:$0xff]  ;;  %v17942_v52 = vld [vmem:[#allocation205_spill] sm:$0xff] }
 0x4e2   :  { %v3837_v59 = vadd.f32 %v3642_v8, %v13541_v21  ;;  %v3838_v17 = vadd.f32 %v3644_v58, %v13544_v32  ;;  %v3839_v6 = vadd.f32 %v3647_v4, %v13550_v0  ;;  %v3840_v34 = vadd.f32 %v3649_v16, %v17937_v28  ;;  %v17943_v27 = vld [vmem:[#allocation96_spill] sm:$0xff]  ;;  %v17944_v21 = vld [vmem:[#allocation97_spill] sm:$0xff]  ;;  %v17948_v3 = vld [vmem:[#allocation35_spill] sm:$0xff] }
 0x4e3   :  { %v3888_v33 = vmul.f32 %v7434_v56, %v17938_v15  ;;  %v3889_v54 = vmul.f32 %v7434_v56, %v17939_v31  ;;  %v3890_v35 = vmul.f32 %v7434_v56, %v17940_v29  ;;  %v3891_v45 = vmul.f32 %v7434_v56, %v17941_v1  ;;  %v17945_v32 = vld [vmem:[#allocation108_spill] sm:$0xff]  ;;  %v17946_v0 = vld [vmem:[#allocation109_spill] sm:$0xff] }
 0x4e4   :  { %v3892_v55 = vmul.f32 %v7434_v56, %v17942_v52  ;;  %v3893_v57 = vmul.f32 %v7434_v56, %v17943_v27  ;;  %v3894_v22 = vmul.f32 %v7434_v56, %v17944_v21  ;;  %v3895_v42 = vmul.f32 %v7434_v56, %v17945_v32  ;;  %v17949_v39 = vld [vmem:[#allocation216_spill] sm:$0xff]  ;;  %v17951_v25 = vld [vmem:[#allocation165_spill] sm:$0xff] }
 0x4e5   :  { %v3896_v60 = vmul.f32 %v7434_v56, %v17946_v0  ;;  %v3897_v47 = vmul.f32 %v7434_v56, %v17947_v5  ;;  %v3898_v62 = vmul.f32 %v7434_v56, %v17948_v3  ;;  %v3899_v8 = vmul.f32 %v7434_v56, %v17949_v39 }
 0x4e6   :  { %v3900_v58 = vmul.f32 %v7434_v56, %v17950_v36  ;;  %v3901_v49 = vmul.f32 %v7434_v56, %v17951_v25  ;;  %v3902_v2 = vmul.f32 %v7434_v56, %v17952_v23  ;;  %v3903_v11 = vmul.f32 %v7434_v56, %v13574_v63 }
 0x4e7   :  { %v3904_v18 = vmul.f32 %v13659_v7, %v7434_v56  ;;  %v3905_v4 = vmul.f32 %v13662_v44, %v7434_v56  ;;  %v3906_v20 = vmul.f32 %v13665_v13, %v7434_v56  ;;  %v3907_v16 = vmul.f32 %v13668_v37, %v7434_v56 }
 0x4e8   :  { %v13671_v28 = vadd.f32 %v3888_v33, %v3819_v61  ;;  %v13673_v23 = vadd.f32 %v3889_v54, %v3820_v51  ;;  %v13675_v63 = vadd.f32 %v3890_v35, %v3821_v41  ;;  %v13677_v25 = vadd.f32 %v3891_v45, %v3822_v19  ;;  %v17965_v33 = vld [vmem:[#allocation191_spill] sm:$0xff] }
 0x4e9   :  { %v13679_v7 = vadd.f32 %v3892_v55, %v3823_v30  ;;  %v13681_v36 = vadd.f32 %v3893_v57, %v3824_v46  ;;  %v13683_v44 = vadd.f32 %v3894_v22, %v3825_v43  ;;  %v13685_v39 = vadd.f32 %v3895_v42, %v3826_v38  ;;  %v17966_v54 = vld [vmem:[#allocation195_spill] sm:$0xff] }
 0x4ea   :  { %v13687_v13 = vadd.f32 %v3896_v60, %v3827_v50  ;;  %v13689_v3 = vadd.f32 %v3897_v47, %v3828_v9  ;;  %v13691_v61 = vadd.f32 %v3898_v62, %v3829_v48  ;;  %v13693_v51 = vadd.f32 %v3899_v8, %v3830_v40  ;;  %v17961_v48 = vld [vmem:[#allocation144_spill] sm:$0xff]  ;;  %v17967_v45 = vld [vmem:[#allocation71_spill] sm:$0xff] }
 0x4eb   :  { %v13695_v41 = vadd.f32 %v3900_v58, %v3831_v53  ;;  %v13697_v19 = vadd.f32 %v3901_v49, %v3832_v12  ;;  %v13699_v30 = vadd.f32 %v3902_v2, %v3833_v26  ;;  %v13701_v46 = vadd.f32 %v3903_v11, %v3834_v24  ;;  %v17963_v40 = vld [vmem:[#allocation164_spill] sm:$0xff]  ;;  %v7439_v12 = vld [vmem:[#allocation11 + $0x7] ss:$0 sm:$0xff]  ;;  %v13734_v2 = vld [vmem:[#allocation2 + $0xb8] sm:$0x3] }
 0x4ec   :  { %v13703_v43 = vadd.f32 %v3904_v18, %v3835_v10  ;;  %v13705_v38 = vadd.f32 %v3905_v4, %v3836_v14  ;;  %v13707_v50 = vadd.f32 %v3906_v20, %v3837_v59  ;;  %v13709_v9 = vadd.f32 %v3907_v16, %v3838_v17  ;;  %v17968_v57 = vld [vmem:[#allocation171_spill] sm:$0xff]  ;;  %v17971_v8 = vld [vmem:[#allocation216_spill] sm:$0xff]  ;;  %17972 = vst [vmem:[#allocation86_spill] sm:$0xff] %v13734_v2  ;;  %v17973_v4 = vld [vmem:[#allocation190_spill] sm:$0xff] }
 0x4ed   :  { %v13712_v56 = vadd.f32 %v17961_v48, %v3839_v6  ;;  %v13715_v53 = vadd.f32 %v17963_v40, %v3840_v34  ;;  %v4021_v26 = vmul.f32 %v7439_v12, %v17938_v15  ;;  %v4022_v24 = vmul.f32 %v7439_v12, %v17939_v31  ;;  %v17969_v60 = vld [vmem:[#allocation143_spill] sm:$0xff]  ;;  %v17974_v20 = vld [vmem:[#allocation165_spill] sm:$0xff]  ;;  %v13739_v16 = vld [vmem:[#allocation2 + $0xd0] sm:$0x3] }
 0x4ee   :  { %17957 = vst [vmem:[#allocation105_spill] sm:$0xff] %v13703_v43  ;;  %17958 = vst [vmem:[#allocation99_spill] sm:$0xff] %v13705_v38  ;;  %v4023_v10 = vmul.f32 %v7439_v12, %v17965_v33  ;;  %v4024_v14 = vmul.f32 %v7439_v12, %v17940_v29  ;;  %v4025_v59 = vmul.f32 %v7439_v12, %v17941_v1  ;;  %v17970_v47 = vld [vmem:[#allocation35_spill] sm:$0xff]  ;;  %v17976_v40 = vld [vmem:[#allocation166_spill] sm:$0xff] }
 0x4ef   :  { %17959 = vst [vmem:[#allocation84_spill] sm:$0xff] %v13707_v50  ;;  %17960 = vst [vmem:[#allocation89_spill] sm:$0xff] %v13709_v9  ;;  %v4026_v17 = vmul.f32 %v7439_v12, %v17966_v54  ;;  %v4027_v35 = vmul.f32 %v7439_v12, %v17942_v52  ;;  %v4028_v6 = vmul.f32 %v7439_v12, %v17943_v27  ;;  %v4213_v58 = vrot.slane %v4021_v26, 1  ;;  %v17977_v26 = vld [vmem:[#allocation85_spill] sm:$0xff] }
 0x4f0   :  { %17962 = vst [vmem:[#allocation162_spill] sm:$0xff] %v13712_v56  ;;  %17964 = vst [vmem:[#allocation167_spill] sm:$0xff] %v13715_v53  ;;  %v4029_v34 = vmul.f32 %v7439_v12, %v17967_v45  ;;  %v4030_v55 = vmul.f32 %v7439_v12, %v17944_v21  ;;  %v4031_v15 = vmul.f32 %v7439_v12, %v17945_v32  ;;  %v4214_v27 = vrot.slane %v4022_v24, 1  ;;  %v17979_v56 = vld [vmem:[#allocation92_spill] sm:$0xff] }
 0x4f1   :  { %v4032_v22 = vmul.f32 %v7439_v12, %v17968_v57  ;;  %v4033_v42 = vmul.f32 %v7439_v12, %v17946_v0  ;;  %v4034_v29 = vmul.f32 %v7439_v12, %v17947_v5  ;;  %v4035_v1 = vmul.f32 %v7439_v12, %v17969_v60  ;;  %17975 = vst [vmem:[#allocation161_spill] sm:$0xff] %v13739_v16 }
 0x4f2   :  { %v4036_v62 = vmul.f32 %v7439_v12, %v17970_v47  ;;  %v4037_v52 = vmul.f32 %v7439_v12, %v17971_v8  ;;  %v4216_v49 = vrot.slane %v4023_v10, 1  ;;  %v4038_v21 = vmul.f32 %v13734_v2, %v7439_v12  ;;  %v17978_v10 = vld [vmem:[#allocation90_spill] sm:$0xff]  ;;  %v17980_v2 = vld [vmem:[#allocation91_spill] sm:$0xff] }
 0x4f3   :  { %v4218_v32 = vrot.slane %v4024_v14, 1  ;;  %v4219_v11 = vrot.slane %v4025_v59, 1  ;;  %v4221_v18 = vrot.slane %v4026_v17, 1  ;;  %v4039_v0 = vmul.f32 %v7439_v12, %v17973_v4 }
 0x4f4   :  { %v4040_v5 = vmul.f32 %v7439_v12, %v17974_v20  ;;  %v4041_v48 = vmul.f32 %v13739_v16, %v7439_v12  ;;  %v4042_v45 = vmul.f32 %v7439_v12, %v17976_v40  ;;  %v4043_v24 = vmul.f32 %v7439_v12, %v17977_v26 }
 0x4f5   :  { %v4045_v53 = vmul.f32 %v7439_v12, %v17978_v10  ;;  %v4046_v8 = vmul.f32 %v7439_v12, %v17979_v56  ;;  %v4048_v14 = vmul.f32 %v7439_v12, %v17980_v2  ;;  %v4049_v59 = vmul.f32 %v7439_v12, %v13668_v37 }
 0x4f6   :  { %v4215_v17 = vsel %vm2005_vm5, %v4213_v58, %v4214_v27  ;;  %v4217_v20 = vsel %vm2005_vm5, %v4214_v27, %v4216_v49  ;;  %v4223_v4 = vrot.slane %v4027_v35, 1  ;;  %v4220_v47 = vsel %vm2005_vm5, %v4218_v32, %v4219_v11 }
 0x4f7   :  { %v4222_v16 = vsel %vm2005_vm5, %v4219_v11, %v4221_v18  ;;  %v4224_v40 = vrot.slane %v4028_v6, 1  ;;  %v4226_v60 = vrot.slane %v4029_v34, 1  ;;  %v4228_v26 = vrot.slane %v4030_v55, 1  ;;  %v17983_v18 = vld [vmem:[#allocation199_spill] sm:$0xff] }
 0x4f8   :  { %v4229_v57 = vrot.slane %v4031_v15, 1  ;;  %v4231_v10 = vrot.slane %v4032_v22, 1  ;;  %v4233_v9 = vrot.slane %v4033_v42, 1  ;;  %v4234_v56 = vrot.slane %v4034_v29, 1 }
 0x4f9   :  { %v4236_v50 = vrot.slane %v4035_v1, 1  ;;  %v4238_v2 = vrot.slane %v4036_v62, 1  ;;  %v4239_v38 = vrot.slane %v4037_v52, 1  ;;  %v4241_v12 = vrot.slane %v4038_v21, 1  ;;  %v17981_v52 = vld [vmem:[#allocation196_spill] sm:$0xff] }
 0x4fa   :  { %v4243_v37 = vrot.slane %v4039_v0, 1  ;;  %v4244_v58 = vrot.slane %v4040_v5, 1  ;;  %v4246_v43 = vrot.slane %v4041_v48, 1  ;;  %v4248_v27 = vrot.slane %v4042_v45, 1  ;;  %v17987_v0 = vld [vmem:[#allocation65_spill] sm:$0xff] }
 0x4fb   :  { %v4249_v35 = vrot.slane %v4043_v24, 1  ;;  %v4253_v49 = vrot.slane %v4045_v53, 1  ;;  %v4254_v32 = vrot.slane %v4046_v8, 1  ;;  %v4225_v11 = vsel %vm2005_vm5, %v4223_v4, %v4224_v40  ;;  %v17985_v4 = vld [vmem:[#allocation198_spill] sm:$0xff]  ;;  %v13784_v45 = vld [vmem:[#allocation11 + $0x8] ss:$0 sm:$0xff] }
 0x4fc   :  { %v4227_v6 = vsel %vm2005_vm5, %v4224_v40, %v4226_v60  ;;  %v4230_v34 = vsel %vm2005_vm5, %v4228_v26, %v4229_v57  ;;  %v4232_v55 = vsel %vm2005_vm5, %v4229_v57, %v4231_v10  ;;  %v4235_v15 = vsel %vm2005_vm5, %v4233_v9, %v4234_v56  ;;  %v7443_v26 = vld [vmem:[#allocation2 + $0x30] sm:$0xff] }
 0x4fd   :  { %v4237_v22 = vsel %vm2005_vm5, %v4234_v56, %v4236_v50  ;;  %v4258_v42 = vrot.slane %v4048_v14, 1  ;;  %v4259_v29 = vrot.slane %v4049_v59, 1  ;;  %v4240_v1 = vsel %vm2005_vm5, %v4238_v2, %v4239_v38 }
 0x4fe   :  { %v4242_v62 = vsel %vm2005_vm5, %v4239_v38, %v4241_v12  ;;  %v4245_v53 = vsel %vm2005_vm5, %v4243_v37, %v4244_v58  ;;  %v4247_v8 = vsel %vm2005_vm5, %v4244_v58, %v4246_v43  ;;  %v4250_v60 = vsel %vm2005_vm5, %v4248_v27, %v4249_v35  ;;  %v17989_v43 = vld [vmem:[#allocation112_spill] sm:$0xff]  ;;  %v7444_v12 = vld [vmem:[#allocation2 + $0x48] sm:$0xff] }
 0x4ff   :  { %v17982_v21 = vrot.slane %v17981_v52, 1  ;;  %v4255_v9 = vsel %vm2005_vm5, %v4253_v49, %v4254_v32  ;;  %v17984_v50 = vrot.slane %v17983_v18, 1  ;;  %v17986_v2 = vrot.slane %v17985_v4, 1  ;;  %v7445_v27 = vld [vmem:[#allocation2 + $0x50] sm:$0xff]  ;;  %v17992_v49 = vld [vmem:[#allocation70_spill] sm:$0xff] }
 0x500   :  { %v17988_v38 = vrot.slane %v17987_v0, 1  ;;  %v17990_v5 = vrot.slane %v17989_v43, 1  ;;  %v4506_v24 = vmul.f32 %v7443_v26, %v13784_v45  ;;  %v4507_v10 = vmul.f32 %v13784_v45, %v17939_v31 }
 0x501   :  { %v4252_v57 = vsel %vm2005_vm5, %v4249_v35, %v17982_v21  ;;  %v4257_v56 = vsel %vm2005_vm5, %v4254_v32, %v17984_v50  ;;  %v17991_v48 = vmov %v17986_v2  ;;  %v4260_v14 = vsel %vm2005_vm5, %v4258_v42, %v4259_v29  ;;  %v17994_v21 = vld [vmem:[#allocation42_spill] sm:$0xff]  ;;  %v17998_v42 = vld [vmem:[#allocation45_spill] sm:$0xff] }
 0x502   :  { %v13775_v37 = vsel %vm2005_vm5, %v17988_v38, %v17986_v2  ;;  %v13782_v40 = vsel %vm2005_vm5, %v17991_v48, %v17990_v5  ;;  %v4508_v59 = vmul.f32 %v13784_v45, %v17965_v33  ;;  %v4509_v58 = vmul.f32 %v7444_v12, %v13784_v45  ;;  %v17996_v50 = vld [vmem:[#allocation214_spill] sm:$0xff] }
 0x503   :  { %v4510_v35 = vmul.f32 %v7445_v27, %v13784_v45  ;;  %v17993_v32 = vrot.slane %v17992_v49, 1  ;;  %v17995_v18 = vrot.slane %v17994_v21, 1  ;;  %v17997_v4 = vrot.slane %v17996_v50, 1  ;;  %v18005_v21 = vld [vmem:[#allocation171_spill] sm:$0xff]  ;;  %v7451_v50 = vld [vmem:[#allocation2 + $0x90] sm:$0xff] }
 0x504   :  { %v17999_v2 = vrot.slane %v17998_v42, 1  ;;  %v4437_v38 = vadd.f32 %v4215_v17, %v13671_v28  ;;  %v4438_v43 = vadd.f32 %v4217_v20, %v13673_v23  ;;  %v4440_v5 = vadd.f32 %v4222_v16, %v13677_v25 }
 0x505   :  { %v4262_v52 = vsel %vm2005_vm5, %v4259_v29, %v17993_v32  ;;  %v13802_v31 = vsel %vm2005_vm5, %v17997_v4, %v17995_v18  ;;  %v18000_v33 = vmov %v17995_v18  ;;  %v4439_v29 = vadd.f32 %v4220_v47, %v13675_v63  ;;  %v7446_v47 = vld [vmem:[#allocation2 + $0x60] sm:$0xff] }
 0x506   :  { %v13809_v0 = vsel %vm2005_vm5, %v18000_v33, %v17999_v2  ;;  %v4441_v48 = vadd.f32 %v4225_v11, %v13679_v7  ;;  %v13817_v26 = vadd.f32 %v4227_v6, %v13681_v36  ;;  %v13820_v12 = vadd.f32 %v4230_v34, %v13683_v44 }
 0x507   :  { %v4698_v27 = vrot.slane %v4506_v24, 2  ;;  %v4699_v49 = vrot.slane %v4507_v10, 2  ;;  %v4511_v32 = vmul.f32 %v13784_v45, %v17966_v54  ;;  %v4701_v28 = vrot.slane %v4508_v59, 2  ;;  %v18002_v59 = vld [vmem:[#allocation99_spill] sm:$0xff] }
 0x508   :  { %v4703_v17 = vrot.slane %v4509_v58, 2  ;;  %v4704_v23 = vrot.slane %v4510_v35, 2  ;;  %v13825_v63 = vadd.f32 %v4232_v55, %v13685_v39  ;;  %v13828_v25 = vadd.f32 %v4235_v15, %v13687_v13  ;;  %v7447_v39 = vld [vmem:[#allocation2 + $0x68] sm:$0xff] }
 0x509   :  { %v13831_v36 = vadd.f32 %v4237_v22, %v13689_v3  ;;  %v13834_v7 = vadd.f32 %v4240_v1, %v13691_v61  ;;  %v13837_v44 = vadd.f32 %v4242_v62, %v13693_v51  ;;  %v13840_v54 = vadd.f32 %v4245_v53, %v13695_v41  ;;  %v7448_v61 = vld [vmem:[#allocation2 + $0x70] sm:$0x3]  ;;  %v7449_v62 = vld [vmem:[#allocation2 + $0x78] sm:$0xff] }
 0x50a   :  { %v4512_v20 = vmul.f32 %v7446_v47, %v13784_v45  ;;  %v4513_v16 = vmul.f32 %v7447_v39, %v13784_v45  ;;  %v13845_v13 = vadd.f32 %v4247_v8, %v13697_v19  ;;  %v13848_v3 = vadd.f32 %v4250_v60, %v13699_v30  ;;  %v18001_v19 = vld [vmem:[#allocation105_spill] sm:$0xff]  ;;  %v7450_v8 = vld [vmem:[#allocation2 + $0x80] sm:$0xff] }
 0x50b   :  { %v4514_v11 = vmul.f32 %v7448_v61, %v13784_v45  ;;  %v4700_v51 = vsel %vm2491_vm6, %v4698_v27, %v4699_v49  ;;  %v4702_v41 = vsel %vm2491_vm6, %v4699_v49, %v4701_v28  ;;  %v4705_v6 = vsel %vm2491_vm6, %v4703_v17, %v4704_v23  ;;  %v18006_v28 = vld [vmem:[#allocation143_spill] sm:$0xff] }
 0x50c   :  { %v4706_v34 = vrot.slane %v4511_v32, 2  ;;  %v13854_v55 = vadd.f32 %v4700_v51, %v4437_v38  ;;  %v13857_v15 = vadd.f32 %v4252_v57, %v13701_v46  ;;  %v13860_v22 = vadd.f32 %v4255_v9, %v18001_v19  ;;  %v18003_v46 = vld [vmem:[#allocation84_spill] sm:$0xff]  ;;  %v18004_v9 = vld [vmem:[#allocation89_spill] sm:$0xff] }
 0x50d   :  { %v13862_v30 = vadd.f32 %v4702_v41, %v4438_v43  ;;  %v13864_v1 = vadd.f32 %v4705_v6, %v4439_v29  ;;  %v4515_v53 = vmul.f32 %v7449_v62, %v13784_v45  ;;  %v4516_v60 = vmul.f32 %v7450_v8, %v13784_v45  ;;  %v18010_v6 = vld [vmem:[#allocation190_spill] sm:$0xff]  ;;  %v18011_v19 = vld [vmem:[#allocation165_spill] sm:$0xff] }
 0x50e   :  { %v4708_v24 = vrot.slane %v4512_v20, 2  ;;  %v4709_v10 = vrot.slane %v4513_v16, 2  ;;  %v13869_v58 = vadd.f32 %v4257_v56, %v18002_v59  ;;  %v13872_v57 = vadd.f32 %v4260_v14, %v18003_v46  ;;  %v7452_v56 = vld [vmem:[#allocation2 + $0x98] sm:$0xff]  ;;  %v18008_v20 = vld [vmem:[#allocation216_spill] sm:$0xff]  ;;  %v18009_v16 = vld [vmem:[#allocation86_spill] sm:$0xff] }
 0x50f   :  { %v13875_v35 = vadd.f32 %v4262_v52, %v18004_v9  ;;  %v4517_v18 = vmul.f32 %v13784_v45, %v18005_v21  ;;  %v4518_v4 = vmul.f32 %v7451_v50, %v13784_v45  ;;  %v4707_v42 = vsel %vm2491_vm6, %v4704_v23, %v4706_v34  ;;  %v18007_v23 = vld [vmem:[#allocation35_spill] sm:$0xff]  ;;  %v18013_v9 = vld [vmem:[#allocation166_spill] sm:$0xff]  ;;  %v18014_v50 = vld [vmem:[#allocation85_spill] sm:$0xff] }
 0x510   :  { %v4711_v2 = vrot.slane %v4514_v11, 2  ;;  %v4988_v33 = vsel %vm807_vm2, %v13854_v55, 0.0  ;;  %v4519_v38 = vmul.f32 %v7452_v56, %v13784_v45  ;;  %v13884_v14 = vadd.f32 %v4707_v42, %v4440_v5  ;;  %v18015_v56 = vld [vmem:[#allocation90_spill] sm:$0xff] }
 0x511   :  { %v4989_v52 = vsel %vm807_vm2, %v13862_v30, 0.0  ;;  %v4991_v43 = vsel %vm807_vm2, %v13864_v1, 0.0  ;;  %v4710_v29 = vsel %vm2491_vm6, %v4708_v24, %v4709_v10  ;;  %v4713_v27 = vrot.slane %v4515_v53, 2 }
 0x512   :  { %v4714_v49 = vrot.slane %v4516_v60, 2  ;;  %v4990_v32 = vadd.f32 %v4989_v52, %v4988_v33  ;;  %v4520_v17 = vmul.f32 %v13784_v45, %v18006_v28  ;;  %v4521_v47 = vmul.f32 %v13784_v45, %v18007_v23  ;;  %v18016_v52 = vld [vmem:[#allocation92_spill] sm:$0xff] }
 0x513   :  { %v4522_v5 = vmul.f32 %v13784_v45, %v18008_v20  ;;  %v13897_v39 = vadd.f32 %v4710_v29, %v4441_v48  ;;  %v4523_v61 = vmul.f32 %v13784_v45, %v18009_v16  ;;  %v4712_v11 = vsel %vm2491_vm6, %v4709_v10, %v4711_v2  ;;  %v18012_v10 = vld [vmem:[#allocation161_spill] sm:$0xff] }
 0x514   :  { %v4716_v51 = vrot.slane %v4517_v18, 2  ;;  %v4992_v41 = vadd.f32 %v4991_v43, %v4990_v32  ;;  %v4524_v34 = vmul.f32 %v13784_v45, %v18010_v6  ;;  %v4525_v62 = vmul.f32 %v13784_v45, %v18011_v19 }
 0x515   :  { %v13907_v53 = vadd.f32 %v4712_v11, %v13817_v26  ;;  %v4993_v48 = vsel %vm807_vm2, %v13884_v14, 0.0  ;;  %v4715_v8 = vsel %vm2491_vm6, %v4713_v27, %v4714_v49  ;;  %v4718_v60 = vrot.slane %v4518_v4, 2  ;;  %v18018_v11 = vld [vmem:[#allocation98_spill] sm:$0xff] }
 0x516   :  { %v4719_v24 = vrot.slane %v4519_v38, 2  ;;  %v4994_v59 = vadd.f32 %v4993_v48, %v4992_v41  ;;  %v4526_v46 = vmul.f32 %v13784_v45, %v18012_v10  ;;  %v4527_v21 = vmul.f32 %v13784_v45, %v18013_v9 }
 0x517   :  { %v13917_v18 = vadd.f32 %v4715_v8, %v13820_v12  ;;  %v4995_v26 = vsel %vm807_vm2, %v13897_v39, 0.0  ;;  %v13923_v42 = vmul.f32 %v13784_v45, %v18014_v50  ;;  %v4717_v4 = vsel %vm2491_vm6, %v4714_v49, %v4716_v51 }
 0x518   :  { %v4721_v2 = vrot.slane %v4520_v17, 2  ;;  %v4996_v33 = vadd.f32 %v4995_v26, %v4994_v59  ;;  %v13928_v38 = vmul.f32 %v13784_v45, %v18015_v56  ;;  %v13932_v43 = vmul.f32 %v13784_v45, %v18016_v52  ;;  %v18017_v17 = vld [vmem:[#allocation91_spill] sm:$0xff] }
 0x519   :  { %v13935_v12 = vadd.f32 %v4717_v4, %v13825_v63  ;;  %v4997_v29 = vsel %vm807_vm2, %v13907_v53, 0.0  ;;  %v4720_v27 = vsel %vm2491_vm6, %v4718_v60, %v4719_v24  ;;  %v4723_v32 = vrot.slane %v4521_v47, 2 }
 0x51a   :  { %v4724_v49 = vrot.slane %v4522_v5, 2  ;;  %v4998_v28 = vadd.f32 %v4997_v29, %v4996_v33  ;;  %v13942_v23 = vmul.f32 %v13784_v45, %v18017_v17  ;;  %v4726_v20 = vrot.slane %v4523_v61, 2 }
 0x51b   :  { %v13945_v16 = vadd.f32 %v4720_v27, %v13828_v25  ;;  %v4999_v63 = vsel %vm807_vm2, %v13917_v18, 0.0  ;;  %v13951_v51 = vmul.f32 %v13784_v45, %v18018_v11  ;;  %v4722_v41 = vsel %vm2491_vm6, %v4719_v24, %v4721_v2 }
 0x51c   :  { %v5000_v47 = vadd.f32 %v4999_v63, %v4998_v28  ;;  %v5121_v5 = vmul.f32 %v13854_v55, %v13854_v55  ;;  %v13957_v6 = vadd.f32 %v4722_v41, %v13831_v36  ;;  %v5001_v25 = vsel %vm807_vm2, %v13935_v12, 0.0 }
 0x51d   :  { %v5122_v61 = vmul.f32 %v13862_v30, %v13862_v30  ;;  %v5123_v19 = vmul.f32 %v13864_v1, %v13864_v1  ;;  %v4725_v45 = vsel %vm2491_vm6, %v4723_v32, %v4724_v49  ;;  %v4728_v48 = vrot.slane %v4524_v34, 2 }
 0x51e   :  { %v4729_v8 = vrot.slane %v4525_v62, 2  ;;  %v5002_v60 = vadd.f32 %v5001_v25, %v5000_v47  ;;  %v4727_v24 = vsel %vm2491_vm6, %v4724_v49, %v4726_v20  ;;  %v4731_v59 = vrot.slane %v4526_v46, 2 }
 0x51f   :  { %v13968_v36 = vadd.f32 %v4725_v45, %v13834_v7  ;;  %v5003_v10 = vsel %vm807_vm2, %v13945_v16, 0.0  ;;  %v4733_v9 = vrot.slane %v4527_v21, 2  ;;  %v13973_v26 = vadd.f32 %v4727_v24, %v13837_v44 }
 0x520   :  { %v5004_v50 = vadd.f32 %v5003_v10, %v5002_v60  ;;  %v5185_v4 = vsel %vm807_vm2, %v5121_v5, 0.0  ;;  %v5005_v34 = vsel %vm807_vm2, %v13957_v6, 0.0  ;;  %v5124_v62 = vmul.f32 %v13884_v14, %v13884_v14  ;;  %v18021_v10 = vld [vmem:[#allocation162_spill] sm:$0xff] }
 0x521   :  { %v5186_v46 = vsel %vm807_vm2, %v5122_v61, 0.0  ;;  %v5188_v7 = vsel %vm807_vm2, %v5123_v19, 0.0  ;;  %v4730_v2 = vsel %vm2491_vm6, %v4728_v48, %v4729_v8  ;;  %v4734_v21 = vrot.slane %v13923_v42, 2  ;;  %v18019_v61 = vld [vmem:[#allocation88_spill] sm:$0xff] }
 0x522   :  { %v5006_v33 = vadd.f32 %v5005_v34, %v5004_v50  ;;  %v5187_v44 = vadd.f32 %v5186_v46, %v5185_v4  ;;  %v4738_v56 = vrot.slane %v13928_v38, 2  ;;  %v13986_v52 = vadd.f32 %v4730_v2, %v13840_v54 }
 0x523   :  { %v5007_v29 = vsel %vm807_vm2, %v13968_v36, 0.0  ;;  %v5125_v27 = vmul.f32 %v13897_v39, %v13897_v39  ;;  %v4732_v32 = vsel %vm2491_vm6, %v4729_v8, %v4731_v59  ;;  %v4739_v49 = vrot.slane %v13932_v43, 2 }
 0x524   :  { %v5008_v28 = vadd.f32 %v5007_v29, %v5006_v33  ;;  %v5189_v17 = vadd.f32 %v5188_v7, %v5187_v44  ;;  %v13995_v42 = vadd.f32 %v4732_v32, %v13845_v13  ;;  %v5009_v38 = vsel %vm807_vm2, %v13973_v26, 0.0  ;;  %v18022_v7 = vld [vmem:[#allocation94_spill] sm:$0xff]  ;;  %v18024_v32 = vld [vmem:[#allocation95_spill] sm:$0xff] }
 0x525   :  { %v5126_v54 = vmul.f32 %v13907_v53, %v13907_v53  ;;  %v5190_v20 = vsel %vm807_vm2, %v5124_v62, 0.0  ;;  %v4735_v63 = vsel %vm2491_vm6, %v4733_v9, %v4734_v21  ;;  %v4743_v11 = vrot.slane %v13942_v23, 2 }
 0x526   :  { %v5010_v41 = vadd.f32 %v5009_v38, %v5008_v28  ;;  %v5191_v47 = vadd.f32 %v5190_v20, %v5189_v17  ;;  %v14005_v43 = vadd.f32 %v4735_v63, %v13848_v3  ;;  %v5011_v13 = vsel %vm807_vm2, %v13986_v52, 0.0  ;;  %v18025_v17 = vld [vmem:[#allocation101_spill] sm:$0xff] }
 0x527   :  { %v5127_v5 = vmul.f32 %v13917_v18, %v13917_v18  ;;  %v5192_v25 = vsel %vm807_vm2, %v5125_v27, 0.0  ;;  %v18020_v19 = vrot.slane %v18019_v61, 2  ;;  %v4744_v48 = vrot.slane %v13951_v51, 2 }
 0x528   :  { %v5012_v23 = vadd.f32 %v5011_v13, %v5010_v41  ;;  %v5193_v8 = vadd.f32 %v5192_v25, %v5191_v47  ;;  %v5013_v3 = vsel %vm807_vm2, %v13995_v42, 0.0  ;;  %v5128_v24 = vmul.f32 %v13935_v12, %v13935_v12  ;;  %v18026_v41 = vld [vmem:[#allocation167_spill] sm:$0xff]  ;;  %v18027_v13 = vld [vmem:[#allocation110_spill] sm:$0xff] }
 0x529   :  { %v4737_v45 = vsel %vm2491_vm6, %v4734_v21, %v18020_v19  ;;  %v5194_v59 = vsel %vm807_vm2, %v5126_v54, 0.0  ;;  %v4457_v9 = vadd.f32 %v13775_v37, %v18021_v10  ;;  %v4740_v50 = vsel %vm2491_vm6, %v4738_v56, %v4739_v49 }
 0x52a   :  { %v14017_v60 = vadd.f32 %v4737_v45, %v13857_v15  ;;  %v5014_v4 = vadd.f32 %v5013_v3, %v5012_v23  ;;  %v5195_v51 = vadd.f32 %v5194_v59, %v5193_v8  ;;  %v14028_v34 = vadd.f32 %v4740_v50, %v13860_v22  ;;  %v18029_v3 = vld [vmem:[#allocation177_spill] sm:$0xff] }
 0x52b   :  { %v5015_v15 = vsel %vm807_vm2, %v14005_v43, 0.0  ;;  %v5129_v62 = vmul.f32 %v13945_v16, %v13945_v16  ;;  %v5196_v46 = vsel %vm807_vm2, %v5127_v5, 0.0  ;;  %v18023_v2 = vrot.slane %v18022_v7, 2 }
 0x52c   :  { %v4745_v37 = vsel %vm2491_vm6, %v4743_v11, %v4744_v48  ;;  %v5016_v33 = vadd.f32 %v5015_v15, %v5014_v4  ;;  %v5197_v44 = vadd.f32 %v5196_v46, %v5195_v51  ;;  %v5017_v22 = vsel %vm807_vm2, %v14017_v60, 0.0  ;;  %v18030_v51 = vld [vmem:[#allocation183_spill] sm:$0xff] }
 0x52d   :  { %v4742_v21 = vsel %vm2491_vm6, %v4739_v49, %v18023_v2  ;;  %v5130_v29 = vmul.f32 %v13957_v6, %v13957_v6  ;;  %v5198_v27 = vsel %vm807_vm2, %v5128_v24, 0.0  ;;  %v4748_v28 = vrot.slane %v18024_v32, 2 }
 0x52e   :  { %v14040_v56 = vadd.f32 %v4742_v21, %v13869_v58  ;;  %v4749_v38 = vrot.slane %v18025_v17, 2  ;;  %v5018_v49 = vadd.f32 %v5017_v22, %v5016_v33  ;;  %v5199_v54 = vadd.f32 %v5198_v27, %v5197_v44  ;;  %v18033_v44 = vld [vmem:[#allocation206_spill] sm:$0xff] }
 0x52f   :  { %v14050_v20 = vadd.f32 %v4745_v37, %v13872_v57  ;;  %v5019_v58 = vsel %vm807_vm2, %v14028_v34, 0.0  ;;  %v5131_v63 = vmul.f32 %v13968_v36, %v13968_v36  ;;  %v5200_v11 = vsel %vm807_vm2, %v5129_v62, 0.0  ;;  %v18031_v62 = vld [vmem:[#allocation115_spill] sm:$0xff]  ;;  %v18036_v27 = vld [vmem:[#allocation102_spill] sm:$0xff] }
 0x530   :  { %v4458_v47 = vadd.f32 %v13782_v40, %v18026_v41  ;;  %v18028_v5 = vrot.slane %v18027_v13, 2  ;;  %v5020_v61 = vadd.f32 %v5019_v58, %v5018_v49  ;;  %v5201_v19 = vadd.f32 %v5200_v11, %v5199_v54  ;;  %v18038_v11 = vld [vmem:[#allocation135_spill] sm:$0xff] }
 0x531   :  { %v5021_v45 = vsel %vm807_vm2, %v14040_v56, 0.0  ;;  %v5132_v23 = vmul.f32 %v13973_v26, %v13973_v26  ;;  %v5202_v8 = vsel %vm807_vm2, %v5130_v29, 0.0  ;;  %v4459_v40 = vadd.f32 %v13802_v31, %v18029_v3  ;;  %v18034_v29 = vld [vmem:[#allocation106_spill] sm:$0xff] }
 0x532   :  { %v4747_v25 = vsel %vm2491_vm6, %v4744_v48, %v18028_v5  ;;  %v4750_v24 = vsel %vm2491_vm6, %v4748_v28, %v4749_v38  ;;  %v5022_v59 = vadd.f32 %v5021_v45, %v5020_v61  ;;  %v5203_v48 = vadd.f32 %v5202_v8, %v5201_v19 }
 0x533   :  { %v14063_v57 = vadd.f32 %v4747_v25, %v13875_v35  ;;  %v14073_v10 = vadd.f32 %v4750_v24, %v4457_v9  ;;  %v5023_v35 = vsel %vm807_vm2, %v14050_v20, 0.0  ;;  %v5133_v50 = vmul.f32 %v13986_v52, %v13986_v52  ;;  %v18042_v25 = vld [vmem:[#allocation119_spill] sm:$0xff] }
 0x534   :  { %v5204_v4 = vsel %vm807_vm2, %v5131_v63, 0.0  ;;  %v4460_v15 = vadd.f32 %v13809_v0, %v18030_v51  ;;  %v18032_v46 = vrot.slane %v18031_v62, 2  ;;  %v5024_v7 = vadd.f32 %v5023_v35, %v5022_v59  ;;  %v18049_v51 = vld [vmem:[#allocation111_spill] sm:$0xff] }
 0x535   :  { %v5205_v2 = vadd.f32 %v5204_v4, %v5203_v48  ;;  %v5025_v9 = vsel %vm807_vm2, %v14063_v57, 0.0  ;;  %v5134_v37 = vmul.f32 %v13995_v42, %v13995_v42  ;;  %v5206_v33 = vsel %vm807_vm2, %v5132_v23, 0.0  ;;  %v18046_v48 = vld [vmem:[#allocation149_spill] sm:$0xff] }
 0x536   :  { %v4752_v31 = vsel %vm2491_vm6, %v4749_v38, %v18032_v46  ;;  %v4779_v22 = vrot.slane %v18033_v44, 2  ;;  %v18035_v0 = vrot.slane %v18034_v29, 2  ;;  %v18037_v32 = vrot.slane %v18036_v27, 2  ;;  %v18051_v46 = vld [vmem:[#allocation107_spill] sm:$0xff] }
 0x537   :  { %v14085_v21 = vadd.f32 %v4752_v31, %v4458_v47  ;;  %v5026_v17 = vadd.f32 %v5025_v9, %v5024_v7  ;;  %v5207_v38 = vadd.f32 %v5206_v33, %v5205_v2  ;;  %v5027_v54 = vsel %vm807_vm2, %v14073_v10, 0.0  ;;  %v18040_v47 = vld [vmem:[#allocation123_spill] sm:$0xff]  ;;  %v18053_v9 = vld [vmem:[#allocation148_spill] sm:$0xff] }
 0x538   :  { %v4755_v28 = vsel %vm2491_vm6, %v18037_v32, %v18035_v0  ;;  %v5135_v58 = vmul.f32 %v14005_v43, %v14005_v43  ;;  %v5208_v63 = vsel %vm807_vm2, %v5133_v50, 0.0  ;;  %v18039_v41 = vrot.slane %v18038_v11, 2  ;;  %v18056_v32 = vld [vmem:[#allocation210_spill] sm:$0xff] }
 0x539   :  { %v14098_v49 = vadd.f32 %v4755_v28, %v4459_v40  ;;  %v18041_v13 = vrot.slane %v18040_v47, 2  ;;  %v18043_v61 = vrot.slane %v18042_v25, 2  ;;  %v18044_v19 = vmov %v18035_v0  ;;  %v18055_v0 = vld [vmem:[#allocation208_spill] sm:$0xff] }
 0x53a   :  { %v5028_v23 = vadd.f32 %v5027_v54, %v5026_v17  ;;  %v5209_v8 = vadd.f32 %v5208_v63, %v5207_v38  ;;  %v5029_v40 = vsel %vm807_vm2, %v14085_v21, 0.0  ;;  %v5136_v24 = vmul.f32 %v14017_v60, %v14017_v60  ;;  %v18057_v54 = vld [vmem:[#allocation152_spill] sm:$0xff]  ;;  %v18058_v63 = vld [vmem:[#allocation113_spill] sm:$0xff] }
 0x53b   :  { %v4770_v5 = vsel %vm2491_vm6, %v18041_v13, %v18039_v41  ;;  %v4757_v45 = vsel %vm2491_vm6, %v18044_v19, %v18043_v61  ;;  %v5210_v59 = vsel %vm807_vm2, %v5134_v37, 0.0  ;;  %v18047_v35 = vrot.slane %v18046_v48, 2  ;;  %v18060_v25 = vld [vmem:[#allocation32_spill] sm:$0xff] }
 0x53c   :  { %v14115_v3 = vadd.f32 %v4757_v45, %v4460_v15  ;;  %v18048_v50 = vmov %v18039_v41  ;;  %v18050_v62 = vrot.slane %v18049_v51, 2  ;;  %v18052_v31 = vrot.slane %v18051_v46, 2  ;;  %v18062_v19 = vld [vmem:[#allocation212_spill] sm:$0xff]  ;;  %v18066_v51 = vld [vmem:[#allocation218_spill] sm:$0xff]  ;;  %v18067_v46 = vld [vmem:[#allocation147_spill] sm:$0xff] }
 0x53d   :  { %v4772_v4 = vsel %vm2491_vm6, %v18048_v50, %v18047_v35  ;;  %v5030_v7 = vadd.f32 %v5029_v40, %v5028_v23  ;;  %v5211_v2 = vadd.f32 %v5210_v59, %v5209_v8  ;;  %v5031_v37 = vsel %vm807_vm2, %v14098_v49, 0.0  ;;  %v18063_v40 = vld [vmem:[#allocation153_spill] sm:$0xff]  ;;  %v18064_v59 = vld [vmem:[#allocation114_spill] sm:$0xff] }
 0x53e   :  { %18045 = vst [vmem:[#allocation168_spill] sm:$0xff] %v14115_v3  ;;  %v4760_v15 = vsel %vm2491_vm6, %v18052_v31, %v18050_v62  ;;  %v5137_v44 = vmul.f32 %v14028_v34, %v14028_v34  ;;  %v5212_v29 = vsel %vm807_vm2, %v5135_v58, 0.0  ;;  %v4781_v27 = vrot.slane %v18055_v0, 2 }
 0x53f   :  { %v14133_v33 = vadd.f32 %v4760_v15, %v18053_v9  ;;  %v4783_v28 = vrot.slane %v18056_v32, 2  ;;  %v5032_v17 = vadd.f32 %v5031_v37, %v5030_v7  ;;  %v5213_v38 = vadd.f32 %v5212_v29, %v5211_v2  ;;  %v18068_v2 = vld [vmem:[#allocation157_spill] sm:$0xff] }
 0x540   :  { %v14144_v11 = vadd.f32 %v18058_v63, %v18057_v54  ;;  %v5033_v41 = vsel %vm807_vm2, %v14115_v3, 0.0  ;;  %v5138_v47 = vmul.f32 %v14040_v56, %v14040_v56  ;;  %v5214_v13 = vsel %vm807_vm2, %v5136_v24, 0.0  ;;  %v18069_v9 = vld [vmem:[#allocation117_spill] sm:$0xff] }
 0x541   :  { %18054 = vst [vmem:[#allocation174_spill] sm:$0xff] %v14133_v33  ;;  %v18061_v58 = vrot.slane %v18060_v25, 2  ;;  %v4784_v45 = vrot.slane %v18062_v19, 2  ;;  %v5034_v23 = vadd.f32 %v5033_v41, %v5032_v17  ;;  %v5215_v8 = vadd.f32 %v5214_v13, %v5213_v38  ;;  %v18071_v17 = vld [vmem:[#allocation62_spill] sm:$0xff]  ;;  %v18072_v41 = vld [vmem:[#allocation120_spill] sm:$0xff] }
 0x542   :  { %18059 = vst [vmem:[#allocation173_spill] sm:$0xff] %v14144_v11  ;;  %v14157_v48 = vadd.f32 %v18064_v59, %v18063_v40  ;;  %v5035_v35 = vsel %vm807_vm2, %v14133_v33, 0.0  ;;  %v5139_v50 = vmul.f32 %v14050_v20, %v14050_v20  ;;  %v5216_v24 = vsel %vm807_vm2, %v5137_v44, 0.0  ;;  %v18076_v59 = vld [vmem:[#allocation193_spill] sm:$0xff] }
 0x543   :  { %v4780_v61 = vsel %vm2491_vm6, %v18061_v58, %v4779_v22  ;;  %v4786_v62 = vrot.slane %v18066_v51, 2  ;;  %v4788_v31 = vrot.slane %v18067_v46, 2  ;;  %v5036_v15 = vadd.f32 %v5035_v35, %v5034_v23  ;;  %v18074_v23 = vld [vmem:[#allocation63_spill] sm:$0xff] }
 0x544   :  { %18065 = vst [vmem:[#allocation180_spill] sm:$0xff] %v14157_v48  ;;  %v5217_v7 = vadd.f32 %v5216_v24, %v5215_v8  ;;  %v14168_v37 = vadd.f32 %v18069_v9, %v18068_v2  ;;  %v5037_v29 = vsel %vm807_vm2, %v14144_v11, 0.0  ;;  %v5140_v0 = vmul.f32 %v14063_v57, %v14063_v57  ;;  %v18078_v2 = vld [vmem:[#allocation200_spill] sm:$0xff]  ;;  %v18079_v9 = vld [vmem:[#allocation47_spill] sm:$0xff] }
 0x545   :  { %v5218_v32 = vsel %vm807_vm2, %v5138_v47, 0.0  ;;  %v4782_v44 = vsel %vm2491_vm6, %v4779_v22, %v4781_v27  ;;  %v4789_v38 = vrot.slane %v18071_v17, 2  ;;  %v5038_v54 = vadd.f32 %v5037_v29, %v5036_v15  ;;  %v18075_v47 = vld [vmem:[#allocation64_spill] sm:$0xff] }
 0x546   :  { %18070 = vst [vmem:[#allocation185_spill] sm:$0xff] %v14168_v37  ;;  %v5219_v63 = vadd.f32 %v5218_v32, %v5217_v7  ;;  %v14178_v13 = vadd.f32 %v4770_v5, %v18072_v41  ;;  %v5039_v25 = vsel %vm807_vm2, %v14157_v48, 0.0  ;;  %v5141_v58 = vmul.f32 %v14073_v10, %v14073_v10 }
 0x547   :  { %v5220_v19 = vsel %vm807_vm2, %v5139_v50, 0.0  ;;  %v4791_v8 = vrot.slane %v18074_v23, 2  ;;  %v4793_v40 = vrot.slane %v18075_v47, 2  ;;  %v5040_v22 = vadd.f32 %v5039_v25, %v5038_v54  ;;  %v18081_v54 = vld [vmem:[#allocation66_spill] sm:$0xff]  ;;  %v18084_v25 = vld [vmem:[#allocation53_spill] sm:$0xff] }
 0x548   :  { %18073 = vst [vmem:[#allocation181_spill] sm:$0xff] %v14178_v13  ;;  %v5221_v27 = vadd.f32 %v5220_v19, %v5219_v63  ;;  %v14188_v35 = vadd.f32 %v4772_v4, %v18076_v59  ;;  %v5041_v5 = vsel %vm807_vm2, %v14168_v37, 0.0  ;;  %v5142_v24 = vmul.f32 %v14085_v21, %v14085_v21  ;;  %v18082_v63 = vld [vmem:[#allocation67_spill] sm:$0xff] }
 0x549   :  { %v5222_v51 = vsel %vm807_vm2, %v5140_v0, 0.0  ;;  %v4785_v46 = vsel %vm2491_vm6, %v4783_v28, %v4784_v45  ;;  %v4787_v50 = vsel %vm2491_vm6, %v4784_v45, %v4786_v62  ;;  %v5042_v15 = vadd.f32 %v5041_v5, %v5040_v22  ;;  %v18083_v62 = vld [vmem:[#allocation186_spill] sm:$0xff] }
 0x54a   :  { %18077 = vst [vmem:[#allocation163_spill] sm:$0xff] %v14188_v35  ;;  %v5223_v7 = vadd.f32 %v5222_v51, %v5221_v27  ;;  %v14199_v29 = vadd.f32 %v18079_v9, %v18078_v2  ;;  %v5043_v4 = vsel %vm807_vm2, %v14178_v13, 0.0  ;;  %v5143_v32 = vmul.f32 %v14098_v49, %v14098_v49  ;;  %v18086_v51 = vld [vmem:[#allocation58_spill] sm:$0xff] }
 0x54b   :  { %v5224_v17 = vsel %vm807_vm2, %v5141_v58, 0.0  ;;  %v4794_v0 = vrot.slane %v18081_v54, 2  ;;  %v4796_v28 = vrot.slane %v18082_v63, 2  ;;  %v5044_v41 = vadd.f32 %v5043_v4, %v5042_v15  ;;  %v18088_v4 = vld [vmem:[#allocation68_spill] sm:$0xff] }
 0x54c   :  { %18080 = vst [vmem:[#allocation169_spill] sm:$0xff] %v14199_v29  ;;  %v5225_v45 = vadd.f32 %v5224_v17, %v5223_v7  ;;  %v14210_v19 = vadd.f32 %v18084_v25, %v18083_v62  ;;  %v5045_v23 = vsel %vm807_vm2, %v14188_v35, 0.0  ;;  %v5144_v47 = vmul.f32 %v14115_v3, %v14115_v3 }
 0x54d   :  { %v5226_v22 = vsel %vm807_vm2, %v5142_v24, 0.0  ;;  %v4790_v58 = vsel %vm2491_vm6, %v4788_v31, %v4789_v38  ;;  %v4792_v27 = vsel %vm2491_vm6, %v4789_v38, %v4791_v8  ;;  %v5046_v59 = vadd.f32 %v5045_v23, %v5044_v41  ;;  %v18089_v24 = vld [vmem:[#allocation207_spill] sm:$0xff] }
 0x54e   :  { %18085 = vst [vmem:[#allocation118_spill] sm:$0xff] %v14210_v19  ;;  %v5227_v5 = vadd.f32 %v5226_v22, %v5225_v45  ;;  %v14220_v15 = vadd.f32 %v4780_v61, %v18086_v51  ;;  %v5047_v7 = vsel %vm807_vm2, %v14199_v29, 0.0  ;;  %v5145_v2 = vmul.f32 %v14133_v33, %v14133_v33  ;;  %v18090_v38 = vld [vmem:[#allocation39_spill] sm:$0xff] }
 0x54f   :  { %v5228_v9 = vsel %vm807_vm2, %v5143_v32, 0.0  ;;  %v4798_v17 = vrot.slane %v18088_v4, 2  ;;  %v4799_v54 = vrot.slane %v18089_v24, 2  ;;  %v5048_v31 = vadd.f32 %v5047_v7, %v5046_v59  ;;  %v18091_v22 = vld [vmem:[#allocation59_spill] sm:$0xff]  ;;  %v18092_v7 = vld [vmem:[#allocation209_spill] sm:$0xff] }
 0x550   :  { %18087 = vst [vmem:[#allocation189_spill] sm:$0xff] %v14220_v15  ;;  %v5229_v63 = vadd.f32 %v5228_v9, %v5227_v5  ;;  %v14230_v8 = vadd.f32 %v4782_v44, %v18090_v38  ;;  %v5049_v61 = vsel %vm807_vm2, %v14210_v19, 0.0  ;;  %v5146_v41 = vmul.f32 %v14144_v11, %v14144_v11 }
 0x551   :  { %v5230_v45 = vsel %vm807_vm2, %v5144_v47, 0.0  ;;  %v4795_v62 = vsel %vm2491_vm6, %v4793_v40, %v4794_v0  ;;  %v4797_v32 = vsel %vm2491_vm6, %v4794_v0, %v4796_v28  ;;  %v5050_v25 = vadd.f32 %v5049_v61, %v5048_v31  ;;  %v18093_v47 = vld [vmem:[#allocation211_spill] sm:$0xff]  ;;  %v18094_v0 = vld [vmem:[#allocation56_spill] sm:$0xff] }
 0x552   :  { %v5231_v23 = vadd.f32 %v5230_v45, %v5229_v63  ;;  %v14240_v59 = vadd.f32 %v4785_v46, %v18091_v22  ;;  %v5051_v44 = vsel %vm807_vm2, %v14220_v15, 0.0  ;;  %v5147_v5 = vmul.f32 %v14157_v48, %v14157_v48 }
 0x553   :  { %v5232_v51 = vsel %vm807_vm2, %v5145_v2, 0.0  ;;  %v4801_v9 = vrot.slane %v18092_v7, 2  ;;  %v4803_v4 = vrot.slane %v18093_v47, 2  ;;  %v5052_v40 = vadd.f32 %v5051_v44, %v5050_v25  ;;  %v18095_v2 = vld [vmem:[#allocation213_spill] sm:$0xff]  ;;  %v18096_v7 = vld [vmem:[#allocation60_spill] sm:$0xff] }
 0x554   :  { %v5233_v24 = vadd.f32 %v5232_v51, %v5231_v23  ;;  %v14250_v28 = vadd.f32 %v4787_v50, %v18094_v0  ;;  %v5053_v46 = vsel %vm807_vm2, %v14230_v8, 0.0  ;;  %v5148_v31 = vmul.f32 %v14168_v37, %v14168_v37  ;;  %v18097_v51 = vld [vmem:[#allocation215_spill] sm:$0xff] }
 0x555   :  { %v5234_v63 = vsel %vm807_vm2, %v5146_v41, 0.0  ;;  %v4800_v38 = vsel %vm2491_vm6, %v4798_v17, %v4799_v54  ;;  %v4804_v61 = vrot.slane %v18095_v2, 2  ;;  %v5054_v45 = vadd.f32 %v5053_v46, %v5052_v40  ;;  %v18098_v41 = vld [vmem:[#allocation217_spill] sm:$0xff] }
 0x556   :  { %v5235_v22 = vadd.f32 %v5234_v63, %v5233_v24  ;;  %v14260_v25 = vadd.f32 %v4790_v58, %v18096_v7  ;;  %v5055_v50 = vsel %vm807_vm2, %v14240_v59, 0.0  ;;  %v5149_v23 = vmul.f32 %v14178_v13, %v14178_v13  ;;  %v18099_v2 = vld [vmem:[#allocation57_spill] sm:$0xff] }
 0x557   :  { %v5236_v44 = vsel %vm807_vm2, %v5147_v5, 0.0  ;;  %v4806_v47 = vrot.slane %v18097_v51, 2  ;;  %v4808_v0 = vrot.slane %v18098_v41, 2  ;;  %v5056_v17 = vadd.f32 %v5055_v50, %v5054_v45  ;;  %v18100_v5 = vld [vmem:[#allocation34_spill] sm:$0xff]  ;;  %v18101_v41 = vld [vmem:[#allocation61_spill] sm:$0xff] }
 0x558   :  { %v5237_v37 = vadd.f32 %v5236_v44, %v5235_v22  ;;  %v14270_v40 = vadd.f32 %v4792_v27, %v18099_v2  ;;  %v5057_v58 = vsel %vm807_vm2, %v14250_v28, 0.0  ;;  %v5150_v24 = vmul.f32 %v14188_v35, %v14188_v35  ;;  %v18102_v44 = vld [vmem:[#allocation44_spill] sm:$0xff] }
 0x559   :  { %v5238_v46 = vsel %vm807_vm2, %v5148_v31, 0.0  ;;  %v4802_v63 = vsel %vm2491_vm6, %v4799_v54, %v4801_v9  ;;  %v4809_v7 = vrot.slane %v18100_v5, 2  ;;  %v5058_v51 = vadd.f32 %v5057_v58, %v5056_v17  ;;  %v18103_v31 = vld [vmem:[#allocation37_spill] sm:$0xff] }
 0x55a   :  { %v5239_v13 = vadd.f32 %v5238_v46, %v5237_v37  ;;  %v14280_v45 = vadd.f32 %v4795_v62, %v18101_v41  ;;  %v5059_v27 = vsel %vm807_vm2, %v14260_v25, 0.0  ;;  %v5151_v22 = vmul.f32 %v14199_v29, %v14199_v29  ;;  %v18104_v5 = vld [vmem:[#allocation129_spill] sm:$0xff] }
 0x55b   :  { %v5240_v50 = vsel %vm807_vm2, %v5149_v23, 0.0  ;;  %v4811_v2 = vrot.slane %v18102_v44, 2  ;;  %v4813_v35 = vrot.slane %v18103_v31, 2  ;;  %v5060_v54 = vadd.f32 %v5059_v27, %v5058_v51  ;;  %v18106_v31 = vld [vmem:[#allocation137_spill] sm:$0xff] }
 0x55c   :  { %v5241_v9 = vadd.f32 %v5240_v50, %v5239_v13  ;;  %v14290_v17 = vadd.f32 %v4797_v32, %v18104_v5  ;;  %v5061_v37 = vsel %vm807_vm2, %v14270_v40, 0.0  ;;  %v5152_v62 = vmul.f32 %v14210_v19, %v14210_v19  ;;  %v18108_v50 = vld [vmem:[#allocation51_spill] sm:$0xff] }
 0x55d   :  { %v5242_v58 = vsel %vm807_vm2, %v5150_v24, 0.0  ;;  %v4805_v46 = vsel %vm2491_vm6, %v4803_v4, %v4804_v61  ;;  %v4807_v23 = vsel %vm2491_vm6, %v4804_v61, %v4806_v47  ;;  %v5062_v41 = vadd.f32 %v5061_v37, %v5060_v54  ;;  %v18109_v24 = vld [vmem:[#allocation36_spill] sm:$0xff]  ;;  %v18110_v61 = vld [vmem:[#allocation146_spill] sm:$0xff] }
 0x55e   :  { %18105 = vst [vmem:[#allocation194_spill] sm:$0xff] %v14290_v17  ;;  %v5243_v44 = vadd.f32 %v5242_v58, %v5241_v9  ;;  %v14300_v51 = vadd.f32 %v4800_v38, %v18106_v31  ;;  %v5063_v13 = vsel %vm807_vm2, %v14280_v45, 0.0  ;;  %v5153_v32 = vmul.f32 %v14220_v15, %v14220_v15 }
 0x55f   :  { %v5244_v27 = vsel %vm807_vm2, %v5151_v22, 0.0  ;;  %v4814_v5 = vrot.slane %v18108_v50, 2  ;;  %v4816_v19 = vrot.slane %v18109_v24, 2  ;;  %v5064_v4 = vadd.f32 %v5063_v13, %v5062_v41  ;;  %v18112_v50 = vld [vmem:[#allocation151_spill] sm:$0xff] }
 0x560   :  { %18107 = vst [vmem:[#allocation125_spill] sm:$0xff] %v14300_v51  ;;  %v5245_v29 = vadd.f32 %v5244_v27, %v5243_v44  ;;  %v14310_v47 = vadd.f32 %v4802_v63, %v18110_v61  ;;  %v5065_v38 = vsel %vm807_vm2, %v14290_v17, 0.0  ;;  %v5154_v54 = vmul.f32 %v14230_v8, %v14230_v8  ;;  %v18113_v27 = vld [vmem:[#allocation78_spill] sm:$0xff] }
 0x561   :  { %v5246_v9 = vsel %vm807_vm2, %v5152_v62, 0.0  ;;  %v4810_v37 = vsel %vm2491_vm6, %v4808_v0, %v4809_v7  ;;  %v4812_v22 = vsel %vm2491_vm6, %v4809_v7, %v4811_v2  ;;  %v5066_v58 = vadd.f32 %v5065_v38, %v5064_v4  ;;  %v18114_v62 = vld [vmem:[#allocation81_spill] sm:$0xff]  ;;  %v18115_v7 = vld [vmem:[#allocation154_spill] sm:$0xff] }
 0x562   :  { %18111 = vst [vmem:[#allocation128_spill] sm:$0xff] %v14310_v47  ;;  %v5247_v31 = vadd.f32 %v5246_v9, %v5245_v29  ;;  %v14320_v41 = vadd.f32 %v4805_v46, %v18112_v50  ;;  %v5067_v63 = vsel %vm807_vm2, %v14300_v51, 0.0  ;;  %v5155_v44 = vmul.f32 %v14240_v59, %v14240_v59 }
 0x563   :  { %v5248_v13 = vsel %vm807_vm2, %v5153_v32, 0.0  ;;  %v4818_v24 = vrot.slane %v18113_v27, 2  ;;  %v4819_v61 = vrot.slane %v18114_v62, 2  ;;  %v5068_v0 = vadd.f32 %v5067_v63, %v5066_v58  ;;  %v18117_v27 = vld [vmem:[#allocation155_spill] sm:$0xff] }
 0x564   :  { %v5249_v15 = vadd.f32 %v5248_v13, %v5247_v31  ;;  %v14330_v2 = vadd.f32 %v4807_v23, %v18115_v7  ;;  %v5069_v29 = vsel %vm807_vm2, %v14310_v47, 0.0  ;;  %v5156_v46 = vmul.f32 %v14250_v28, %v14250_v28  ;;  %v18118_v13 = vld [vmem:[#allocation170_spill] sm:$0xff] }
 0x565   :  { %v5250_v4 = vsel %vm807_vm2, %v5154_v54, 0.0  ;;  %v4815_v38 = vsel %vm2491_vm6, %v4813_v35, %v4814_v5  ;;  %v4817_v32 = vsel %vm2491_vm6, %v4814_v5, %v4816_v19  ;;  %v5070_v9 = vadd.f32 %v5069_v29, %v5068_v0  ;;  %v18119_v54 = vld [vmem:[#allocation175_spill] sm:$0xff] }
 0x566   :  { %18116 = vst [vmem:[#allocation156_spill] sm:$0xff] %v14330_v2  ;;  %v5251_v50 = vadd.f32 %v5250_v4, %v5249_v15  ;;  %v14340_v58 = vadd.f32 %v4810_v37, %v18117_v27  ;;  %v5071_v23 = vsel %vm807_vm2, %v14320_v41, 0.0  ;;  %v5157_v31 = vmul.f32 %v14260_v25, %v14260_v25  ;;  %v18120_v19 = vld [vmem:[#allocation159_spill] sm:$0xff] }
 0x567   :  { %v5252_v63 = vsel %vm807_vm2, %v5155_v44, 0.0  ;;  %v4821_v62 = vrot.slane %v18118_v13, 2  ;;  %v4823_v7 = vrot.slane %v18119_v54, 2  ;;  %v5072_v35 = vadd.f32 %v5071_v23, %v5070_v9  ;;  %v18122_v44 = vld [vmem:[#allocation176_spill] sm:$0xff] }
 0x568   :  { %v5253_v48 = vadd.f32 %v5252_v63, %v5251_v50  ;;  %v14350_v5 = vadd.f32 %v4812_v22, %v18120_v19  ;;  %v5073_v15 = vsel %vm807_vm2, %v14330_v2, 0.0  ;;  %v5158_v37 = vmul.f32 %v14270_v40, %v14270_v40  ;;  %v18123_v54 = vld [vmem:[#allocation160_spill] sm:$0xff]  ;;  %v18124_v63 = vld [vmem:[#allocation182_spill] sm:$0xff] }
 0x569   :  { %v5254_v0 = vsel %vm807_vm2, %v5156_v46, 0.0  ;;  %v4820_v29 = vsel %vm2491_vm6, %v4818_v24, %v4819_v61  ;;  %v4824_v4 = vrot.slane %v18122_v44, 2  ;;  %v5074_v27 = vadd.f32 %v5073_v15, %v5072_v35  ;;  %v18125_v46 = vld [vmem:[#allocation187_spill] sm:$0xff]  ;;  %v18126_v44 = vld [vmem:[#allocation150_spill] sm:$0xff] }
 0x56a   :  { %18121 = vst [vmem:[#allocation116_spill] sm:$0xff] %v14350_v5  ;;  %v5255_v13 = vadd.f32 %v5254_v0, %v5253_v48  ;;  %v14360_v9 = vadd.f32 %v4815_v38, %v18123_v54  ;;  %v5075_v22 = vsel %vm807_vm2, %v14340_v58, 0.0  ;;  %v5159_v50 = vmul.f32 %v14280_v45, %v14280_v45 }
 0x56b   :  { %v5256_v23 = vsel %vm807_vm2, %v5157_v31, 0.0  ;;  %v4826_v19 = vrot.slane %v18124_v63, 2  ;;  %v4828_v11 = vrot.slane %v18125_v46, 2  ;;  %v5076_v24 = vadd.f32 %v5075_v22, %v5074_v27  ;;  %v18128_v31 = vld [vmem:[#allocation188_spill] sm:$0xff] }
 0x56c   :  { %v5257_v33 = vadd.f32 %v5256_v23, %v5255_v13  ;;  %v14370_v35 = vadd.f32 %v4817_v32, %v18126_v44  ;;  %v5077_v48 = vsel %vm807_vm2, %v14350_v5, 0.0  ;;  %v5160_v38 = vmul.f32 %v14290_v17, %v14290_v17  ;;  %v18129_v46 = vld [vmem:[#allocation172_spill] sm:$0xff] }
 0x56d   :  { %v5258_v15 = vsel %vm807_vm2, %v5158_v37, 0.0  ;;  %v4822_v0 = vsel %vm2491_vm6, %v4819_v61, %v4821_v62  ;;  %v4829_v54 = vrot.slane %v18128_v31, 2  ;;  %v5078_v63 = vadd.f32 %v5077_v48, %v5076_v24  ;;  %v18131_v23 = vld [vmem:[#allocation192_spill] sm:$0xff]  ;;  %v18132_v37 = vld [vmem:[#allocation197_spill] sm:$0xff]  ;;  %v18133_v31 = vld [vmem:[#allocation178_spill] sm:$0xff] }
 0x56e   :  { %18127 = vst [vmem:[#allocation124_spill] sm:$0xff] %v14370_v35  ;;  %v5259_v3 = vadd.f32 %v5258_v15, %v5257_v33  ;;  %v14380_v27 = vadd.f32 %v4820_v29, %v18129_v46  ;;  %v5079_v32 = vsel %vm807_vm2, %v14360_v9, 0.0  ;;  %v5161_v13 = vmul.f32 %v14300_v51, %v14300_v51 }
 0x56f   :  { %v5260_v22 = vsel %vm807_vm2, %v5159_v50, 0.0  ;;  %v4831_v44 = vrot.slane %v18131_v23, 2  ;;  %v4833_v17 = vrot.slane %v18132_v37, 2  ;;  %v5080_v61 = vadd.f32 %v5079_v32, %v5078_v63  ;;  %v18135_v37 = vld [vmem:[#allocation179_spill] sm:$0xff] }
 0x570   :  { %18130 = vst [vmem:[#allocation132_spill] sm:$0xff] %v14380_v27  ;;  %v5261_v62 = vadd.f32 %v5260_v22, %v5259_v3  ;;  %v14390_v24 = vadd.f32 %v4822_v0, %v18133_v31  ;;  %v5081_v33 = vsel %vm807_vm2, %v14370_v35, 0.0  ;;  %v5162_v29 = vmul.f32 %v14310_v47, %v14310_v47  ;;  %v18137_v22 = vld [vmem:[#allocation201_spill] sm:$0xff] }
 0x571   :  { %v5262_v48 = vsel %vm807_vm2, %v5160_v38, 0.0  ;;  %v4825_v15 = vsel %vm2491_vm6, %v4823_v7, %v4824_v4  ;;  %v4827_v50 = vsel %vm2491_vm6, %v4824_v4, %v4826_v19  ;;  %v5082_v46 = vadd.f32 %v5081_v33, %v5080_v61  ;;  %v18138_v38 = vld [vmem:[#allocation202_spill] sm:$0xff]  ;;  %v18139_v4 = vld [vmem:[#allocation184_spill] sm:$0xff] }
 0x572   :  { %18134 = vst [vmem:[#allocation136_spill] sm:$0xff] %v14390_v24  ;;  %v5263_v23 = vadd.f32 %v5262_v48, %v5261_v62  ;;  %v14400_v63 = vadd.f32 %v4825_v15, %v18135_v37  ;;  %v5083_v3 = vsel %vm807_vm2, %v14380_v27, 0.0  ;;  %v5163_v0 = vmul.f32 %v14320_v41, %v14320_v41 }
 0x573   :  { %v5264_v32 = vsel %vm807_vm2, %v5161_v13, 0.0  ;;  %v4834_v31 = vrot.slane %v18137_v22, 2  ;;  %v4836_v47 = vrot.slane %v18138_v38, 2  ;;  %v5084_v7 = vadd.f32 %v5083_v3, %v5082_v46  ;;  %v18141_v22 = vld [vmem:[#allocation46_spill] sm:$0xff] }
 0x574   :  { %18136 = vst [vmem:[#allocation133_spill] sm:$0xff] %v14400_v63  ;;  %v5265_v51 = vadd.f32 %v5264_v32, %v5263_v23  ;;  %v14410_v19 = vadd.f32 %v4827_v50, %v18139_v4  ;;  %v5085_v61 = vsel %vm807_vm2, %v14390_v24, 0.0  ;;  %v5164_v62 = vmul.f32 %v14330_v2, %v14330_v2  ;;  %v18143_v32 = vld [vmem:[#allocation69_spill] sm:$0xff] }
 0x575   :  { %v5266_v33 = vsel %vm807_vm2, %v5162_v29, 0.0  ;;  %v4830_v48 = vsel %vm2491_vm6, %v4828_v11, %v4829_v54  ;;  %v4832_v13 = vsel %vm2491_vm6, %v4829_v54, %v4831_v44  ;;  %v5086_v15 = vadd.f32 %v5085_v61, %v5084_v7  ;;  %v18144_v29 = vld [vmem:[#allocation73_spill] sm:$0xff]  ;;  %v18145_v54 = vld [vmem:[#allocation54_spill] sm:$0xff] }
 0x576   :  { %18140 = vst [vmem:[#allocation140_spill] sm:$0xff] %v14410_v19  ;;  %v5267_v37 = vadd.f32 %v5266_v33, %v5265_v51  ;;  %v14420_v46 = vadd.f32 %v4830_v48, %v18141_v22  ;;  %v5087_v50 = vsel %vm807_vm2, %v14400_v63, 0.0  ;;  %v5165_v23 = vmul.f32 %v14340_v58, %v14340_v58 }
 0x577   :  { %v5268_v3 = vsel %vm807_vm2, %v5163_v0, 0.0  ;;  %v4838_v38 = vrot.slane %v18143_v32, 2  ;;  %v4839_v4 = vrot.slane %v18144_v29, 2  ;;  %v5088_v11 = vadd.f32 %v5087_v50, %v5086_v15  ;;  %v18146_v32 = vld [vmem:[#allocation79_spill] sm:$0xff] }
 0x578   :  { %18142 = vst [vmem:[#allocation145_spill] sm:$0xff] %v14420_v46  ;;  %v5269_v2 = vadd.f32 %v5268_v3, %v5267_v37  ;;  %v14430_v44 = vadd.f32 %v4832_v13, %v18145_v54  ;;  %v5089_v51 = vsel %vm807_vm2, %v14410_v19, 0.0  ;;  %v5166_v7 = vmul.f32 %v14350_v5, %v14350_v5  ;;  %v18147_v3 = vld [vmem:[#allocation74_spill] sm:$0xff] }
 0x579   :  { %v5270_v61 = vsel %vm807_vm2, %v5164_v62, 0.0  ;;  %v4835_v33 = vsel %vm2491_vm6, %v4833_v17, %v4834_v31  ;;  %v4837_v0 = vsel %vm2491_vm6, %v4834_v31, %v4836_v47  ;;  %v5090_v48 = vadd.f32 %v5089_v51, %v5088_v11  ;;  %v18148_v62 = vld [vmem:[#allocation75_spill] sm:$0xff]  ;;  %v18149_v47 = vld [vmem:[#allocation82_spill] sm:$0xff] }
 0x57a   :  { %v5271_v22 = vadd.f32 %v5270_v61, %v5269_v2  ;;  %v14440_v15 = vadd.f32 %v4835_v33, %v18146_v32  ;;  %v5091_v13 = vsel %vm807_vm2, %v14420_v46, 0.0  ;;  %v5167_v37 = vmul.f32 %v14360_v9, %v14360_v9 }
 0x57b   :  { %v5272_v50 = vsel %vm807_vm2, %v5165_v23, 0.0  ;;  %v4841_v29 = vrot.slane %v18147_v3, 2  ;;  %v4843_v54 = vrot.slane %v18148_v62, 2  ;;  %v5092_v17 = vadd.f32 %v5091_v13, %v5090_v48  ;;  %v18150_v23 = vld [vmem:[#allocation76_spill] sm:$0xff]  ;;  %v18151_v62 = vld [vmem:[#allocation93_spill] sm:$0xff] }
 0x57c   :  { %v5273_v5 = vadd.f32 %v5272_v50, %v5271_v22  ;;  %v14450_v31 = vadd.f32 %v4837_v0, %v18149_v47  ;;  %v5093_v2 = vsel %vm807_vm2, %v14430_v44, 0.0  ;;  %v5168_v11 = vmul.f32 %v14370_v35, %v14370_v35 }
 0x57d   :  { %v5274_v51 = vsel %vm807_vm2, %v5166_v7, 0.0  ;;  %v4840_v61 = vsel %vm2491_vm6, %v4838_v38, %v4839_v4  ;;  %v4844_v33 = vrot.slane %v18150_v23, 2  ;;  %v5094_v32 = vadd.f32 %v5093_v2, %v5092_v17  ;;  %v18152_v7 = vld [vmem:[#allocation80_spill] sm:$0xff]  ;;  %v18153_v23 = vld [vmem:[#allocation83_spill] sm:$0xff] }
 0x57e   :  { %v5275_v3 = vadd.f32 %v5274_v51, %v5273_v5  ;;  %v14460_v48 = vadd.f32 %v4840_v61, %v18151_v62  ;;  %v5095_v0 = vsel %vm807_vm2, %v14440_v15, 0.0  ;;  %v5169_v22 = vmul.f32 %v14380_v27, %v14380_v27  ;;  %v18154_v61 = vld [vmem:[#allocation33_spill] sm:$0xff]  ;;  %v18161_v27 = vld [vmem:[#allocation55_spill] sm:$0xff] }
 0x57f   :  { %v5276_v13 = vsel %vm807_vm2, %v5167_v37, 0.0  ;;  %v4842_v50 = vsel %vm2491_vm6, %v4839_v4, %v4841_v29  ;;  %v4846_v47 = vrot.slane %v18152_v7, 2  ;;  %v5096_v38 = vadd.f32 %v5095_v0, %v5094_v32  ;;  %v18155_v7 = vld [vmem:[#allocation87_spill] sm:$0xff] }
 0x580   :  { %v5277_v35 = vadd.f32 %v5276_v13, %v5275_v3  ;;  %v14470_v17 = vadd.f32 %v4842_v50, %v18153_v23  ;;  %v5097_v5 = vsel %vm807_vm2, %v14450_v31, 0.0  ;;  %v5170_v2 = vmul.f32 %v14390_v24, %v14390_v24  ;;  %v18156_v50 = vld [vmem:[#allocation41_spill] sm:$0xff]  ;;  %v18157_v23 = vld [vmem:[#allocation31_spill] sm:$0xff] }
 0x581   :  { %v5278_v51 = vsel %vm807_vm2, %v5168_v11, 0.0  ;;  %v4851_v62 = vrot.slane %v18154_v61, 2  ;;  %v4845_v37 = vsel %vm2491_vm6, %v4843_v54, %v4844_v33  ;;  %v5098_v4 = vadd.f32 %v5097_v5, %v5096_v38  ;;  %v18158_v38 = vld [vmem:[#allocation100_spill] sm:$0xff] }
 0x582   :  { %v5279_v29 = vadd.f32 %v5278_v51, %v5277_v35  ;;  %v14480_v32 = vadd.f32 %v4845_v37, %v18155_v7  ;;  %v5099_v3 = vsel %vm807_vm2, %v14460_v48, 0.0  ;;  %v5171_v0 = vmul.f32 %v14400_v63, %v14400_v63  ;;  %v18159_v7 = vld [vmem:[#allocation40_spill] sm:$0xff] }
 0x583   :  { %v5280_v13 = vsel %vm807_vm2, %v5169_v22, 0.0  ;;  %v4498_v11 = vadd.f32 %v18157_v23, %v18156_v50  ;;  %v4847_v61 = vsel %vm2491_vm6, %v4844_v33, %v4846_v47  ;;  %v5100_v24 = vadd.f32 %v5099_v3, %v5098_v4  ;;  %v18160_v22 = vld [vmem:[#allocation29_spill] sm:$0xff]  ;;  %v18163_v23 = vld [vmem:[#allocation50_spill] sm:$0xff] }
 0x584   :  { %v5281_v54 = vadd.f32 %v5280_v13, %v5279_v29  ;;  %v14491_v35 = vadd.f32 %v4847_v61, %v18158_v38  ;;  %v5101_v5 = vsel %vm807_vm2, %v14470_v17, 0.0  ;;  %v5172_v51 = vmul.f32 %v14410_v19, %v14410_v19  ;;  %v18165_v3 = vld [vmem:[#allocation30_spill] sm:$0xff] }
 0x585   :  { %v5282_v37 = vsel %vm807_vm2, %v5170_v2, 0.0  ;;  %v4499_v63 = vadd.f32 %v18160_v22, %v18159_v7  ;;  %v18162_v50 = vrot.slane %v18161_v27, 2  ;;  %v18164_v33 = vrot.slane %v18163_v23, 2  ;;  %v18166_v7 = vld [vmem:[#allocation43_spill] sm:$0xff]  ;;  %v18167_v22 = vld [vmem:[#allocation28_spill] sm:$0xff] }
 0x586   :  { %v5102_v4 = vadd.f32 %v5101_v5, %v5100_v24  ;;  %v5283_v29 = vadd.f32 %v5282_v37, %v5281_v54  ;;  %v5103_v61 = vsel %vm807_vm2, %v14480_v32, 0.0  ;;  %v5173_v2 = vmul.f32 %v14420_v46, %v14420_v46  ;;  %v18172_v46 = vld [vmem:[#allocation49_spill] sm:$0xff] }
 0x587   :  { %v4850_v47 = vsel %vm2491_vm6, %v18164_v33, %v18162_v50  ;;  %v5284_v38 = vsel %vm807_vm2, %v5171_v0, 0.0  ;;  %v4500_v19 = vadd.f32 %v18167_v22, %v18166_v7  ;;  %v18168_v23 = vmov %v18162_v50  ;;  %v18170_v0 = vld [vmem:[#allocation48_spill] sm:$0xff] }
 0x588   :  { %v14506_v13 = vadd.f32 %v4850_v47, %v18165_v3  ;;  %v4852_v50 = vsel %vm2491_vm6, %v18168_v23, %v4851_v62  ;;  %v5104_v24 = vadd.f32 %v5103_v61, %v5102_v4  ;;  %v5285_v54 = vadd.f32 %v5284_v38, %v5283_v29  ;;  %v18174_v4 = vld [vmem:[#allocation38_spill] sm:$0xff] }
 0x589   :  { %v14518_v5 = vadd.f32 %v4852_v50, %v4498_v11  ;;  %v5105_v37 = vsel %vm807_vm2, %v14491_v35, 0.0  ;;  %v5174_v33 = vmul.f32 %v14430_v44, %v14430_v44  ;;  %v5286_v47 = vsel %vm807_vm2, %v5172_v51, 0.0 }
 0x58a   :  { %v18171_v3 = vrot.slane %v18170_v0, 2  ;;  %v18173_v7 = vrot.slane %v18172_v46, 2  ;;  %v5106_v22 = vadd.f32 %v5105_v37, %v5104_v24  ;;  %v5287_v62 = vadd.f32 %v5286_v47, %v5285_v54 }
 0x58b   :  { %18169 = vst [vmem:[#allocation141_spill] sm:$0xff] %v14518_v5  ;;  %v14531_v29 = vadd.f32 %v18174_v4, %v4499_v63  ;;  %v5107_v11 = vsel %vm807_vm2, %v14506_v13, 0.0  ;;  %v5175_v61 = vmul.f32 %v14440_v15, %v14440_v15  ;;  %v5288_v38 = vsel %vm807_vm2, %v5173_v2, 0.0 }
 0x58c   :  { %v4857_v27 = vsel %vm2491_vm6, %v18173_v7, %v18171_v3  ;;  %v5108_v51 = vadd.f32 %v5107_v11, %v5106_v22  ;;  %v5289_v23 = vadd.f32 %v5288_v38, %v5287_v62  ;;  %v5109_v46 = vsel %vm807_vm2, %v14518_v5, 0.0 }
 0x58d   :  { %18175 = vst [vmem:[#allocation77_spill] sm:$0xff] %v14531_v29  ;;  %v14538_v50 = vadd.f32 %v4857_v27, %v4500_v19  ;;  %v5176_v24 = vmul.f32 %v14450_v31, %v14450_v31  ;;  %v5290_v63 = vsel %vm807_vm2, %v5174_v33, 0.0  ;;  %v5111_v47 = vsel %vm807_vm2, %v14531_v29, 0.0 }
 0x58e   :  { %v5110_v54 = vadd.f32 %v5109_v46, %v5108_v51  ;;  %v5291_v37 = vadd.f32 %v5290_v63, %v5289_v23  ;;  %v5177_v2 = vmul.f32 %v14460_v48, %v14460_v48  ;;  %v5292_v0 = vsel %vm807_vm2, %v5175_v61, 0.0 }
 0x58f   :  { %18176 = vst [vmem:[#allocation72_spill] sm:$0xff] %v14538_v50  ;;  %v5113_v7 = vsel %vm807_vm2, %v14538_v50, 0.0  ;;  %v5178_v27 = vmul.f32 %v14470_v17, %v14470_v17  ;;  %v5294_v33 = vsel %vm807_vm2, %v5176_v24, 0.0  ;;  %v5179_v4 = vmul.f32 %v14480_v32, %v14480_v32 }
 0x590   :  { %v5112_v19 = vadd.f32 %v5111_v47, %v5110_v54  ;;  %v5293_v3 = vadd.f32 %v5292_v0, %v5291_v37  ;;  %v5296_v11 = vsel %vm807_vm2, %v5177_v2, 0.0  ;;  %v5180_v61 = vmul.f32 %v14491_v35, %v14491_v35 }
 0x591   :  { %v5298_v23 = vsel %vm807_vm2, %v5178_v27, 0.0  ;;  %v5181_v54 = vmul.f32 %v14506_v13, %v14506_v13  ;;  %v5300_v24 = vsel %vm807_vm2, %v5179_v4, 0.0  ;;  %v5182_v47 = vmul.f32 %v14518_v5, %v14518_v5 }
 0x592   :  { %v5114_v22 = vadd.f32 %v5113_v7, %v5112_v19  ;;  %v5295_v62 = vadd.f32 %v5294_v33, %v5293_v3  ;;  %v5302_v2 = vsel %vm807_vm2, %v5180_v61, 0.0  ;;  %v5183_v3 = vmul.f32 %v14531_v29, %v14531_v29 }
 0x593   :  { %v5304_v7 = vsel %vm807_vm2, %v5181_v54, 0.0  ;;  %v5184_v33 = vmul.f32 %v14538_v50, %v14538_v50 }
 0x594   :  { %v5115_v38 = vrot.slane %v5114_v22, 4  ;;  %v5297_v51 = vadd.f32 %v5296_v11, %v5295_v62  ;;  %v5308_v11 = vsel %vm807_vm2, %v5183_v3, 0.0 }
 0x596   :  { %v5116_v46 = vadd.f32 %v5115_v38, %v5114_v22  ;;  %v5299_v63 = vadd.f32 %v5298_v23, %v5297_v51  ;;  %v5306_v22 = vsel %vm807_vm2, %v5182_v47, 0.0  ;;  %v5310_v51 = vsel %vm807_vm2, %v5184_v33, 0.0 }
 0x598   :  { %v5301_v37 = vadd.f32 %v5300_v24, %v5299_v63  ;;  %v5117_v0 = vrot.slane %v5116_v46, 2 }
 0x59a   :  { %v5303_v19 = vadd.f32 %v5302_v2, %v5301_v37  ;;  %v5118_v62 = vadd.f32 %v5117_v0, %v5116_v46  ;;  %v4986_v0 = vld [vmem:[#allocation12] sm:$0x1] }
 0x59c   :  { %v5305_v27 = vadd.f32 %v5304_v7, %v5303_v19  ;;  %v5119_v61 = vrot.slane %v5118_v62, 1 }
 0x59e   :  { %v5307_v4 = vadd.f32 %v5306_v22, %v5305_v27  ;;  %v5120_v24 = vadd.f32 %v5119_v61, %v5118_v62  ;;  %v4987_v22 = vld [vmem:[#allocation14] sm:$0x1] }
 0x5a0   :  { %v5309_v38 = vadd.f32 %v5308_v11, %v5307_v4  ;;  %v5318_v19 = vmul.f32 0.001953125, %v5120_v24  ;;  %v18177_v4 = vld [vmem:[#allocation52_spill] sm:$0xff] }
 0x5a2   :  { %v5311_v23 = vadd.f32 %v5310_v51, %v5309_v38  ;;  %v5320_v50 = vmul.f32 %v5318_v19, %v5318_v19 }
 0x5a4   :  { %v5312_v63 = vrot.slane %v5311_v23, 4 }
 0x5a6   :  { %v5313_v37 = vadd.f32 %v5312_v63, %v5311_v23 }
 0x5a8   :  { %v5314_v2 = vrot.slane %v5313_v37, 2 }
 0x5aa   :  { %v5315_v54 = vadd.f32 %v5314_v2, %v5313_v37 }
 0x5ac   :  { %v5316_v7 = vrot.slane %v5315_v54, 1 }
 0x5ae   :  { %v5317_v29 = vadd.f32 %v5316_v7, %v5315_v54 }
 0x5b0   :  { %v5319_v5 = vmul.f32 0.001953125, %v5317_v29 }
 0x5b2   :  { %v5321_v47 = vsub.f32 %v5319_v5, %v5320_v50 }
 0x5b4   :  { %v5322_v46 = vadd.f32 1e-05, %v5321_v47 }
 0x5b6   :  { %7292 = vrsqrt.f32 %v5322_v46 }
 0x5c0   :  { %v7293_v3 = vpop.eup %7292 }
 0x5c1   :  { %v5324_v27 = vmul.f32 %v7293_v3, %v4986_v0 }
 0x5c3   :  { %v5325_v33 = vmul.f32 %v5324_v27, %v5318_v19  ;;  %v14576_v11 = vrot.slane %v5324_v27, %v18177_v4 }
 0x5c5   :  { %v5326_v62 = vsub.f32 %v4987_v22, %v5325_v33  ;;  %v5333_v38 = vmul.f32 %v14576_v11, %v13854_v55  ;;  %v5334_v5 = vmul.f32 %v14576_v11, %v13862_v30  ;;  %v5335_v29 = vmul.f32 %v14576_v11, %v13864_v1 }
 0x5c6   :  { %v5336_v50 = vmul.f32 %v14576_v11, %v13884_v14  ;;  %v5337_v55 = vmul.f32 %v14576_v11, %v13897_v39  ;;  %v5338_v1 = vmul.f32 %v14576_v11, %v13907_v53  ;;  %v5339_v7 = vmul.f32 %v14576_v11, %v13917_v18 }
 0x5c7   :  { %v14581_v51 = vrot.slane %v5326_v62, %v18177_v4  ;;  %v5340_v27 = vmul.f32 %v14576_v11, %v13935_v12  ;;  %v5341_v53 = vmul.f32 %v14576_v11, %v13945_v16  ;;  %v5343_v12 = vmul.f32 %v14576_v11, %v13968_v36 }
 0x5c8   :  { %v5345_v36 = vmul.f32 %v14576_v11, %v13986_v52 }
 0x5c9   :  { %v5403_v61 = vadd.f32 %v14581_v51, %v5333_v38  ;;  %v5404_v23 = vadd.f32 %v14581_v51, %v5334_v5  ;;  %v5405_v63 = vadd.f32 %v14581_v51, %v5335_v29  ;;  %v5406_v24 = vadd.f32 %v14581_v51, %v5336_v50 }
 0x5ca   :  { %v5407_v54 = vadd.f32 %v14581_v51, %v5337_v55  ;;  %v5408_v46 = vadd.f32 %v14581_v51, %v5338_v1  ;;  %v5409_v3 = vadd.f32 %v14581_v51, %v5339_v7  ;;  %v5410_v33 = vadd.f32 %v14581_v51, %v5340_v27 }
 0x5cb   :  { %v5467_v37 = vmax.f32 %v5403_v61, 0.0  ;;  %v5468_v2 = vmax.f32 %v5404_v23, 0.0  ;;  %v5469_v30 = vmax.f32 %v5405_v63, 0.0  ;;  %v5470_v47 = vmax.f32 %v5406_v24, 0.0 }
 0x5cc   :  { %v5471_v0 = vmax.f32 %v5407_v54, 0.0  ;;  %v5472_v22 = vmax.f32 %v5408_v46, 0.0  ;;  %v5473_v38 = vmax.f32 %v5409_v3, 0.0  ;;  %v5411_v5 = vadd.f32 %v14581_v51, %v5341_v53 }
 0x5cd   :  { %v5531_v14 = vmin.f32 %v5467_v37, 6.0  ;;  %v5532_v19 = vmin.f32 %v5468_v2, 6.0  ;;  %v5533_v39 = vmin.f32 %v5469_v30, 6.0  ;;  %v5534_v18 = vmin.f32 %v5470_v47, 6.0 }
 0x5ce   :  { %v5535_v62 = vmin.f32 %v5471_v0, 6.0  ;;  %v5342_v29 = vmul.f32 %v14576_v11, %v13957_v6  ;;  %v5536_v50 = vmin.f32 %v5472_v22, 6.0  ;;  %v5474_v16 = vmax.f32 %v5410_v33, 0.0 }
 0x5cf   :  { %7176 = vmatprep.mubr.msk.f32.mxu1 %vm807_vm2, %v5531_v14  ;;  %v5537_v23 = vmin.f32 %v5473_v38, 6.0  ;;  %v5475_v63 = vmax.f32 %v5411_v5, 0.0  ;;  %v5413_v55 = vadd.f32 %v14581_v51, %v5343_v12  ;;  %v5344_v24 = vmul.f32 %v14576_v11, %v13973_v26 }
 0x5d0   :  { %7177 = vmatmul.mubr.msk.f32.vlgmr.msra.gmra.mrb[0].mxu1 %vm807_vm2, %v5532_v19  ;;  %v5412_v61 = vadd.f32 %v14581_v51, %v5342_v29  ;;  %v5346_v37 = vmul.f32 %v14576_v11, %v13995_v42  ;;  %v5538_v2 = vmin.f32 %v5474_v16, 6.0  ;;  %v5347_v54 = vmul.f32 %v14576_v11, %v14005_v43 }
 0x5d1   :  { %7179 = vmatprep.mubr.msk.f32.mxu1 %vm807_vm2, %v5533_v39  ;;  %v5414_v6 = vadd.f32 %v14581_v51, %v5344_v24  ;;  %v5539_v1 = vmin.f32 %v5475_v63, 6.0  ;;  %v5477_v14 = vmax.f32 %v5413_v55, 0.0  ;;  %v5415_v26 = vadd.f32 %v14581_v51, %v5345_v36 }
 0x5d2   :  { %v5476_v30 = vmax.f32 %v5412_v61, 0.0  ;;  %v5416_v19 = vadd.f32 %v14581_v51, %v5346_v37  ;;  %v5417_v7 = vadd.f32 %v14581_v51, %v5347_v54  ;;  %v5348_v42 = vmul.f32 %v14576_v11, %v14017_v60  ;;  %v18178_v37 = vld [vmem:[#allocation194_spill] sm:$0xff] }
 0x5d3   :  { %v5478_v52 = vmax.f32 %v5414_v6, 0.0  ;;  %v5541_v46 = vmin.f32 %v5477_v14, 6.0  ;;  %v5479_v39 = vmax.f32 %v5415_v26, 0.0  ;;  %v5349_v27 = vmul.f32 %v14576_v11, %v14028_v34 }
 0x5d4   :  { %7180 = vmatmul.mubr.msk.f32.gmra.mrb[2].mxu1 %vm807_vm2, %v5534_v18  ;;  %v5540_v47 = vmin.f32 %v5476_v30, 6.0  ;;  %v5480_v43 = vmax.f32 %v5416_v19, 0.0  ;;  %v5418_v0 = vadd.f32 %v14581_v51, %v5348_v42  ;;  %v5481_v3 = vmax.f32 %v5417_v7, 0.0 }
 0x5d5   :  { %7182 = vmatprep.mubr.msk.f32.mxu1 %vm807_vm2, %v5535_v62  ;;  %v5350_v53 = vmul.f32 %v14576_v11, %v14040_v56  ;;  %v5542_v18 = vmin.f32 %v5478_v52, 6.0  ;;  %v5351_v60 = vmul.f32 %v14576_v11, %v14050_v20  ;;  %v5352_v22 = vmul.f32 %v14576_v11, %v14063_v57 }
 0x5d6   :  { %v5419_v33 = vadd.f32 %v14581_v51, %v5349_v27  ;;  %v5353_v38 = vmul.f32 %v14576_v11, %v14073_v10  ;;  %v5354_v34 = vmul.f32 %v14576_v11, %v14085_v21  ;;  %v5543_v56 = vmin.f32 %v5479_v39, 6.0 }
 0x5d7   :  { %v5420_v62 = vadd.f32 %v14581_v51, %v5350_v53  ;;  %v5544_v5 = vmin.f32 %v5480_v43, 6.0  ;;  %v5482_v29 = vmax.f32 %v5418_v0, 0.0  ;;  %v5421_v12 = vadd.f32 %v14581_v51, %v5351_v60  ;;  %v18180_v43 = vld [vmem:[#allocation125_spill] sm:$0xff] }
 0x5d8   :  { %7183 = vmatmul.mubr.msk.f32.gmra.mrb[4].mxu1 %vm807_vm2, %v5536_v50  ;;  %v5545_v20 = vmin.f32 %v5481_v3, 6.0  ;;  %v5422_v57 = vadd.f32 %v14581_v51, %v5352_v22  ;;  %v5423_v50 = vadd.f32 %v14581_v51, %v5353_v38  ;;  %v5424_v16 = vadd.f32 %v14581_v51, %v5354_v34  ;;  %v18181_v3 = vld [vmem:[#allocation128_spill] sm:$0xff] }
 0x5d9   :  { %7185 = vmatprep.mubr.msk.f32.mxu1 %vm807_vm2, %v5537_v23  ;;  %v5355_v10 = vmul.f32 %v14576_v11, %v14098_v49  ;;  %v5366_v21 = vmul.f32 %v14576_v11, %v14230_v8  ;;  %v5367_v61 = vmul.f32 %v14576_v11, %v14240_v59  ;;  %v5368_v23 = vmul.f32 %v14576_v11, %v14250_v28  ;;  %v18184_v34 = vld [vmem:[#allocation116_spill] sm:$0xff] }
 0x5da   :  { %v5483_v63 = vmax.f32 %v5419_v33, 0.0  ;;  %v5484_v55 = vmax.f32 %v5420_v62, 0.0  ;;  %v5369_v24 = vmul.f32 %v14576_v11, %v14260_v25  ;;  %v5370_v6 = vmul.f32 %v14576_v11, %v14270_v40  ;;  %v18183_v33 = vld [vmem:[#allocation174_spill] sm:$0xff] }
 0x5db   :  { %v5485_v36 = vmax.f32 %v5421_v12, 0.0  ;;  %v14673_v49 = vadd.f32 %v14581_v51, %v5366_v21  ;;  %v14676_v8 = vadd.f32 %v14581_v51, %v5367_v61  ;;  %v14679_v59 = vadd.f32 %v14581_v51, %v5368_v23  ;;  %v18186_v21 = vld [vmem:[#allocation173_spill] sm:$0xff]  ;;  %v18187_v23 = vld [vmem:[#allocation180_spill] sm:$0xff] }
 0x5dc   :  { %7186 = vmatmul.mubr.msk.f32.gmra.mrb[6].mxu1 %vm807_vm2, %v5538_v2  ;;  %v14683_v28 = vadd.f32 %v14581_v51, %v5369_v24  ;;  %v14686_v25 = vadd.f32 %v14581_v51, %v5370_v6  ;;  %v5371_v40 = vmul.f32 %v14576_v11, %v14280_v45  ;;  %v5372_v2 = vmul.f32 %v14576_v11, %v18178_v37  ;;  %v18188_v24 = vld [vmem:[#allocation185_spill] sm:$0xff] }
 0x5dd   :  { %7188 = vmatprep.mubr.msk.f32.mxu1 %vm807_vm2, %v5539_v1  ;;  %v5546_v30 = vmin.f32 %v5482_v29, 6.0  ;;  %v5425_v54 = vadd.f32 %v14581_v51, %v5355_v10  ;;  %v18179_v1 = vld [vmem:[#allocation168_spill] sm:$0xff]  ;;  %v5547_v7 = vmin.f32 %v5483_v63, 6.0  ;;  %v5486_v52 = vmax.f32 %v5422_v57, 0.0 }
 0x5de   :  { %v5356_v14 = vmul.f32 %v14576_v11, %v18179_v1  ;;  %v14697_v26 = vadd.f32 %v14581_v51, %v5371_v40  ;;  %v14700_v19 = vadd.f32 %v14581_v51, %v5372_v2  ;;  %v5487_v45 = vmax.f32 %v5423_v50, 0.0  ;;  %v18185_v50 = vld [vmem:[#allocation124_spill] sm:$0xff] }
 0x5df   :  { %v5548_v42 = vmin.f32 %v5484_v55, 6.0  ;;  %v5373_v0 = vmul.f32 %v14576_v11, %v18180_v43  ;;  %v5374_v27 = vmul.f32 %v14576_v11, %v18181_v3  ;;  %v5375_v53 = vmul.f32 %v14576_v11, %v14320_v41 }
 0x5e0   :  { %7189 = vmatmul.mubr.msk.f32.gmra.mrb[8].mxu1 %vm807_vm2, %v5540_v47  ;;  %v5549_v47 = vmin.f32 %v5485_v36, 6.0  ;;  %v5426_v39 = vadd.f32 %v14581_v51, %v5356_v14  ;;  %v5489_v22 = vmax.f32 %v5425_v54, 0.0  ;;  %v5357_v62 = vmul.f32 %v14576_v11, %v18183_v33 }
 0x5e1   :  { %7191 = vmatprep.mubr.msk.f32.mxu1 %vm807_vm2, %v5541_v46  ;;  %v5488_v46 = vmax.f32 %v5424_v16, 0.0  ;;  %v5377_v38 = vmul.f32 %v14576_v11, %v14340_v58  ;;  %v14723_v29 = vadd.f32 %v14581_v51, %v5374_v27  ;;  %v14726_v41 = vadd.f32 %v14581_v51, %v5375_v53 }
 0x5e2   :  { %v5379_v57 = vmul.f32 %v14576_v11, %v14360_v9  ;;  %v5380_v16 = vmul.f32 %v14576_v11, %v18185_v50  ;;  %v5550_v10 = vmin.f32 %v5486_v52, 6.0  ;;  %v5358_v61 = vmul.f32 %v14576_v11, %v18186_v21 }
 0x5e3   :  { %v5359_v63 = vmul.f32 %v14576_v11, %v18187_v23  ;;  %v5427_v55 = vadd.f32 %v14581_v51, %v5357_v62  ;;  %v5360_v6 = vmul.f32 %v14576_v11, %v18188_v24  ;;  %v5551_v40 = vmin.f32 %v5487_v45, 6.0  ;;  %v18191_v45 = vld [vmem:[#allocation136_spill] sm:$0xff] }
 0x5e4   :  { %7192 = vmatmul.mubr.msk.f32.gmra.mrb[10].mxu1 %vm807_vm2, %v5542_v18  ;;  %v18182_v18 = vld [vmem:[#allocation156_spill] sm:$0xff]  ;;  %v14751_v36 = vadd.f32 %v14581_v51, %v5379_v57  ;;  %v14754_v9 = vadd.f32 %v14581_v51, %v5380_v16  ;;  %v5552_v37 = vmin.f32 %v5488_v46, 6.0  ;;  %v5553_v2 = vmin.f32 %v5489_v22, 6.0 }
 0x5e5   :  { %7194 = vmatprep.mubr.msk.f32.mxu1 %vm807_vm2, %v5543_v56  ;;  %v5376_v60 = vmul.f32 %v14576_v11, %v18182_v18  ;;  %v5378_v56 = vmul.f32 %v14576_v11, %v18184_v34  ;;  %v5428_v54 = vadd.f32 %v14581_v51, %v5358_v61  ;;  %v5429_v1 = vadd.f32 %v14581_v51, %v5359_v63  ;;  %v18194_v18 = vld [vmem:[#allocation145_spill] sm:$0xff] }
 0x5e6   :  { %v5430_v14 = vadd.f32 %v14581_v51, %v5360_v6  ;;  %v5382_v46 = vmul.f32 %v14576_v11, %v18191_v45  ;;  %v5491_v27 = vmax.f32 %v5427_v55, 0.0  ;;  %v5386_v22 = vmul.f32 %v14576_v11, %v14430_v44  ;;  %v18196_v61 = vld [vmem:[#allocation169_spill] sm:$0xff] }
 0x5e7   :  { %v14729_v12 = vadd.f32 %v14581_v51, %v5376_v60  ;;  %v14736_v58 = vadd.f32 %v14581_v51, %v5378_v56  ;;  %v5385_v60 = vmul.f32 %v14576_v11, %v18194_v18  ;;  %v5387_v44 = vmul.f32 %v14576_v11, %v14440_v15 }
 0x5e8   :  { %7195 = vmatmul.mubr.msk.f32.gmra.mrb[12].mxu1 %vm807_vm2, %v5544_v5  ;;  %v14720_v5 = vadd.f32 %v14581_v51, %v5373_v0  ;;  %v18193_v0 = vld [vmem:[#allocation140_spill] sm:$0xff]  ;;  %v14780_v62 = vadd.f32 %v14581_v51, %v5382_v46  ;;  %v14793_v57 = vadd.f32 %v14581_v51, %v5386_v22  ;;  %v5388_v50 = vmul.f32 %v14576_v11, %v14450_v31  ;;  %v18198_v46 = vld [vmem:[#allocation141_spill] sm:$0xff] }
 0x5e9   :  { %7197 = vmatprep.mubr.msk.f32.mxu1 %vm807_vm2, %v5545_v20  ;;  %v14733_v20 = vadd.f32 %v14581_v51, %v5377_v38  ;;  %v5384_v3 = vmul.f32 %v14576_v11, %v18193_v0  ;;  %v14790_v56 = vadd.f32 %v14581_v51, %v5385_v60  ;;  %v5363_v23 = vmul.f32 %v14576_v11, %v18196_v61  ;;  %v18199_v0 = vld [vmem:[#allocation77_spill] sm:$0xff] }
 0x5ea   :  { %v5492_v63 = vmax.f32 %v5428_v54, 0.0  ;;  %v5493_v55 = vmax.f32 %v5429_v1, 0.0  ;;  %v14805_v24 = vadd.f32 %v14581_v51, %v5387_v44  ;;  %v14808_v6 = vadd.f32 %v14581_v51, %v5388_v50  ;;  %v18201_v60 = vld [vmem:[#allocation189_spill] sm:$0xff] }
 0x5eb   :  { %v14786_v34 = vadd.f32 %v14581_v51, %v5384_v3  ;;  %v5555_v15 = vmin.f32 %v5491_v27, 6.0  ;;  %v5389_v54 = vmul.f32 %v14576_v11, %v14460_v48  ;;  %v5390_v1 = vmul.f32 %v14576_v11, %v14470_v17  ;;  %v18200_v27 = vld [vmem:[#allocation72_spill] sm:$0xff] }
 0x5ec   :  { %7198 = vmatmul.mubr.msk.f32.gmra.mrb[14].mxu1 %vm807_vm2, %v5546_v30  ;;  %v5490_v30 = vmax.f32 %v5426_v39, 0.0  ;;  %v18192_v39 = vld [vmem:[#allocation133_spill] sm:$0xff]  ;;  %v5393_v45 = vmul.f32 %v14576_v11, %v14506_v13  ;;  %v5395_v3 = vmul.f32 %v14576_v11, %v18199_v0  ;;  %v5365_v22 = vmul.f32 %v14576_v11, %v18201_v60 }
 0x5ed   :  { %7200 = vmatprep.mubr.msk.f32.mxu1 %vm807_vm2, %v5547_v7  ;;  %v18189_v7 = vld [vmem:[#allocation181_spill] sm:$0xff]  ;;  %v5383_v43 = vmul.f32 %v14576_v11, %v18192_v39  ;;  %v5394_v39 = vmul.f32 %v14576_v11, %v18198_v46  ;;  %v14832_v48 = vadd.f32 %v14581_v51, %v5390_v1 }
 0x5ee   :  { %v5361_v52 = vmul.f32 %v14576_v11, %v18189_v7  ;;  %v5554_v16 = vmin.f32 %v5490_v30, 6.0  ;;  %v18197_v30 = vld [vmem:[#allocation118_spill] sm:$0xff] }
 0x5ef   :  { %v14783_v38 = vadd.f32 %v14581_v51, %v5383_v43  ;;  %v5364_v7 = vmul.f32 %v14576_v11, %v18197_v30  ;;  %v14829_v43 = vadd.f32 %v14581_v51, %v5389_v54  ;;  %v14845_v13 = vadd.f32 %v14581_v51, %v5394_v39 }
 0x5f0   :  { %7201 = vmatmul.mubr.msk.f32.gmra.mrb[16].mxu1 %vm807_vm2, %v5548_v42  ;;  %v18190_v42 = vld [vmem:[#allocation132_spill] sm:$0xff]  ;;  %v5431_v53 = vadd.f32 %v14581_v51, %v5361_v52  ;;  %v5391_v52 = vmul.f32 %v14576_v11, %v14480_v32  ;;  %v5503_v54 = vmax.f32 %v14683_v28, 0.0  ;;  %v5507_v28 = vmax.f32 %v14720_v5, 0.0 }
 0x5f1   :  { %7203 = vmatprep.mubr.msk.f32.mxu1 %vm807_vm2, %v5549_v47  ;;  %v5381_v47 = vmul.f32 %v14576_v11, %v18190_v42  ;;  %v5556_v42 = vmin.f32 %v5492_v63, 6.0  ;;  %v5434_v50 = vadd.f32 %v14581_v51, %v5364_v7  ;;  %v5511_v5 = vmax.f32 %v14733_v20, 0.0 }
 0x5f2   :  { %v14835_v17 = vadd.f32 %v14581_v51, %v5391_v52  ;;  %v5567_v52 = vmin.f32 %v5503_v54, 6.0 }
 0x5f3   :  { %v14777_v33 = vadd.f32 %v14581_v51, %v5381_v47  ;;  %v5557_v47 = vmin.f32 %v5493_v55, 6.0  ;;  %v5498_v55 = vmax.f32 %v5434_v50, 0.0 }
 0x5f4   :  { %7204 = vmatmul.mubr.msk.f32.gmra.mrb[18].mxu1 %vm807_vm2, %v5550_v10  ;;  %v18195_v10 = vld [vmem:[#allocation163_spill] sm:$0xff] }
 0x5f5   :  { %7206 = vmatprep.mubr.msk.f32.mxu1 %vm807_vm2, %v5551_v40  ;;  %v5362_v21 = vmul.f32 %v14576_v11, %v18195_v10  ;;  %v5494_v40 = vmax.f32 %v5430_v14, 0.0  ;;  %v5392_v14 = vmul.f32 %v14576_v11, %v14491_v35  ;;  %v14842_v35 = vadd.f32 %v14581_v51, %v5393_v45 }
 0x5f6   :  { %v5571_v45 = vmin.f32 %v5507_v28, 6.0  ;;  %v5515_v20 = vmax.f32 %v14777_v33, 0.0  ;;  %v5519_v33 = vmax.f32 %v14790_v56, 0.0  ;;  %v5523_v56 = vmax.f32 %v14829_v43, 0.0 }
 0x5f7   :  { %v5432_v31 = vadd.f32 %v14581_v51, %v5362_v21  ;;  %v14838_v32 = vadd.f32 %v14581_v51, %v5392_v14  ;;  %v5558_v44 = vmin.f32 %v5494_v40, 6.0  ;;  %v5500_v40 = vmax.f32 %v14673_v49, 0.0 }
 0x5f8   :  { %7207 = vmatmul.mubr.msk.f32.gmra.mrb[20].mxu1 %vm807_vm2, %v5552_v37  ;;  %v5495_v37 = vmax.f32 %v5431_v53, 0.0  ;;  %v5396_v53 = vmul.f32 %v14576_v11, %v18200_v27  ;;  %v5504_v49 = vmax.f32 %v14686_v25, 0.0  ;;  %v5508_v25 = vmax.f32 %v14723_v29, 0.0 }
 0x5f9   :  { %7209 = vmatprep.mubr.msk.f32.mxu1 %vm807_vm2, %v5553_v2  ;;  %v5433_v2 = vadd.f32 %v14581_v51, %v5363_v23  ;;  %v5496_v18 = vmax.f32 %v5432_v31, 0.0  ;;  %v5435_v23 = vadd.f32 %v14581_v51, %v5365_v22  ;;  %v5562_v31 = vmin.f32 %v5498_v55, 6.0 }
 0x5fa   :  { %v14859_v10 = vadd.f32 %v14581_v51, %v5396_v53  ;;  %v5559_v21 = vmin.f32 %v5495_v37, 6.0  ;;  %v5501_v37 = vmax.f32 %v14676_v8, 0.0  ;;  %v5505_v8 = vmax.f32 %v14697_v26, 0.0 }
 0x5fb   :  { %v5497_v61 = vmax.f32 %v5433_v2, 0.0  ;;  %v5560_v63 = vmin.f32 %v5496_v18, 6.0  ;;  %v5502_v2 = vmax.f32 %v14679_v59, 0.0  ;;  %v5568_v14 = vmin.f32 %v5504_v49, 6.0 }
 0x5fc   :  { %7210 = vmatmul.mubr.msk.f32.gmra.mrb[22].mxu1 %vm807_vm2, %v5554_v16  ;;  %v14856_v16 = vadd.f32 %v14581_v51, %v5395_v3  ;;  %v5564_v51 = vmin.f32 %v5500_v40, 6.0  ;;  %v5565_v7 = vmin.f32 %v5501_v37, 6.0  ;;  %v5506_v59 = vmax.f32 %v14700_v19, 0.0 }
 0x5fd   :  { %7212 = vmatprep.mubr.msk.f32.mxu1 %vm807_vm2, %v5555_v15  ;;  %v5561_v11 = vmin.f32 %v5497_v61, 6.0  ;;  %v5499_v15 = vmax.f32 %v5435_v23, 0.0  ;;  %v5566_v1 = vmin.f32 %v5502_v2, 6.0  ;;  %v5509_v26 = vmax.f32 %v14726_v41, 0.0 }
 0x5fe   :  { %v5572_v46 = vmin.f32 %v5508_v25, 6.0  ;;  %v5510_v19 = vmax.f32 %v14729_v12, 0.0  ;;  %v5512_v29 = vmax.f32 %v14736_v58, 0.0  ;;  %v5575_v3 = vmin.f32 %v5511_v5, 6.0 }
 0x5ff   :  { %v5563_v30 = vmin.f32 %v5499_v15, 6.0  ;;  %v5573_v39 = vmin.f32 %v5509_v26, 6.0  ;;  %v5513_v41 = vmax.f32 %v14751_v36, 0.0  ;;  %v5514_v12 = vmax.f32 %v14754_v9, 0.0 }
 0x600   :  { %7213 = vmatmul.mubr.msk.f32.gmra.mrb[24].mxu1 %vm807_vm2, %v5556_v42  ;;  %v5569_v42 = vmin.f32 %v5505_v8, 6.0  ;;  %v5574_v0 = vmin.f32 %v5510_v19, 6.0  ;;  %v5576_v27 = vmin.f32 %v5512_v29, 6.0  ;;  %v5516_v58 = vmax.f32 %v14780_v62, 0.0 }
 0x601   :  { %7215 = vmatprep.mubr.msk.f32.mxu1 %vm807_vm2, %v5557_v47  ;;  %v5570_v47 = vmin.f32 %v5506_v59, 6.0  ;;  %v5577_v53 = vmin.f32 %v5513_v41, 6.0  ;;  %v5578_v18 = vmin.f32 %v5514_v12, 6.0  ;;  %v5579_v60 = vmin.f32 %v5515_v20, 6.0 }
 0x602   :  { %v5517_v36 = vmax.f32 %v14783_v38, 0.0  ;;  %v5580_v22 = vmin.f32 %v5516_v58, 6.0  ;;  %v5518_v9 = vmax.f32 %v14786_v34, 0.0  ;;  %v5520_v62 = vmax.f32 %v14793_v57, 0.0 }
 0x603   :  { %v5521_v38 = vmax.f32 %v14805_v24, 0.0  ;;  %v5522_v34 = vmax.f32 %v14808_v6, 0.0  ;;  %v5524_v57 = vmax.f32 %v14832_v48, 0.0  ;;  %v5587_v55 = vmin.f32 %v5523_v56, 6.0 }
 0x604   :  { %7216 = vmatmul.mubr.msk.f32.gmra.mrb[26].mxu1 %vm807_vm2, %v5558_v44  ;;  %v5581_v44 = vmin.f32 %v5517_v36, 6.0  ;;  %v5582_v50 = vmin.f32 %v5518_v9, 6.0  ;;  %v5584_v61 = vmin.f32 %v5520_v62, 6.0  ;;  %v5525_v24 = vmax.f32 %v14835_v17, 0.0 }
 0x605   :  { %7218 = vmatprep.mubr.msk.f32.mxu1 %vm807_vm2, %v5559_v21  ;;  %v5583_v21 = vmin.f32 %v5519_v33, 6.0  ;;  %v5585_v23 = vmin.f32 %v5521_v38, 6.0  ;;  %v5526_v6 = vmax.f32 %v14838_v32, 0.0  ;;  %v5527_v43 = vmax.f32 %v14842_v35, 0.0 }
 0x606   :  { %v5589_v15 = vmin.f32 %v5525_v24, 6.0  ;;  %v5528_v48 = vmax.f32 %v14845_v13, 0.0  ;;  %v5529_v17 = vmax.f32 %v14856_v16, 0.0  ;;  %v5530_v32 = vmax.f32 %v14859_v10, 0.0 }
 0x607   :  { %v5591_v40 = vmin.f32 %v5527_v43, 6.0 }
 0x608   :  { %7219 = vmatmul.mubr.msk.f32.gmra.mrb[28].mxu1 %vm807_vm2, %v5560_v63  ;;  %v5586_v63 = vmin.f32 %v5522_v34, 6.0  ;;  %v5593_v37 = vmin.f32 %v5529_v17, 6.0  ;;  %v5594_v35 = vmin.f32 %v5530_v32, 6.0 }
 0x609   :  { %7221 = vmatprep.mubr.msk.f32.mxu1 %vm807_vm2, %v5561_v11  ;;  %v5588_v11 = vmin.f32 %v5524_v57, 6.0 }
 0x60c   :  { %7222 = vmatmul.mubr.msk.f32.gmra.mrb[30].mxu1 %vm807_vm2, %v5562_v31  ;;  %v5590_v31 = vmin.f32 %v5526_v6, 6.0 }
 0x60d   :  { %7224 = vmatprep.mubr.msk.f32.mxu1 %vm807_vm2, %v5563_v30  ;;  %v5592_v30 = vmin.f32 %v5528_v48, 6.0 }
 0x610   :  { %7225 = vmatmul.mubr.msk.f32.gmra.mrb[32].mxu1 %vm807_vm2, %v5564_v51 }
 0x611   :  { %7227 = vmatprep.mubr.msk.f32.mxu1 %vm807_vm2, %v5565_v7 }
 0x614   :  { %7228 = vmatmul.mubr.msk.f32.gmra.mrb[34].mxu1 %vm807_vm2, %v5566_v1 }
 0x615   :  { %7230 = vmatprep.mubr.msk.f32.mxu1 %vm807_vm2, %v5567_v52 }
 0x618   :  { %7231 = vmatmul.mubr.msk.f32.gmra.mrb[36].mxu1 %vm807_vm2, %v5568_v14 }
 0x619   :  { %7233 = vmatprep.mubr.msk.f32.mxu1 %vm807_vm2, %v5569_v42 }
 0x61c   :  { %7234 = vmatmul.mubr.msk.f32.gmra.mrb[38].mxu1 %vm807_vm2, %v5570_v47 }
 0x61d   :  { %7236 = vmatprep.mubr.msk.f32.mxu1 %vm807_vm2, %v5571_v45 }
 0x620   :  { %7237 = vmatmul.mubr.msk.f32.gmra.mrb[40].mxu1 %vm807_vm2, %v5572_v46 }
 0x621   :  { %7239 = vmatprep.mubr.msk.f32.mxu1 %vm807_vm2, %v5573_v39 }
 0x624   :  { %7240 = vmatmul.mubr.msk.f32.gmra.mrb[42].mxu1 %vm807_vm2, %v5574_v0 }
 0x625   :  { %7242 = vmatprep.mubr.msk.f32.mxu1 %vm807_vm2, %v5575_v3 }
 0x628   :  { %7243 = vmatmul.mubr.msk.f32.gmra.mrb[44].mxu1 %vm807_vm2, %v5576_v27 }
 0x629   :  { %7245 = vmatprep.mubr.msk.f32.mxu1 %vm807_vm2, %v5577_v53 }
 0x62c   :  { %7246 = vmatmul.mubr.msk.f32.gmra.mrb[46].mxu1 %vm807_vm2, %v5578_v18 }
 0x62d   :  { %7248 = vmatprep.mubr.msk.f32.mxu1 %vm807_vm2, %v5579_v60 }
 0x630   :  { %7249 = vmatmul.mubr.msk.f32.gmra.mrb[48].mxu1 %vm807_vm2, %v5580_v22 }
 0x631   :  { %7251 = vmatprep.mubr.msk.f32.mxu1 %vm807_vm2, %v5581_v44 }
 0x634   :  { %7252 = vmatmul.mubr.msk.f32.gmra.mrb[50].mxu1 %vm807_vm2, %v5582_v50 }
 0x635   :  { %7254 = vmatprep.mubr.msk.f32.mxu1 %vm807_vm2, %v5583_v21 }
 0x638   :  { %7255 = vmatmul.mubr.msk.f32.gmra.mrb[52].mxu1 %vm807_vm2, %v5584_v61 }
 0x639   :  { %7257 = vmatprep.mubr.msk.f32.mxu1 %vm807_vm2, %v5585_v23 }
 0x63c   :  { %7258 = vmatmul.mubr.msk.f32.gmra.mrb[54].mxu1 %vm807_vm2, %v5586_v63 }
 0x63d   :  { %7260 = vmatprep.mubr.msk.f32.mxu1 %vm807_vm2, %v5587_v55 }
 0x640   :  { %7261 = vmatmul.mubr.msk.f32.gmra.mrb[56].mxu1 %vm807_vm2, %v5588_v11 }
 0x641   :  { %7263 = vmatprep.mubr.msk.f32.mxu1 %vm807_vm2, %v5589_v15 }
 0x644   :  { %7264 = vmatmul.mubr.msk.f32.gmra.mrb[58].mxu1 %vm807_vm2, %v5590_v31 }
 0x645   :  { %7266 = vmatprep.mubr.msk.f32.mxu1 %vm807_vm2, %v5591_v40 }
 0x648   :  { %7267 = vmatmul.mubr.msk.f32.gmra.mrb[60].mxu1 %vm807_vm2, %v5592_v30 }
 0x649   :  { %7269 = vmatprep.mubr.msk.f32.mxu1 %vm807_vm2, %v5593_v37 }
 0x64c   :  { %7270 = vmatmul.mubr.msk.f32.gmra.mrb[62].mxu1 %vm807_vm2, %v5594_v35 }
 0x6a3   :  { %v14930_v51 = vpop.f32.mrb[0].mxu1 }
 0x6a4   :  { %v6177_v13 = vsel %vm223_vm1, %v14930_v51, 0.0  ;;  %v6310_v16 = vmul.f32 %v14930_v51, %v14930_v51  ;;  %v14936_v2 = vpop.f32.mrb[1].mxu1 }
 0x6a5   :  { %v6176_v10 = vsel %vm223_vm1, %v14936_v2, 0.0  ;;  %v6309_v7 = vmul.f32 %v14936_v2, %v14936_v2 }
 0x6a6   :  { %v6374_v54 = vsel %vm223_vm1, %v6310_v16, 0.0  ;;  %v6178_v1 = vadd.f32 %v6177_v13, %v6176_v10 }
 0x6a7   :  { %v6373_v49 = vsel %vm223_vm1, %v6309_v7, 0.0  ;;  %v14944_v52 = vpop.f32.mrb[2].mxu1 }
 0x6a8   :  { %v6375_v8 = vadd.f32 %v6374_v54, %v6373_v49  ;;  %v14946_v14 = vpop.f32.mrb[3].mxu1  ;;  %v6312_v59 = vmul.f32 %v14944_v52, %v14944_v52  ;;  %v6181_v25 = vsel %vm223_vm1, %v14944_v52, 0.0 }
 0x6a9   :  { %v6179_v42 = vsel %vm223_vm1, %v14946_v14, 0.0  ;;  %v6311_v28 = vmul.f32 %v14946_v14, %v14946_v14 }
 0x6aa   :  { %v6180_v47 = vadd.f32 %v6179_v42, %v6178_v1  ;;  %v6378_v5 = vsel %vm223_vm1, %v6312_v59, 0.0 }
 0x6ab   :  { %v6376_v45 = vsel %vm223_vm1, %v6311_v28, 0.0  ;;  %v14957_v26 = vpop.f32.mrb[4].mxu1 }
 0x6ac   :  { %v6182_v46 = vadd.f32 %v6181_v25, %v6180_v47  ;;  %v6377_v19 = vadd.f32 %v6376_v45, %v6375_v8  ;;  %v14959_v39 = vpop.f32.mrb[5].mxu1  ;;  %v6314_v0 = vmul.f32 %v14957_v26, %v14957_v26  ;;  %v6185_v12 = vsel %vm223_vm1, %v14957_v26, 0.0 }
 0x6ad   :  { %v6183_v29 = vsel %vm223_vm1, %v14959_v39, 0.0  ;;  %v6313_v3 = vmul.f32 %v14959_v39, %v14959_v39 }
 0x6ae   :  { %v6379_v41 = vadd.f32 %v6378_v5, %v6377_v19  ;;  %v6184_v27 = vadd.f32 %v6183_v29, %v6182_v46  ;;  %v6382_v36 = vsel %vm223_vm1, %v6314_v0, 0.0 }
 0x6af   :  { %v6380_v53 = vsel %vm223_vm1, %v6313_v3, 0.0  ;;  %v14971_v20 = vpop.f32.mrb[6].mxu1 }
 0x6b0   :  { %v6381_v18 = vadd.f32 %v6380_v53, %v6379_v41  ;;  %v14973_v58 = vpop.f32.mrb[7].mxu1  ;;  %v6186_v60 = vadd.f32 %v6185_v12, %v6184_v27  ;;  %v6316_v22 = vmul.f32 %v14971_v20, %v14971_v20  ;;  %v6189_v62 = vsel %vm223_vm1, %v14971_v20, 0.0 }
 0x6b1   :  { %v6187_v9 = vsel %vm223_vm1, %v14973_v58, 0.0  ;;  %v6315_v44 = vmul.f32 %v14973_v58, %v14973_v58 }
 0x6b2   :  { %v6188_v33 = vadd.f32 %v6187_v9, %v6186_v60  ;;  %v6383_v50 = vadd.f32 %v6382_v36, %v6381_v18  ;;  %v6386_v56 = vsel %vm223_vm1, %v6316_v22, 0.0 }
 0x6b3   :  { %v6384_v21 = vsel %vm223_vm1, %v6315_v44, 0.0  ;;  %v14985_v38 = vpop.f32.mrb[8].mxu1 }
 0x6b4   :  { %v6385_v61 = vadd.f32 %v6384_v21, %v6383_v50  ;;  %v14987_v34 = vpop.f32.mrb[9].mxu1  ;;  %v6190_v23 = vadd.f32 %v6189_v62, %v6188_v33  ;;  %v6318_v63 = vmul.f32 %v14985_v38, %v14985_v38  ;;  %v6193_v6 = vsel %vm223_vm1, %v14985_v38, 0.0 }
 0x6b5   :  { %v6191_v57 = vsel %vm223_vm1, %v14987_v34, 0.0  ;;  %v6317_v55 = vmul.f32 %v14987_v34, %v14987_v34 }
 0x6b6   :  { %v6192_v24 = vadd.f32 %v6191_v57, %v6190_v23  ;;  %v6387_v11 = vadd.f32 %v6386_v56, %v6385_v61  ;;  %v6390_v17 = vsel %vm223_vm1, %v6318_v63, 0.0 }
 0x6b7   :  { %v6388_v15 = vsel %vm223_vm1, %v6317_v55, 0.0  ;;  %v14999_v43 = vpop.f32.mrb[10].mxu1 }
 0x6b8   :  { %v6389_v31 = vadd.f32 %v6388_v15, %v6387_v11  ;;  %v15001_v48 = vpop.f32.mrb[11].mxu1  ;;  %v6194_v40 = vadd.f32 %v6193_v6, %v6192_v24  ;;  %v6320_v30 = vmul.f32 %v14999_v43, %v14999_v43  ;;  %v6197_v16 = vsel %vm223_vm1, %v14999_v43, 0.0 }
 0x6b9   :  { %v6195_v32 = vsel %vm223_vm1, %v15001_v48, 0.0  ;;  %v6319_v37 = vmul.f32 %v15001_v48, %v15001_v48 }
 0x6ba   :  { %v6196_v35 = vadd.f32 %v6195_v32, %v6194_v40  ;;  %v6391_v13 = vadd.f32 %v6390_v17, %v6389_v31  ;;  %v6394_v8 = vsel %vm223_vm1, %v6320_v30, 0.0 }
 0x6bb   :  { %v6392_v10 = vsel %vm223_vm1, %v6319_v37, 0.0  ;;  %v15013_v7 = vpop.f32.mrb[12].mxu1 }
 0x6bc   :  { %v6393_v54 = vadd.f32 %v6392_v10, %v6391_v13  ;;  %v15015_v1 = vpop.f32.mrb[13].mxu1  ;;  %v6198_v49 = vadd.f32 %v6197_v16, %v6196_v35  ;;  %v6322_v59 = vmul.f32 %v15013_v7, %v15013_v7  ;;  %v6201_v45 = vsel %vm223_vm1, %v15013_v7, 0.0 }
 0x6bd   :  { %v6199_v42 = vsel %vm223_vm1, %v15015_v1, 0.0  ;;  %v6321_v28 = vmul.f32 %v15015_v1, %v15015_v1 }
 0x6be   :  { %v6200_v47 = vadd.f32 %v6199_v42, %v6198_v49  ;;  %v6395_v25 = vadd.f32 %v6394_v8, %v6393_v54  ;;  %v6398_v3 = vsel %vm223_vm1, %v6322_v59, 0.0 }
 0x6bf   :  { %v6396_v46 = vsel %vm223_vm1, %v6321_v28, 0.0  ;;  %v15027_v19 = vpop.f32.mrb[14].mxu1 }
 0x6c0   :  { %v6397_v5 = vadd.f32 %v6396_v46, %v6395_v25  ;;  %v15029_v0 = vpop.f32.mrb[15].mxu1  ;;  %v6202_v29 = vadd.f32 %v6201_v45, %v6200_v47  ;;  %v6324_v41 = vmul.f32 %v15027_v19, %v15027_v19  ;;  %v6205_v60 = vsel %vm223_vm1, %v15027_v19, 0.0 }
 0x6c1   :  { %v6203_v27 = vsel %vm223_vm1, %v15029_v0, 0.0  ;;  %v6323_v12 = vmul.f32 %v15029_v0, %v15029_v0 }
 0x6c2   :  { %v6204_v53 = vadd.f32 %v6203_v27, %v6202_v29  ;;  %v6399_v18 = vadd.f32 %v6398_v3, %v6397_v5  ;;  %v6402_v50 = vsel %vm223_vm1, %v6324_v41, 0.0 }
 0x6c3   :  { %v6400_v36 = vsel %vm223_vm1, %v6323_v12, 0.0  ;;  %v15041_v22 = vpop.f32.mrb[16].mxu1 }
 0x6c4   :  { %v6401_v9 = vadd.f32 %v6400_v36, %v6399_v18  ;;  %v15043_v44 = vpop.f32.mrb[17].mxu1  ;;  %v6206_v33 = vadd.f32 %v6205_v60, %v6204_v53  ;;  %v6326_v62 = vmul.f32 %v15041_v22, %v15041_v22  ;;  %v6209_v63 = vsel %vm223_vm1, %v15041_v22, 0.0 }
 0x6c5   :  { %v6207_v21 = vsel %vm223_vm1, %v15043_v44, 0.0  ;;  %v6325_v61 = vmul.f32 %v15043_v44, %v15043_v44 }
 0x6c6   :  { %v6208_v23 = vadd.f32 %v6207_v21, %v6206_v33  ;;  %v6403_v56 = vadd.f32 %v6402_v50, %v6401_v9  ;;  %v6406_v15 = vsel %vm223_vm1, %v6326_v62, 0.0 }
 0x6c7   :  { %v6404_v57 = vsel %vm223_vm1, %v6325_v61, 0.0  ;;  %v15055_v55 = vpop.f32.mrb[18].mxu1 }
 0x6c8   :  { %v6405_v24 = vadd.f32 %v6404_v57, %v6403_v56  ;;  %v15057_v11 = vpop.f32.mrb[19].mxu1  ;;  %v6210_v6 = vadd.f32 %v6209_v63, %v6208_v23  ;;  %v6328_v31 = vmul.f32 %v15055_v55, %v15055_v55  ;;  %v6213_v37 = vsel %vm223_vm1, %v15055_v55, 0.0 }
 0x6c9   :  { %v6211_v40 = vsel %vm223_vm1, %v15057_v11, 0.0  ;;  %v6327_v17 = vmul.f32 %v15057_v11, %v15057_v11 }
 0x6ca   :  { %v6212_v30 = vadd.f32 %v6211_v40, %v6210_v6  ;;  %v6407_v32 = vadd.f32 %v6406_v15, %v6405_v24  ;;  %v6410_v49 = vsel %vm223_vm1, %v6328_v31, 0.0 }
 0x6cb   :  { %v6408_v35 = vsel %vm223_vm1, %v6327_v17, 0.0  ;;  %v15069_v13 = vpop.f32.mrb[20].mxu1 }
 0x6cc   :  { %v6409_v16 = vadd.f32 %v6408_v35, %v6407_v32  ;;  %v15071_v10 = vpop.f32.mrb[21].mxu1  ;;  %v6214_v54 = vadd.f32 %v6213_v37, %v6212_v30  ;;  %v6330_v8 = vmul.f32 %v15069_v13, %v15069_v13  ;;  %v6217_v25 = vsel %vm223_vm1, %v15069_v13, 0.0 }
 0x6cd   :  { %v6215_v59 = vsel %vm223_vm1, %v15071_v10, 0.0  ;;  %v6329_v42 = vmul.f32 %v15071_v10, %v15071_v10 }
 0x6ce   :  { %v6216_v28 = vadd.f32 %v6215_v59, %v6214_v54  ;;  %v6411_v47 = vadd.f32 %v6410_v49, %v6409_v16  ;;  %v6414_v41 = vsel %vm223_vm1, %v6330_v8, 0.0 }
 0x6cf   :  { %v6412_v45 = vsel %vm223_vm1, %v6329_v42, 0.0  ;;  %v15083_v46 = vpop.f32.mrb[22].mxu1 }
 0x6d0   :  { %v6413_v5 = vadd.f32 %v6412_v45, %v6411_v47  ;;  %v15085_v29 = vpop.f32.mrb[23].mxu1  ;;  %v6218_v3 = vadd.f32 %v6217_v25, %v6216_v28  ;;  %v6332_v27 = vmul.f32 %v15083_v46, %v15083_v46  ;;  %v6221_v36 = vsel %vm223_vm1, %v15083_v46, 0.0 }
 0x6d1   :  { %v6219_v12 = vsel %vm223_vm1, %v15085_v29, 0.0  ;;  %v6331_v53 = vmul.f32 %v15085_v29, %v15085_v29 }
 0x6d2   :  { %v6220_v18 = vadd.f32 %v6219_v12, %v6218_v3  ;;  %v6415_v60 = vadd.f32 %v6414_v41, %v6413_v5  ;;  %v6418_v61 = vsel %vm223_vm1, %v6332_v27, 0.0 }
 0x6d3   :  { %v6416_v9 = vsel %vm223_vm1, %v6331_v53, 0.0  ;;  %v15097_v33 = vpop.f32.mrb[24].mxu1 }
 0x6d4   :  { %v6417_v50 = vadd.f32 %v6416_v9, %v6415_v60  ;;  %v15099_v62 = vpop.f32.mrb[25].mxu1  ;;  %v6222_v21 = vadd.f32 %v6221_v36, %v6220_v18  ;;  %v6334_v23 = vmul.f32 %v15097_v33, %v15097_v33  ;;  %v6225_v6 = vsel %vm223_vm1, %v15097_v33, 0.0 }
 0x6d5   :  { %v6223_v56 = vsel %vm223_vm1, %v15099_v62, 0.0  ;;  %v6333_v63 = vmul.f32 %v15099_v62, %v15099_v62 }
 0x6d6   :  { %v6224_v57 = vadd.f32 %v6223_v56, %v6222_v21  ;;  %v6419_v24 = vadd.f32 %v6418_v61, %v6417_v50  ;;  %v6422_v32 = vsel %vm223_vm1, %v6334_v23, 0.0 }
 0x6d7   :  { %v6420_v15 = vsel %vm223_vm1, %v6333_v63, 0.0  ;;  %v15111_v31 = vpop.f32.mrb[26].mxu1 }
 0x6d8   :  { %v6421_v40 = vadd.f32 %v6420_v15, %v6419_v24  ;;  %v15113_v17 = vpop.f32.mrb[27].mxu1  ;;  %v6226_v30 = vadd.f32 %v6225_v6, %v6224_v57  ;;  %v6336_v37 = vmul.f32 %v15111_v31, %v15111_v31  ;;  %v6229_v8 = vsel %vm223_vm1, %v15111_v31, 0.0 }
 0x6d9   :  { %v6227_v35 = vsel %vm223_vm1, %v15113_v17, 0.0  ;;  %v6335_v16 = vmul.f32 %v15113_v17, %v15113_v17 }
 0x6da   :  { %v6228_v54 = vadd.f32 %v6227_v35, %v6226_v30  ;;  %v6423_v49 = vadd.f32 %v6422_v32, %v6421_v40  ;;  %v6426_v45 = vsel %vm223_vm1, %v6336_v37, 0.0 }
 0x6db   :  { %v6424_v59 = vsel %vm223_vm1, %v6335_v16, 0.0  ;;  %v15125_v42 = vpop.f32.mrb[28].mxu1 }
 0x6dc   :  { %v6425_v28 = vadd.f32 %v6424_v59, %v6423_v49  ;;  %v15127_v47 = vpop.f32.mrb[29].mxu1  ;;  %v6230_v25 = vadd.f32 %v6229_v8, %v6228_v54  ;;  %v6338_v5 = vmul.f32 %v15125_v42, %v15125_v42  ;;  %v6233_v53 = vsel %vm223_vm1, %v15125_v42, 0.0 }
 0x6dd   :  { %v6231_v3 = vsel %vm223_vm1, %v15127_v47, 0.0  ;;  %v6337_v41 = vmul.f32 %v15127_v47, %v15127_v47 }
 0x6de   :  { %v6232_v27 = vadd.f32 %v6231_v3, %v6230_v25  ;;  %v6427_v12 = vadd.f32 %v6426_v45, %v6425_v28  ;;  %v6430_v21 = vsel %vm223_vm1, %v6338_v5, 0.0 }
 0x6df   :  { %v6428_v18 = vsel %vm223_vm1, %v6337_v41, 0.0  ;;  %v15139_v60 = vpop.f32.mrb[30].mxu1 }
 0x6e0   :  { %v6429_v36 = vadd.f32 %v6428_v18, %v6427_v12  ;;  %v15141_v9 = vpop.f32.mrb[31].mxu1  ;;  %v6234_v50 = vadd.f32 %v6233_v53, %v6232_v27  ;;  %v6340_v61 = vmul.f32 %v15139_v60, %v15139_v60  ;;  %v6237_v24 = vsel %vm223_vm1, %v15139_v60, 0.0 }
 0x6e1   :  { %v6235_v23 = vsel %vm223_vm1, %v15141_v9, 0.0  ;;  %v6339_v56 = vmul.f32 %v15141_v9, %v15141_v9 }
 0x6e2   :  { %v6236_v63 = vadd.f32 %v6235_v23, %v6234_v50  ;;  %v6431_v57 = vadd.f32 %v6430_v21, %v6429_v36  ;;  %v6434_v37 = vsel %vm223_vm1, %v6340_v61, 0.0 }
 0x6e3   :  { %v6432_v6 = vsel %vm223_vm1, %v6339_v56, 0.0  ;;  %v15153_v15 = vpop.f32.mrb[32].mxu1 }
 0x6e4   :  { %v6433_v40 = vadd.f32 %v6432_v6, %v6431_v57  ;;  %v15155_v30 = vpop.f32.mrb[33].mxu1  ;;  %v6238_v32 = vadd.f32 %v6237_v24, %v6236_v63  ;;  %v6342_v35 = vmul.f32 %v15153_v15, %v15153_v15  ;;  %v6241_v59 = vsel %vm223_vm1, %v15153_v15, 0.0 }
 0x6e5   :  { %v6239_v16 = vsel %vm223_vm1, %v15155_v30, 0.0  ;;  %v6341_v54 = vmul.f32 %v15155_v30, %v15155_v30 }
 0x6e6   :  { %v6240_v49 = vadd.f32 %v6239_v16, %v6238_v32  ;;  %v6435_v8 = vadd.f32 %v6434_v37, %v6433_v40  ;;  %v6438_v41 = vsel %vm223_vm1, %v6342_v35, 0.0 }
 0x6e7   :  { %v6436_v28 = vsel %vm223_vm1, %v6341_v54, 0.0  ;;  %v15167_v25 = vpop.f32.mrb[34].mxu1 }
 0x6e8   :  { %v6437_v45 = vadd.f32 %v6436_v28, %v6435_v8  ;;  %v15169_v5 = vpop.f32.mrb[35].mxu1  ;;  %v6242_v3 = vadd.f32 %v6241_v59, %v6240_v49  ;;  %v6344_v27 = vmul.f32 %v15167_v25, %v15167_v25  ;;  %v6245_v50 = vsel %vm223_vm1, %v15167_v25, 0.0 }
 0x6e9   :  { %v6243_v12 = vsel %vm223_vm1, %v15169_v5, 0.0  ;;  %v6343_v53 = vmul.f32 %v15169_v5, %v15169_v5 }
 0x6ea   :  { %v6244_v18 = vadd.f32 %v6243_v12, %v6242_v3  ;;  %v6439_v36 = vadd.f32 %v6438_v41, %v6437_v45  ;;  %v6442_v57 = vsel %vm223_vm1, %v6344_v27, 0.0 }
 0x6eb   :  { %v6440_v21 = vsel %vm223_vm1, %v6343_v53, 0.0  ;;  %v15181_v61 = vpop.f32.mrb[36].mxu1 }
 0x6ec   :  { %v6441_v23 = vadd.f32 %v6440_v21, %v6439_v36  ;;  %v15183_v56 = vpop.f32.mrb[37].mxu1  ;;  %v6246_v63 = vadd.f32 %v6245_v50, %v6244_v18  ;;  %v6346_v24 = vmul.f32 %v15181_v61, %v15181_v61  ;;  %v6249_v35 = vsel %vm223_vm1, %v15181_v61, 0.0 }
 0x6ed   :  { %v6247_v6 = vsel %vm223_vm1, %v15183_v56, 0.0  ;;  %v6345_v40 = vmul.f32 %v15183_v56, %v15183_v56 }
 0x6ee   :  { %v6248_v32 = vadd.f32 %v6247_v6, %v6246_v63  ;;  %v6443_v37 = vadd.f32 %v6442_v57, %v6441_v23  ;;  %v6446_v28 = vsel %vm223_vm1, %v6346_v24, 0.0 }
 0x6ef   :  { %v6444_v16 = vsel %vm223_vm1, %v6345_v40, 0.0  ;;  %v15195_v54 = vpop.f32.mrb[38].mxu1 }
 0x6f0   :  { %18202 = vst [vmem:[#allocation121_spill] sm:$0xff] %v15195_v54  ;;  %v6445_v49 = vadd.f32 %v6444_v16, %v6443_v37  ;;  %v15197_v8 = vpop.f32.mrb[39].mxu1  ;;  %v6250_v59 = vadd.f32 %v6249_v35, %v6248_v32  ;;  %v6348_v45 = vmul.f32 %v15195_v54, %v15195_v54  ;;  %v6253_v53 = vsel %vm223_vm1, %v15195_v54, 0.0 }
 0x6f1   :  { %18203 = vst [vmem:[#allocation122_spill] sm:$0xff] %v15197_v8  ;;  %v6251_v3 = vsel %vm223_vm1, %v15197_v8, 0.0  ;;  %v6347_v41 = vmul.f32 %v15197_v8, %v15197_v8 }
 0x6f2   :  { %v6252_v27 = vadd.f32 %v6251_v3, %v6250_v59  ;;  %v6447_v12 = vadd.f32 %v6446_v28, %v6445_v49  ;;  %v6450_v63 = vsel %vm223_vm1, %v6348_v45, 0.0 }
 0x6f3   :  { %v6448_v18 = vsel %vm223_vm1, %v6347_v41, 0.0  ;;  %v15209_v36 = vpop.f32.mrb[40].mxu1 }
 0x6f4   :  { %18204 = vst [vmem:[#allocation130_spill] sm:$0xff] %v15209_v36  ;;  %v6449_v50 = vadd.f32 %v6448_v18, %v6447_v12  ;;  %v15211_v21 = vpop.f32.mrb[41].mxu1  ;;  %v6254_v23 = vadd.f32 %v6253_v53, %v6252_v27  ;;  %v6350_v57 = vmul.f32 %v15209_v36, %v15209_v36  ;;  %v6257_v37 = vsel %vm223_vm1, %v15209_v36, 0.0 }
 0x6f5   :  { %18205 = vst [vmem:[#allocation127_spill] sm:$0xff] %v15211_v21  ;;  %v6255_v24 = vsel %vm223_vm1, %v15211_v21, 0.0  ;;  %v6349_v6 = vmul.f32 %v15211_v21, %v15211_v21 }
 0x6f6   :  { %v6256_v40 = vadd.f32 %v6255_v24, %v6254_v23  ;;  %v6451_v32 = vadd.f32 %v6450_v63, %v6449_v50  ;;  %v6454_v45 = vsel %vm223_vm1, %v6350_v57, 0.0 }
 0x6f7   :  { %v6452_v35 = vsel %vm223_vm1, %v6349_v6, 0.0  ;;  %v15223_v16 = vpop.f32.mrb[42].mxu1 }
 0x6f8   :  { %18206 = vst [vmem:[#allocation134_spill] sm:$0xff] %v15223_v16  ;;  %v6453_v49 = vadd.f32 %v6452_v35, %v6451_v32  ;;  %v15225_v59 = vpop.f32.mrb[43].mxu1  ;;  %v6258_v28 = vadd.f32 %v6257_v37, %v6256_v40  ;;  %v6352_v3 = vmul.f32 %v15223_v16, %v15223_v16  ;;  %v6261_v18 = vsel %vm223_vm1, %v15223_v16, 0.0 }
 0x6f9   :  { %18207 = vst [vmem:[#allocation126_spill] sm:$0xff] %v15225_v59  ;;  %v6259_v41 = vsel %vm223_vm1, %v15225_v59, 0.0  ;;  %v6351_v27 = vmul.f32 %v15225_v59, %v15225_v59 }
 0x6fa   :  { %v6260_v12 = vadd.f32 %v6259_v41, %v6258_v28  ;;  %v6455_v53 = vadd.f32 %v6454_v45, %v6453_v49  ;;  %v6458_v6 = vsel %vm223_vm1, %v6352_v3, 0.0 }
 0x6fb   :  { %v6456_v50 = vsel %vm223_vm1, %v6351_v27, 0.0  ;;  %v15237_v23 = vpop.f32.mrb[44].mxu1 }
 0x6fc   :  { %18208 = vst [vmem:[#allocation139_spill] sm:$0xff] %v15237_v23  ;;  %v6457_v63 = vadd.f32 %v6456_v50, %v6455_v53  ;;  %v15239_v57 = vpop.f32.mrb[45].mxu1  ;;  %v6262_v24 = vadd.f32 %v6261_v18, %v6260_v12  ;;  %v6354_v40 = vmul.f32 %v15237_v23, %v15237_v23  ;;  %v6265_v28 = vsel %vm223_vm1, %v15237_v23, 0.0 }
 0x6fd   :  { %18209 = vst [vmem:[#allocation138_spill] sm:$0xff] %v15239_v57  ;;  %v6263_v32 = vsel %vm223_vm1, %v15239_v57, 0.0  ;;  %v6353_v37 = vmul.f32 %v15239_v57, %v15239_v57 }
 0x6fe   :  { %v6264_v35 = vadd.f32 %v6263_v32, %v6262_v24  ;;  %v6459_v49 = vadd.f32 %v6458_v6, %v6457_v63  ;;  %v6462_v53 = vsel %vm223_vm1, %v6354_v40, 0.0 }
 0x6ff   :  { %v6460_v45 = vsel %vm223_vm1, %v6353_v37, 0.0  ;;  %v15251_v41 = vpop.f32.mrb[46].mxu1 }
 0x700   :  { %18210 = vst [vmem:[#allocation142_spill] sm:$0xff] %v15251_v41  ;;  %v6461_v27 = vadd.f32 %v6460_v45, %v6459_v49  ;;  %v15253_v3 = vpop.f32.mrb[47].mxu1  ;;  %v6266_v12 = vadd.f32 %v6265_v28, %v6264_v35  ;;  %v6356_v18 = vmul.f32 %v15251_v41, %v15251_v41  ;;  %v6269_v32 = vsel %vm223_vm1, %v15251_v41, 0.0 }
 0x701   :  { %18211 = vst [vmem:[#allocation131_spill] sm:$0xff] %v15253_v3  ;;  %v6267_v50 = vsel %vm223_vm1, %v15253_v3, 0.0  ;;  %v6355_v63 = vmul.f32 %v15253_v3, %v15253_v3 }
 0x702   :  { %v6268_v24 = vadd.f32 %v6267_v50, %v6266_v12  ;;  %v6463_v6 = vadd.f32 %v6462_v53, %v6461_v27  ;;  %v6466_v45 = vsel %vm223_vm1, %v6356_v18, 0.0 }
 0x703   :  { %v6464_v37 = vsel %vm223_vm1, %v6355_v63, 0.0  ;;  %v15265_v49 = vpop.f32.mrb[48].mxu1 }
 0x704   :  { %18212 = vst [vmem:[#allocation103_spill] sm:$0xff] %v15265_v49  ;;  %v6465_v35 = vadd.f32 %v6464_v37, %v6463_v6  ;;  %v15267_v40 = vpop.f32.mrb[49].mxu1  ;;  %v6270_v28 = vadd.f32 %v6269_v32, %v6268_v24  ;;  %v6358_v23 = vmul.f32 %v15265_v49, %v15265_v49  ;;  %v6273_v63 = vsel %vm223_vm1, %v15265_v49, 0.0 }
 0x705   :  { %18213 = vst [vmem:[#allocation104_spill] sm:$0xff] %v15267_v40  ;;  %v6271_v12 = vsel %vm223_vm1, %v15267_v40, 0.0  ;;  %v6357_v27 = vmul.f32 %v15267_v40, %v15267_v40 }
 0x706   :  { %v6272_v53 = vadd.f32 %v6271_v12, %v6270_v28  ;;  %v6467_v50 = vadd.f32 %v6466_v45, %v6465_v35  ;;  %v6470_v41 = vsel %vm223_vm1, %v6358_v23, 0.0 }
 0x707   :  { %v6468_v6 = vsel %vm223_vm1, %v6357_v27, 0.0  ;;  %v15279_v37 = vpop.f32.mrb[50].mxu1 }
 0x708   :  { %18214 = vst [vmem:[#allocation203_spill] sm:$0xff] %v15279_v37  ;;  %v6469_v24 = vadd.f32 %v6468_v6, %v6467_v50  ;;  %v15281_v18 = vpop.f32.mrb[51].mxu1  ;;  %v6274_v32 = vadd.f32 %v6273_v63, %v6272_v53  ;;  %v6360_v3 = vmul.f32 %v15279_v37, %v15279_v37  ;;  %v6277_v27 = vsel %vm223_vm1, %v15279_v37, 0.0 }
 0x709   :  { %18215 = vst [vmem:[#allocation204_spill] sm:$0xff] %v15281_v18  ;;  %v6275_v28 = vsel %vm223_vm1, %v15281_v18, 0.0  ;;  %v6359_v35 = vmul.f32 %v15281_v18, %v15281_v18 }
 0x70a   :  { %v6276_v45 = vadd.f32 %v6275_v28, %v6274_v32  ;;  %v6471_v12 = vadd.f32 %v6470_v41, %v6469_v24  ;;  %v6474_v49 = vsel %vm223_vm1, %v6360_v3, 0.0 }
 0x70b   :  { %v6472_v50 = vsel %vm223_vm1, %v6359_v35, 0.0  ;;  %v15293_v6 = vpop.f32.mrb[52].mxu1 }
 0x70c   :  { %18216 = vst [vmem:[#allocation205_spill] sm:$0xff] %v15293_v6  ;;  %v6473_v53 = vadd.f32 %v6472_v50, %v6471_v12  ;;  %v15295_v23 = vpop.f32.mrb[53].mxu1  ;;  %v6278_v63 = vadd.f32 %v6277_v27, %v6276_v45  ;;  %v6362_v40 = vmul.f32 %v15293_v6, %v15293_v6  ;;  %v6281_v35 = vsel %vm223_vm1, %v15293_v6, 0.0 }
 0x70d   :  { %18217 = vst [vmem:[#allocation96_spill] sm:$0xff] %v15295_v23  ;;  %v6279_v32 = vsel %vm223_vm1, %v15295_v23, 0.0  ;;  %v6361_v41 = vmul.f32 %v15295_v23, %v15295_v23 }
 0x70e   :  { %v6280_v24 = vadd.f32 %v6279_v32, %v6278_v63  ;;  %v6475_v28 = vadd.f32 %v6474_v49, %v6473_v53  ;;  %v6478_v37 = vsel %vm223_vm1, %v6362_v40, 0.0 }
 0x70f   :  { %v6476_v12 = vsel %vm223_vm1, %v6361_v41, 0.0  ;;  %v15307_v50 = vpop.f32.mrb[54].mxu1 }
 0x710   :  { %18218 = vst [vmem:[#allocation97_spill] sm:$0xff] %v15307_v50  ;;  %v6477_v45 = vadd.f32 %v6476_v12, %v6475_v28  ;;  %v15309_v3 = vpop.f32.mrb[55].mxu1  ;;  %v6282_v27 = vadd.f32 %v6281_v35, %v6280_v24  ;;  %v6364_v18 = vmul.f32 %v15307_v50, %v15307_v50  ;;  %v6285_v41 = vsel %vm223_vm1, %v15307_v50, 0.0 }
 0x711   :  { %18219 = vst [vmem:[#allocation108_spill] sm:$0xff] %v15309_v3  ;;  %v6283_v63 = vsel %vm223_vm1, %v15309_v3, 0.0  ;;  %v6363_v49 = vmul.f32 %v15309_v3, %v15309_v3 }
 0x712   :  { %v6284_v53 = vadd.f32 %v6283_v63, %v6282_v27  ;;  %v6479_v32 = vadd.f32 %v6478_v37, %v6477_v45  ;;  %v6482_v6 = vsel %vm223_vm1, %v6364_v18, 0.0 }
 0x713   :  { %v6480_v28 = vsel %vm223_vm1, %v6363_v49, 0.0  ;;  %v15321_v12 = vpop.f32.mrb[56].mxu1 }
 0x714   :  { %18220 = vst [vmem:[#allocation109_spill] sm:$0xff] %v15321_v12  ;;  %v6481_v24 = vadd.f32 %v6480_v28, %v6479_v32  ;;  %v15323_v40 = vpop.f32.mrb[57].mxu1  ;;  %v6286_v35 = vadd.f32 %v6285_v41, %v6284_v53  ;;  %v6366_v23 = vmul.f32 %v15321_v12, %v15321_v12  ;;  %v6289_v49 = vsel %vm223_vm1, %v15321_v12, 0.0 }
 0x715   :  { %18221 = vst [vmem:[#allocation158_spill] sm:$0xff] %v15323_v40  ;;  %v6287_v27 = vsel %vm223_vm1, %v15323_v40, 0.0  ;;  %v6365_v37 = vmul.f32 %v15323_v40, %v15323_v40 }
 0x716   :  { %v6288_v45 = vadd.f32 %v6287_v27, %v6286_v35  ;;  %v6483_v63 = vadd.f32 %v6482_v6, %v6481_v24  ;;  %v6486_v50 = vsel %vm223_vm1, %v6366_v23, 0.0 }
 0x717   :  { %v6484_v32 = vsel %vm223_vm1, %v6365_v37, 0.0  ;;  %v15335_v28 = vpop.f32.mrb[58].mxu1 }
 0x718   :  { %18222 = vst [vmem:[#allocation144_spill] sm:$0xff] %v15335_v28  ;;  %v6485_v53 = vadd.f32 %v6484_v32, %v6483_v63  ;;  %v15337_v18 = vpop.f32.mrb[59].mxu1  ;;  %v6290_v41 = vadd.f32 %v6289_v49, %v6288_v45  ;;  %v6368_v3 = vmul.f32 %v15335_v28, %v15335_v28  ;;  %v6293_v37 = vsel %vm223_vm1, %v15335_v28, 0.0 }
 0x719   :  { %18223 = vst [vmem:[#allocation164_spill] sm:$0xff] %v15337_v18  ;;  %v6291_v35 = vsel %vm223_vm1, %v15337_v18, 0.0  ;;  %v6367_v6 = vmul.f32 %v15337_v18, %v15337_v18 }
 0x71a   :  { %v6292_v24 = vadd.f32 %v6291_v35, %v6290_v41  ;;  %v6487_v27 = vadd.f32 %v6486_v50, %v6485_v53  ;;  %v6490_v12 = vsel %vm223_vm1, %v6368_v3, 0.0 }
 0x71b   :  { %v6488_v63 = vsel %vm223_vm1, %v6367_v6, 0.0  ;;  %v15349_v32 = vpop.f32.mrb[60].mxu1 }
 0x71c   :  { %18224 = vst [vmem:[#allocation191_spill] sm:$0xff] %v15349_v32  ;;  %v6489_v45 = vadd.f32 %v6488_v63, %v6487_v27  ;;  %v15351_v23 = vpop.f32.mrb[61].mxu1  ;;  %v6294_v49 = vadd.f32 %v6293_v37, %v6292_v24  ;;  %v6370_v40 = vmul.f32 %v15349_v32, %v15349_v32  ;;  %v6297_v6 = vsel %vm223_vm1, %v15349_v32, 0.0 }
 0x71d   :  { %18225 = vst [vmem:[#allocation195_spill] sm:$0xff] %v15351_v23  ;;  %v6295_v41 = vsel %vm223_vm1, %v15351_v23, 0.0  ;;  %v6369_v50 = vmul.f32 %v15351_v23, %v15351_v23 }
 0x71e   :  { %v6296_v53 = vadd.f32 %v6295_v41, %v6294_v49  ;;  %v6491_v35 = vadd.f32 %v6490_v12, %v6489_v45  ;;  %v6494_v28 = vsel %vm223_vm1, %v6370_v40, 0.0 }
 0x71f   :  { %v6492_v27 = vsel %vm223_vm1, %v6369_v50, 0.0  ;;  %v15363_v63 = vpop.f32.mrb[62].mxu1 }
 0x720   :  { %18226 = vst [vmem:[#allocation71_spill] sm:$0xff] %v15363_v63  ;;  %v6493_v24 = vadd.f32 %v6492_v27, %v6491_v35  ;;  %v6165_v3 = vpop.f32.mrb[63].mxu1  ;;  %v6298_v37 = vadd.f32 %v6297_v6, %v6296_v53  ;;  %v6372_v18 = vmul.f32 %v15363_v63, %v15363_v63  ;;  %v6301_v45 = vsel %vm223_vm1, %v15363_v63, 0.0 }
 0x721   :  { %v6299_v57 = vsel %vm223_vm1, %v6165_v3, 0.0  ;;  %v6371_v23 = vmul.f32 %v6165_v3, %v6165_v3 }
 0x722   :  { %v6300_v49 = vadd.f32 %v6299_v57, %v6298_v37  ;;  %v6495_v12 = vadd.f32 %v6494_v28, %v6493_v24  ;;  %v6498_v35 = vsel %vm223_vm1, %v6372_v18, 0.0  ;;  %v6174_v18 = vld [vmem:[#allocation17] sm:$0x1] }
 0x723   :  { %v6496_v41 = vsel %vm223_vm1, %v6371_v23, 0.0 }
 0x724   :  { %v6302_v50 = vadd.f32 %v6301_v45, %v6300_v49  ;;  %v6497_v32 = vadd.f32 %v6496_v41, %v6495_v12  ;;  %v6175_v41 = vld [vmem:[#allocation18] sm:$0x1] }
 0x726   :  { %v6303_v53 = vrot.slane %v6302_v50, 4  ;;  %v6499_v6 = vadd.f32 %v6498_v35, %v6497_v32 }
 0x728   :  { %v6304_v40 = vadd.f32 %v6303_v53, %v6302_v50  ;;  %v6500_v27 = vrot.slane %v6499_v6, 4  ;;  %v7453_v53 = vld [vmem:[#allocation3 + $0x1f0] sm:$0xff] }
 0x72a   :  { %v6305_v16 = vrot.slane %v6304_v40, 2  ;;  %v6501_v59 = vadd.f32 %v6500_v27, %v6499_v6  ;;  %v18228_v27 = vld [vmem:[#allocation121_spill] sm:$0xff] }
 0x72c   :  { %v6306_v36 = vadd.f32 %v6305_v16, %v6304_v40  ;;  %v6502_v21 = vrot.slane %v6501_v59, 2  ;;  %v18227_v40 = vld [vmem:[#allocation122_spill] sm:$0xff] }
 0x72e   :  { %v6307_v54 = vrot.slane %v6306_v36, 1  ;;  %v6503_v57 = vadd.f32 %v6502_v21, %v6501_v59 }
 0x730   :  { %v6308_v28 = vadd.f32 %v6307_v54, %v6306_v36  ;;  %v6504_v24 = vrot.slane %v6503_v57, 1 }
 0x732   :  { %v6505_v37 = vadd.f32 %v6504_v24, %v6503_v57  ;;  %v6506_v63 = vmul.f32 0.001953125, %v6308_v28  ;;  %v18229_v57 = vld [vmem:[#allocation127_spill] sm:$0xff]  ;;  %v18230_v28 = vld [vmem:[#allocation130_spill] sm:$0xff] }
 0x733   :  { %v18231_v24 = vld [vmem:[#allocation126_spill] sm:$0xff] }
 0x734   :  { %v6507_v8 = vmul.f32 0.001953125, %v6505_v37  ;;  %v6508_v23 = vmul.f32 %v6506_v63, %v6506_v63  ;;  %v18232_v37 = vld [vmem:[#allocation134_spill] sm:$0xff] }
 0x736   :  { %v6509_v49 = vsub.f32 %v6507_v8, %v6508_v23 }
 0x738   :  { %v6510_v12 = vadd.f32 1e-05, %v6509_v49  ;;  %v18233_v49 = vld [vmem:[#allocation138_spill] sm:$0xff] }
 0x73a   :  { %7294 = vrsqrt.f32 %v6510_v12 }
 0x744   :  { %v7295_v45 = vpop.eup %7294 }
 0x745   :  { %v6512_v32 = vmul.f32 %v7295_v45, %v6174_v18  ;;  %v18234_v18 = vld [vmem:[#allocation139_spill] sm:$0xff] }
 0x747   :  { %v6513_v50 = vmul.f32 %v6512_v32, %v6506_v63  ;;  %v15374_v35 = vrot.slane %v6512_v32, %v18177_v4  ;;  %v18235_v32 = vld [vmem:[#allocation131_spill] sm:$0xff] }
 0x749   :  { %v6514_v16 = vsub.f32 %v6175_v41, %v6513_v50  ;;  %v6583_v21 = vmul.f32 %v15374_v35, %v6165_v3  ;;  %v15379_v54 = vmul.f32 %v15374_v35, %v14936_v2  ;;  %v15383_v8 = vmul.f32 %v14930_v51, %v15374_v35  ;;  %v18236_v50 = vld [vmem:[#allocation142_spill] sm:$0xff] }
 0x74a   :  { %v15387_v36 = vmul.f32 %v15374_v35, %v14946_v14  ;;  %v15391_v59 = vmul.f32 %v14944_v52, %v15374_v35  ;;  %v15395_v63 = vmul.f32 %v15374_v35, %v14959_v39  ;;  %v15399_v2 = vmul.f32 %v14957_v26, %v15374_v35 }
 0x74b   :  { %v15402_v3 = vrot.slane %v6514_v16, %v18177_v4  ;;  %v15406_v51 = vmul.f32 %v15374_v35, %v14973_v58  ;;  %v15410_v14 = vmul.f32 %v14971_v20, %v15374_v35  ;;  %v15414_v52 = vmul.f32 %v15374_v35, %v14987_v34 }
 0x74c   :  { %v15418_v39 = vmul.f32 %v14985_v38, %v15374_v35  ;;  %v15422_v4 = vmul.f32 %v15374_v35, %v15001_v48  ;;  %v15426_v26 = vmul.f32 %v14999_v43, %v15374_v35  ;;  %v15430_v20 = vmul.f32 %v15374_v35, %v15015_v1 }
 0x74d   :  { %v6653_v58 = vadd.f32 %v15402_v3, %v6583_v21  ;;  %v15435_v34 = vmul.f32 %v15013_v7, %v15374_v35  ;;  %v15439_v38 = vmul.f32 %v15374_v35, %v15029_v0  ;;  %v15443_v48 = vmul.f32 %v15027_v19, %v15374_v35  ;;  %v18237_v21 = vld [vmem:[#allocation104_spill] sm:$0xff] }
 0x74e   :  { %v15447_v43 = vmul.f32 %v15374_v35, %v15043_v44  ;;  %v15451_v1 = vmul.f32 %v15041_v22, %v15374_v35  ;;  %v15455_v7 = vmul.f32 %v15374_v35, %v15057_v11  ;;  %v15459_v0 = vmul.f32 %v15055_v55, %v15374_v35 }
 0x74f   :  { %v6717_v6 = vadd.f32 %v7453_v53, %v6653_v58  ;;  %v15463_v19 = vmul.f32 %v15374_v35, %v15071_v10  ;;  %v15467_v44 = vmul.f32 %v15069_v13, %v15374_v35  ;;  %v15471_v22 = vmul.f32 %v15374_v35, %v15085_v29  ;;  %v18238_v53 = vld [vmem:[#allocation103_spill] sm:$0xff] }
 0x750   :  { %v15475_v11 = vmul.f32 %v15083_v46, %v15374_v35  ;;  %v15479_v55 = vmul.f32 %v15374_v35, %v15099_v62  ;;  %v15483_v10 = vmul.f32 %v15097_v33, %v15374_v35  ;;  %v15487_v13 = vmul.f32 %v15374_v35, %v15113_v17 }
 0x751   :  { %6781 = vst.msk [vmem:[#allocation20 + $0x1f0] sm:$0xff] %vm223_vm1, %v6717_v6  ;;  %v15492_v29 = vmul.f32 %v15111_v31, %v15374_v35  ;;  %v15496_v46 = vmul.f32 %v15374_v35, %v15127_v47  ;;  %v15500_v62 = vmul.f32 %v15125_v42, %v15374_v35  ;;  %v15504_v33 = vmul.f32 %v15374_v35, %v15141_v9 }
 0x752   :  { %v15508_v17 = vmul.f32 %v15139_v60, %v15374_v35  ;;  %v15512_v31 = vmul.f32 %v15374_v35, %v15155_v30  ;;  %v15516_v47 = vmul.f32 %v15153_v15, %v15374_v35  ;;  %v15520_v42 = vmul.f32 %v15374_v35, %v15169_v5 }
 0x753   :  { %v15524_v9 = vmul.f32 %v15167_v25, %v15374_v35  ;;  %v15528_v60 = vmul.f32 %v15374_v35, %v15183_v56  ;;  %v15532_v30 = vmul.f32 %v15181_v61, %v15374_v35  ;;  %v15536_v15 = vmul.f32 %v15374_v35, %v18227_v40  ;;  %v18239_v40 = vld [vmem:[#allocation204_spill] sm:$0xff] }
 0x754   :  { %v15540_v5 = vmul.f32 %v18228_v27, %v15374_v35  ;;  %v15544_v25 = vmul.f32 %v15374_v35, %v18229_v57  ;;  %v15548_v56 = vmul.f32 %v18230_v28, %v15374_v35  ;;  %v15552_v61 = vmul.f32 %v15374_v35, %v18231_v24  ;;  %v18240_v57 = vld [vmem:[#allocation203_spill] sm:$0xff]  ;;  %v18242_v24 = vld [vmem:[#allocation96_spill] sm:$0xff] }
 0x755   :  { %v15556_v23 = vmul.f32 %v18232_v37, %v15374_v35  ;;  %v15560_v12 = vmul.f32 %v15374_v35, %v18233_v49  ;;  %v15564_v45 = vmul.f32 %v18234_v18, %v15374_v35  ;;  %v15568_v41 = vmul.f32 %v15374_v35, %v18235_v32  ;;  %v18244_v49 = vld [vmem:[#allocation205_spill] sm:$0xff]  ;;  %v18246_v32 = vld [vmem:[#allocation108_spill] sm:$0xff] }
 0x756   :  { %v15572_v16 = vmul.f32 %v18236_v50, %v15374_v35  ;;  %v15576_v58 = vmul.f32 %v15374_v35, %v18237_v21  ;;  %v15580_v6 = vmul.f32 %v18238_v53, %v15374_v35  ;;  %v15584_v27 = vmul.f32 %v15374_v35, %v18239_v40  ;;  %v18248_v21 = vld [vmem:[#allocation97_spill] sm:$0xff]  ;;  %v18250_v40 = vld [vmem:[#allocation158_spill] sm:$0xff] }
 0x757   :  { %v15588_v28 = vmul.f32 %v18240_v57, %v15374_v35  ;;  %v15592_v37 = vmul.f32 %v15374_v35, %v18242_v24  ;;  %v15596_v18 = vmul.f32 %v18244_v49, %v15374_v35  ;;  %v15600_v50 = vmul.f32 %v15374_v35, %v18246_v32 }
 0x758   :  { %v15604_v53 = vmul.f32 %v18248_v21, %v15374_v35  ;;  %v15608_v57 = vmul.f32 %v15374_v35, %v18250_v40 }
 0x759   :  { %18241 = vst [vmem:[#allocation196_spill] sm:$0xff] %v15588_v28  ;;  %18243 = vst [vmem:[#allocation199_spill] sm:$0xff] %v15592_v37  ;;  %v18252_v28 = vld [vmem:[#allocation109_spill] sm:$0xff]  ;;  %v18253_v37 = vld [vmem:[#allocation164_spill] sm:$0xff] }
 0x75a   :  { %18245 = vst [vmem:[#allocation198_spill] sm:$0xff] %v15596_v18  ;;  %18247 = vst [vmem:[#allocation65_spill] sm:$0xff] %v15600_v50  ;;  %v15612_v24 = vmul.f32 %v18252_v28, %v15374_v35  ;;  %v15616_v49 = vmul.f32 %v15374_v35, %v18253_v37  ;;  %v18254_v18 = vld [vmem:[#allocation144_spill] sm:$0xff]  ;;  %v18255_v50 = vld [vmem:[#allocation195_spill] sm:$0xff]  ;;  %v15636_v37 = vadd.f32 %v15402_v3, %v15379_v54 }
 0x75b   :  { %18249 = vst [vmem:[#allocation112_spill] sm:$0xff] %v15604_v53  ;;  %18251 = vst [vmem:[#allocation70_spill] sm:$0xff] %v15608_v57  ;;  %v15620_v32 = vmul.f32 %v18254_v18, %v15374_v35  ;;  %v15624_v21 = vmul.f32 %v15374_v35, %v18255_v50  ;;  %v18256_v53 = vld [vmem:[#allocation191_spill] sm:$0xff]  ;;  %v15640_v18 = vadd.f32 %v15402_v3, %v15383_v8 }
 0x75c   :  { %v15628_v40 = vmul.f32 %v18256_v53, %v15374_v35  ;;  %v18257_v57 = vld [vmem:[#allocation71_spill] sm:$0xff]  ;;  %v15644_v50 = vadd.f32 %v15402_v3, %v15387_v36  ;;  %v15648_v53 = vadd.f32 %v15402_v3, %v15391_v59  ;;  %v15656_v54 = vadd.f32 %v15402_v3, %v15399_v2 }
 0x75d   :  { %v15632_v28 = vmul.f32 %v18257_v57, %v15374_v35  ;;  %v15652_v35 = vadd.f32 %v15402_v3, %v15395_v63  ;;  %v15660_v8 = vadd.f32 %v15402_v3, %v15406_v51  ;;  %v15664_v36 = vadd.f32 %v15402_v3, %v15410_v14 }
 0x75e   :  { %v15668_v59 = vadd.f32 %v15402_v3, %v15414_v52  ;;  %v15672_v63 = vadd.f32 %v15402_v3, %v15418_v39  ;;  %v15676_v2 = vadd.f32 %v15402_v3, %v15422_v4  ;;  %v15680_v51 = vadd.f32 %v15402_v3, %v15426_v26 }
 0x75f   :  { %v15684_v14 = vadd.f32 %v15402_v3, %v15430_v20  ;;  %v15688_v52 = vadd.f32 %v15402_v3, %v15435_v34  ;;  %v15692_v39 = vadd.f32 %v15402_v3, %v15439_v38  ;;  %v15696_v4 = vadd.f32 %v15402_v3, %v15443_v48 }
 0x760   :  { %v15700_v26 = vadd.f32 %v15402_v3, %v15447_v43  ;;  %v15704_v20 = vadd.f32 %v15402_v3, %v15451_v1  ;;  %v15708_v34 = vadd.f32 %v15402_v3, %v15455_v7  ;;  %v15712_v38 = vadd.f32 %v15402_v3, %v15459_v0  ;;  %v18263_v57 = vld [vmem:[#allocation196_spill] sm:$0xff] }
 0x761   :  { %v15716_v48 = vadd.f32 %v15402_v3, %v15463_v19  ;;  %v15720_v43 = vadd.f32 %v15402_v3, %v15467_v44  ;;  %v15724_v1 = vadd.f32 %v15402_v3, %v15471_v22  ;;  %v15728_v7 = vadd.f32 %v15402_v3, %v15475_v11 }
 0x762   :  { %v15732_v0 = vadd.f32 %v15402_v3, %v15479_v55  ;;  %v15736_v19 = vadd.f32 %v15402_v3, %v15483_v10  ;;  %v15740_v44 = vadd.f32 %v15402_v3, %v15487_v13  ;;  %v15744_v22 = vadd.f32 %v15402_v3, %v15492_v29 }
 0x763   :  { %v15748_v11 = vadd.f32 %v15402_v3, %v15496_v46  ;;  %v15752_v55 = vadd.f32 %v15402_v3, %v15500_v62  ;;  %v15756_v10 = vadd.f32 %v15402_v3, %v15504_v33  ;;  %v15760_v13 = vadd.f32 %v15402_v3, %v15508_v17 }
 0x764   :  { %v15764_v29 = vadd.f32 %v15402_v3, %v15512_v31  ;;  %v15768_v46 = vadd.f32 %v15402_v3, %v15516_v47  ;;  %v15772_v62 = vadd.f32 %v15402_v3, %v15520_v42  ;;  %v15776_v33 = vadd.f32 %v15402_v3, %v15524_v9 }
 0x765   :  { %v15780_v17 = vadd.f32 %v15402_v3, %v15528_v60  ;;  %v15784_v31 = vadd.f32 %v15402_v3, %v15532_v30  ;;  %v15788_v47 = vadd.f32 %v15402_v3, %v15536_v15  ;;  %v15792_v42 = vadd.f32 %v15402_v3, %v15540_v5 }
 0x766   :  { %v15796_v9 = vadd.f32 %v15402_v3, %v15544_v25  ;;  %v15800_v60 = vadd.f32 %v15402_v3, %v15548_v56  ;;  %v15804_v30 = vadd.f32 %v15402_v3, %v15552_v61  ;;  %v15808_v15 = vadd.f32 %v15402_v3, %v15556_v23 }
 0x767   :  { %v15812_v5 = vadd.f32 %v15402_v3, %v15560_v12  ;;  %v15816_v25 = vadd.f32 %v15402_v3, %v15564_v45  ;;  %v15820_v56 = vadd.f32 %v15402_v3, %v15568_v41  ;;  %v15824_v61 = vadd.f32 %v15402_v3, %v15572_v16 }
 0x768   :  { %v15828_v23 = vadd.f32 %v15402_v3, %v15576_v58  ;;  %v15832_v12 = vadd.f32 %v15402_v3, %v15580_v6  ;;  %v15836_v45 = vadd.f32 %v15402_v3, %v15584_v27  ;;  %v15840_v41 = vadd.f32 %v15402_v3, %v18263_v57 }
 0x769   :  { %18258 = vst [vmem:[#allocation42_spill] sm:$0xff] %v15820_v56  ;;  %18259 = vst [vmem:[#allocation214_spill] sm:$0xff] %v15824_v61  ;;  %v18264_v56 = vld [vmem:[#allocation199_spill] sm:$0xff]  ;;  %v18265_v61 = vld [vmem:[#allocation198_spill] sm:$0xff] }
 0x76a   :  { %18260 = vst [vmem:[#allocation45_spill] sm:$0xff] %v15828_v23  ;;  %18261 = vst [vmem:[#allocation105_spill] sm:$0xff] %v15832_v12  ;;  %v15844_v16 = vadd.f32 %v15402_v3, %v18264_v56  ;;  %v15848_v58 = vadd.f32 %v15402_v3, %v18265_v61  ;;  %v18266_v23 = vld [vmem:[#allocation65_spill] sm:$0xff]  ;;  %v18268_v12 = vld [vmem:[#allocation112_spill] sm:$0xff]  ;;  %v15864_v56 = vadd.f32 %v15402_v3, %v15612_v24 }
 0x76b   :  { %18262 = vst [vmem:[#allocation99_spill] sm:$0xff] %v15836_v45  ;;  %v15852_v6 = vadd.f32 %v15402_v3, %v18266_v23  ;;  %v15856_v27 = vadd.f32 %v15402_v3, %v18268_v12  ;;  %v18270_v45 = vld [vmem:[#allocation70_spill] sm:$0xff]  ;;  %v15868_v61 = vadd.f32 %v15402_v3, %v15616_v49  ;;  %v15872_v23 = vadd.f32 %v15402_v3, %v15620_v32  ;;  %v7456_v32 = vld [vmem:[#allocation3 + $0x10] sm:$0xff] }
 0x76c   :  { %v15860_v57 = vadd.f32 %v15402_v3, %v18270_v45  ;;  %18272 = vst [vmem:[#allocation143_spill] sm:$0xff] %v15864_v56  ;;  %v15876_v12 = vadd.f32 %v15402_v3, %v15624_v21  ;;  %v15880_v45 = vadd.f32 %v15402_v3, %v15628_v40  ;;  %v15884_v24 = vadd.f32 %v15402_v3, %v15632_v28  ;;  %v7454_v56 = vld [vmem:[#allocation3] sm:$0xff]  ;;  %v7460_v3 = vld [vmem:[#allocation3 + $0x30] sm:$0xff] }
 0x76d   :  { %18267 = vst [vmem:[#allocation84_spill] sm:$0xff] %v15852_v6  ;;  %18269 = vst [vmem:[#allocation89_spill] sm:$0xff] %v15856_v27  ;;  %v6655_v49 = vadd.f32 %v7454_v56, %v15636_v37  ;;  %v7457_v27 = vld [vmem:[#allocation3 + $0x18] sm:$0xff]  ;;  %v6661_v28 = vadd.f32 %v7460_v3, %v15660_v8  ;;  %v7462_v56 = vld [vmem:[#allocation3 + $0x40] sm:$0xff] }
 0x76e   :  { %18271 = vst [vmem:[#allocation171_spill] sm:$0xff] %v15860_v57  ;;  %18273 = vst [vmem:[#allocation35_spill] sm:$0xff] %v15868_v61  ;;  %v7455_v61 = vld [vmem:[#allocation3 + $0x8] sm:$0xff]  ;;  %v6658_v21 = vadd.f32 %v7457_v27, %v15648_v53  ;;  %v7464_v27 = vld [vmem:[#allocation3 + $0x50] sm:$0xff] }
 0x76f   :  { %18274 = vst [vmem:[#allocation216_spill] sm:$0xff] %v15872_v23  ;;  %18275 = vst [vmem:[#allocation86_spill] sm:$0xff] %v15876_v12  ;;  %v6656_v57 = vadd.f32 %v7455_v61, %v15640_v18  ;;  %v6657_v23 = vadd.f32 %v7456_v32, %v15644_v50  ;;  %v7458_v12 = vld [vmem:[#allocation3 + $0x20] sm:$0xff]  ;;  %v6663_v18 = vadd.f32 %v7462_v56, %v15668_v59  ;;  %v7463_v50 = vld [vmem:[#allocation3 + $0x48] sm:$0xff] }
 0x770   :  { %18276 = vst [vmem:[#allocation190_spill] sm:$0xff] %v15880_v45  ;;  %18277 = vst [vmem:[#allocation165_spill] sm:$0xff] %v15884_v24  ;;  %v6659_v40 = vadd.f32 %v7458_v12, %v15652_v35  ;;  %v7459_v45 = vld [vmem:[#allocation3 + $0x28] sm:$0xff]  ;;  %v7461_v24 = vld [vmem:[#allocation3 + $0x38] sm:$0xff]  ;;  %v6664_v53 = vadd.f32 %v7463_v50, %v15672_v63  ;;  %v6665_v35 = vadd.f32 %v7464_v27, %v15676_v2 }
 0x771   :  { %v6660_v6 = vadd.f32 %v7459_v45, %v15656_v54  ;;  %v6662_v37 = vadd.f32 %v7461_v24, %v15664_v36  ;;  %6719 = vst.msk [vmem:[#allocation20] sm:$0xff] %vm223_vm1, %v6655_v49  ;;  %v7465_v61 = vld [vmem:[#allocation3 + $0x58] sm:$0xff]  ;;  %v7466_v12 = vld [vmem:[#allocation3 + $0x60] sm:$0xff]  ;;  %6720 = vst.msk [vmem:[#allocation20 + $0x8] sm:$0xff] %vm223_vm1, %v6656_v57 }
 0x772   :  { %v6666_v54 = vadd.f32 %v7465_v61, %v15680_v51  ;;  %v6667_v8 = vadd.f32 %v7466_v12, %v15684_v14  ;;  %6721 = vst.msk [vmem:[#allocation20 + $0x10] sm:$0xff] %vm223_vm1, %v6657_v23  ;;  %6722 = vst.msk [vmem:[#allocation20 + $0x18] sm:$0xff] %vm223_vm1, %v6658_v21  ;;  %v7467_v36 = vld [vmem:[#allocation3 + $0x68] sm:$0xff]  ;;  %v7468_v63 = vld [vmem:[#allocation3 + $0x70] sm:$0xff] }
 0x773   :  { %6723 = vst.msk [vmem:[#allocation20 + $0x20] sm:$0xff] %vm223_vm1, %v6659_v40  ;;  %v6668_v59 = vadd.f32 %v7467_v36, %v15688_v52  ;;  %v6669_v2 = vadd.f32 %v7468_v63, %v15692_v39  ;;  %v7469_v45 = vld [vmem:[#allocation3 + $0x78] sm:$0xff]  ;;  %v7470_v24 = vld [vmem:[#allocation3 + $0x80] sm:$0xff]  ;;  %6724 = vst.msk [vmem:[#allocation20 + $0x28] sm:$0xff] %vm223_vm1, %v6660_v6 }
 0x774   :  { %v6670_v51 = vadd.f32 %v7469_v45, %v15696_v4  ;;  %v6671_v14 = vadd.f32 %v7470_v24, %v15700_v26  ;;  %6725 = vst.msk [vmem:[#allocation20 + $0x30] sm:$0xff] %vm223_vm1, %v6661_v28  ;;  %6726 = vst.msk [vmem:[#allocation20 + $0x38] sm:$0xff] %vm223_vm1, %v6662_v37  ;;  %v7471_v57 = vld [vmem:[#allocation3 + $0x88] sm:$0xff]  ;;  %v7472_v23 = vld [vmem:[#allocation3 + $0x90] sm:$0xff] }
 0x775   :  { %6727 = vst.msk [vmem:[#allocation20 + $0x40] sm:$0xff] %vm223_vm1, %v6663_v18  ;;  %v6672_v52 = vadd.f32 %v7471_v57, %v15704_v20  ;;  %v6673_v39 = vadd.f32 %v7472_v23, %v15708_v34  ;;  %v7473_v49 = vld [vmem:[#allocation3 + $0x98] sm:$0xff]  ;;  %v7474_v32 = vld [vmem:[#allocation3 + $0xa0] sm:$0xff]  ;;  %6728 = vst.msk [vmem:[#allocation20 + $0x48] sm:$0xff] %vm223_vm1, %v6664_v53 }
 0x776   :  { %v6674_v4 = vadd.f32 %v7473_v49, %v15712_v38  ;;  %v6675_v26 = vadd.f32 %v7474_v32, %v15716_v48  ;;  %6729 = vst.msk [vmem:[#allocation20 + $0x50] sm:$0xff] %vm223_vm1, %v6665_v35  ;;  %6730 = vst.msk [vmem:[#allocation20 + $0x58] sm:$0xff] %vm223_vm1, %v6666_v54  ;;  %v7475_v6 = vld [vmem:[#allocation3 + $0xa8] sm:$0xff]  ;;  %v7476_v21 = vld [vmem:[#allocation3 + $0xb0] sm:$0xff] }
 0x777   :  { %6731 = vst.msk [vmem:[#allocation20 + $0x60] sm:$0xff] %vm223_vm1, %v6667_v8  ;;  %v6676_v20 = vadd.f32 %v7475_v6, %v15720_v43  ;;  %v6677_v34 = vadd.f32 %v7476_v21, %v15724_v1  ;;  %v7477_v40 = vld [vmem:[#allocation3 + $0xb8] sm:$0xff]  ;;  %v7478_v3 = vld [vmem:[#allocation3 + $0xc0] sm:$0xff]  ;;  %6732 = vst.msk [vmem:[#allocation20 + $0x68] sm:$0xff] %vm223_vm1, %v6668_v59 }
 0x778   :  { %v6678_v38 = vadd.f32 %v7477_v40, %v15728_v7  ;;  %v6679_v48 = vadd.f32 %v7478_v3, %v15732_v0  ;;  %6733 = vst.msk [vmem:[#allocation20 + $0x70] sm:$0xff] %vm223_vm1, %v6669_v2  ;;  %6734 = vst.msk [vmem:[#allocation20 + $0x78] sm:$0xff] %vm223_vm1, %v6670_v51  ;;  %v7479_v28 = vld [vmem:[#allocation3 + $0xc8] sm:$0xff]  ;;  %v7480_v37 = vld [vmem:[#allocation3 + $0xd0] sm:$0xff] }
 0x779   :  { %6735 = vst.msk [vmem:[#allocation20 + $0x80] sm:$0xff] %vm223_vm1, %v6671_v14  ;;  %v6680_v43 = vadd.f32 %v7479_v28, %v15736_v19  ;;  %v6681_v1 = vadd.f32 %v7480_v37, %v15740_v44  ;;  %v7481_v56 = vld [vmem:[#allocation3 + $0xd8] sm:$0xff]  ;;  %v7482_v18 = vld [vmem:[#allocation3 + $0xe0] sm:$0xff]  ;;  %6736 = vst.msk [vmem:[#allocation20 + $0x88] sm:$0xff] %vm223_vm1, %v6672_v52 }
 0x77a   :  { %v6682_v7 = vadd.f32 %v7481_v56, %v15744_v22  ;;  %v6683_v0 = vadd.f32 %v7482_v18, %v15748_v11  ;;  %6737 = vst.msk [vmem:[#allocation20 + $0x90] sm:$0xff] %vm223_vm1, %v6673_v39  ;;  %6738 = vst.msk [vmem:[#allocation20 + $0x98] sm:$0xff] %vm223_vm1, %v6674_v4  ;;  %v7483_v50 = vld [vmem:[#allocation3 + $0xe8] sm:$0xff]  ;;  %v7484_v53 = vld [vmem:[#allocation3 + $0xf0] sm:$0xff] }
 0x77b   :  { %6739 = vst.msk [vmem:[#allocation20 + $0xa0] sm:$0xff] %vm223_vm1, %v6675_v26  ;;  %v6684_v19 = vadd.f32 %v7483_v50, %v15752_v55  ;;  %v6685_v44 = vadd.f32 %v7484_v53, %v15756_v10  ;;  %v7485_v27 = vld [vmem:[#allocation3 + $0xf8] sm:$0xff]  ;;  %v7486_v35 = vld [vmem:[#allocation3 + $0x100] sm:$0xff]  ;;  %6740 = vst.msk [vmem:[#allocation20 + $0xa8] sm:$0xff] %vm223_vm1, %v6676_v20 }
 0x77c   :  { %v6686_v22 = vadd.f32 %v7485_v27, %v15760_v13  ;;  %v6687_v11 = vadd.f32 %v7486_v35, %v15764_v29  ;;  %6741 = vst.msk [vmem:[#allocation20 + $0xb0] sm:$0xff] %vm223_vm1, %v6677_v34  ;;  %6742 = vst.msk [vmem:[#allocation20 + $0xb8] sm:$0xff] %vm223_vm1, %v6678_v38  ;;  %v7487_v61 = vld [vmem:[#allocation3 + $0x108] sm:$0xff]  ;;  %v7488_v54 = vld [vmem:[#allocation3 + $0x110] sm:$0xff] }
 0x77d   :  { %6743 = vst.msk [vmem:[#allocation20 + $0xc0] sm:$0xff] %vm223_vm1, %v6679_v48  ;;  %v6688_v55 = vadd.f32 %v7487_v61, %v15768_v46  ;;  %v6689_v10 = vadd.f32 %v7488_v54, %v15772_v62  ;;  %v7489_v12 = vld [vmem:[#allocation3 + $0x118] sm:$0xff]  ;;  %v7490_v8 = vld [vmem:[#allocation3 + $0x120] sm:$0xff]  ;;  %6744 = vst.msk [vmem:[#allocation20 + $0xc8] sm:$0xff] %vm223_vm1, %v6680_v43 }
 0x77e   :  { %v6690_v13 = vadd.f32 %v7489_v12, %v15776_v33  ;;  %v6691_v29 = vadd.f32 %v7490_v8, %v15780_v17  ;;  %6745 = vst.msk [vmem:[#allocation20 + $0xd0] sm:$0xff] %vm223_vm1, %v6681_v1  ;;  %6746 = vst.msk [vmem:[#allocation20 + $0xd8] sm:$0xff] %vm223_vm1, %v6682_v7  ;;  %v7491_v36 = vld [vmem:[#allocation3 + $0x128] sm:$0xff]  ;;  %v7492_v59 = vld [vmem:[#allocation3 + $0x130] sm:$0xff] }
 0x77f   :  { %6747 = vst.msk [vmem:[#allocation20 + $0xe0] sm:$0xff] %vm223_vm1, %v6683_v0  ;;  %v6692_v46 = vadd.f32 %v7491_v36, %v15784_v31  ;;  %v6693_v62 = vadd.f32 %v7492_v59, %v15788_v47  ;;  %v7493_v63 = vld [vmem:[#allocation3 + $0x138] sm:$0xff]  ;;  %v7494_v2 = vld [vmem:[#allocation3 + $0x140] sm:$0xff]  ;;  %6748 = vst.msk [vmem:[#allocation20 + $0xe8] sm:$0xff] %vm223_vm1, %v6684_v19 }
 0x780   :  { %v6694_v33 = vadd.f32 %v7493_v63, %v15792_v42  ;;  %v6695_v17 = vadd.f32 %v7494_v2, %v15796_v9  ;;  %6749 = vst.msk [vmem:[#allocation20 + $0xf0] sm:$0xff] %vm223_vm1, %v6685_v44  ;;  %6750 = vst.msk [vmem:[#allocation20 + $0xf8] sm:$0xff] %vm223_vm1, %v6686_v22  ;;  %v7495_v45 = vld [vmem:[#allocation3 + $0x148] sm:$0xff]  ;;  %v7496_v51 = vld [vmem:[#allocation3 + $0x150] sm:$0xff] }
 0x781   :  { %6751 = vst.msk [vmem:[#allocation20 + $0x100] sm:$0xff] %vm223_vm1, %v6687_v11  ;;  %v6696_v31 = vadd.f32 %v7495_v45, %v15800_v60  ;;  %v6697_v47 = vadd.f32 %v7496_v51, %v15804_v30  ;;  %v7497_v24 = vld [vmem:[#allocation3 + $0x158] sm:$0xff]  ;;  %v7498_v14 = vld [vmem:[#allocation3 + $0x160] sm:$0xff]  ;;  %6752 = vst.msk [vmem:[#allocation20 + $0x108] sm:$0xff] %vm223_vm1, %v6688_v55 }
 0x782   :  { %v6698_v42 = vadd.f32 %v7497_v24, %v15808_v15  ;;  %v6699_v9 = vadd.f32 %v7498_v14, %v15812_v5  ;;  %6753 = vst.msk [vmem:[#allocation20 + $0x110] sm:$0xff] %vm223_vm1, %v6689_v10  ;;  %6754 = vst.msk [vmem:[#allocation20 + $0x118] sm:$0xff] %vm223_vm1, %v6690_v13  ;;  %v7499_v57 = vld [vmem:[#allocation3 + $0x168] sm:$0xff]  ;;  %v7500_v52 = vld [vmem:[#allocation3 + $0x170] sm:$0xff] }
 0x783   :  { %6755 = vst.msk [vmem:[#allocation20 + $0x120] sm:$0xff] %vm223_vm1, %v6691_v29  ;;  %v6700_v60 = vadd.f32 %v7499_v57, %v15816_v25  ;;  %v18278_v23 = vld [vmem:[#allocation42_spill] sm:$0xff]  ;;  %v7501_v39 = vld [vmem:[#allocation3 + $0x178] sm:$0xff]  ;;  %6756 = vst.msk [vmem:[#allocation20 + $0x128] sm:$0xff] %vm223_vm1, %v6692_v46 }
 0x784   :  { %v6701_v30 = vadd.f32 %v7500_v52, %v18278_v23  ;;  %v18279_v49 = vld [vmem:[#allocation214_spill] sm:$0xff]  ;;  %v18280_v32 = vld [vmem:[#allocation45_spill] sm:$0xff]  ;;  %6757 = vst.msk [vmem:[#allocation20 + $0x130] sm:$0xff] %vm223_vm1, %v6693_v62  ;;  %6758 = vst.msk [vmem:[#allocation20 + $0x138] sm:$0xff] %vm223_vm1, %v6694_v33 }
 0x785   :  { %v6702_v15 = vadd.f32 %v7501_v39, %v18279_v49  ;;  %v7502_v4 = vld [vmem:[#allocation3 + $0x180] sm:$0xff]  ;;  %6759 = vst.msk [vmem:[#allocation20 + $0x140] sm:$0xff] %vm223_vm1, %v6695_v17  ;;  %v7503_v26 = vld [vmem:[#allocation3 + $0x188] sm:$0xff]  ;;  %v18281_v6 = vld [vmem:[#allocation105_spill] sm:$0xff] }
 0x786   :  { %v6703_v5 = vadd.f32 %v7502_v4, %v18280_v32  ;;  %v6704_v25 = vadd.f32 %v7503_v26, %v18281_v6  ;;  %v7504_v20 = vld [vmem:[#allocation3 + $0x190] sm:$0xff]  ;;  %v18282_v21 = vld [vmem:[#allocation99_spill] sm:$0xff]  ;;  %v7505_v40 = vld [vmem:[#allocation3 + $0x198] sm:$0xff]  ;;  %6760 = vst.msk [vmem:[#allocation20 + $0x148] sm:$0xff] %vm223_vm1, %v6696_v31 }
 0x787   :  { %v6705_v34 = vadd.f32 %v7504_v20, %v18282_v21  ;;  %v6706_v38 = vadd.f32 %v7505_v40, %v15840_v41  ;;  %v7506_v3 = vld [vmem:[#allocation3 + $0x1a0] sm:$0xff]  ;;  %6761 = vst.msk [vmem:[#allocation20 + $0x150] sm:$0xff] %vm223_vm1, %v6697_v47  ;;  %6762 = vst.msk [vmem:[#allocation20 + $0x158] sm:$0xff] %vm223_vm1, %v6698_v42  ;;  %v7507_v28 = vld [vmem:[#allocation3 + $0x1a8] sm:$0xff] }
 0x788   :  { %v6707_v48 = vadd.f32 %v7506_v3, %v15844_v16  ;;  %6763 = vst.msk [vmem:[#allocation20 + $0x160] sm:$0xff] %vm223_vm1, %v6699_v9  ;;  %v6708_v43 = vadd.f32 %v7507_v28, %v15848_v58  ;;  %v7508_v37 = vld [vmem:[#allocation3 + $0x1b0] sm:$0xff]  ;;  %v7509_v56 = vld [vmem:[#allocation3 + $0x1b8] sm:$0xff]  ;;  %v7510_v18 = vld [vmem:[#allocation3 + $0x1c0] sm:$0xff] }
 0x789   :  { %v18283_v1 = vld [vmem:[#allocation84_spill] sm:$0xff]  ;;  %v18284_v7 = vld [vmem:[#allocation89_spill] sm:$0xff]  ;;  %v18285_v0 = vld [vmem:[#allocation171_spill] sm:$0xff]  ;;  %6764 = vst.msk [vmem:[#allocation20 + $0x168] sm:$0xff] %vm223_vm1, %v6700_v60 }
 0x78a   :  { %v6709_v41 = vadd.f32 %v7508_v37, %v18283_v1  ;;  %v6710_v16 = vadd.f32 %v7509_v56, %v18284_v7  ;;  %v6711_v50 = vadd.f32 %v7510_v18, %v18285_v0  ;;  %6765 = vst.msk [vmem:[#allocation20 + $0x170] sm:$0xff] %vm223_vm1, %v6701_v30  ;;  %6766 = vst.msk [vmem:[#allocation20 + $0x178] sm:$0xff] %vm223_vm1, %v6702_v15  ;;  %v7511_v19 = vld [vmem:[#allocation3 + $0x1c8] sm:$0xff]  ;;  %v7512_v44 = vld [vmem:[#allocation3 + $0x1d0] sm:$0xff] }
 0x78b   :  { %6767 = vst.msk [vmem:[#allocation20 + $0x180] sm:$0xff] %vm223_vm1, %v6703_v5  ;;  %v18286_v53 = vld [vmem:[#allocation143_spill] sm:$0xff]  ;;  %v7513_v35 = vld [vmem:[#allocation3 + $0x1d8] sm:$0xff]  ;;  %v18288_v11 = vld [vmem:[#allocation216_spill] sm:$0xff] }
 0x78c   :  { %v6712_v58 = vadd.f32 %v7511_v19, %v18286_v53  ;;  %v18287_v27 = vld [vmem:[#allocation35_spill] sm:$0xff]  ;;  %v6714_v61 = vadd.f32 %v7513_v35, %v18288_v11  ;;  %v7514_v55 = vld [vmem:[#allocation3 + $0x1e0] sm:$0xff]  ;;  %6768 = vst.msk [vmem:[#allocation20 + $0x188] sm:$0xff] %vm223_vm1, %v6704_v25  ;;  %6769 = vst.msk [vmem:[#allocation20 + $0x190] sm:$0xff] %vm223_vm1, %v6705_v34 }
 0x78d   :  { %v6713_v22 = vadd.f32 %v7512_v44, %v18287_v27  ;;  %v18289_v54 = vld [vmem:[#allocation86_spill] sm:$0xff]  ;;  %6770 = vst.msk [vmem:[#allocation20 + $0x198] sm:$0xff] %vm223_vm1, %v6706_v38  ;;  %6771 = vst.msk [vmem:[#allocation20 + $0x1a0] sm:$0xff] %vm223_vm1, %v6707_v48  ;;  %v7515_v12 = vld [vmem:[#allocation3 + $0x1e8] sm:$0xff] }
 0x78e   :  { %v6715_v10 = vadd.f32 %v7514_v55, %v18289_v54  ;;  %v18290_v13 = vld [vmem:[#allocation190_spill] sm:$0xff]  ;;  %v7516_v29 = vld [vmem:[#allocation3 + $0x1f8] sm:$0xff]  ;;  %6772 = vst.msk [vmem:[#allocation20 + $0x1a8] sm:$0xff] %vm223_vm1, %v6708_v43  ;;  %6773 = vst.msk [vmem:[#allocation20 + $0x1b0] sm:$0xff] %vm223_vm1, %v6709_v41 }
 0x78f   :  { %v6716_v8 = vadd.f32 %v7515_v12, %v18290_v13  ;;  %v18291_v36 = vld [vmem:[#allocation165_spill] sm:$0xff]  ;;  %6774 = vst.msk [vmem:[#allocation20 + $0x1b8] sm:$0xff] %vm223_vm1, %v6710_v16  ;;  %6775 = vst.msk [vmem:[#allocation20 + $0x1c0] sm:$0xff] %vm223_vm1, %v6711_v50 }
 0x790   :  { %v6718_v46 = vadd.f32 %v7516_v29, %v18291_v36  ;;  %6776 = vst.msk [vmem:[#allocation20 + $0x1c8] sm:$0xff] %vm223_vm1, %v6712_v58  ;;  %6777 = vst.msk [vmem:[#allocation20 + $0x1d0] sm:$0xff] %vm223_vm1, %v6713_v22 }
 0x791   :  { %6778 = vst.msk [vmem:[#allocation20 + $0x1d8] sm:$0xff] %vm223_vm1, %v6714_v61  ;;  %6779 = vst.msk [vmem:[#allocation20 + $0x1e0] sm:$0xff] %vm223_vm1, %v6715_v10 }
 0x792   :  { %6780 = vst.msk [vmem:[#allocation20 + $0x1e8] sm:$0xff] %vm223_vm1, %v6716_v8  ;;  %6782 = vst.msk [vmem:[#allocation20 + $0x1f8] sm:$0xff] %vm223_vm1, %v6718_v46 }
 0x793   :  { %7748 = shalt.err (!%p7745_p0)
}
 0x794   :  { %s7749_s27 = scalar_lea.hbm %s16040_s10, 8192 }
 0x795   :  { %p7750_p1 = scmp.ne.s32.totalorder %s16040_s10, %s7749_s27  ;;  %p7753_p2 = scmp.lt.u32.totalorder %s7749_s27, %s16040_s10 }
 0x797   :  { %p7755_p3 = pnand %p7753_p2, %p7750_p1 }
 0x799   :  { %7758 = shalt.err (!%p7755_p3)
}
 0x79a   :  { %6794 = dma.vmem_to_hbm [thread:$0]  %s6789_s17, 8192, %s16040_s10, [#allocation5], %s7778_s19, %s7778_s19, %s7779_s21  }
 0x79b   :  { %7771 = dma.done.wait [#allocation5], 8192  }
 0x79c   :  { %7772 = vsyncadd [#allocation5], 4294959104 }
 0x79d   :  { %6798 = vsyncpa [#allocation4], 1 }
 0x79e   :  { %6799 = vsyncpa [#allocation7], 1 }
 0x79f   :  { %6800 = vsyncpa [#allocation10], 1 }
 0x7a0   :  { %6801 = vsyncpa [#allocation13], 1 }
 0x7a1   :  { %6802 = vsyncpa [#allocation16], 1 }
 0x7a2   :  { %6803 = vsyncpa [#allocation19], 1 }
 0x7a3   :  { %6804 = vsyncpa [#allocation5], 1 }

</bundles_post_ra>
